<compile_context>
chip_gen: v7x
topology: tpu7x:2x2x1
jax: 0.10.0
libtpu: 0.0.40
codegen_flags: <defaults>
</compile_context>

<pallas_src>
import jax
import jax.numpy as jnp
from jax.experimental import pallas as pl
from jax.experimental.pallas import tpu as pltpu


def _round_up(x, m):
    return (x + m - 1) // m * m


def _pick_tile(dim, cap, align=128):
    """Largest multiple of `align` <= cap that divides `dim` (dim % align == 0)."""
    best = align
    t = align
    while t <= min(cap, dim):
        if dim % t == 0:
            best = t
        t += align
    return best


# ---------------------------------------------------------------------------
# Pallas kernels
# ---------------------------------------------------------------------------
def _conv_mm_kernel(p_ref, w_ref, scale_ref, shift_ref, o_ref, acc_ref):
    """(TM,TN) tile of: out = relu((patches @ W) * scale + shift).

    p/w are bf16 (MXU-native), accumulation in fp32, output bf16.
    """
    k = pl.program_id(2)

    @pl.when(k == 0)
    def _():
        acc_ref[...] = jnp.zeros_like(acc_ref)

    acc_ref[...] += jnp.dot(p_ref[...], w_ref[...],
                            preferred_element_type=jnp.float32)

    @pl.when(k == pl.num_programs(2) - 1)
    def _():
        y = acc_ref[...] * scale_ref[...] + shift_ref[...]
        o_ref[...] = jnp.maximum(y, 0.0).astype(o_ref.dtype)


def _max4_kernel(a_ref, b_ref, c_ref, d_ref, o_ref):
    """Elementwise max of the 4 window taps of a 2x2 max-pool (lane-dense)."""
    o_ref[...] = jnp.maximum(jnp.maximum(a_ref[...], b_ref[...]),
                             jnp.maximum(c_ref[...], d_ref[...]))


def _cls_logsoftmax_kernel(x_ref, w_ref, b_ref, o_ref):
    """Fused newCnn 1x1-conv (matmul + bias) + row-wise log_softmax."""
    y = jnp.dot(x_ref[...], w_ref[...], preferred_element_type=jnp.float32)
    y = y + b_ref[...]
    m = jnp.max(y, axis=-1, keepdims=True)
    e = jnp.exp(y - m)
    s = jnp.sum(e, axis=-1, keepdims=True)
    o_ref[...] = y - m - jnp.log(s)


# ---------------------------------------------------------------------------
# Pallas-backed building blocks
# ---------------------------------------------------------------------------
def conv_matmul(patches, w_p, scale_p, shift_p):
    """patches:(M,K) bf16, w_p:(Kp,Np) bf16 pre-padded, scale/shift:(1,Np) f32.

    Returns (Mp, Np) bf16; the caller slices the valid region.
    """
    M, K = patches.shape
    Kp, Np = w_p.shape

    tn = _pick_tile(Np, 256)
    tk = _pick_tile(Kp, 512)
    tm = min(512, _round_up(M, 16))
    Mp = _round_up(M, tm)

    # Keep >=2 blocks along a parallel axis when possible (v7x dual TensorCore).
    if Mp // tm == 1 and Np // tn == 1:
        if Np // 128 >= 2:
            tn = _pick_tile(Np, tn // 2)
        elif Mp // 16 >= 2:
            tm = _round_up(Mp // 2, 16)
            Mp = _round_up(M, tm)

    p = patches
    if (Mp, Kp) != (M, K):
        p = jnp.pad(patches, ((0, Mp - M), (0, Kp - K)))

    out = pl.pallas_call(
        _conv_mm_kernel,
        out_shape=jax.ShapeDtypeStruct((Mp, Np), jnp.bfloat16),
        grid_spec=pltpu.PrefetchScalarGridSpec(
            num_scalar_prefetch=0,
            grid=(Mp // tm, Np // tn, Kp // tk),
            in_specs=[
                pl.BlockSpec((tm, tk), lambda i, j, k: (i, k)),
                pl.BlockSpec((tk, tn), lambda i, j, k: (k, j)),
                pl.BlockSpec((1, tn), lambda i, j, k: (0, j)),
                pl.BlockSpec((1, tn), lambda i, j, k: (0, j)),
            ],
            out_specs=pl.BlockSpec((tm, tn), lambda i, j, k: (i, j)),
            scratch_shapes=[pltpu.VMEM((tm, tn), jnp.float32)],
        ),
        compiler_params=pltpu.CompilerParams(
            dimension_semantics=("parallel", "parallel", "arbitrary")),
    )(p, w_p, scale_p, shift_p)
    return out


def _im2col(x_nhwc, kh, kw, stride, pad):
    N, H, W, C = x_nhwc.shape
    xp = jnp.pad(x_nhwc, ((0, 0), (pad, pad), (pad, pad), (0, 0)))
    Ho = (H + 2 * pad - kh) // stride + 1
    Wo = (W + 2 * pad - kw) // stride + 1
    cols = []
    for dy in range(kh):
        for dx in range(kw):
            cols.append(xp[:, dy:dy + stride * (Ho - 1) + 1:stride,
                           dx:dx + stride * (Wo - 1) + 1:stride, :])
    patches = jnp.concatenate(cols, axis=-1)  # (N, Ho, Wo, kh*kw*C), bf16
    return patches.reshape(N * Ho * Wo, kh * kw * C), (N, Ho, Wo)


def conv_bn_relu(x_nhwc, layer):
    """Conv2d + (folded, inference-mode) BatchNorm + ReLU via im2col + MXU matmul."""
    k = layer["k"]
    patches, (N, Ho, Wo) = _im2col(x_nhwc, k, k, layer["stride"], layer["pad"])
    out = conv_matmul(patches, layer["w"], layer["scale"], layer["shift"])
    M = N * Ho * Wo
    Cout = layer["n_out"]
    return out[:M, :Cout].reshape(N, Ho, Wo, Cout)


def maxpool2x2(x_nhwc, stride, pad):
    """MaxPool2d with kernel 2x2, stride=(sh,sw), padding=(ph,pw), lane-dense."""
    N, H, W, C = x_nhwc.shape
    sh, sw = stride
    ph, pw = pad
    neg = float(jnp.finfo(x_nhwc.dtype).min)
    xp = jnp.pad(x_nhwc, ((0, 0), (ph, ph), (pw, pw), (0, 0)), constant_values=neg)
    Hp, Wp = H + 2 * ph, W + 2 * pw
    Ho = (Hp - 2) // sh + 1
    Wo = (Wp - 2) // sw + 1

    # Flatten to (N*Ho, Wo*C): last dim is a multiple of 128 in practice -> unmasked stores.
    R, L = N * Ho, Wo * C
    itemsize = x_nhwc.dtype.itemsize
    max_tr = max(16, ((1 << 20) // max(1, L * itemsize)) // 16 * 16)
    tr = min(256, max_tr, _round_up(R, 16))
    Rp = _round_up(R, tr)

    slabs = []
    for dy in range(2):
        for dx in range(2):
            s = xp[:, dy:dy + sh * (Ho - 1) + 1:sh,
                   dx:dx + sw * (Wo - 1) + 1:sw, :].reshape(R, L)
            if Rp != R:
                s = jnp.pad(s, ((0, Rp - R), (0, 0)))
            slabs.append(s)

    out = pl.pallas_call(
        _max4_kernel,
        out_shape=jax.ShapeDtypeStruct((Rp, L), x_nhwc.dtype),
        grid_spec=pltpu.PrefetchScalarGridSpec(
            num_scalar_prefetch=0,
            grid=(Rp // tr,),
            in_specs=[pl.BlockSpec((tr, L), lambda i: (i, 0))] * 4,
            out_specs=pl.BlockSpec((tr, L), lambda i: (i, 0)),
        ),
        compiler_params=pltpu.CompilerParams(
            dimension_semantics=("parallel",)),
    )(*slabs)
    return out[:R].reshape(N, Ho, Wo, C)


def classifier_logsoftmax(x2d, w_p, b_p, nclass):
    """x2d:(M,512) bf16, w_p:(512,Np) bf16, b_p:(1,Np) f32 (-1e30 on padded cols).

    Returns fp32 log_softmax logits (M, nclass).
    """
    M, K = x2d.shape
    Kp, Np = w_p.shape
    tm = min(256, _round_up(M, 16))
    Mp = _round_up(M, tm)
    xp = x2d
    if (Mp, Kp) != (M, K):
        xp = jnp.pad(x2d, ((0, Mp - M), (0, Kp - K)))

    out = pl.pallas_call(
        _cls_logsoftmax_kernel,
        out_shape=jax.ShapeDtypeStruct((Mp, Np), jnp.float32),
        grid_spec=pltpu.PrefetchScalarGridSpec(
            num_scalar_prefetch=0,
            grid=(Mp // tm,),
            in_specs=[
                pl.BlockSpec((tm, Kp), lambda i: (i, 0)),
                pl.BlockSpec((Kp, Np), lambda i: (0, 0)),
                pl.BlockSpec((1, Np), lambda i: (0, 0)),
            ],
            out_specs=pl.BlockSpec((tm, Np), lambda i: (i, 0)),
        ),
        compiler_params=pltpu.CompilerParams(
            dimension_semantics=("parallel",)),
    )(xp, w_p, b_p)
    return out[:M, :nclass]


# ---------------------------------------------------------------------------
# CRNN parameters
# ---------------------------------------------------------------------------
_KS = [3, 3, 3, 3, 3, 3, 2]
_PS = [1, 1, 1, 1, 1, 1, 0]
_SS = [1, 1, 1, 1, 1, 1, 1]
_NM = [64, 128, 256, 256, 512, 512, 512]
_BN_LAYERS = (2, 4, 6)


def init_params(key, nc, nclass):
    params = {}
    keys = jax.random.split(key, 9)
    n_in = nc
    for i in range(7):
        fan_in = n_in * _KS[i] * _KS[i]
        params[f"conv{i}_w"] = (
            jax.random.normal(keys[i], (_NM[i], n_in, _KS[i], _KS[i]),
                              jnp.float32) * jnp.sqrt(2.0 / fan_in))
        params[f"conv{i}_b"] = jnp.zeros((_NM[i],), jnp.float32)
        if i in _BN_LAYERS:
            params[f"bn{i}"] = (jnp.ones((_NM[i],), jnp.float32),   # gamma
                                jnp.zeros((_NM[i],), jnp.float32),  # beta
                                jnp.zeros((_NM[i],), jnp.float32),  # running_mean
                                jnp.ones((_NM[i],), jnp.float32),   # running_var
                                1e-5)
        n_in = _NM[i]
    params["newcnn_w"] = (jax.random.normal(keys[7], (nclass, 512, 1, 1),
                                            jnp.float32) * jnp.sqrt(1.0 / 512))
    params["newcnn_b"] = jax.random.normal(keys[8], (nclass,), jnp.float32) * 0.01
    return params


def prepare_inference_params(params, nclass):
    """One-time (per parameter set) preprocessing hoisted out of the forward:
    fold BN into scale/shift, transpose + pad weights and cast to bf16."""
    prep = {"layers": [], "nclass": nclass}
    for i in range(7):
        w = params[f"conv{i}_w"]          # (Cout, Cin, kh, kw)
        b = params[f"conv{i}_b"]
        Cout, Cin, kh, kw = w.shape
        K, N = kh * kw * Cin, Cout
        if i in _BN_LAYERS:
            gamma, beta, mean, var, eps = params[f"bn{i}"]
            s = gamma / jnp.sqrt(var + eps)
            scale = s
            shift = (b - mean) * s + beta
        else:
            scale = jnp.ones((Cout,), jnp.float32)
            shift = b
        Kp, Np = _round_up(K, 128), _round_up(N, 128)
        # (Cout, Cin, kh, kw) -> (kh, kw, Cin, Cout) -> (kh*kw*Cin, Cout)
        w2 = jnp.transpose(w, (2, 3, 1, 0)).reshape(K, N)
        w_p = jnp.pad(w2, ((0, Kp - K), (0, Np - N))).astype(jnp.bfloat16)
        scale_p = jnp.pad(scale.astype(jnp.float32), (0, Np - N)).reshape(1, Np)
        shift_p = jnp.pad(shift.astype(jnp.float32), (0, Np - N)).reshape(1, Np)
        prep["layers"].append(dict(k=kh, stride=_SS[i], pad=_PS[i], n_out=N,
                                   w=w_p, scale=scale_p, shift=shift_p))
    # newCnn 1x1 conv (512 -> nclass), fused later with log_softmax.
    wN = params["newcnn_w"].reshape(nclass, 512)
    bN = params["newcnn_b"]
    Np = _round_up(nclass, 128)
    prep["cls_w"] = jnp.pad(jnp.transpose(wN),
                            ((0, 0), (0, Np - nclass))).astype(jnp.bfloat16)
    # Padded classes get a huge negative bias so they vanish in the softmax.
    prep["cls_b"] = jnp.full((1, Np), -1e30, jnp.float32).at[0, :nclass].set(
        bN.astype(jnp.float32))
    return prep


# ---------------------------------------------------------------------------
# CRNN forward
# ---------------------------------------------------------------------------
def crnn_forward(x_nchw, prep):
    # NCHW (PyTorch) -> NHWC (kernel layout), bf16 activations.
    x = jnp.transpose(x_nchw, (0, 2, 3, 1)).astype(jnp.bfloat16)

    for i in range(7):
        x = conv_bn_relu(x, prep["layers"][i])
        if i in (0, 1):
            x = maxpool2x2(x, (2, 2), (0, 0))
        elif i in (3, 5):
            x = maxpool2x2(x, (2, 1), (0, 1))

    N, H, W, C = x.shape
    assert H == 1, "the height of conv must be 1"
    nclass = prep["nclass"]
    # Fused newCnn (1x1 conv) + log_softmax over classes.
    logits = classifier_logsoftmax(x.reshape(N * W, C),
                                   prep["cls_w"], prep["cls_b"], nclass)
    # (b*w, c) -> (b, w, c) -> (T=w, b, c)   (matches squeeze(2).permute(2,0,1))
    return jnp.transpose(logits.reshape(N, W, nclass), (1, 0, 2))


if __name__ == "__main__":
    # imgH must be a multiple of 16 and >= 32 for the h==1 assertion to hold.
    batch, nc, imgH, imgW = 2, 1, 32, 32
    nclass, nh = 37, 32  # nh unused: the LSTM stack is not called in forward

    key = jax.random.PRNGKey(0)
    k_x, k_p = jax.random.split(key)
    x = jax.random.normal(k_x, (batch, nc, imgH, imgW), jnp.float32)
    params = init_params(k_p, nc, nclass)
    prep = prepare_inference_params(params, nclass)   # hoisted out of forward

    fwd = jax.jit(lambda inp: crnn_forward(inp, prep))
    out = jax.block_until_ready(fwd(x))

    assert out.shape == (imgW // 4 + 1, batch, nclass), out.shape
    assert bool(jnp.all(jnp.isfinite(out)))
    # log_softmax rows must (log-)sum to ~0
    assert bool(jnp.max(jnp.abs(jax.scipy.special.logsumexp(out, axis=2))) < 1e-3)
    print("KERNEL_OK")
</pallas_src>

<mosaic_0001>
module attributes {stable_mosaic.version = 11 : i64} {
  func.func @_conv_mm_kernel(%arg0: i32, %arg1: i32, %arg2: i32, %arg3: memref<512x128xbf16, #tpu.memory_space<vmem>>, %arg4: memref<128x128xbf16, #tpu.memory_space<vmem>>, %arg5: memref<1x128xf32, #tpu.memory_space<vmem>>, %arg6: memref<1x128xf32, #tpu.memory_space<vmem>>, %arg7: memref<512x128xbf16, #tpu.memory_space<vmem>>, %arg8: memref<512x128xf32, #tpu.memory_space<vmem>>) attributes {dimension_semantics = [#tpu.dimension_semantics<parallel>, #tpu.dimension_semantics<parallel>, #tpu.dimension_semantics<arbitrary>], iteration_bounds = array<i64: 4, 1, 1>, scalar_prefetch = 0 : i64, scratch_operands = 1 : i64, tpu.core_type = #tpu.core_type<tc>, window_params = [{transform_indices = @transform_0, window_bounds = array<i64: 512, 128>}, {transform_indices = @transform_1, window_bounds = array<i64: 128, 128>}, {transform_indices = @transform_2, window_bounds = array<i64: 1, 128>}, {transform_indices = @transform_3, window_bounds = array<i64: 1, 128>}, {transform_indices = @transform_4, window_bounds = array<i64: 512, 128>}]} {
    %c0_i32 = arith.constant 0 : i32
    %0 = arith.cmpi eq, %arg2, %c0_i32 : i32
    %1 = arith.extui %0 : i1 to i32
    %c0_i32_0 = arith.constant 0 : i32
    %2 = arith.cmpi ne, %1, %c0_i32_0 : i32
    scf.if %2 {
      %cst_10 = arith.constant 0.000000e+00 : f32
      %12 = vector.broadcast %cst_10 : f32 to vector<512x128xf32>
      %c0_11 = arith.constant 0 : index
      %c0_12 = arith.constant 0 : index
      %13 = vector.load %arg8[%c0_11, %c0_12] : memref<512x128xf32, #tpu.memory_space<vmem>>, vector<512x128xf32>
      tpu.vector_store %arg8[%c0_11, %c0_12], %12 {strides = array<i32>} : memref<512x128xf32, #tpu.memory_space<vmem>>, vector<512x128xf32>,
    } else {
    }
    %c0 = arith.constant 0 : index
    %c0_1 = arith.constant 0 : index
    %3 = vector.load %arg8[%c0, %c0_1] : memref<512x128xf32, #tpu.memory_space<vmem>>, vector<512x128xf32>
    %c0_2 = arith.constant 0 : index
    %c0_3 = arith.constant 0 : index
    %4 = vector.load %arg3[%c0_2, %c0_3] : memref<512x128xbf16, #tpu.memory_space<vmem>>, vector<512x128xbf16>
    %c0_4 = arith.constant 0 : index
    %c0_5 = arith.constant 0 : index
    %5 = vector.load %arg4[%c0_4, %c0_5] : memref<128x128xbf16, #tpu.memory_space<vmem>>, vector<128x128xbf16>
    %cst = arith.constant dense<0.000000e+00> : vector<512x128xf32>
    %6 = tpu.matmul %4, %5, %cst {dimension_numbers = #tpu.dot_dimension_numbers<[1], [0], [0], [1], [0, 0, 1, 1], [], []>} : vector<512x128xbf16>, vector<128x128xbf16>, vector<512x128xf32> -> vector<512x128xf32>
    %7 = arith.addf %3, %6 : vector<512x128xf32>
    %c0_6 = arith.constant 0 : index
    %c0_7 = arith.constant 0 : index
    %8 = vector.load %arg8[%c0_6, %c0_7] : memref<512x128xf32, #tpu.memory_space<vmem>>, vector<512x128xf32>
    tpu.vector_store %arg8[%c0_6, %c0_7], %7 {strides = array<i32>} : memref<512x128xf32, #tpu.memory_space<vmem>>, vector<512x128xf32>,
    %c0_i32_8 = arith.constant 0 : i32
    %9 = arith.cmpi eq, %arg2, %c0_i32_8 : i32
    %10 = arith.extui %9 : i1 to i32
    %c0_i32_9 = arith.constant 0 : i32
    %11 = arith.cmpi ne, %10, %c0_i32_9 : i32
    scf.if %11 {
      %c0_10 = arith.constant 0 : index
      %c0_11 = arith.constant 0 : index
      %12 = vector.load %arg8[%c0_10, %c0_11] : memref<512x128xf32, #tpu.memory_space<vmem>>, vector<512x128xf32>
      %c0_12 = arith.constant 0 : index
      %c0_13 = arith.constant 0 : index
      %13 = vector.load %arg5[%c0_12, %c0_13] : memref<1x128xf32, #tpu.memory_space<vmem>>, vector<1x128xf32>
      %14 = vector.broadcast %13 : vector<1x128xf32> to vector<512x128xf32>
      %15 = arith.mulf %12, %14 : vector<512x128xf32>
      %c0_14 = arith.constant 0 : index
      %c0_15 = arith.constant 0 : index
      %16 = vector.load %arg6[%c0_14, %c0_15] : memref<1x128xf32, #tpu.memory_space<vmem>>, vector<1x128xf32>
      %17 = vector.broadcast %16 : vector<1x128xf32> to vector<512x128xf32>
      %18 = arith.addf %15, %17 : vector<512x128xf32>
      %cst_16 = arith.constant 0.000000e+00 : f32
      %19 = vector.broadcast %cst_16 : f32 to vector<512x128xf32>
      %20 = arith.maximumf %18, %19 : vector<512x128xf32>
      %21 = arith.truncf %20 : vector<512x128xf32> to vector<512x128xbf16>
      %c0_17 = arith.constant 0 : index
      %c0_18 = arith.constant 0 : index
      %22 = vector.load %arg7[%c0_17, %c0_18] : memref<512x128xbf16, #tpu.memory_space<vmem>>, vector<512x128xbf16>
      tpu.vector_store %arg7[%c0_17, %c0_18], %21 {strides = array<i32>} : memref<512x128xbf16, #tpu.memory_space<vmem>>, vector<512x128xbf16>,
    } else {
    }
    return
  }
  func.func @transform_0(%arg0: i32, %arg1: i32, %arg2: i32) -> (i32, i32) {
    %c0_i32 = arith.constant 0 : i32
    return %arg0, %arg2 : i32, i32
  }
  func.func @transform_1(%arg0: i32, %arg1: i32, %arg2: i32) -> (i32, i32) {
    %c0_i32 = arith.constant 0 : i32
    return %arg2, %arg1 : i32, i32
  }
  func.func @transform_2(%arg0: i32, %arg1: i32, %arg2: i32) -> (i32, i32) {
    %c0_i32 = arith.constant 0 : i32
    %c0_i32_0 = arith.constant 0 : i32
    return %c0_i32, %arg1 : i32, i32
  }
  func.func @transform_3(%arg0: i32, %arg1: i32, %arg2: i32) -> (i32, i32) {
    %c0_i32 = arith.constant 0 : i32
    %c0_i32_0 = arith.constant 0 : i32
    return %c0_i32, %arg1 : i32, i32
  }
  func.func @transform_4(%arg0: i32, %arg1: i32, %arg2: i32) -> (i32, i32) {
    %c0_i32 = arith.constant 0 : i32
    return %arg0, %arg1 : i32, i32
  }
}

module attributes {stable_mosaic.version = 11 : i64} {
  func.func @_max4_kernel(%arg0: i32, %arg1: memref<32x1024xbf16, #tpu.memory_space<vmem>>, %arg2: memref<32x1024xbf16, #tpu.memory_space<vmem>>, %arg3: memref<32x1024xbf16, #tpu.memory_space<vmem>>, %arg4: memref<32x1024xbf16, #tpu.memory_space<vmem>>, %arg5: memref<32x1024xbf16, #tpu.memory_space<vmem>>) attributes {dimension_semantics = [#tpu.dimension_semantics<parallel>], iteration_bounds = array<i64: 1>, scalar_prefetch = 0 : i64, scratch_operands = 0 : i64, tpu.core_type = #tpu.core_type<tc>, window_params = [{transform_indices = @transform_0, window_bounds = array<i64: 32, 1024>}, {transform_indices = @transform_1, window_bounds = array<i64: 32, 1024>}, {transform_indices = @transform_2, window_bounds = array<i64: 32, 1024>}, {transform_indices = @transform_3, window_bounds = array<i64: 32, 1024>}, {transform_indices = @transform_4, window_bounds = array<i64: 32, 1024>}]} {
    %c0 = arith.constant 0 : index
    %c0_0 = arith.constant 0 : index
    %0 = vector.load %arg1[%c0, %c0_0] : memref<32x1024xbf16, #tpu.memory_space<vmem>>, vector<32x1024xbf16>
    %c0_1 = arith.constant 0 : index
    %c0_2 = arith.constant 0 : index
    %1 = vector.load %arg2[%c0_1, %c0_2] : memref<32x1024xbf16, #tpu.memory_space<vmem>>, vector<32x1024xbf16>
    %2 = arith.maximumf %0, %1 : vector<32x1024xbf16>
    %c0_3 = arith.constant 0 : index
    %c0_4 = arith.constant 0 : index
    %3 = vector.load %arg3[%c0_3, %c0_4] : memref<32x1024xbf16, #tpu.memory_space<vmem>>, vector<32x1024xbf16>
    %c0_5 = arith.constant 0 : index
    %c0_6 = arith.constant 0 : index
    %4 = vector.load %arg4[%c0_5, %c0_6] : memref<32x1024xbf16, #tpu.memory_space<vmem>>, vector<32x1024xbf16>
    %5 = arith.maximumf %3, %4 : vector<32x1024xbf16>
    %6 = arith.maximumf %2, %5 : vector<32x1024xbf16>
    %c0_7 = arith.constant 0 : index
    %c0_8 = arith.constant 0 : index
    %7 = vector.load %arg5[%c0_7, %c0_8] : memref<32x1024xbf16, #tpu.memory_space<vmem>>, vector<32x1024xbf16>
    tpu.vector_store %arg5[%c0_7, %c0_8], %6 {strides = array<i32>} : memref<32x1024xbf16, #tpu.memory_space<vmem>>, vector<32x1024xbf16>,
    return
  }
  func.func @transform_0(%arg0: i32) -> (i32, i32) {
    %c0_i32 = arith.constant 0 : i32
    %c0_i32_0 = arith.constant 0 : i32
    return %arg0, %c0_i32 : i32, i32
  }
  func.func @transform_1(%arg0: i32) -> (i32, i32) {
    %c0_i32 = arith.constant 0 : i32
    %c0_i32_0 = arith.constant 0 : i32
    return %arg0, %c0_i32 : i32, i32
  }
  func.func @transform_2(%arg0: i32) -> (i32, i32) {
    %c0_i32 = arith.constant 0 : i32
    %c0_i32_0 = arith.constant 0 : i32
    return %arg0, %c0_i32 : i32, i32
  }
  func.func @transform_3(%arg0: i32) -> (i32, i32) {
    %c0_i32 = arith.constant 0 : i32
    %c0_i32_0 = arith.constant 0 : i32
    return %arg0, %c0_i32 : i32, i32
  }
  func.func @transform_4(%arg0: i32) -> (i32, i32) {
    %c0_i32 = arith.constant 0 : i32
    %c0_i32_0 = arith.constant 0 : i32
    return %arg0, %c0_i32 : i32, i32
  }
}

module attributes {stable_mosaic.version = 11 : i64} {
  func.func @_conv_mm_kernel(%arg0: i32, %arg1: i32, %arg2: i32, %arg3: memref<256x128xbf16, #tpu.memory_space<vmem>>, %arg4: memref<128x128xbf16, #tpu.memory_space<vmem>>, %arg5: memref<1x128xf32, #tpu.memory_space<vmem>>, %arg6: memref<1x128xf32, #tpu.memory_space<vmem>>, %arg7: memref<256x128xbf16, #tpu.memory_space<vmem>>, %arg8: memref<256x128xf32, #tpu.memory_space<vmem>>) attributes {dimension_semantics = [#tpu.dimension_semantics<parallel>, #tpu.dimension_semantics<parallel>, #tpu.dimension_semantics<arbitrary>], iteration_bounds = array<i64: 2, 1, 5>, scalar_prefetch = 0 : i64, scratch_operands = 1 : i64, tpu.core_type = #tpu.core_type<tc>, window_params = [{transform_indices = @transform_0, window_bounds = array<i64: 256, 128>}, {transform_indices = @transform_1, window_bounds = array<i64: 128, 128>}, {transform_indices = @transform_2, window_bounds = array<i64: 1, 128>}, {transform_indices = @transform_3, window_bounds = array<i64: 1, 128>}, {transform_indices = @transform_4, window_bounds = array<i64: 256, 128>}]} {
    %c0_i32 = arith.constant 0 : i32
    %0 = arith.cmpi eq, %arg2, %c0_i32 : i32
    %1 = arith.extui %0 : i1 to i32
    %c0_i32_0 = arith.constant 0 : i32
    %2 = arith.cmpi ne, %1, %c0_i32_0 : i32
    scf.if %2 {
      %cst_9 = arith.constant 0.000000e+00 : f32
      %12 = vector.broadcast %cst_9 : f32 to vector<256x128xf32>
      %c0_10 = arith.constant 0 : index
      %c0_11 = arith.constant 0 : index
      %13 = vector.load %arg8[%c0_10, %c0_11] : memref<256x128xf32, #tpu.memory_space<vmem>>, vector<256x128xf32>
      tpu.vector_store %arg8[%c0_10, %c0_11], %12 {strides = array<i32>} : memref<256x128xf32, #tpu.memory_space<vmem>>, vector<256x128xf32>,
    } else {
    }
    %c0 = arith.constant 0 : index
    %c0_1 = arith.constant 0 : index
    %3 = vector.load %arg8[%c0, %c0_1] : memref<256x128xf32, #tpu.memory_space<vmem>>, vector<256x128xf32>
    %c0_2 = arith.constant 0 : index
    %c0_3 = arith.constant 0 : index
    %4 = vector.load %arg3[%c0_2, %c0_3] : memref<256x128xbf16, #tpu.memory_space<vmem>>, vector<256x128xbf16>
    %c0_4 = arith.constant 0 : index
    %c0_5 = arith.constant 0 : index
    %5 = vector.load %arg4[%c0_4, %c0_5] : memref<128x128xbf16, #tpu.memory_space<vmem>>, vector<128x128xbf16>
    %cst = arith.constant dense<0.000000e+00> : vector<256x128xf32>
    %6 = tpu.matmul %4, %5, %cst {dimension_numbers = #tpu.dot_dimension_numbers<[1], [0], [0], [1], [0, 0, 1, 1], [], []>} : vector<256x128xbf16>, vector<128x128xbf16>, vector<256x128xf32> -> vector<256x128xf32>
    %7 = arith.addf %3, %6 : vector<256x128xf32>
    %c0_6 = arith.constant 0 : index
    %c0_7 = arith.constant 0 : index
    %8 = vector.load %arg8[%c0_6, %c0_7] : memref<256x128xf32, #tpu.memory_space<vmem>>, vector<256x128xf32>
    tpu.vector_store %arg8[%c0_6, %c0_7], %7 {strides = array<i32>} : memref<256x128xf32, #tpu.memory_space<vmem>>, vector<256x128xf32>,
    %c4_i32 = arith.constant 4 : i32
    %9 = arith.cmpi eq, %arg2, %c4_i32 : i32
    %10 = arith.extui %9 : i1 to i32
    %c0_i32_8 = arith.constant 0 : i32
    %11 = arith.cmpi ne, %10, %c0_i32_8 : i32
    scf.if %11 {
      %c0_9 = arith.constant 0 : index
      %c0_10 = arith.constant 0 : index
      %12 = vector.load %arg8[%c0_9, %c0_10] : memref<256x128xf32, #tpu.memory_space<vmem>>, vector<256x128xf32>
      %c0_11 = arith.constant 0 : index
      %c0_12 = arith.constant 0 : index
      %13 = vector.load %arg5[%c0_11, %c0_12] : memref<1x128xf32, #tpu.memory_space<vmem>>, vector<1x128xf32>
      %14 = vector.broadcast %13 : vector<1x128xf32> to vector<256x128xf32>
      %15 = arith.mulf %12, %14 : vector<256x128xf32>
      %c0_13 = arith.constant 0 : index
      %c0_14 = arith.constant 0 : index
      %16 = vector.load %arg6[%c0_13, %c0_14] : memref<1x128xf32, #tpu.memory_space<vmem>>, vector<1x128xf32>
      %17 = vector.broadcast %16 : vector<1x128xf32> to vector<256x128xf32>
      %18 = arith.addf %15, %17 : vector<256x128xf32>
      %cst_15 = arith.constant 0.000000e+00 : f32
      %19 = vector.broadcast %cst_15 : f32 to vector<256x128xf32>
      %20 = arith.maximumf %18, %19 : vector<256x128xf32>
      %21 = arith.truncf %20 : vector<256x128xf32> to vector<256x128xbf16>
      %c0_16 = arith.constant 0 : index
      %c0_17 = arith.constant 0 : index
      %22 = vector.load %arg7[%c0_16, %c0_17] : memref<256x128xbf16, #tpu.memory_space<vmem>>, vector<256x128xbf16>
      tpu.vector_store %arg7[%c0_16, %c0_17], %21 {strides = array<i32>} : memref<256x128xbf16, #tpu.memory_space<vmem>>, vector<256x128xbf16>,
    } else {
    }
    return
  }
  func.func @transform_0(%arg0: i32, %arg1: i32, %arg2: i32) -> (i32, i32) {
    %c0_i32 = arith.constant 0 : i32
    return %arg0, %arg2 : i32, i32
  }
  func.func @transform_1(%arg0: i32, %arg1: i32, %arg2: i32) -> (i32, i32) {
    %c0_i32 = arith.constant 0 : i32
    return %arg2, %arg1 : i32, i32
  }
  func.func @transform_2(%arg0: i32, %arg1: i32, %arg2: i32) -> (i32, i32) {
    %c0_i32 = arith.constant 0 : i32
    %c0_i32_0 = arith.constant 0 : i32
    return %c0_i32, %arg1 : i32, i32
  }
  func.func @transform_3(%arg0: i32, %arg1: i32, %arg2: i32) -> (i32, i32) {
    %c0_i32 = arith.constant 0 : i32
    %c0_i32_0 = arith.constant 0 : i32
    return %c0_i32, %arg1 : i32, i32
  }
  func.func @transform_4(%arg0: i32, %arg1: i32, %arg2: i32) -> (i32, i32) {
    %c0_i32 = arith.constant 0 : i32
    return %arg0, %arg1 : i32, i32
  }
}

module attributes {stable_mosaic.version = 11 : i64} {
  func.func @_max4_kernel(%arg0: i32, %arg1: memref<16x1024xbf16, #tpu.memory_space<vmem>>, %arg2: memref<16x1024xbf16, #tpu.memory_space<vmem>>, %arg3: memref<16x1024xbf16, #tpu.memory_space<vmem>>, %arg4: memref<16x1024xbf16, #tpu.memory_space<vmem>>, %arg5: memref<16x1024xbf16, #tpu.memory_space<vmem>>) attributes {dimension_semantics = [#tpu.dimension_semantics<parallel>], iteration_bounds = array<i64: 1>, scalar_prefetch = 0 : i64, scratch_operands = 0 : i64, tpu.core_type = #tpu.core_type<tc>, window_params = [{transform_indices = @transform_0, window_bounds = array<i64: 16, 1024>}, {transform_indices = @transform_1, window_bounds = array<i64: 16, 1024>}, {transform_indices = @transform_2, window_bounds = array<i64: 16, 1024>}, {transform_indices = @transform_3, window_bounds = array<i64: 16, 1024>}, {transform_indices = @transform_4, window_bounds = array<i64: 16, 1024>}]} {
    %c0 = arith.constant 0 : index
    %c0_0 = arith.constant 0 : index
    %0 = vector.load %arg1[%c0, %c0_0] : memref<16x1024xbf16, #tpu.memory_space<vmem>>, vector<16x1024xbf16>
    %c0_1 = arith.constant 0 : index
    %c0_2 = arith.constant 0 : index
    %1 = vector.load %arg2[%c0_1, %c0_2] : memref<16x1024xbf16, #tpu.memory_space<vmem>>, vector<16x1024xbf16>
    %2 = arith.maximumf %0, %1 : vector<16x1024xbf16>
    %c0_3 = arith.constant 0 : index
    %c0_4 = arith.constant 0 : index
    %3 = vector.load %arg3[%c0_3, %c0_4] : memref<16x1024xbf16, #tpu.memory_space<vmem>>, vector<16x1024xbf16>
    %c0_5 = arith.constant 0 : index
    %c0_6 = arith.constant 0 : index
    %4 = vector.load %arg4[%c0_5, %c0_6] : memref<16x1024xbf16, #tpu.memory_space<vmem>>, vector<16x1024xbf16>
    %5 = arith.maximumf %3, %4 : vector<16x1024xbf16>
    %6 = arith.maximumf %2, %5 : vector<16x1024xbf16>
    %c0_7 = arith.constant 0 : index
    %c0_8 = arith.constant 0 : index
    %7 = vector.load %arg5[%c0_7, %c0_8] : memref<16x1024xbf16, #tpu.memory_space<vmem>>, vector<16x1024xbf16>
    tpu.vector_store %arg5[%c0_7, %c0_8], %6 {strides = array<i32>} : memref<16x1024xbf16, #tpu.memory_space<vmem>>, vector<16x1024xbf16>,
    return
  }
  func.func @transform_0(%arg0: i32) -> (i32, i32) {
    %c0_i32 = arith.constant 0 : i32
    %c0_i32_0 = arith.constant 0 : i32
    return %arg0, %c0_i32 : i32, i32
  }
  func.func @transform_1(%arg0: i32) -> (i32, i32) {
    %c0_i32 = arith.constant 0 : i32
    %c0_i32_0 = arith.constant 0 : i32
    return %arg0, %c0_i32 : i32, i32
  }
  func.func @transform_2(%arg0: i32) -> (i32, i32) {
    %c0_i32 = arith.constant 0 : i32
    %c0_i32_0 = arith.constant 0 : i32
    return %arg0, %c0_i32 : i32, i32
  }
  func.func @transform_3(%arg0: i32) -> (i32, i32) {
    %c0_i32 = arith.constant 0 : i32
    %c0_i32_0 = arith.constant 0 : i32
    return %arg0, %c0_i32 : i32, i32
  }
  func.func @transform_4(%arg0: i32) -> (i32, i32) {
    %c0_i32 = arith.constant 0 : i32
    %c0_i32_0 = arith.constant 0 : i32
    return %arg0, %c0_i32 : i32, i32
  }
}

module attributes {stable_mosaic.version = 11 : i64} {
  func.func @_conv_mm_kernel(%arg0: i32, %arg1: i32, %arg2: i32, %arg3: memref<128x384xbf16, #tpu.memory_space<vmem>>, %arg4: memref<384x128xbf16, #tpu.memory_space<vmem>>, %arg5: memref<1x128xf32, #tpu.memory_space<vmem>>, %arg6: memref<1x128xf32, #tpu.memory_space<vmem>>, %arg7: memref<128x128xbf16, #tpu.memory_space<vmem>>, %arg8: memref<128x128xf32, #tpu.memory_space<vmem>>) attributes {dimension_semantics = [#tpu.dimension_semantics<parallel>, #tpu.dimension_semantics<parallel>, #tpu.dimension_semantics<arbitrary>], iteration_bounds = array<i64: 1, 2, 3>, scalar_prefetch = 0 : i64, scratch_operands = 1 : i64, tpu.core_type = #tpu.core_type<tc>, window_params = [{transform_indices = @transform_0, window_bounds = array<i64: 128, 384>}, {transform_indices = @transform_1, window_bounds = array<i64: 384, 128>}, {transform_indices = @transform_2, window_bounds = array<i64: 1, 128>}, {transform_indices = @transform_3, window_bounds = array<i64: 1, 128>}, {transform_indices = @transform_4, window_bounds = array<i64: 128, 128>}]} {
    %c0_i32 = arith.constant 0 : i32
    %0 = arith.cmpi eq, %arg2, %c0_i32 : i32
    %1 = arith.extui %0 : i1 to i32
    %c0_i32_0 = arith.constant 0 : i32
    %2 = arith.cmpi ne, %1, %c0_i32_0 : i32
    scf.if %2 {
      %cst_9 = arith.constant 0.000000e+00 : f32
      %12 = vector.broadcast %cst_9 : f32 to vector<128x128xf32>
      %c0_10 = arith.constant 0 : index
      %c0_11 = arith.constant 0 : index
      %13 = vector.load %arg8[%c0_10, %c0_11] : memref<128x128xf32, #tpu.memory_space<vmem>>, vector<128x128xf32>
      tpu.vector_store %arg8[%c0_10, %c0_11], %12 {strides = array<i32>} : memref<128x128xf32, #tpu.memory_space<vmem>>, vector<128x128xf32>,
    } else {
    }
    %c0 = arith.constant 0 : index
    %c0_1 = arith.constant 0 : index
    %3 = vector.load %arg8[%c0, %c0_1] : memref<128x128xf32, #tpu.memory_space<vmem>>, vector<128x128xf32>
    %c0_2 = arith.constant 0 : index
    %c0_3 = arith.constant 0 : index
    %4 = vector.load %arg3[%c0_2, %c0_3] : memref<128x384xbf16, #tpu.memory_space<vmem>>, vector<128x384xbf16>
    %c0_4 = arith.constant 0 : index
    %c0_5 = arith.constant 0 : index
    %5 = vector.load %arg4[%c0_4, %c0_5] : memref<384x128xbf16, #tpu.memory_space<vmem>>, vector<384x128xbf16>
    %cst = arith.constant dense<0.000000e+00> : vector<128x128xf32>
    %6 = tpu.matmul %4, %5, %cst {dimension_numbers = #tpu.dot_dimension_numbers<[1], [0], [0], [1], [0, 0, 1, 1], [], []>} : vector<128x384xbf16>, vector<384x128xbf16>, vector<128x128xf32> -> vector<128x128xf32>
    %7 = arith.addf %3, %6 : vector<128x128xf32>
    %c0_6 = arith.constant 0 : index
    %c0_7 = arith.constant 0 : index
    %8 = vector.load %arg8[%c0_6, %c0_7] : memref<128x128xf32, #tpu.memory_space<vmem>>, vector<128x128xf32>
    tpu.vector_store %arg8[%c0_6, %c0_7], %7 {strides = array<i32>} : memref<128x128xf32, #tpu.memory_space<vmem>>, vector<128x128xf32>,
    %c2_i32 = arith.constant 2 : i32
    %9 = arith.cmpi eq, %arg2, %c2_i32 : i32
    %10 = arith.extui %9 : i1 to i32
    %c0_i32_8 = arith.constant 0 : i32
    %11 = arith.cmpi ne, %10, %c0_i32_8 : i32
    scf.if %11 {
      %c0_9 = arith.constant 0 : index
      %c0_10 = arith.constant 0 : index
      %12 = vector.load %arg8[%c0_9, %c0_10] : memref<128x128xf32, #tpu.memory_space<vmem>>, vector<128x128xf32>
      %c0_11 = arith.constant 0 : index
      %c0_12 = arith.constant 0 : index
      %13 = vector.load %arg5[%c0_11, %c0_12] : memref<1x128xf32, #tpu.memory_space<vmem>>, vector<1x128xf32>
      %14 = vector.broadcast %13 : vector<1x128xf32> to vector<128x128xf32>
      %15 = arith.mulf %12, %14 : vector<128x128xf32>
      %c0_13 = arith.constant 0 : index
      %c0_14 = arith.constant 0 : index
      %16 = vector.load %arg6[%c0_13, %c0_14] : memref<1x128xf32, #tpu.memory_space<vmem>>, vector<1x128xf32>
      %17 = vector.broadcast %16 : vector<1x128xf32> to vector<128x128xf32>
      %18 = arith.addf %15, %17 : vector<128x128xf32>
      %cst_15 = arith.constant 0.000000e+00 : f32
      %19 = vector.broadcast %cst_15 : f32 to vector<128x128xf32>
      %20 = arith.maximumf %18, %19 : vector<128x128xf32>
      %21 = arith.truncf %20 : vector<128x128xf32> to vector<128x128xbf16>
      %c0_16 = arith.constant 0 : index
      %c0_17 = arith.constant 0 : index
      %22 = vector.load %arg7[%c0_16, %c0_17] : memref<128x128xbf16, #tpu.memory_space<vmem>>, vector<128x128xbf16>
      tpu.vector_store %arg7[%c0_16, %c0_17], %21 {strides = array<i32>} : memref<128x128xbf16, #tpu.memory_space<vmem>>, vector<128x128xbf16>,
    } else {
    }
    return
  }
  func.func @transform_0(%arg0: i32, %arg1: i32, %arg2: i32) -> (i32, i32) {
    %c0_i32 = arith.constant 0 : i32
    return %arg0, %arg2 : i32, i32
  }
  func.func @transform_1(%arg0: i32, %arg1: i32, %arg2: i32) -> (i32, i32) {
    %c0_i32 = arith.constant 0 : i32
    return %arg2, %arg1 : i32, i32
  }
  func.func @transform_2(%arg0: i32, %arg1: i32, %arg2: i32) -> (i32, i32) {
    %c0_i32 = arith.constant 0 : i32
    %c0_i32_0 = arith.constant 0 : i32
    return %c0_i32, %arg1 : i32, i32
  }
  func.func @transform_3(%arg0: i32, %arg1: i32, %arg2: i32) -> (i32, i32) {
    %c0_i32 = arith.constant 0 : i32
    %c0_i32_0 = arith.constant 0 : i32
    return %c0_i32, %arg1 : i32, i32
  }
  func.func @transform_4(%arg0: i32, %arg1: i32, %arg2: i32) -> (i32, i32) {
    %c0_i32 = arith.constant 0 : i32
    return %arg0, %arg1 : i32, i32
  }
}

module attributes {stable_mosaic.version = 11 : i64} {
  func.func @_conv_mm_kernel(%arg0: i32, %arg1: i32, %arg2: i32, %arg3: memref<128x384xbf16, #tpu.memory_space<vmem>>, %arg4: memref<384x128xbf16, #tpu.memory_space<vmem>>, %arg5: memref<1x128xf32, #tpu.memory_space<vmem>>, %arg6: memref<1x128xf32, #tpu.memory_space<vmem>>, %arg7: memref<128x128xbf16, #tpu.memory_space<vmem>>, %arg8: memref<128x128xf32, #tpu.memory_space<vmem>>) attributes {dimension_semantics = [#tpu.dimension_semantics<parallel>, #tpu.dimension_semantics<parallel>, #tpu.dimension_semantics<arbitrary>], iteration_bounds = array<i64: 1, 2, 6>, scalar_prefetch = 0 : i64, scratch_operands = 1 : i64, tpu.core_type = #tpu.core_type<tc>, window_params = [{transform_indices = @transform_0, window_bounds = array<i64: 128, 384>}, {transform_indices = @transform_1, window_bounds = array<i64: 384, 128>}, {transform_indices = @transform_2, window_bounds = array<i64: 1, 128>}, {transform_indices = @transform_3, window_bounds = array<i64: 1, 128>}, {transform_indices = @transform_4, window_bounds = array<i64: 128, 128>}]} {
    %c0_i32 = arith.constant 0 : i32
    %0 = arith.cmpi eq, %arg2, %c0_i32 : i32
    %1 = arith.extui %0 : i1 to i32
    %c0_i32_0 = arith.constant 0 : i32
    %2 = arith.cmpi ne, %1, %c0_i32_0 : i32
    scf.if %2 {
      %cst_9 = arith.constant 0.000000e+00 : f32
      %12 = vector.broadcast %cst_9 : f32 to vector<128x128xf32>
      %c0_10 = arith.constant 0 : index
      %c0_11 = arith.constant 0 : index
      %13 = vector.load %arg8[%c0_10, %c0_11] : memref<128x128xf32, #tpu.memory_space<vmem>>, vector<128x128xf32>
      tpu.vector_store %arg8[%c0_10, %c0_11], %12 {strides = array<i32>} : memref<128x128xf32, #tpu.memory_space<vmem>>, vector<128x128xf32>,
    } else {
    }
    %c0 = arith.constant 0 : index
    %c0_1 = arith.constant 0 : index
    %3 = vector.load %arg8[%c0, %c0_1] : memref<128x128xf32, #tpu.memory_space<vmem>>, vector<128x128xf32>
    %c0_2 = arith.constant 0 : index
    %c0_3 = arith.constant 0 : index
    %4 = vector.load %arg3[%c0_2, %c0_3] : memref<128x384xbf16, #tpu.memory_space<vmem>>, vector<128x384xbf16>
    %c0_4 = arith.constant 0 : index
    %c0_5 = arith.constant 0 : index
    %5 = vector.load %arg4[%c0_4, %c0_5] : memref<384x128xbf16, #tpu.memory_space<vmem>>, vector<384x128xbf16>
    %cst = arith.constant dense<0.000000e+00> : vector<128x128xf32>
    %6 = tpu.matmul %4, %5, %cst {dimension_numbers = #tpu.dot_dimension_numbers<[1], [0], [0], [1], [0, 0, 1, 1], [], []>} : vector<128x384xbf16>, vector<384x128xbf16>, vector<128x128xf32> -> vector<128x128xf32>
    %7 = arith.addf %3, %6 : vector<128x128xf32>
    %c0_6 = arith.constant 0 : index
    %c0_7 = arith.constant 0 : index
    %8 = vector.load %arg8[%c0_6, %c0_7] : memref<128x128xf32, #tpu.memory_space<vmem>>, vector<128x128xf32>
    tpu.vector_store %arg8[%c0_6, %c0_7], %7 {strides = array<i32>} : memref<128x128xf32, #tpu.memory_space<vmem>>, vector<128x128xf32>,
    %c5_i32 = arith.constant 5 : i32
    %9 = arith.cmpi eq, %arg2, %c5_i32 : i32
    %10 = arith.extui %9 : i1 to i32
    %c0_i32_8 = arith.constant 0 : i32
    %11 = arith.cmpi ne, %10, %c0_i32_8 : i32
    scf.if %11 {
      %c0_9 = arith.constant 0 : index
      %c0_10 = arith.constant 0 : index
      %12 = vector.load %arg8[%c0_9, %c0_10] : memref<128x128xf32, #tpu.memory_space<vmem>>, vector<128x128xf32>
      %c0_11 = arith.constant 0 : index
      %c0_12 = arith.constant 0 : index
      %13 = vector.load %arg5[%c0_11, %c0_12] : memref<1x128xf32, #tpu.memory_space<vmem>>, vector<1x128xf32>
      %14 = vector.broadcast %13 : vector<1x128xf32> to vector<128x128xf32>
      %15 = arith.mulf %12, %14 : vector<128x128xf32>
      %c0_13 = arith.constant 0 : index
      %c0_14 = arith.constant 0 : index
      %16 = vector.load %arg6[%c0_13, %c0_14] : memref<1x128xf32, #tpu.memory_space<vmem>>, vector<1x128xf32>
      %17 = vector.broadcast %16 : vector<1x128xf32> to vector<128x128xf32>
      %18 = arith.addf %15, %17 : vector<128x128xf32>
      %cst_15 = arith.constant 0.000000e+00 : f32
      %19 = vector.broadcast %cst_15 : f32 to vector<128x128xf32>
      %20 = arith.maximumf %18, %19 : vector<128x128xf32>
      %21 = arith.truncf %20 : vector<128x128xf32> to vector<128x128xbf16>
      %c0_16 = arith.constant 0 : index
      %c0_17 = arith.constant 0 : index
      %22 = vector.load %arg7[%c0_16, %c0_17] : memref<128x128xbf16, #tpu.memory_space<vmem>>, vector<128x128xbf16>
      tpu.vector_store %arg7[%c0_16, %c0_17], %21 {strides = array<i32>} : memref<128x128xbf16, #tpu.memory_space<vmem>>, vector<128x128xbf16>,
    } else {
    }
    return
  }
  func.func @transform_0(%arg0: i32, %arg1: i32, %arg2: i32) -> (i32, i32) {
    %c0_i32 = arith.constant 0 : i32
    return %arg0, %arg2 : i32, i32
  }
  func.func @transform_1(%arg0: i32, %arg1: i32, %arg2: i32) -> (i32, i32) {
    %c0_i32 = arith.constant 0 : i32
    return %arg2, %arg1 : i32, i32
  }
  func.func @transform_2(%arg0: i32, %arg1: i32, %arg2: i32) -> (i32, i32) {
    %c0_i32 = arith.constant 0 : i32
    %c0_i32_0 = arith.constant 0 : i32
    return %c0_i32, %arg1 : i32, i32
  }
  func.func @transform_3(%arg0: i32, %arg1: i32, %arg2: i32) -> (i32, i32) {
    %c0_i32 = arith.constant 0 : i32
    %c0_i32_0 = arith.constant 0 : i32
    return %c0_i32, %arg1 : i32, i32
  }
  func.func @transform_4(%arg0: i32, %arg1: i32, %arg2: i32) -> (i32, i32) {
    %c0_i32 = arith.constant 0 : i32
    return %arg0, %arg1 : i32, i32
  }
}

module attributes {stable_mosaic.version = 11 : i64} {
  func.func @_max4_kernel(%arg0: i32, %arg1: memref<16x2304xbf16, #tpu.memory_space<vmem>>, %arg2: memref<16x2304xbf16, #tpu.memory_space<vmem>>, %arg3: memref<16x2304xbf16, #tpu.memory_space<vmem>>, %arg4: memref<16x2304xbf16, #tpu.memory_space<vmem>>, %arg5: memref<16x2304xbf16, #tpu.memory_space<vmem>>) attributes {dimension_semantics = [#tpu.dimension_semantics<parallel>], iteration_bounds = array<i64: 1>, scalar_prefetch = 0 : i64, scratch_operands = 0 : i64, tpu.core_type = #tpu.core_type<tc>, window_params = [{transform_indices = @transform_0, window_bounds = array<i64: 16, 2304>}, {transform_indices = @transform_1, window_bounds = array<i64: 16, 2304>}, {transform_indices = @transform_2, window_bounds = array<i64: 16, 2304>}, {transform_indices = @transform_3, window_bounds = array<i64: 16, 2304>}, {transform_indices = @transform_4, window_bounds = array<i64: 16, 2304>}]} {
    %c0 = arith.constant 0 : index
    %c0_0 = arith.constant 0 : index
    %0 = vector.load %arg1[%c0, %c0_0] : memref<16x2304xbf16, #tpu.memory_space<vmem>>, vector<16x2304xbf16>
    %c0_1 = arith.constant 0 : index
    %c0_2 = arith.constant 0 : index
    %1 = vector.load %arg2[%c0_1, %c0_2] : memref<16x2304xbf16, #tpu.memory_space<vmem>>, vector<16x2304xbf16>
    %2 = arith.maximumf %0, %1 : vector<16x2304xbf16>
    %c0_3 = arith.constant 0 : index
    %c0_4 = arith.constant 0 : index
    %3 = vector.load %arg3[%c0_3, %c0_4] : memref<16x2304xbf16, #tpu.memory_space<vmem>>, vector<16x2304xbf16>
    %c0_5 = arith.constant 0 : index
    %c0_6 = arith.constant 0 : index
    %4 = vector.load %arg4[%c0_5, %c0_6] : memref<16x2304xbf16, #tpu.memory_space<vmem>>, vector<16x2304xbf16>
    %5 = arith.maximumf %3, %4 : vector<16x2304xbf16>
    %6 = arith.maximumf %2, %5 : vector<16x2304xbf16>
    %c0_7 = arith.constant 0 : index
    %c0_8 = arith.constant 0 : index
    %7 = vector.load %arg5[%c0_7, %c0_8] : memref<16x2304xbf16, #tpu.memory_space<vmem>>, vector<16x2304xbf16>
    tpu.vector_store %arg5[%c0_7, %c0_8], %6 {strides = array<i32>} : memref<16x2304xbf16, #tpu.memory_space<vmem>>, vector<16x2304xbf16>,
    return
  }
  func.func @transform_0(%arg0: i32) -> (i32, i32) {
    %c0_i32 = arith.constant 0 : i32
    %c0_i32_0 = arith.constant 0 : i32
    return %arg0, %c0_i32 : i32, i32
  }
  func.func @transform_1(%arg0: i32) -> (i32, i32) {
    %c0_i32 = arith.constant 0 : i32
    %c0_i32_0 = arith.constant 0 : i32
    return %arg0, %c0_i32 : i32, i32
  }
  func.func @transform_2(%arg0: i32) -> (i32, i32) {
    %c0_i32 = arith.constant 0 : i32
    %c0_i32_0 = arith.constant 0 : i32
    return %arg0, %c0_i32 : i32, i32
  }
  func.func @transform_3(%arg0: i32) -> (i32, i32) {
    %c0_i32 = arith.constant 0 : i32
    %c0_i32_0 = arith.constant 0 : i32
    return %arg0, %c0_i32 : i32, i32
  }
  func.func @transform_4(%arg0: i32) -> (i32, i32) {
    %c0_i32 = arith.constant 0 : i32
    %c0_i32_0 = arith.constant 0 : i32
    return %arg0, %c0_i32 : i32, i32
  }
}

module attributes {stable_mosaic.version = 11 : i64} {
  func.func @_conv_mm_kernel(%arg0: i32, %arg1: i32, %arg2: i32, %arg3: memref<80x384xbf16, #tpu.memory_space<vmem>>, %arg4: memref<384x256xbf16, #tpu.memory_space<vmem>>, %arg5: memref<1x256xf32, #tpu.memory_space<vmem>>, %arg6: memref<1x256xf32, #tpu.memory_space<vmem>>, %arg7: memref<80x256xbf16, #tpu.memory_space<vmem>>, %arg8: memref<80x256xf32, #tpu.memory_space<vmem>>) attributes {dimension_semantics = [#tpu.dimension_semantics<parallel>, #tpu.dimension_semantics<parallel>, #tpu.dimension_semantics<arbitrary>], iteration_bounds = array<i64: 1, 2, 6>, scalar_prefetch = 0 : i64, scratch_operands = 1 : i64, tpu.core_type = #tpu.core_type<tc>, window_params = [{transform_indices = @transform_0, window_bounds = array<i64: 80, 384>}, {transform_indices = @transform_1, window_bounds = array<i64: 384, 256>}, {transform_indices = @transform_2, window_bounds = array<i64: 1, 256>}, {transform_indices = @transform_3, window_bounds = array<i64: 1, 256>}, {transform_indices = @transform_4, window_bounds = array<i64: 80, 256>}]} {
    %c0_i32 = arith.constant 0 : i32
    %0 = arith.cmpi eq, %arg2, %c0_i32 : i32
    %1 = arith.extui %0 : i1 to i32
    %c0_i32_0 = arith.constant 0 : i32
    %2 = arith.cmpi ne, %1, %c0_i32_0 : i32
    scf.if %2 {
      %cst_9 = arith.constant 0.000000e+00 : f32
      %12 = vector.broadcast %cst_9 : f32 to vector<80x256xf32>
      %c0_10 = arith.constant 0 : index
      %c0_11 = arith.constant 0 : index
      %13 = vector.load %arg8[%c0_10, %c0_11] : memref<80x256xf32, #tpu.memory_space<vmem>>, vector<80x256xf32>
      tpu.vector_store %arg8[%c0_10, %c0_11], %12 {strides = array<i32>} : memref<80x256xf32, #tpu.memory_space<vmem>>, vector<80x256xf32>,
    } else {
    }
    %c0 = arith.constant 0 : index
    %c0_1 = arith.constant 0 : index
    %3 = vector.load %arg8[%c0, %c0_1] : memref<80x256xf32, #tpu.memory_space<vmem>>, vector<80x256xf32>
    %c0_2 = arith.constant 0 : index
    %c0_3 = arith.constant 0 : index
    %4 = vector.load %arg3[%c0_2, %c0_3] : memref<80x384xbf16, #tpu.memory_space<vmem>>, vector<80x384xbf16>
    %c0_4 = arith.constant 0 : index
    %c0_5 = arith.constant 0 : index
    %5 = vector.load %arg4[%c0_4, %c0_5] : memref<384x256xbf16, #tpu.memory_space<vmem>>, vector<384x256xbf16>
    %cst = arith.constant dense<0.000000e+00> : vector<80x256xf32>
    %6 = tpu.matmul %4, %5, %cst {dimension_numbers = #tpu.dot_dimension_numbers<[1], [0], [0], [1], [0, 0, 1, 1], [], []>} : vector<80x384xbf16>, vector<384x256xbf16>, vector<80x256xf32> -> vector<80x256xf32>
    %7 = arith.addf %3, %6 : vector<80x256xf32>
    %c0_6 = arith.constant 0 : index
    %c0_7 = arith.constant 0 : index
    %8 = vector.load %arg8[%c0_6, %c0_7] : memref<80x256xf32, #tpu.memory_space<vmem>>, vector<80x256xf32>
    tpu.vector_store %arg8[%c0_6, %c0_7], %7 {strides = array<i32>} : memref<80x256xf32, #tpu.memory_space<vmem>>, vector<80x256xf32>,
    %c5_i32 = arith.constant 5 : i32
    %9 = arith.cmpi eq, %arg2, %c5_i32 : i32
    %10 = arith.extui %9 : i1 to i32
    %c0_i32_8 = arith.constant 0 : i32
    %11 = arith.cmpi ne, %10, %c0_i32_8 : i32
    scf.if %11 {
      %c0_9 = arith.constant 0 : index
      %c0_10 = arith.constant 0 : index
      %12 = vector.load %arg8[%c0_9, %c0_10] : memref<80x256xf32, #tpu.memory_space<vmem>>, vector<80x256xf32>
      %c0_11 = arith.constant 0 : index
      %c0_12 = arith.constant 0 : index
      %13 = vector.load %arg5[%c0_11, %c0_12] : memref<1x256xf32, #tpu.memory_space<vmem>>, vector<1x256xf32>
      %14 = vector.broadcast %13 : vector<1x256xf32> to vector<80x256xf32>
      %15 = arith.mulf %12, %14 : vector<80x256xf32>
      %c0_13 = arith.constant 0 : index
      %c0_14 = arith.constant 0 : index
      %16 = vector.load %arg6[%c0_13, %c0_14] : memref<1x256xf32, #tpu.memory_space<vmem>>, vector<1x256xf32>
      %17 = vector.broadcast %16 : vector<1x256xf32> to vector<80x256xf32>
      %18 = arith.addf %15, %17 : vector<80x256xf32>
      %cst_15 = arith.constant 0.000000e+00 : f32
      %19 = vector.broadcast %cst_15 : f32 to vector<80x256xf32>
      %20 = arith.maximumf %18, %19 : vector<80x256xf32>
      %21 = arith.truncf %20 : vector<80x256xf32> to vector<80x256xbf16>
      %c0_16 = arith.constant 0 : index
      %c0_17 = arith.constant 0 : index
      %22 = vector.load %arg7[%c0_16, %c0_17] : memref<80x256xbf16, #tpu.memory_space<vmem>>, vector<80x256xbf16>
      tpu.vector_store %arg7[%c0_16, %c0_17], %21 {strides = array<i32>} : memref<80x256xbf16, #tpu.memory_space<vmem>>, vector<80x256xbf16>,
    } else {
    }
    return
  }
  func.func @transform_0(%arg0: i32, %arg1: i32, %arg2: i32) -> (i32, i32) {
    %c0_i32 = arith.constant 0 : i32
    return %arg0, %arg2 : i32, i32
  }
  func.func @transform_1(%arg0: i32, %arg1: i32, %arg2: i32) -> (i32, i32) {
    %c0_i32 = arith.constant 0 : i32
    return %arg2, %arg1 : i32, i32
  }
  func.func @transform_2(%arg0: i32, %arg1: i32, %arg2: i32) -> (i32, i32) {
    %c0_i32 = arith.constant 0 : i32
    %c0_i32_0 = arith.constant 0 : i32
    return %c0_i32, %arg1 : i32, i32
  }
  func.func @transform_3(%arg0: i32, %arg1: i32, %arg2: i32) -> (i32, i32) {
    %c0_i32 = arith.constant 0 : i32
    %c0_i32_0 = arith.constant 0 : i32
    return %c0_i32, %arg1 : i32, i32
  }
  func.func @transform_4(%arg0: i32, %arg1: i32, %arg2: i32) -> (i32, i32) {
    %c0_i32 = arith.constant 0 : i32
    return %arg0, %arg1 : i32, i32
  }
}

module attributes {stable_mosaic.version = 11 : i64} {
  func.func @_conv_mm_kernel(%arg0: i32, %arg1: i32, %arg2: i32, %arg3: memref<80x512xbf16, #tpu.memory_space<vmem>>, %arg4: memref<512x256xbf16, #tpu.memory_space<vmem>>, %arg5: memref<1x256xf32, #tpu.memory_space<vmem>>, %arg6: memref<1x256xf32, #tpu.memory_space<vmem>>, %arg7: memref<80x256xbf16, #tpu.memory_space<vmem>>, %arg8: memref<80x256xf32, #tpu.memory_space<vmem>>) attributes {dimension_semantics = [#tpu.dimension_semantics<parallel>, #tpu.dimension_semantics<parallel>, #tpu.dimension_semantics<arbitrary>], iteration_bounds = array<i64: 1, 2, 9>, scalar_prefetch = 0 : i64, scratch_operands = 1 : i64, tpu.core_type = #tpu.core_type<tc>, window_params = [{transform_indices = @transform_0, window_bounds = array<i64: 80, 512>}, {transform_indices = @transform_1, window_bounds = array<i64: 512, 256>}, {transform_indices = @transform_2, window_bounds = array<i64: 1, 256>}, {transform_indices = @transform_3, window_bounds = array<i64: 1, 256>}, {transform_indices = @transform_4, window_bounds = array<i64: 80, 256>}]} {
    %c0_i32 = arith.constant 0 : i32
    %0 = arith.cmpi eq, %arg2, %c0_i32 : i32
    %1 = arith.extui %0 : i1 to i32
    %c0_i32_0 = arith.constant 0 : i32
    %2 = arith.cmpi ne, %1, %c0_i32_0 : i32
    scf.if %2 {
      %cst_9 = arith.constant 0.000000e+00 : f32
      %12 = vector.broadcast %cst_9 : f32 to vector<80x256xf32>
      %c0_10 = arith.constant 0 : index
      %c0_11 = arith.constant 0 : index
      %13 = vector.load %arg8[%c0_10, %c0_11] : memref<80x256xf32, #tpu.memory_space<vmem>>, vector<80x256xf32>
      tpu.vector_store %arg8[%c0_10, %c0_11], %12 {strides = array<i32>} : memref<80x256xf32, #tpu.memory_space<vmem>>, vector<80x256xf32>,
    } else {
    }
    %c0 = arith.constant 0 : index
    %c0_1 = arith.constant 0 : index
    %3 = vector.load %arg8[%c0, %c0_1] : memref<80x256xf32, #tpu.memory_space<vmem>>, vector<80x256xf32>
    %c0_2 = arith.constant 0 : index
    %c0_3 = arith.constant 0 : index
    %4 = vector.load %arg3[%c0_2, %c0_3] : memref<80x512xbf16, #tpu.memory_space<vmem>>, vector<80x512xbf16>
    %c0_4 = arith.constant 0 : index
    %c0_5 = arith.constant 0 : index
    %5 = vector.load %arg4[%c0_4, %c0_5] : memref<512x256xbf16, #tpu.memory_space<vmem>>, vector<512x256xbf16>
    %cst = arith.constant dense<0.000000e+00> : vector<80x256xf32>
    %6 = tpu.matmul %4, %5, %cst {dimension_numbers = #tpu.dot_dimension_numbers<[1], [0], [0], [1], [0, 0, 1, 1], [], []>} : vector<80x512xbf16>, vector<512x256xbf16>, vector<80x256xf32> -> vector<80x256xf32>
    %7 = arith.addf %3, %6 : vector<80x256xf32>
    %c0_6 = arith.constant 0 : index
    %c0_7 = arith.constant 0 : index
    %8 = vector.load %arg8[%c0_6, %c0_7] : memref<80x256xf32, #tpu.memory_space<vmem>>, vector<80x256xf32>
    tpu.vector_store %arg8[%c0_6, %c0_7], %7 {strides = array<i32>} : memref<80x256xf32, #tpu.memory_space<vmem>>, vector<80x256xf32>,
    %c8_i32 = arith.constant 8 : i32
    %9 = arith.cmpi eq, %arg2, %c8_i32 : i32
    %10 = arith.extui %9 : i1 to i32
    %c0_i32_8 = arith.constant 0 : i32
    %11 = arith.cmpi ne, %10, %c0_i32_8 : i32
    scf.if %11 {
      %c0_9 = arith.constant 0 : index
      %c0_10 = arith.constant 0 : index
      %12 = vector.load %arg8[%c0_9, %c0_10] : memref<80x256xf32, #tpu.memory_space<vmem>>, vector<80x256xf32>
      %c0_11 = arith.constant 0 : index
      %c0_12 = arith.constant 0 : index
      %13 = vector.load %arg5[%c0_11, %c0_12] : memref<1x256xf32, #tpu.memory_space<vmem>>, vector<1x256xf32>
      %14 = vector.broadcast %13 : vector<1x256xf32> to vector<80x256xf32>
      %15 = arith.mulf %12, %14 : vector<80x256xf32>
      %c0_13 = arith.constant 0 : index
      %c0_14 = arith.constant 0 : index
      %16 = vector.load %arg6[%c0_13, %c0_14] : memref<1x256xf32, #tpu.memory_space<vmem>>, vector<1x256xf32>
      %17 = vector.broadcast %16 : vector<1x256xf32> to vector<80x256xf32>
      %18 = arith.addf %15, %17 : vector<80x256xf32>
      %cst_15 = arith.constant 0.000000e+00 : f32
      %19 = vector.broadcast %cst_15 : f32 to vector<80x256xf32>
      %20 = arith.maximumf %18, %19 : vector<80x256xf32>
      %21 = arith.truncf %20 : vector<80x256xf32> to vector<80x256xbf16>
      %c0_16 = arith.constant 0 : index
      %c0_17 = arith.constant 0 : index
      %22 = vector.load %arg7[%c0_16, %c0_17] : memref<80x256xbf16, #tpu.memory_space<vmem>>, vector<80x256xbf16>
      tpu.vector_store %arg7[%c0_16, %c0_17], %21 {strides = array<i32>} : memref<80x256xbf16, #tpu.memory_space<vmem>>, vector<80x256xbf16>,
    } else {
    }
    return
  }
  func.func @transform_0(%arg0: i32, %arg1: i32, %arg2: i32) -> (i32, i32) {
    %c0_i32 = arith.constant 0 : i32
    return %arg0, %arg2 : i32, i32
  }
  func.func @transform_1(%arg0: i32, %arg1: i32, %arg2: i32) -> (i32, i32) {
    %c0_i32 = arith.constant 0 : i32
    return %arg2, %arg1 : i32, i32
  }
  func.func @transform_2(%arg0: i32, %arg1: i32, %arg2: i32) -> (i32, i32) {
    %c0_i32 = arith.constant 0 : i32
    %c0_i32_0 = arith.constant 0 : i32
    return %c0_i32, %arg1 : i32, i32
  }
  func.func @transform_3(%arg0: i32, %arg1: i32, %arg2: i32) -> (i32, i32) {
    %c0_i32 = arith.constant 0 : i32
    %c0_i32_0 = arith.constant 0 : i32
    return %c0_i32, %arg1 : i32, i32
  }
  func.func @transform_4(%arg0: i32, %arg1: i32, %arg2: i32) -> (i32, i32) {
    %c0_i32 = arith.constant 0 : i32
    return %arg0, %arg1 : i32, i32
  }
}

module attributes {stable_mosaic.version = 11 : i64} {
  func.func @_max4_kernel(%arg0: i32, %arg1: memref<16x5120xbf16, #tpu.memory_space<vmem>>, %arg2: memref<16x5120xbf16, #tpu.memory_space<vmem>>, %arg3: memref<16x5120xbf16, #tpu.memory_space<vmem>>, %arg4: memref<16x5120xbf16, #tpu.memory_space<vmem>>, %arg5: memref<16x5120xbf16, #tpu.memory_space<vmem>>) attributes {dimension_semantics = [#tpu.dimension_semantics<parallel>], iteration_bounds = array<i64: 1>, scalar_prefetch = 0 : i64, scratch_operands = 0 : i64, tpu.core_type = #tpu.core_type<tc>, window_params = [{transform_indices = @transform_0, window_bounds = array<i64: 16, 5120>}, {transform_indices = @transform_1, window_bounds = array<i64: 16, 5120>}, {transform_indices = @transform_2, window_bounds = array<i64: 16, 5120>}, {transform_indices = @transform_3, window_bounds = array<i64: 16, 5120>}, {transform_indices = @transform_4, window_bounds = array<i64: 16, 5120>}]} {
    %c0 = arith.constant 0 : index
    %c0_0 = arith.constant 0 : index
    %0 = vector.load %arg1[%c0, %c0_0] : memref<16x5120xbf16, #tpu.memory_space<vmem>>, vector<16x5120xbf16>
    %c0_1 = arith.constant 0 : index
    %c0_2 = arith.constant 0 : index
    %1 = vector.load %arg2[%c0_1, %c0_2] : memref<16x5120xbf16, #tpu.memory_space<vmem>>, vector<16x5120xbf16>
    %2 = arith.maximumf %0, %1 : vector<16x5120xbf16>
    %c0_3 = arith.constant 0 : index
    %c0_4 = arith.constant 0 : index
    %3 = vector.load %arg3[%c0_3, %c0_4] : memref<16x5120xbf16, #tpu.memory_space<vmem>>, vector<16x5120xbf16>
    %c0_5 = arith.constant 0 : index
    %c0_6 = arith.constant 0 : index
    %4 = vector.load %arg4[%c0_5, %c0_6] : memref<16x5120xbf16, #tpu.memory_space<vmem>>, vector<16x5120xbf16>
    %5 = arith.maximumf %3, %4 : vector<16x5120xbf16>
    %6 = arith.maximumf %2, %5 : vector<16x5120xbf16>
    %c0_7 = arith.constant 0 : index
    %c0_8 = arith.constant 0 : index
    %7 = vector.load %arg5[%c0_7, %c0_8] : memref<16x5120xbf16, #tpu.memory_space<vmem>>, vector<16x5120xbf16>
    tpu.vector_store %arg5[%c0_7, %c0_8], %6 {strides = array<i32>} : memref<16x5120xbf16, #tpu.memory_space<vmem>>, vector<16x5120xbf16>,
    return
  }
  func.func @transform_0(%arg0: i32) -> (i32, i32) {
    %c0_i32 = arith.constant 0 : i32
    %c0_i32_0 = arith.constant 0 : i32
    return %arg0, %c0_i32 : i32, i32
  }
  func.func @transform_1(%arg0: i32) -> (i32, i32) {
    %c0_i32 = arith.constant 0 : i32
    %c0_i32_0 = arith.constant 0 : i32
    return %arg0, %c0_i32 : i32, i32
  }
  func.func @transform_2(%arg0: i32) -> (i32, i32) {
    %c0_i32 = arith.constant 0 : i32
    %c0_i32_0 = arith.constant 0 : i32
    return %arg0, %c0_i32 : i32, i32
  }
  func.func @transform_3(%arg0: i32) -> (i32, i32) {
    %c0_i32 = arith.constant 0 : i32
    %c0_i32_0 = arith.constant 0 : i32
    return %arg0, %c0_i32 : i32, i32
  }
  func.func @transform_4(%arg0: i32) -> (i32, i32) {
    %c0_i32 = arith.constant 0 : i32
    %c0_i32_0 = arith.constant 0 : i32
    return %arg0, %c0_i32 : i32, i32
  }
}

module attributes {stable_mosaic.version = 11 : i64} {
  func.func @_cls_logsoftmax_kernel(%arg0: i32, %arg1: memref<32x512xbf16, #tpu.memory_space<vmem>>, %arg2: memref<512x128xbf16, #tpu.memory_space<vmem>>, %arg3: memref<1x128xf32, #tpu.memory_space<vmem>>, %arg4: memref<32x128xf32, #tpu.memory_space<vmem>>) attributes {dimension_semantics = [#tpu.dimension_semantics<parallel>], iteration_bounds = array<i64: 1>, scalar_prefetch = 0 : i64, scratch_operands = 0 : i64, tpu.core_type = #tpu.core_type<tc>, window_params = [{transform_indices = @transform_0, window_bounds = array<i64: 32, 512>}, {pipeline_mode = #tpu.pipeline_mode<synchronous>, transform_indices = @transform_1, window_bounds = array<i64: 512, 128>}, {pipeline_mode = #tpu.pipeline_mode<synchronous>, transform_indices = @transform_2, window_bounds = array<i64: 1, 128>}, {transform_indices = @transform_3, window_bounds = array<i64: 32, 128>}]} {
    %c0 = arith.constant 0 : index
    %c0_0 = arith.constant 0 : index
    %0 = vector.load %arg1[%c0, %c0_0] : memref<32x512xbf16, #tpu.memory_space<vmem>>, vector<32x512xbf16>
    %c0_1 = arith.constant 0 : index
    %c0_2 = arith.constant 0 : index
    %1 = vector.load %arg2[%c0_1, %c0_2] : memref<512x128xbf16, #tpu.memory_space<vmem>>, vector<512x128xbf16>
    %cst = arith.constant dense<0.000000e+00> : vector<32x128xf32>
    %2 = tpu.matmul %0, %1, %cst {dimension_numbers = #tpu.dot_dimension_numbers<[1], [0], [0], [1], [0, 0, 1, 1], [], []>} : vector<32x512xbf16>, vector<512x128xbf16>, vector<32x128xf32> -> vector<32x128xf32>
    %c0_3 = arith.constant 0 : index
    %c0_4 = arith.constant 0 : index
    %3 = vector.load %arg3[%c0_3, %c0_4] : memref<1x128xf32, #tpu.memory_space<vmem>>, vector<1x128xf32>
    %4 = vector.broadcast %3 : vector<1x128xf32> to vector<32x128xf32>
    %5 = arith.addf %2, %4 : vector<32x128xf32>
    %cst_5 = arith.constant dense<0xFF800000> : vector<32xf32>
    %6 = vector.multi_reduction <maximumf>, %5, %cst_5 [1] : vector<32x128xf32> to vector<32xf32>
    %7 = vector.shape_cast %6 : vector<32xf32> to vector<32x1xf32>
    %8 = vector.broadcast %7 : vector<32x1xf32> to vector<32x128xf32>
    %9 = arith.subf %5, %8 : vector<32x128xf32>
    %10 = math.exp %9 : vector<32x128xf32>
    %cst_6 = arith.constant dense<0.000000e+00> : vector<32xf32>
    %11 = vector.multi_reduction <add>, %10, %cst_6 [1] : vector<32x128xf32> to vector<32xf32>
    %12 = vector.shape_cast %11 : vector<32xf32> to vector<32x1xf32>
    %13 = vector.broadcast %7 : vector<32x1xf32> to vector<32x128xf32>
    %14 = arith.subf %5, %13 : vector<32x128xf32>
    %15 = math.log %12 : vector<32x1xf32>
    %16 = vector.broadcast %15 : vector<32x1xf32> to vector<32x128xf32>
    %17 = arith.subf %14, %16 : vector<32x128xf32>
    %c0_7 = arith.constant 0 : index
    %c0_8 = arith.constant 0 : index
    %18 = vector.load %arg4[%c0_7, %c0_8] : memref<32x128xf32, #tpu.memory_space<vmem>>, vector<32x128xf32>
    tpu.vector_store %arg4[%c0_7, %c0_8], %17 {strides = array<i32>} : memref<32x128xf32, #tpu.memory_space<vmem>>, vector<32x128xf32>,
    return
  }
  func.func @transform_0(%arg0: i32) -> (i32, i32) {
    %c0_i32 = arith.constant 0 : i32
    %c0_i32_0 = arith.constant 0 : i32
    return %arg0, %c0_i32 : i32, i32
  }
  func.func @transform_1(%arg0: i32) -> (i32, i32) {
    %c0_i32 = arith.constant 0 : i32
    %c0_i32_0 = arith.constant 0 : i32
    %c0_i32_1 = arith.constant 0 : i32
    return %c0_i32, %c0_i32_0 : i32, i32
  }
  func.func @transform_2(%arg0: i32) -> (i32, i32) {
    %c0_i32 = arith.constant 0 : i32
    %c0_i32_0 = arith.constant 0 : i32
    %c0_i32_1 = arith.constant 0 : i32
    return %c0_i32, %c0_i32_0 : i32, i32
  }
  func.func @transform_3(%arg0: i32) -> (i32, i32) {
    %c0_i32 = arith.constant 0 : i32
    %c0_i32_0 = arith.constant 0 : i32
    return %arg0, %c0_i32 : i32, i32
  }
}

module attributes {stable_mosaic.version = 11 : i64} {
  func.func @_conv_mm_kernel(%arg0: i32, %arg1: i32, %arg2: i32, %arg3: memref<32x512xbf16, #tpu.memory_space<vmem>>, %arg4: memref<512x256xbf16, #tpu.memory_space<vmem>>, %arg5: memref<1x256xf32, #tpu.memory_space<vmem>>, %arg6: memref<1x256xf32, #tpu.memory_space<vmem>>, %arg7: memref<32x256xbf16, #tpu.memory_space<vmem>>, %arg8: memref<32x256xf32, #tpu.memory_space<vmem>>) attributes {dimension_semantics = [#tpu.dimension_semantics<parallel>, #tpu.dimension_semantics<parallel>, #tpu.dimension_semantics<arbitrary>], iteration_bounds = array<i64: 1, 2, 4>, scalar_prefetch = 0 : i64, scratch_operands = 1 : i64, tpu.core_type = #tpu.core_type<tc>, window_params = [{transform_indices = @transform_0, window_bounds = array<i64: 32, 512>}, {transform_indices = @transform_1, window_bounds = array<i64: 512, 256>}, {transform_indices = @transform_2, window_bounds = array<i64: 1, 256>}, {transform_indices = @transform_3, window_bounds = array<i64: 1, 256>}, {transform_indices = @transform_4, window_bounds = array<i64: 32, 256>}]} {
    %c0_i32 = arith.constant 0 : i32
    %0 = arith.cmpi eq, %arg2, %c0_i32 : i32
    %1 = arith.extui %0 : i1 to i32
    %c0_i32_0 = arith.constant 0 : i32
    %2 = arith.cmpi ne, %1, %c0_i32_0 : i32
    scf.if %2 {
      %cst_9 = arith.constant 0.000000e+00 : f32
      %12 = vector.broadcast %cst_9 : f32 to vector<32x256xf32>
      %c0_10 = arith.constant 0 : index
      %c0_11 = arith.constant 0 : index
      %13 = vector.load %arg8[%c0_10, %c0_11] : memref<32x256xf32, #tpu.memory_space<vmem>>, vector<32x256xf32>
      tpu.vector_store %arg8[%c0_10, %c0_11], %12 {strides = array<i32>} : memref<32x256xf32, #tpu.memory_space<vmem>>, vector<32x256xf32>,
    } else {
    }
    %c0 = arith.constant 0 : index
    %c0_1 = arith.constant 0 : index
    %3 = vector.load %arg8[%c0, %c0_1] : memref<32x256xf32, #tpu.memory_space<vmem>>, vector<32x256xf32>
    %c0_2 = arith.constant 0 : index
    %c0_3 = arith.constant 0 : index
    %4 = vector.load %arg3[%c0_2, %c0_3] : memref<32x512xbf16, #tpu.memory_space<vmem>>, vector<32x512xbf16>
    %c0_4 = arith.constant 0 : index
    %c0_5 = arith.constant 0 : index
    %5 = vector.load %arg4[%c0_4, %c0_5] : memref<512x256xbf16, #tpu.memory_space<vmem>>, vector<512x256xbf16>
    %cst = arith.constant dense<0.000000e+00> : vector<32x256xf32>
    %6 = tpu.matmul %4, %5, %cst {dimension_numbers = #tpu.dot_dimension_numbers<[1], [0], [0], [1], [0, 0, 1, 1], [], []>} : vector<32x512xbf16>, vector<512x256xbf16>, vector<32x256xf32> -> vector<32x256xf32>
    %7 = arith.addf %3, %6 : vector<32x256xf32>
    %c0_6 = arith.constant 0 : index
    %c0_7 = arith.constant 0 : index
    %8 = vector.load %arg8[%c0_6, %c0_7] : memref<32x256xf32, #tpu.memory_space<vmem>>, vector<32x256xf32>
    tpu.vector_store %arg8[%c0_6, %c0_7], %7 {strides = array<i32>} : memref<32x256xf32, #tpu.memory_space<vmem>>, vector<32x256xf32>,
    %c3_i32 = arith.constant 3 : i32
    %9 = arith.cmpi eq, %arg2, %c3_i32 : i32
    %10 = arith.extui %9 : i1 to i32
    %c0_i32_8 = arith.constant 0 : i32
    %11 = arith.cmpi ne, %10, %c0_i32_8 : i32
    scf.if %11 {
      %c0_9 = arith.constant 0 : index
      %c0_10 = arith.constant 0 : index
      %12 = vector.load %arg8[%c0_9, %c0_10] : memref<32x256xf32, #tpu.memory_space<vmem>>, vector<32x256xf32>
      %c0_11 = arith.constant 0 : index
      %c0_12 = arith.constant 0 : index
      %13 = vector.load %arg5[%c0_11, %c0_12] : memref<1x256xf32, #tpu.memory_space<vmem>>, vector<1x256xf32>
      %14 = vector.broadcast %13 : vector<1x256xf32> to vector<32x256xf32>
      %15 = arith.mulf %12, %14 : vector<32x256xf32>
      %c0_13 = arith.constant 0 : index
      %c0_14 = arith.constant 0 : index
      %16 = vector.load %arg6[%c0_13, %c0_14] : memref<1x256xf32, #tpu.memory_space<vmem>>, vector<1x256xf32>
      %17 = vector.broadcast %16 : vector<1x256xf32> to vector<32x256xf32>
      %18 = arith.addf %15, %17 : vector<32x256xf32>
      %cst_15 = arith.constant 0.000000e+00 : f32
      %19 = vector.broadcast %cst_15 : f32 to vector<32x256xf32>
      %20 = arith.maximumf %18, %19 : vector<32x256xf32>
      %21 = arith.truncf %20 : vector<32x256xf32> to vector<32x256xbf16>
      %c0_16 = arith.constant 0 : index
      %c0_17 = arith.constant 0 : index
      %22 = vector.load %arg7[%c0_16, %c0_17] : memref<32x256xbf16, #tpu.memory_space<vmem>>, vector<32x256xbf16>
      tpu.vector_store %arg7[%c0_16, %c0_17], %21 {strides = array<i32>} : memref<32x256xbf16, #tpu.memory_space<vmem>>, vector<32x256xbf16>,
    } else {
    }
    return
  }
  func.func @transform_0(%arg0: i32, %arg1: i32, %arg2: i32) -> (i32, i32) {
    %c0_i32 = arith.constant 0 : i32
    return %arg0, %arg2 : i32, i32
  }
  func.func @transform_1(%arg0: i32, %arg1: i32, %arg2: i32) -> (i32, i32) {
    %c0_i32 = arith.constant 0 : i32
    return %arg2, %arg1 : i32, i32
  }
  func.func @transform_2(%arg0: i32, %arg1: i32, %arg2: i32) -> (i32, i32) {
    %c0_i32 = arith.constant 0 : i32
    %c0_i32_0 = arith.constant 0 : i32
    return %c0_i32, %arg1 : i32, i32
  }
  func.func @transform_3(%arg0: i32, %arg1: i32, %arg2: i32) -> (i32, i32) {
    %c0_i32 = arith.constant 0 : i32
    %c0_i32_0 = arith.constant 0 : i32
    return %c0_i32, %arg1 : i32, i32
  }
  func.func @transform_4(%arg0: i32, %arg1: i32, %arg2: i32) -> (i32, i32) {
    %c0_i32 = arith.constant 0 : i32
    return %arg0, %arg1 : i32, i32
  }
}

</mosaic_0001>

<bundles_post_ra>
// kernel: _lambda_.13
= control target key start
LH: loop header
LB: loop body
LE: loop exit
PB: predicated region body
PF: predicated region fallthrough
CT: control target
= control target key end

     0   :  { %s414_s0 = inlined_call_operand.vmem [shape: bf16[32,1024], index: 0, kind: input, shape index: {}]   ;;  %s415_s1 = inlined_call_operand.vmem [shape: bf16[32,1024], index: 1, kind: input, shape index: {}]   ;;  %s416_s2 = inlined_call_operand.vmem [shape: bf16[32,1024], index: 2, kind: input, shape index: {}]   ;;  %s417_s3 = inlined_call_operand.vmem [shape: bf16[32,1024], index: 3, kind: input, shape index: {}]   ;;  %s418_s4 = inlined_call_operand.vmem [shape: bf16[32,1024], index: 4, kind: output, shape index: {}]  }
   0x1   :  { %v17_v0 = vld [vmem:[%s414_s0] sm:$0xff]  ;;  %v18_v5 = vld [vmem:[%s414_s0 + $0x8] sm:$0xff]  ;;  %v19_v11 = vld [vmem:[%s414_s0 + $0x10] sm:$0xff] }
   0x2   :  { %v33_v1 = vld [vmem:[%s415_s1] sm:$0xff]  ;;  %v34_v6 = vld [vmem:[%s415_s1 + $0x8] sm:$0xff]  ;;  %v35_v13 = vld [vmem:[%s415_s1 + $0x10] sm:$0xff] }
   0x3   :  { %v65_v2 = vld [vmem:[%s416_s2] sm:$0xff]  ;;  %v49_v3 = vmax.bf16 %v33_v1, %v17_v0  ;;  %v50_v8 = vmax.bf16 %v34_v6, %v18_v5  ;;  %v66_v9 = vld [vmem:[%s416_s2 + $0x8] sm:$0xff]  ;;  %v67_v14 = vld [vmem:[%s416_s2 + $0x10] sm:$0xff]  ;;  %v51_v17 = vmax.bf16 %v35_v13, %v19_v11 }
   0x4   :  { %v81_v4 = vld [vmem:[%s417_s3] sm:$0xff]  ;;  %v82_v10 = vld [vmem:[%s417_s3 + $0x8] sm:$0xff]  ;;  %v83_v15 = vld [vmem:[%s417_s3 + $0x10] sm:$0xff] }
   0x5   :  { %v97_v7 = vmax.bf16 %v81_v4, %v65_v2  ;;  %v98_v12 = vmax.bf16 %v82_v10, %v66_v9  ;;  %v99_v18 = vmax.bf16 %v83_v15, %v67_v14  ;;  %v20_v19 = vld [vmem:[%s414_s0 + $0x18] sm:$0xff]  ;;  %v21_v25 = vld [vmem:[%s414_s0 + $0x20] sm:$0xff]  ;;  %v22_v32 = vld [vmem:[%s414_s0 + $0x28] sm:$0xff] }
   0x6   :  { %v36_v20 = vld [vmem:[%s415_s1 + $0x18] sm:$0xff]  ;;  %v37_v26 = vld [vmem:[%s415_s1 + $0x20] sm:$0xff]  ;;  %v38_v34 = vld [vmem:[%s415_s1 + $0x28] sm:$0xff] }
   0x7   :  { %v113_v16 = vmax.bf16 %v97_v7, %v49_v3  ;;  %v68_v21 = vld [vmem:[%s416_s2 + $0x18] sm:$0xff]  ;;  %v114_v22 = vmax.bf16 %v98_v12, %v50_v8  ;;  %v52_v23 = vmax.bf16 %v36_v20, %v20_v19  ;;  %v115_v27 = vmax.bf16 %v99_v18, %v51_v17  ;;  %v69_v30 = vld [vmem:[%s416_s2 + $0x20] sm:$0xff]  ;;  %v70_v35 = vld [vmem:[%s416_s2 + $0x28] sm:$0xff] }
   0x8   :  { %v84_v24 = vld [vmem:[%s417_s3 + $0x18] sm:$0xff]  ;;  %v53_v29 = vmax.bf16 %v37_v26, %v21_v25  ;;  %v85_v31 = vld [vmem:[%s417_s3 + $0x20] sm:$0xff]  ;;  %v86_v36 = vld [vmem:[%s417_s3 + $0x28] sm:$0xff]  ;;  %v54_v38 = vmax.bf16 %v38_v34, %v22_v32 }
   0x9   :  { %129 = vst [vmem:[%s418_s4] sm:$0xff] %v113_v16  ;;  %v100_v28 = vmax.bf16 %v84_v24, %v68_v21  ;;  %130 = vst [vmem:[%s418_s4 + $0x8] sm:$0xff] %v114_v22  ;;  %v101_v33 = vmax.bf16 %v85_v31, %v69_v30  ;;  %v102_v39 = vmax.bf16 %v86_v36, %v70_v35  ;;  %v23_v40 = vld [vmem:[%s414_s0 + $0x30] sm:$0xff]  ;;  %v24_v46 = vld [vmem:[%s414_s0 + $0x38] sm:$0xff] }
   0xa   :  { %131 = vst [vmem:[%s418_s4 + $0x10] sm:$0xff] %v115_v27  ;;  %v39_v41 = vld [vmem:[%s415_s1 + $0x30] sm:$0xff]  ;;  %v40_v47 = vld [vmem:[%s415_s1 + $0x38] sm:$0xff]  ;;  %v25_v53 = vld [vmem:[%s414_s0 + $0x40] sm:$0xff] }
   0xb   :  { %v116_v37 = vmax.bf16 %v100_v28, %v52_v23  ;;  %v71_v42 = vld [vmem:[%s416_s2 + $0x30] sm:$0xff]  ;;  %v117_v43 = vmax.bf16 %v101_v33, %v53_v29  ;;  %v55_v44 = vmax.bf16 %v39_v41, %v23_v40  ;;  %v118_v48 = vmax.bf16 %v102_v39, %v54_v38  ;;  %v72_v51 = vld [vmem:[%s416_s2 + $0x38] sm:$0xff]  ;;  %v41_v55 = vld [vmem:[%s415_s1 + $0x40] sm:$0xff] }
   0xc   :  { %v87_v45 = vld [vmem:[%s417_s3 + $0x30] sm:$0xff]  ;;  %v56_v50 = vmax.bf16 %v40_v47, %v24_v46  ;;  %v88_v52 = vld [vmem:[%s417_s3 + $0x38] sm:$0xff]  ;;  %v73_v56 = vld [vmem:[%s416_s2 + $0x40] sm:$0xff]  ;;  %v57_v59 = vmax.bf16 %v41_v55, %v25_v53 }
   0xd   :  { %132 = vst [vmem:[%s418_s4 + $0x18] sm:$0xff] %v116_v37  ;;  %v103_v49 = vmax.bf16 %v87_v45, %v71_v42  ;;  %133 = vst [vmem:[%s418_s4 + $0x20] sm:$0xff] %v117_v43  ;;  %v104_v54 = vmax.bf16 %v88_v52, %v72_v51  ;;  %v89_v57 = vld [vmem:[%s417_s3 + $0x40] sm:$0xff]  ;;  %v26_v61 = vld [vmem:[%s414_s0 + $0x48] sm:$0xff] }
   0xe   :  { %134 = vst [vmem:[%s418_s4 + $0x28] sm:$0xff] %v118_v48  ;;  %v105_v60 = vmax.bf16 %v89_v57, %v73_v56  ;;  %v42_v62 = vld [vmem:[%s415_s1 + $0x48] sm:$0xff]  ;;  %v27_v3 = vld [vmem:[%s414_s0 + $0x50] sm:$0xff]  ;;  %v28_v10 = vld [vmem:[%s414_s0 + $0x58] sm:$0xff] }
   0xf   :  { %v119_v58 = vmax.bf16 %v103_v49, %v55_v44  ;;  %v74_v63 = vld [vmem:[%s416_s2 + $0x48] sm:$0xff]  ;;  %v120_v0 = vmax.bf16 %v104_v54, %v56_v50  ;;  %v58_v1 = vmax.bf16 %v42_v62, %v26_v61  ;;  %v43_v4 = vld [vmem:[%s415_s1 + $0x50] sm:$0xff]  ;;  %v44_v12 = vld [vmem:[%s415_s1 + $0x58] sm:$0xff] }
  0x10   :  { %v90_v2 = vld [vmem:[%s417_s3 + $0x48] sm:$0xff]  ;;  %v121_v5 = vmax.bf16 %v105_v60, %v57_v59  ;;  %v59_v7 = vmax.bf16 %v43_v4, %v27_v3  ;;  %v75_v8 = vld [vmem:[%s416_s2 + $0x50] sm:$0xff]  ;;  %v76_v13 = vld [vmem:[%s416_s2 + $0x58] sm:$0xff]  ;;  %v60_v16 = vmax.bf16 %v44_v12, %v28_v10 }
  0x11   :  { %135 = vst [vmem:[%s418_s4 + $0x30] sm:$0xff] %v119_v58  ;;  %v106_v6 = vmax.bf16 %v90_v2, %v74_v63  ;;  %v91_v9 = vld [vmem:[%s417_s3 + $0x50] sm:$0xff]  ;;  %136 = vst [vmem:[%s418_s4 + $0x38] sm:$0xff] %v120_v0  ;;  %v92_v14 = vld [vmem:[%s417_s3 + $0x58] sm:$0xff] }
  0x12   :  { %v107_v11 = vmax.bf16 %v91_v9, %v75_v8  ;;  %137 = vst [vmem:[%s418_s4 + $0x40] sm:$0xff] %v121_v5  ;;  %v108_v17 = vmax.bf16 %v92_v14, %v76_v13  ;;  %v29_v18 = vld [vmem:[%s414_s0 + $0x60] sm:$0xff]  ;;  %v30_v24 = vld [vmem:[%s414_s0 + $0x68] sm:$0xff]  ;;  %v31_v31 = vld [vmem:[%s414_s0 + $0x70] sm:$0xff] }
  0x13   :  { %v122_v15 = vmax.bf16 %v106_v6, %v58_v1  ;;  %v45_v19 = vld [vmem:[%s415_s1 + $0x60] sm:$0xff]  ;;  %v46_v25 = vld [vmem:[%s415_s1 + $0x68] sm:$0xff]  ;;  %v47_v33 = vld [vmem:[%s415_s1 + $0x70] sm:$0xff] }
  0x14   :  { %v77_v20 = vld [vmem:[%s416_s2 + $0x60] sm:$0xff]  ;;  %v123_v21 = vmax.bf16 %v107_v11, %v59_v7  ;;  %v61_v22 = vmax.bf16 %v45_v19, %v29_v18  ;;  %v124_v26 = vmax.bf16 %v108_v17, %v60_v16  ;;  %v62_v28 = vmax.bf16 %v46_v25, %v30_v24  ;;  %v78_v29 = vld [vmem:[%s416_s2 + $0x68] sm:$0xff]  ;;  %v79_v34 = vld [vmem:[%s416_s2 + $0x70] sm:$0xff] }
  0x15   :  { %v93_v23 = vld [vmem:[%s417_s3 + $0x60] sm:$0xff]  ;;  %138 = vst [vmem:[%s418_s4 + $0x48] sm:$0xff] %v122_v15  ;;  %v94_v30 = vld [vmem:[%s417_s3 + $0x68] sm:$0xff]  ;;  %v95_v35 = vld [vmem:[%s417_s3 + $0x70] sm:$0xff]  ;;  %v63_v37 = vmax.bf16 %v47_v33, %v31_v31 }
  0x16   :  { %v109_v27 = vmax.bf16 %v93_v23, %v77_v20  ;;  %139 = vst [vmem:[%s418_s4 + $0x50] sm:$0xff] %v123_v21  ;;  %v110_v32 = vmax.bf16 %v94_v30, %v78_v29  ;;  %140 = vst [vmem:[%s418_s4 + $0x58] sm:$0xff] %v124_v26  ;;  %v111_v38 = vmax.bf16 %v95_v35, %v79_v34  ;;  %v32_v39 = vld [vmem:[%s414_s0 + $0x78] sm:$0xff] }
  0x17   :  { %v48_v40 = vld [vmem:[%s415_s1 + $0x78] sm:$0xff] }
  0x18   :  { %v125_v36 = vmax.bf16 %v109_v27, %v61_v22  ;;  %v80_v41 = vld [vmem:[%s416_s2 + $0x78] sm:$0xff]  ;;  %v126_v42 = vmax.bf16 %v110_v32, %v62_v28  ;;  %v64_v43 = vmax.bf16 %v48_v40, %v32_v39  ;;  %v127_v45 = vmax.bf16 %v111_v38, %v63_v37 }
  0x19   :  { %v96_v44 = vld [vmem:[%s417_s3 + $0x78] sm:$0xff] }
  0x1a   :  { %141 = vst [vmem:[%s418_s4 + $0x60] sm:$0xff] %v125_v36  ;;  %v112_v46 = vmax.bf16 %v96_v44, %v80_v41  ;;  %142 = vst [vmem:[%s418_s4 + $0x68] sm:$0xff] %v126_v42 }
  0x1b   :  { %143 = vst [vmem:[%s418_s4 + $0x70] sm:$0xff] %v127_v45 }
  0x1c   :  { %v128_v47 = vmax.bf16 %v112_v46, %v64_v43 }
  0x1e   :  { %144 = vst [vmem:[%s418_s4 + $0x78] sm:$0xff] %v128_v47 }

// kernel: _lambda_.12
= control target key start
LH: loop header
LB: loop body
LE: loop exit
PB: predicated region body
PF: predicated region fallthrough
CT: control target
= control target key end

     0   :  { %9 = vsyncpa [#allocation4], 0  ;;  %s2924_s0 = inlined_call_operand.vmem [shape: bf16[2048,128], index: 0, kind: input, shape index: {}]   ;;  %s2925_s1 = inlined_call_operand.hbm [shape: bf16[128,128], index: 1, kind: input, shape index: {}]   ;;  %s2926_s2 = inlined_call_operand.hbm [shape: f32[1,128], index: 2, kind: input, shape index: {}]   ;;  %s2927_s3 = inlined_call_operand.vmem [shape: f32[1,128], index: 3, kind: input, shape index: {}]   ;;  %s2928_s4 = inlined_call_operand.vmem [shape: bf16[2048,128], index: 4, kind: output, shape index: {}]  }
   0x1   :  { %10 = vsyncpa [#allocation6], 0  ;;  %s2601_s15 = smov 0   ;;  %s2603_s16 = smov 0  }
   0x2   :  { %s2605_s17 = smov 0  }
   0x3 LB: > { %s1884_s18 = sadd.s32 4294967295, %s2570_s17   ;;  %s35_s19 = sadd.s32 1, %s2566_s16  ;;  %s2570_s17 = sphi %s2605_s17, %s16_s17   ;;  %s2566_s16 = sphi %s2603_s16, %s2938_s16   ;;  %s2562_s15 = sphi %s2601_s15, %s2937_s15  }
   0x4   : > { %p37_p0 = scmp.ge.s32.totalorder %s35_s19, 4  ;;  %p1886_p1 = scmp.ge.s32.totalorder %s2570_s17, 1 }
   0x5   : > { %p176_p2 = scmp.lt.s32.totalorder %s2570_s17, 5  ;;  %p2626_p4 = scmp.eq.s32.totalorder %s1884_s18, 0 }
   0x6   : > { %s2940_s19 = smov (%p37_p0, %s35_s19), 0  ;;  %s2572_s22 = smov [#allocation3]  }
   0x7   : > { %p2622_p3 = pnand %p1886_p1, %p176_p2  ;;  %s192_s23 = sshll.u32 %s2572_s22, 4  ;;  %s193_s23 = int_to_ptr.vmem [resolvable:$true] %s192_s23 }
   0x8   : > { %s2933_s21 = scalar_select %p2626_p4, 1, 0 }
   0x9   : > { %s2932_s20 = scalar_select %p2622_p3, 1, 0 }
   0xa   : > { %p2405_p5 = pneg %p2622_p3  ;;  %s2573_s25 = smov [#allocation5]  }
   0xb   : > { %s208_s26 = sshll.u32 %s2573_s25, 4  ;;  %s2484_s29 = scalar_lea.hbm %s2925_s1, 1024  ;;  %s2638_s26 = int_to_ptr.vmem [resolvable:$true] %s208_s26 }
   0xc   : > { %p2634_p6 = pnand %p2626_p4, %p2405_p5  ;;  %p2485_p7 = scmp.ne.s32.totalorder %s2925_s1, %s2484_s29 }
   0xd   : > { %p2491_p11 = scmp.lt.u32.totalorder %s2484_s29, %s2925_s1 }
   0xe   : > { %p2486_p8 = pneg %p2634_p6 }
  0x10   : > { %p2487_p9 = pnand %p2486_p8, %p2485_p7 }
  0x12   : > { %p2488_p10 = pneg %p2487_p9 }
  0x14   : > { %p2493_p12 = pnand %p2491_p11, %p2488_p10 }
  0x16   : > { %2496 = shalt.err (!%p2493_p12)
}
  0x17   : > { %s2497_s8 = scalar_lea.vmem %s193_s23, 1024  ;;  %p2505_p2 = scmp.lt.s32.totalorder %s193_s23, %s193_s23 }
  0x18   : > { %p2498_p13 = scmp.ne.s32.totalorder %s193_s23, %s2497_s8  ;;  %p2506_p5 = scmp.lt.s32.totalorder %s2497_s8, %s2497_s8 }
  0x1a   : > { %p2500_p0 = pnand %p2498_p13, %p2486_p8  ;;  %p2507_p4 = por %p2506_p5, %p2505_p2 }
  0x1c   : > { %p2501_p1 = pneg %p2500_p0 }
  0x1e   : > { %p2508_p3 = pnand %p2507_p4, %p2501_p1 }
  0x20   : > { %2511 = shalt.err (!%p2508_p3)
}
  0x21   : > { %s2574_s9 = smov 64   ;;  %s2575_s10 = smov 4  }
  0x22   : > { %2408 = dma.hbm_to_vmem [thread:$0]  (!%p2634_p6), %s2925_s1, 1024, %s193_s23, [#allocation4], %s2574_s9, %s2574_s9, %s2575_s10  }
  0x23   : > { %s2512_s18 = scalar_lea.hbm %s2926_s2, 16 }
  0x24   : > { %p2513_p7 = scmp.ne.s32.totalorder %s2926_s2, %s2512_s18  ;;  %p2519_p9 = scmp.lt.u32.totalorder %s2512_s18, %s2926_s2 }
  0x26   : > { %p2515_p3 = pnand %p2513_p7, %p2486_p8 }
  0x28   : > { %p2516_p4 = pneg %p2515_p3 }
  0x2a   : > { %p2521_p10 = pnand %p2519_p9, %p2516_p4 }
  0x2c   : > { %2524 = shalt.err (!%p2521_p10)
}
  0x2d   : > { %s2525_s23 = scalar_lea.vmem %s2638_s26, 16  ;;  %s2532_s29 = scalar_lea.vmem %s2638_s26, 32 }
  0x2e   : > { %p2526_p11 = scmp.ne.s32.totalorder %s2638_s26, %s2525_s23  ;;  %p2533_p0 = scmp.lt.s32.totalorder %s2638_s26, %s2638_s26 }
  0x2f   : > { %p2534_p1 = scmp.lt.s32.totalorder %s2532_s29, %s2525_s23 }
  0x30   : > { %p2528_p12 = pnand %p2526_p11, %p2486_p8 }
  0x31   : > { %p2535_p2 = por %p2534_p1, %p2533_p0 }
  0x32   : > { %p2529_p13 = pneg %p2528_p12 }
  0x34   : > { %p2536_p5 = pnand %p2535_p2, %p2529_p13 }
  0x36   : > { %2539 = shalt.err (!%p2536_p5)
}
  0x37   : > { %2411 = dma.hbm_to_vmem [thread:$0]  (!%p2634_p6), %s2926_s2, 16, %s2638_s26, [#allocation6]  }
  0x38   : > { %p2935_p7 = scmp.ne.s32.totalorder %s2932_s20, 0 }
  0x39   : > { %p2936_p8 = scmp.ne.s32.totalorder (!%p2935_p7), %s2933_s21, 0 }
  0x3a   : > { %239 = sbr.rel (%p2935_p7) target bundleno = 382 (0x17e), region = 36 }
  0x41   : > { %2553 = dma.done.wait (%p2936_p8), [#allocation4], 1024  }
  0x42   : > { %2555 = vsyncadd (%p2936_p8), [#allocation4], 4294966272 }
  0x43   : > { %2557 = dma.done.wait (%p2936_p8), [#allocation6], 16  }
  0x44   : > { %2559 = vsyncadd (%p2936_p8), [#allocation6], 4294967280  ;;  %s1894_s24 = sshll.u32 %s2562_s15, 6  ;;  %v2444_v0 = vld [vmem:[#allocation3] sm:$0xff]   ;;  %v2445_v1 = vld [vmem:[#allocation3 + $0x8] sm:$0xff]  }
  0x45   : > { %p279_p3 = scmp.lt.s32.totalorder %s1894_s24, 255  ;;  %2301 = vmatprep.subr.bf16.mxu0 %v2444_v0  ;;  %2381 = vmatprep.subr.bf16.mxu1 %v2444_v0  ;;  %v2446_v2 = vld [vmem:[#allocation3 + $0x10] sm:$0xff]   ;;  %v2447_v3 = vld [vmem:[#allocation3 + $0x18] sm:$0xff]   ;;  %v2448_v6 = vld [vmem:[#allocation3 + $0x20] sm:$0xff]  }
  0x46   : > { %2302 = vmatpush3.bf16.msra.mxu0 %v2444_v0  ;;  %2389 = vmatpush3.bf16.msra.mxu1 %v2444_v0  ;;  %v2449_v7 = vld [vmem:[#allocation3 + $0x28] sm:$0xff]   ;;  %v2450_v8 = vld [vmem:[#allocation3 + $0x30] sm:$0xff]   ;;  %v2451_v9 = vld [vmem:[#allocation3 + $0x38] sm:$0xff]  }
  0x47   : > { %s2942_s24 = smov (!%p279_p3, %s1894_s24), 255  ;;  %2303 = vmatprep.subr.bf16.mxu0 %v2445_v1  ;;  %2382 = vmatprep.subr.bf16.mxu1 %v2445_v1  ;;  %v2741_v40 = vld [vmem:[#allocation5] ss:$0 sm:$0xff] }
  0x48   : > { %s1895_s20 = sshll.u32 %s2942_s24, 2  ;;  %v2746_v42 = vld [vmem:[%s2927_s3] ss:$0 sm:$0xff] }
  0x49   : > { %s2707_s15 = scalar_lea.vmem %s2924_s0, %s1895_s20  ;;  %s2769_s10 = scalar_lea.vmem %s2928_s4, %s1895_s20 }
  0x4a   : > { %2304 = vmatpush3.bf16.msra.mxu0 %v2445_v1  ;;  %2390 = vmatpush3.bf16.msra.mxu1 %v2445_v1  ;;  %v2452_v4 = vld [vmem:[%s2707_s15] sm:$0xff]   ;;  %v2454_v10 = vld [vmem:[%s2707_s15 + $0x8] sm:$0xff]   ;;  %v2456_v12 = vld [vmem:[%s2707_s15 + $0x10] sm:$0xff]  }
  0x4b   : > { %2305 = vmatprep.subr.bf16.mxu0 %v2446_v2  ;;  %2383 = vmatprep.subr.bf16.mxu1 %v2446_v2  ;;  %v2453_v5 = vld [vmem:[%s2707_s15 + $0x80] sm:$0xff]   ;;  %v2455_v11 = vld [vmem:[%s2707_s15 + $0x88] sm:$0xff]   ;;  %v2457_v13 = vld [vmem:[%s2707_s15 + $0x90] sm:$0xff]  }
  0x4c   : > { %2317 = vmatprep.mubr.bf16.mxu0 %v2452_v4  ;;  %2349 = vmatprep.mubr.bf16.mxu1 %v2453_v5  ;;  %v2458_v14 = vld [vmem:[%s2707_s15 + $0x18] sm:$0xff]   ;;  %v2460_v16 = vld [vmem:[%s2707_s15 + $0x20] sm:$0xff]   ;;  %v2462_v18 = vld [vmem:[%s2707_s15 + $0x28] sm:$0xff]  }
  0x4d   : > { %v2459_v15 = vld [vmem:[%s2707_s15 + $0x98] sm:$0xff]   ;;  %v2461_v17 = vld [vmem:[%s2707_s15 + $0xa0] sm:$0xff]   ;;  %v2463_v19 = vld [vmem:[%s2707_s15 + $0xa8] sm:$0xff]  }
  0x4e   : > { %2306 = vmatpush3.bf16.msra.mxu0 %v2446_v2  ;;  %2391 = vmatpush3.bf16.msra.mxu1 %v2446_v2  ;;  %v2464_v20 = vld [vmem:[%s2707_s15 + $0x30] sm:$0xff]   ;;  %v2466_v22 = vld [vmem:[%s2707_s15 + $0x38] sm:$0xff]   ;;  %v2468_v24 = vld [vmem:[%s2707_s15 + $0x40] sm:$0xff]  }
  0x4f   : > { %2307 = vmatprep.subr.bf16.mxu0 %v2447_v3  ;;  %2384 = vmatprep.subr.bf16.mxu1 %v2447_v3  ;;  %v2465_v21 = vld [vmem:[%s2707_s15 + $0xb0] sm:$0xff]   ;;  %v2467_v23 = vld [vmem:[%s2707_s15 + $0xb8] sm:$0xff]   ;;  %v2469_v25 = vld [vmem:[%s2707_s15 + $0xc0] sm:$0xff]  }
  0x50   : > { %v2470_v26 = vld [vmem:[%s2707_s15 + $0x48] sm:$0xff]   ;;  %v2472_v28 = vld [vmem:[%s2707_s15 + $0x50] sm:$0xff]   ;;  %v2474_v30 = vld [vmem:[%s2707_s15 + $0x58] sm:$0xff]  }
  0x51   : > { %v2471_v27 = vld [vmem:[%s2707_s15 + $0xc8] sm:$0xff]   ;;  %v2473_v29 = vld [vmem:[%s2707_s15 + $0xd0] sm:$0xff]   ;;  %v2475_v31 = vld [vmem:[%s2707_s15 + $0xd8] sm:$0xff]  }
  0x52   : > { %2308 = vmatpush3.bf16.msra.mxu0 %v2447_v3  ;;  %2392 = vmatpush3.bf16.msra.mxu1 %v2447_v3  ;;  %v2476_v32 = vld [vmem:[%s2707_s15 + $0x60] sm:$0xff]   ;;  %v2478_v34 = vld [vmem:[%s2707_s15 + $0x68] sm:$0xff]   ;;  %v2480_v36 = vld [vmem:[%s2707_s15 + $0x70] sm:$0xff]  }
  0x53   : > { %2309 = vmatprep.subr.bf16.mxu0 %v2448_v6  ;;  %2385 = vmatprep.subr.bf16.mxu1 %v2448_v6  ;;  %v2477_v33 = vld [vmem:[%s2707_s15 + $0xe0] sm:$0xff]   ;;  %v2479_v35 = vld [vmem:[%s2707_s15 + $0xe8] sm:$0xff]   ;;  %v2481_v37 = vld [vmem:[%s2707_s15 + $0xf0] sm:$0xff]  }
  0x54   : > { %v2482_v38 = vld [vmem:[%s2707_s15 + $0x78] sm:$0xff]  }
  0x55   : > { %v2483_v39 = vld [vmem:[%s2707_s15 + $0xf8] sm:$0xff]  }
  0x56   : > { %2310 = vmatpush3.bf16.msra.mxu0 %v2448_v6  ;;  %2393 = vmatpush3.bf16.msra.mxu1 %v2448_v6 }
  0x57   : > { %2311 = vmatprep.subr.bf16.mxu0 %v2449_v7  ;;  %2386 = vmatprep.subr.bf16.mxu1 %v2449_v7 }
  0x5a   : > { %2312 = vmatpush3.bf16.msra.mxu0 %v2449_v7  ;;  %2394 = vmatpush3.bf16.msra.mxu1 %v2449_v7 }
  0x5b   : > { %2313 = vmatprep.subr.bf16.mxu0 %v2450_v8  ;;  %2387 = vmatprep.subr.bf16.mxu1 %v2450_v8 }
  0x5e   : > { %2314 = vmatpush3.bf16.msra.mxu0 %v2450_v8  ;;  %2395 = vmatpush3.bf16.msra.mxu1 %v2450_v8 }
  0x5f   : > { %2315 = vmatprep.subr.bf16.mxu0 %v2451_v9  ;;  %2388 = vmatprep.subr.bf16.mxu1 %v2451_v9 }
  0x62   : > { %2316 = vmatpush3.bf16.msra.mxu0 %v2451_v9  ;;  %2396 = vmatpush3.bf16.msra.mxu1 %v2451_v9 }
  0x65   : > { %2318 = vmatmul.mubr.bf16.vlgmr.msra.gmra.mrb[0].mxu0 %v2454_v10  ;;  %2350 = vmatmul.mubr.bf16.vlgmr.msra.gmra.mrb[0].mxu1 %v2455_v11 }
  0x66   : > { %2321 = vmatprep.mubr.bf16.mxu0 %v2456_v12  ;;  %2353 = vmatprep.mubr.bf16.mxu1 %v2457_v13 }
  0x6d   : > { %2322 = vmatmul.mubr.bf16.gmra.mrb[4].mxu0 %v2458_v14  ;;  %2354 = vmatmul.mubr.bf16.gmra.mrb[4].mxu1 %v2459_v15 }
  0x6e   : > { %2325 = vmatprep.mubr.bf16.mxu0 %v2460_v16  ;;  %2357 = vmatprep.mubr.bf16.mxu1 %v2461_v17 }
  0x75   : > { %2326 = vmatmul.mubr.bf16.gmra.mrb[8].mxu0 %v2462_v18  ;;  %2358 = vmatmul.mubr.bf16.gmra.mrb[8].mxu1 %v2463_v19 }
  0x76   : > { %2329 = vmatprep.mubr.bf16.mxu0 %v2464_v20  ;;  %2361 = vmatprep.mubr.bf16.mxu1 %v2465_v21 }
  0x7d   : > { %2330 = vmatmul.mubr.bf16.gmra.mrb[12].mxu0 %v2466_v22  ;;  %2362 = vmatmul.mubr.bf16.gmra.mrb[12].mxu1 %v2467_v23 }
  0x7e   : > { %2333 = vmatprep.mubr.bf16.mxu0 %v2468_v24  ;;  %2365 = vmatprep.mubr.bf16.mxu1 %v2469_v25 }
  0x85   : > { %2334 = vmatmul.mubr.bf16.gmra.mrb[16].mxu0 %v2470_v26  ;;  %2366 = vmatmul.mubr.bf16.gmra.mrb[16].mxu1 %v2471_v27 }
  0x86   : > { %2337 = vmatprep.mubr.bf16.mxu0 %v2472_v28  ;;  %2369 = vmatprep.mubr.bf16.mxu1 %v2473_v29 }
  0x8d   : > { %2338 = vmatmul.mubr.bf16.gmra.mrb[20].mxu0 %v2474_v30  ;;  %2370 = vmatmul.mubr.bf16.gmra.mrb[20].mxu1 %v2475_v31 }
  0x8e   : > { %2341 = vmatprep.mubr.bf16.mxu0 %v2476_v32  ;;  %2373 = vmatprep.mubr.bf16.mxu1 %v2477_v33 }
  0x95   : > { %2342 = vmatmul.mubr.bf16.gmra.mrb[24].mxu0 %v2478_v34  ;;  %2374 = vmatmul.mubr.bf16.gmra.mrb[24].mxu1 %v2479_v35 }
  0x96   : > { %2345 = vmatprep.mubr.bf16.mxu0 %v2480_v36  ;;  %2377 = vmatprep.mubr.bf16.mxu1 %v2481_v37 }
  0x9d   : > { %2346 = vmatmul.mubr.bf16.gmra.mrb[28].mxu0 %v2482_v38  ;;  %2378 = vmatmul.mubr.bf16.gmra.mrb[28].mxu1 %v2483_v39 }
 0x138   : > { %v2319_v41 = vpop.f32.mrb[0].mxu0  ;;  %v2351_v43 = vpop.f32.mrb[0].mxu1 }
 0x139   : > { %v1246_v44 = vmul.f32 %v2319_v41, %v2741_v40  ;;  %v1278_v45 = vmul.f32 %v2351_v43, %v2741_v40  ;;  %v787_v46 = vpop.f32.mrb[1].mxu0  ;;  %v915_v47 = vpop.f32.mrb[1].mxu1 }
 0x13a   : > { %v1244_v48 = vmul.f32 %v2741_v40, %v787_v46  ;;  %v1276_v49 = vmul.f32 %v2741_v40, %v915_v47  ;;  %v2320_v50 = vpop.f32.mrb[2].mxu0  ;;  %v2352_v51 = vpop.f32.mrb[2].mxu1 }
 0x13b   : > { %v1317_v52 = vadd.f32 %v2746_v42, %v1246_v44  ;;  %v1349_v53 = vadd.f32 %v2746_v42, %v1278_v45  ;;  %v1247_v54 = vmul.f32 %v2320_v50, %v2741_v40  ;;  %v1279_v55 = vmul.f32 %v2352_v51, %v2741_v40  ;;  %v790_v56 = vpop.f32.mrb[3].mxu0  ;;  %v918_v57 = vpop.f32.mrb[3].mxu1 }
 0x13c   : > { %v1315_v58 = vadd.f32 %v2746_v42, %v1244_v48  ;;  %v1347_v59 = vadd.f32 %v2746_v42, %v1276_v49  ;;  %v1245_v60 = vmul.f32 %v2741_v40, %v790_v56  ;;  %v1277_v61 = vmul.f32 %v2741_v40, %v918_v57 }
 0x13d   : > { %v1318_v62 = vadd.f32 %v2746_v42, %v1247_v54  ;;  %v1350_v63 = vadd.f32 %v2746_v42, %v1279_v55  ;;  %v1381_v2 = vmax.f32 %v1317_v52, 0.0  ;;  %v1413_v3 = vmax.f32 %v1349_v53, 0.0 }
 0x13e   : > { %v1316_v0 = vadd.f32 %v2746_v42, %v1245_v60  ;;  %v1348_v1 = vadd.f32 %v2746_v42, %v1277_v61  ;;  %v1379_v6 = vmax.f32 %v1315_v58, 0.0  ;;  %v1411_v7 = vmax.f32 %v1347_v59, 0.0 }
 0x13f   : > { %v1382_v4 = vmax.f32 %v1318_v62, 0.0  ;;  %v1414_v5 = vmax.f32 %v1350_v63, 0.0 }
 0x140   : > { %v1380_v8 = vmax.f32 %v1316_v0, 0.0  ;;  %v1412_v9 = vmax.f32 %v1348_v1, 0.0  ;;  %v2323_v10 = vpop.f32.mrb[4].mxu0  ;;  %v2355_v11 = vpop.f32.mrb[4].mxu1 }
 0x141   : > { %v2078_v12 = vpack.c.bf16 %v1382_v4, %v1381_v2  ;;  %v2158_v13 = vpack.c.bf16 %v1414_v5, %v1413_v3  ;;  %v1250_v14 = vmul.f32 %v2323_v10, %v2741_v40  ;;  %v1282_v15 = vmul.f32 %v2355_v11, %v2741_v40  ;;  %v803_v16 = vpop.f32.mrb[5].mxu0  ;;  %v931_v17 = vpop.f32.mrb[5].mxu1 }
 0x142   : > { %v2073_v18 = vpack.c.bf16 %v1380_v8, %v1379_v6  ;;  %v2153_v19 = vpack.c.bf16 %v1412_v9, %v1411_v7  ;;  %v1248_v20 = vmul.f32 %v2741_v40, %v803_v16  ;;  %v1280_v21 = vmul.f32 %v2741_v40, %v931_v17  ;;  %v2324_v22 = vpop.f32.mrb[6].mxu0  ;;  %v2356_v23 = vpop.f32.mrb[6].mxu1 }
 0x143   : > { %2230 = vst [vmem:[%s2769_s10 + $0x8] sm:$0xff] %v2078_v12   ;;  %2246 = vst [vmem:[%s2769_s10 + $0x88] sm:$0xff] %v2158_v13   ;;  %v1321_v24 = vadd.f32 %v2746_v42, %v1250_v14  ;;  %v1353_v25 = vadd.f32 %v2746_v42, %v1282_v15  ;;  %v1251_v26 = vmul.f32 %v2324_v22, %v2741_v40  ;;  %v806_v28 = vpop.f32.mrb[7].mxu0  ;;  %v934_v29 = vpop.f32.mrb[7].mxu1 }
 0x144   : > { %v1283_v27 = vmul.f32 %v2356_v23, %v2741_v40  ;;  %2074 = vst [vmem:[%s2769_s10] sm:$0xff] %v2073_v18   ;;  %2245 = vst [vmem:[%s2769_s10 + $0x80] sm:$0xff] %v2153_v19   ;;  %v1319_v30 = vadd.f32 %v2746_v42, %v1248_v20  ;;  %v1351_v31 = vadd.f32 %v2746_v42, %v1280_v21 }
 0x145   : > { %v1249_v32 = vmul.f32 %v2741_v40, %v806_v28  ;;  %v1281_v33 = vmul.f32 %v2741_v40, %v934_v29  ;;  %v1322_v34 = vadd.f32 %v2746_v42, %v1251_v26  ;;  %v1385_v38 = vmax.f32 %v1321_v24, 0.0 }
 0x146   : > { %v1354_v35 = vadd.f32 %v2746_v42, %v1283_v27  ;;  %v1417_v39 = vmax.f32 %v1353_v25, 0.0  ;;  %v1383_v44 = vmax.f32 %v1319_v30, 0.0  ;;  %v1415_v45 = vmax.f32 %v1351_v31, 0.0 }
 0x147   : > { %v1320_v36 = vadd.f32 %v2746_v42, %v1249_v32  ;;  %v1352_v37 = vadd.f32 %v2746_v42, %v1281_v33  ;;  %v1386_v41 = vmax.f32 %v1322_v34, 0.0 }
 0x148   : > { %v1418_v43 = vmax.f32 %v1354_v35, 0.0  ;;  %v2327_v48 = vpop.f32.mrb[8].mxu0  ;;  %v2359_v49 = vpop.f32.mrb[8].mxu1 }
 0x149   : > { %v1384_v46 = vmax.f32 %v1320_v36, 0.0  ;;  %v1416_v47 = vmax.f32 %v1352_v37, 0.0  ;;  %v2088_v50 = vpack.c.bf16 %v1386_v41, %v1385_v38  ;;  %v1254_v52 = vmul.f32 %v2327_v48, %v2741_v40  ;;  %v819_v54 = vpop.f32.mrb[9].mxu0  ;;  %v947_v55 = vpop.f32.mrb[9].mxu1 }
 0x14a   : > { %v2168_v51 = vpack.c.bf16 %v1418_v43, %v1417_v39  ;;  %v1286_v53 = vmul.f32 %v2359_v49, %v2741_v40  ;;  %v1252_v58 = vmul.f32 %v2741_v40, %v819_v54  ;;  %v1284_v59 = vmul.f32 %v2741_v40, %v947_v55  ;;  %v2328_v60 = vpop.f32.mrb[10].mxu0  ;;  %v2360_v61 = vpop.f32.mrb[10].mxu1 }
 0x14b   : > { %v2083_v56 = vpack.c.bf16 %v1384_v46, %v1383_v44  ;;  %v2163_v57 = vpack.c.bf16 %v1416_v47, %v1415_v45  ;;  %2232 = vst [vmem:[%s2769_s10 + $0x18] sm:$0xff] %v2088_v50   ;;  %v1325_v62 = vadd.f32 %v2746_v42, %v1254_v52  ;;  %v1255_v0 = vmul.f32 %v2328_v60, %v2741_v40  ;;  %v822_v2 = vpop.f32.mrb[11].mxu0  ;;  %v950_v3 = vpop.f32.mrb[11].mxu1 }
 0x14c   : > { %2248 = vst [vmem:[%s2769_s10 + $0x98] sm:$0xff] %v2168_v51   ;;  %v1357_v63 = vadd.f32 %v2746_v42, %v1286_v53  ;;  %v1287_v1 = vmul.f32 %v2360_v61, %v2741_v40  ;;  %v1323_v4 = vadd.f32 %v2746_v42, %v1252_v58  ;;  %v1355_v5 = vadd.f32 %v2746_v42, %v1284_v59 }
 0x14d   : > { %2231 = vst [vmem:[%s2769_s10 + $0x10] sm:$0xff] %v2083_v56   ;;  %2247 = vst [vmem:[%s2769_s10 + $0x90] sm:$0xff] %v2163_v57   ;;  %v1253_v6 = vmul.f32 %v2741_v40, %v822_v2  ;;  %v1285_v7 = vmul.f32 %v2741_v40, %v950_v3  ;;  %v1326_v8 = vadd.f32 %v2746_v42, %v1255_v0  ;;  %v1389_v12 = vmax.f32 %v1325_v62, 0.0 }
 0x14e   : > { %v1358_v9 = vadd.f32 %v2746_v42, %v1287_v1  ;;  %v1421_v13 = vmax.f32 %v1357_v63, 0.0  ;;  %v1387_v16 = vmax.f32 %v1323_v4, 0.0  ;;  %v1419_v17 = vmax.f32 %v1355_v5, 0.0 }
 0x14f   : > { %v1324_v10 = vadd.f32 %v2746_v42, %v1253_v6  ;;  %v1356_v11 = vadd.f32 %v2746_v42, %v1285_v7  ;;  %v1390_v14 = vmax.f32 %v1326_v8, 0.0 }
 0x150   : > { %v1422_v15 = vmax.f32 %v1358_v9, 0.0  ;;  %v2331_v20 = vpop.f32.mrb[12].mxu0  ;;  %v2363_v21 = vpop.f32.mrb[12].mxu1 }
 0x151   : > { %v1388_v18 = vmax.f32 %v1324_v10, 0.0  ;;  %v1420_v19 = vmax.f32 %v1356_v11, 0.0  ;;  %v2098_v22 = vpack.c.bf16 %v1390_v14, %v1389_v12  ;;  %v1258_v24 = vmul.f32 %v2331_v20, %v2741_v40  ;;  %v835_v26 = vpop.f32.mrb[13].mxu0  ;;  %v963_v27 = vpop.f32.mrb[13].mxu1 }
 0x152   : > { %v2178_v23 = vpack.c.bf16 %v1422_v15, %v1421_v13  ;;  %v1290_v25 = vmul.f32 %v2363_v21, %v2741_v40  ;;  %v1256_v30 = vmul.f32 %v2741_v40, %v835_v26  ;;  %v1288_v31 = vmul.f32 %v2741_v40, %v963_v27  ;;  %v2332_v32 = vpop.f32.mrb[14].mxu0  ;;  %v2364_v33 = vpop.f32.mrb[14].mxu1 }
 0x153   : > { %v2093_v28 = vpack.c.bf16 %v1388_v18, %v1387_v16  ;;  %v2173_v29 = vpack.c.bf16 %v1420_v19, %v1419_v17  ;;  %2234 = vst [vmem:[%s2769_s10 + $0x28] sm:$0xff] %v2098_v22   ;;  %v1329_v34 = vadd.f32 %v2746_v42, %v1258_v24  ;;  %v1259_v36 = vmul.f32 %v2332_v32, %v2741_v40  ;;  %v838_v38 = vpop.f32.mrb[15].mxu0  ;;  %v966_v39 = vpop.f32.mrb[15].mxu1 }
 0x154   : > { %2250 = vst [vmem:[%s2769_s10 + $0xa8] sm:$0xff] %v2178_v23   ;;  %v1361_v35 = vadd.f32 %v2746_v42, %v1290_v25  ;;  %v1291_v37 = vmul.f32 %v2364_v33, %v2741_v40  ;;  %v1327_v41 = vadd.f32 %v2746_v42, %v1256_v30  ;;  %v1359_v43 = vadd.f32 %v2746_v42, %v1288_v31 }
 0x155   : > { %2233 = vst [vmem:[%s2769_s10 + $0x20] sm:$0xff] %v2093_v28   ;;  %2249 = vst [vmem:[%s2769_s10 + $0xa0] sm:$0xff] %v2173_v29   ;;  %v1257_v44 = vmul.f32 %v2741_v40, %v838_v38  ;;  %v1289_v45 = vmul.f32 %v2741_v40, %v966_v39  ;;  %v1330_v46 = vadd.f32 %v2746_v42, %v1259_v36  ;;  %v1393_v50 = vmax.f32 %v1329_v34, 0.0 }
 0x156   : > { %v1362_v47 = vadd.f32 %v2746_v42, %v1291_v37  ;;  %v1425_v51 = vmax.f32 %v1361_v35, 0.0  ;;  %v1391_v54 = vmax.f32 %v1327_v41, 0.0  ;;  %v1423_v55 = vmax.f32 %v1359_v43, 0.0 }
 0x157   : > { %v1328_v48 = vadd.f32 %v2746_v42, %v1257_v44  ;;  %v1360_v49 = vadd.f32 %v2746_v42, %v1289_v45  ;;  %v1394_v52 = vmax.f32 %v1330_v46, 0.0 }
 0x158   : > { %v1426_v53 = vmax.f32 %v1362_v47, 0.0  ;;  %v2335_v58 = vpop.f32.mrb[16].mxu0  ;;  %v2367_v59 = vpop.f32.mrb[16].mxu1 }
 0x159   : > { %v1392_v56 = vmax.f32 %v1328_v48, 0.0  ;;  %v1424_v57 = vmax.f32 %v1360_v49, 0.0  ;;  %v2108_v60 = vpack.c.bf16 %v1394_v52, %v1393_v50  ;;  %v1262_v62 = vmul.f32 %v2335_v58, %v2741_v40  ;;  %v851_v0 = vpop.f32.mrb[17].mxu0  ;;  %v979_v1 = vpop.f32.mrb[17].mxu1 }
 0x15a   : > { %v2188_v61 = vpack.c.bf16 %v1426_v53, %v1425_v51  ;;  %v1294_v63 = vmul.f32 %v2367_v59, %v2741_v40  ;;  %v1260_v4 = vmul.f32 %v2741_v40, %v851_v0  ;;  %v1292_v5 = vmul.f32 %v2741_v40, %v979_v1  ;;  %v2336_v6 = vpop.f32.mrb[18].mxu0  ;;  %v2368_v7 = vpop.f32.mrb[18].mxu1 }
 0x15b   : > { %v2103_v2 = vpack.c.bf16 %v1392_v56, %v1391_v54  ;;  %v2183_v3 = vpack.c.bf16 %v1424_v57, %v1423_v55  ;;  %2236 = vst [vmem:[%s2769_s10 + $0x38] sm:$0xff] %v2108_v60   ;;  %v1333_v8 = vadd.f32 %v2746_v42, %v1262_v62  ;;  %v1263_v10 = vmul.f32 %v2336_v6, %v2741_v40  ;;  %v854_v12 = vpop.f32.mrb[19].mxu0  ;;  %v982_v13 = vpop.f32.mrb[19].mxu1 }
 0x15c   : > { %2252 = vst [vmem:[%s2769_s10 + $0xb8] sm:$0xff] %v2188_v61   ;;  %v1365_v9 = vadd.f32 %v2746_v42, %v1294_v63  ;;  %v1295_v11 = vmul.f32 %v2368_v7, %v2741_v40  ;;  %v1331_v14 = vadd.f32 %v2746_v42, %v1260_v4  ;;  %v1363_v15 = vadd.f32 %v2746_v42, %v1292_v5 }
 0x15d   : > { %2235 = vst [vmem:[%s2769_s10 + $0x30] sm:$0xff] %v2103_v2   ;;  %2251 = vst [vmem:[%s2769_s10 + $0xb0] sm:$0xff] %v2183_v3   ;;  %v1261_v16 = vmul.f32 %v2741_v40, %v854_v12  ;;  %v1293_v17 = vmul.f32 %v2741_v40, %v982_v13  ;;  %v1334_v18 = vadd.f32 %v2746_v42, %v1263_v10  ;;  %v1397_v22 = vmax.f32 %v1333_v8, 0.0 }
 0x15e   : > { %v1366_v19 = vadd.f32 %v2746_v42, %v1295_v11  ;;  %v1429_v23 = vmax.f32 %v1365_v9, 0.0  ;;  %v1395_v26 = vmax.f32 %v1331_v14, 0.0  ;;  %v1427_v27 = vmax.f32 %v1363_v15, 0.0 }
 0x15f   : > { %v1332_v20 = vadd.f32 %v2746_v42, %v1261_v16  ;;  %v1364_v21 = vadd.f32 %v2746_v42, %v1293_v17  ;;  %v1398_v24 = vmax.f32 %v1334_v18, 0.0 }
 0x160   : > { %v1430_v25 = vmax.f32 %v1366_v19, 0.0  ;;  %v2339_v30 = vpop.f32.mrb[20].mxu0  ;;  %v2371_v31 = vpop.f32.mrb[20].mxu1 }
 0x161   : > { %v1396_v28 = vmax.f32 %v1332_v20, 0.0  ;;  %v1428_v29 = vmax.f32 %v1364_v21, 0.0  ;;  %v2118_v32 = vpack.c.bf16 %v1398_v24, %v1397_v22  ;;  %v1266_v34 = vmul.f32 %v2339_v30, %v2741_v40  ;;  %v867_v36 = vpop.f32.mrb[21].mxu0  ;;  %v995_v37 = vpop.f32.mrb[21].mxu1 }
 0x162   : > { %v2198_v33 = vpack.c.bf16 %v1430_v25, %v1429_v23  ;;  %v1298_v35 = vmul.f32 %v2371_v31, %v2741_v40  ;;  %v1264_v41 = vmul.f32 %v2741_v40, %v867_v36  ;;  %v1296_v43 = vmul.f32 %v2741_v40, %v995_v37  ;;  %v2340_v44 = vpop.f32.mrb[22].mxu0  ;;  %v2372_v45 = vpop.f32.mrb[22].mxu1 }
 0x163   : > { %v2113_v38 = vpack.c.bf16 %v1396_v28, %v1395_v26  ;;  %v2193_v39 = vpack.c.bf16 %v1428_v29, %v1427_v27  ;;  %2238 = vst [vmem:[%s2769_s10 + $0x48] sm:$0xff] %v2118_v32   ;;  %v1337_v46 = vadd.f32 %v2746_v42, %v1266_v34  ;;  %v1267_v48 = vmul.f32 %v2340_v44, %v2741_v40  ;;  %v870_v50 = vpop.f32.mrb[23].mxu0  ;;  %v998_v51 = vpop.f32.mrb[23].mxu1 }
 0x164   : > { %2254 = vst [vmem:[%s2769_s10 + $0xc8] sm:$0xff] %v2198_v33   ;;  %v1369_v47 = vadd.f32 %v2746_v42, %v1298_v35  ;;  %v1299_v49 = vmul.f32 %v2372_v45, %v2741_v40  ;;  %v1335_v52 = vadd.f32 %v2746_v42, %v1264_v41  ;;  %v1367_v53 = vadd.f32 %v2746_v42, %v1296_v43 }
 0x165   : > { %2237 = vst [vmem:[%s2769_s10 + $0x40] sm:$0xff] %v2113_v38   ;;  %2253 = vst [vmem:[%s2769_s10 + $0xc0] sm:$0xff] %v2193_v39   ;;  %v1265_v54 = vmul.f32 %v2741_v40, %v870_v50  ;;  %v1297_v55 = vmul.f32 %v2741_v40, %v998_v51  ;;  %v1338_v56 = vadd.f32 %v2746_v42, %v1267_v48  ;;  %v1401_v60 = vmax.f32 %v1337_v46, 0.0 }
 0x166   : > { %v1370_v57 = vadd.f32 %v2746_v42, %v1299_v49  ;;  %v1433_v61 = vmax.f32 %v1369_v47, 0.0  ;;  %v1399_v0 = vmax.f32 %v1335_v52, 0.0  ;;  %v1431_v1 = vmax.f32 %v1367_v53, 0.0 }
 0x167   : > { %v1336_v58 = vadd.f32 %v2746_v42, %v1265_v54  ;;  %v1368_v59 = vadd.f32 %v2746_v42, %v1297_v55  ;;  %v1402_v62 = vmax.f32 %v1338_v56, 0.0 }
 0x168   : > { %v1434_v63 = vmax.f32 %v1370_v57, 0.0  ;;  %v2343_v4 = vpop.f32.mrb[24].mxu0  ;;  %v2375_v5 = vpop.f32.mrb[24].mxu1 }
 0x169   : > { %v1400_v2 = vmax.f32 %v1336_v58, 0.0  ;;  %v1432_v3 = vmax.f32 %v1368_v59, 0.0  ;;  %v2128_v6 = vpack.c.bf16 %v1402_v62, %v1401_v60  ;;  %v1270_v8 = vmul.f32 %v2343_v4, %v2741_v40  ;;  %v883_v10 = vpop.f32.mrb[25].mxu0  ;;  %v1011_v11 = vpop.f32.mrb[25].mxu1 }
 0x16a   : > { %v2208_v7 = vpack.c.bf16 %v1434_v63, %v1433_v61  ;;  %v1302_v9 = vmul.f32 %v2375_v5, %v2741_v40  ;;  %v1268_v14 = vmul.f32 %v2741_v40, %v883_v10  ;;  %v1300_v15 = vmul.f32 %v2741_v40, %v1011_v11  ;;  %v2344_v16 = vpop.f32.mrb[26].mxu0  ;;  %v2376_v17 = vpop.f32.mrb[26].mxu1 }
 0x16b   : > { %v2123_v12 = vpack.c.bf16 %v1400_v2, %v1399_v0  ;;  %v2203_v13 = vpack.c.bf16 %v1432_v3, %v1431_v1  ;;  %2240 = vst [vmem:[%s2769_s10 + $0x58] sm:$0xff] %v2128_v6   ;;  %v1341_v18 = vadd.f32 %v2746_v42, %v1270_v8  ;;  %v1271_v20 = vmul.f32 %v2344_v16, %v2741_v40  ;;  %v886_v22 = vpop.f32.mrb[27].mxu0  ;;  %v1014_v23 = vpop.f32.mrb[27].mxu1 }
 0x16c   : > { %2256 = vst [vmem:[%s2769_s10 + $0xd8] sm:$0xff] %v2208_v7   ;;  %v1373_v19 = vadd.f32 %v2746_v42, %v1302_v9  ;;  %v1303_v21 = vmul.f32 %v2376_v17, %v2741_v40  ;;  %v1339_v24 = vadd.f32 %v2746_v42, %v1268_v14  ;;  %v1371_v25 = vadd.f32 %v2746_v42, %v1300_v15 }
 0x16d   : > { %2239 = vst [vmem:[%s2769_s10 + $0x50] sm:$0xff] %v2123_v12   ;;  %2255 = vst [vmem:[%s2769_s10 + $0xd0] sm:$0xff] %v2203_v13   ;;  %v1269_v26 = vmul.f32 %v2741_v40, %v886_v22  ;;  %v1301_v27 = vmul.f32 %v2741_v40, %v1014_v23  ;;  %v1342_v28 = vadd.f32 %v2746_v42, %v1271_v20  ;;  %v1405_v32 = vmax.f32 %v1341_v18, 0.0 }
 0x16e   : > { %v1374_v29 = vadd.f32 %v2746_v42, %v1303_v21  ;;  %v1437_v33 = vmax.f32 %v1373_v19, 0.0  ;;  %v1403_v36 = vmax.f32 %v1339_v24, 0.0  ;;  %v1435_v37 = vmax.f32 %v1371_v25, 0.0 }
 0x16f   : > { %v1340_v30 = vadd.f32 %v2746_v42, %v1269_v26  ;;  %v1372_v31 = vadd.f32 %v2746_v42, %v1301_v27  ;;  %v1406_v34 = vmax.f32 %v1342_v28, 0.0 }
 0x170   : > { %v1438_v35 = vmax.f32 %v1374_v29, 0.0  ;;  %v2347_v41 = vpop.f32.mrb[28].mxu0  ;;  %v2379_v43 = vpop.f32.mrb[28].mxu1 }
 0x171   : > { %v1404_v38 = vmax.f32 %v1340_v30, 0.0  ;;  %v1436_v39 = vmax.f32 %v1372_v31, 0.0  ;;  %v2138_v44 = vpack.c.bf16 %v1406_v34, %v1405_v32  ;;  %v1274_v46 = vmul.f32 %v2347_v41, %v2741_v40  ;;  %v899_v48 = vpop.f32.mrb[29].mxu0  ;;  %v1027_v49 = vpop.f32.mrb[29].mxu1 }
 0x172   : > { %v2218_v45 = vpack.c.bf16 %v1438_v35, %v1437_v33  ;;  %v1306_v47 = vmul.f32 %v2379_v43, %v2741_v40  ;;  %v1272_v52 = vmul.f32 %v2741_v40, %v899_v48  ;;  %v1304_v53 = vmul.f32 %v2741_v40, %v1027_v49  ;;  %v2348_v54 = vpop.f32.mrb[30].mxu0  ;;  %v2380_v55 = vpop.f32.mrb[30].mxu1 }
 0x173   : > { %v2133_v50 = vpack.c.bf16 %v1404_v38, %v1403_v36  ;;  %v2213_v51 = vpack.c.bf16 %v1436_v39, %v1435_v37  ;;  %2242 = vst [vmem:[%s2769_s10 + $0x68] sm:$0xff] %v2138_v44   ;;  %v1345_v56 = vadd.f32 %v2746_v42, %v1274_v46  ;;  %v1275_v58 = vmul.f32 %v2348_v54, %v2741_v40  ;;  %v902_v60 = vpop.f32.mrb[31].mxu0  ;;  %v1030_v61 = vpop.f32.mrb[31].mxu1 }
 0x174   : > { %2258 = vst [vmem:[%s2769_s10 + $0xe8] sm:$0xff] %v2218_v45   ;;  %v1377_v57 = vadd.f32 %v2746_v42, %v1306_v47  ;;  %v1307_v59 = vmul.f32 %v2380_v55, %v2741_v40  ;;  %v1343_v62 = vadd.f32 %v2746_v42, %v1272_v52  ;;  %v1375_v63 = vadd.f32 %v2746_v42, %v1304_v53 }
 0x175   : > { %2241 = vst [vmem:[%s2769_s10 + $0x60] sm:$0xff] %v2133_v50   ;;  %2257 = vst [vmem:[%s2769_s10 + $0xe0] sm:$0xff] %v2213_v51   ;;  %v1273_v0 = vmul.f32 %v2741_v40, %v902_v60  ;;  %v1305_v1 = vmul.f32 %v2741_v40, %v1030_v61  ;;  %v1346_v2 = vadd.f32 %v2746_v42, %v1275_v58  ;;  %v1409_v6 = vmax.f32 %v1345_v56, 0.0 }
 0x176   : > { %v1378_v3 = vadd.f32 %v2746_v42, %v1307_v59  ;;  %v1441_v7 = vmax.f32 %v1377_v57, 0.0  ;;  %v1407_v10 = vmax.f32 %v1343_v62, 0.0  ;;  %v1439_v11 = vmax.f32 %v1375_v63, 0.0 }
 0x177   : > { %v1344_v4 = vadd.f32 %v2746_v42, %v1273_v0  ;;  %v1376_v5 = vadd.f32 %v2746_v42, %v1305_v1  ;;  %v1410_v8 = vmax.f32 %v1346_v2, 0.0 }
 0x178   : > { %v1442_v9 = vmax.f32 %v1378_v3, 0.0 }
 0x179   : > { %v1408_v12 = vmax.f32 %v1344_v4, 0.0  ;;  %v1440_v40 = vmax.f32 %v1376_v5, 0.0  ;;  %v2148_v13 = vpack.c.bf16 %v1410_v8, %v1409_v6 }
 0x17a   : > { %v2228_v14 = vpack.c.bf16 %v1442_v9, %v1441_v7 }
 0x17b   : > { %v2143_v15 = vpack.c.bf16 %v1408_v12, %v1407_v10  ;;  %v2223_v16 = vpack.c.bf16 %v1440_v40, %v1439_v11  ;;  %2244 = vst [vmem:[%s2769_s10 + $0x78] sm:$0xff] %v2148_v13  }
 0x17c   : > { %2260 = vst [vmem:[%s2769_s10 + $0xf8] sm:$0xff] %v2228_v14  }
 0x17d   : > { %2243 = vst [vmem:[%s2769_s10 + $0x70] sm:$0xff] %v2143_v15   ;;  %2259 = vst [vmem:[%s2769_s10 + $0xf0] sm:$0xff] %v2223_v16  }
 0x17e PF: > { %s16_s17 = sadd.s32 1, %s2570_s17   ;;  %s2937_s15 = smov %s2566_s16 }
 0x17f   : > { %p13_p6 = scmp.ge.s32.totalorder %s16_s17, 6   ;;  %s2938_s16 = smov %s2940_s19 }
 0x181   :  { %15 = sbr.rel (!%p13_p6) target bundleno = 3 (0x3), region = 88 }
 0x188   :  { %1791 = vsyncpa [#allocation4], 1 }
 0x189   :  { %1793 = vsyncpa [#allocation4 + $0x1], 1 }
 0x18a   :  { %1794 = vsyncpa [#allocation6], 1 }

// kernel: _lambda_.14
= control target key start
LH: loop header
LB: loop body
LE: loop exit
PB: predicated region body
PF: predicated region fallthrough
CT: control target
= control target key end

     0   :  { %s1835_s15 = smov 0   ;;  %s1837_s16 = smov 0   ;;  %s2117_s0 = inlined_call_operand.vmem [shape: bf16[512,640], index: 0, kind: input, shape index: {}]   ;;  %s2118_s1 = inlined_call_operand.vmem [shape: bf16[640,128], index: 1, kind: input, shape index: {}]   ;;  %s2119_s2 = inlined_call_operand.vmem [shape: f32[1,128], index: 2, kind: input, shape index: {}]   ;;  %s2120_s3 = inlined_call_operand.vmem [shape: f32[1,128], index: 3, kind: input, shape index: {}]   ;;  %s2121_s4 = inlined_call_operand.vmem [shape: bf16[512,128], index: 4, kind: output, shape index: {}]  }
   0x1   :  { %s1839_s17 = smov 0   ;;  %s1841_s18 = smov 0  }
   0x2   :  { %s1843_s19 = smov 0   ;;  %s1845_s20 = smov 0  }
   0x3   :  { %s1847_s21 = smov 0  }
   0x4 LB: > { %s26_s22 = sadd.s32 1, %s1799_s19  ;;  %s33_s23 = sadd.s32 1, %s1803_s20  ;;  %s1807_s21 = sphi %s1847_s21, %s14_s21   ;;  %s1803_s20 = sphi %s1845_s20, %s2127_s20   ;;  %s1799_s19 = sphi %s1843_s19, %s2126_s19   ;;  %s1795_s18 = sphi %s1841_s18, %s2125_s18   ;;  %s1791_s17 = sphi %s1839_s17, %s2124_s17   ;;  %s1787_s16 = sphi %s1837_s16, %s2123_s16   ;;  %s1783_s15 = sphi %s1835_s15, %s2122_s15  }
   0x5   : > { %p27_p0 = scmp.ge.s32.totalorder %s26_s22, 5  ;;  %p49_p1 = scmp.ne.s32.totalorder %s1787_s16, %s1783_s15 }
   0x6   : > { %p50_p2 = scmp.eq.s32.totalorder %s1807_s21, 0  ;;  %s42_s27 = sadd.s32 1, %s1787_s16 }
   0x7   : > { %s2129_s22 = smov (%p27_p0, %s26_s22), 0  ;;  %s2131_s23 = smov (!%p27_p0, %s33_s23), %s1803_s20 }
   0x8   : > { %p51_p3 = por %p50_p2, %p49_p1  ;;  %p35_p4 = scmp.ge.s32.totalorder %s2131_s23, 2 }
   0x9   : > { %s38_s24 = ssub.s32 %s1799_s19, %s2129_s22  ;;  %p1383_p6 = scmp.ge.s32.totalorder %s1807_s21, 10 }
   0xa   : > { %s2133_s23 = smov (%p35_p4, %s2131_s23), 0 }
   0xb   : > { %s37_s25 = ssub.s32 %s1803_s20, %s2133_s23  ;;  %195 = sbr.rel (%p1383_p6) target bundleno = 46 (0x2e), region = 24 }
   0xc   : > { %s39_s26 = sor.u32 %s38_s24, %s37_s25 }
   0xd   : > { %p40_p5 = scmp.eq.s32.totalorder %s39_s26, 0 }
   0xf   : > { %s1886_s28 = scalar_select %p40_p5, %s1787_s16, %s42_s27  }
  0x12   : > { %198 = sbr.rel (!%p51_p3) target bundleno = 46 (0x2e), region = 28  ;;  %s200_s29 = sand.u32 (%p51_p3), 1, %s1787_s16  }
  0x13   : > { %s1671_s30 = smul.u32 (%p51_p3), 160, %s1803_s20  ;;  %s1384_s5 = sshll.u32 (%p51_p3), %s200_s29, 7 }
  0x14   : > { %s1900_s11 = scalar_lea.vmem (%p51_p3), [#allocation3], %s1384_s5 }
  0x15   : > { %s205_s6 = sadd.s32 (%p51_p3), %s1799_s19, %s1671_s30 }
  0x16   : > { %s1387_s7 = sshll.u32 (%p51_p3), %s205_s6, 2 }
  0x17   : > { %s1895_s10 = scalar_lea.vmem (%p51_p3), %s2117_s0, %s1387_s7 }
  0x18   : > { %v223_v0 = vld [vmem:[%s1895_s10] sm:$0xf] (%p51_p3)  ;;  %v225_v1 = vld [vmem:[%s1895_s10 + $0x14] sm:$0xf] (%p51_p3)  ;;  %v227_v2 = vld [vmem:[%s1895_s10 + $0x28] sm:$0xf] (%p51_p3) }
  0x19   : > { %224 = vst [vmem:[%s1900_s11] sm:$0xf] %v223_v0  ;;  %226 = vst [vmem:[%s1900_s11 + $0x4] sm:$0xf] %v225_v1  ;;  %v229_v3 = vld [vmem:[%s1895_s10 + $0x3c] sm:$0xf] }
  0x1a   : > { %228 = vst [vmem:[%s1900_s11 + $0x8] sm:$0xf] %v227_v2  ;;  %v231_v4 = vld [vmem:[%s1895_s10 + $0x50] sm:$0xf]  ;;  %v233_v5 = vld [vmem:[%s1895_s10 + $0x64] sm:$0xf] }
  0x1b   : > { %230 = vst [vmem:[%s1900_s11 + $0xc] sm:$0xf] %v229_v3  ;;  %232 = vst [vmem:[%s1900_s11 + $0x10] sm:$0xf] %v231_v4  ;;  %v235_v6 = vld [vmem:[%s1895_s10 + $0x78] sm:$0xf] }
  0x1c   : > { %234 = vst [vmem:[%s1900_s11 + $0x14] sm:$0xf] %v233_v5  ;;  %v237_v7 = vld [vmem:[%s1895_s10 + $0x8c] sm:$0xf]  ;;  %v239_v8 = vld [vmem:[%s1895_s10 + $0xa0] sm:$0xf] }
  0x1d   : > { %236 = vst [vmem:[%s1900_s11 + $0x18] sm:$0xf] %v235_v6  ;;  %238 = vst [vmem:[%s1900_s11 + $0x1c] sm:$0xf] %v237_v7  ;;  %v241_v9 = vld [vmem:[%s1895_s10 + $0xb4] sm:$0xf] }
  0x1e   : > { %240 = vst [vmem:[%s1900_s11 + $0x20] sm:$0xf] %v239_v8  ;;  %v243_v10 = vld [vmem:[%s1895_s10 + $0xc8] sm:$0xf]  ;;  %v245_v11 = vld [vmem:[%s1895_s10 + $0xdc] sm:$0xf] }
  0x1f   : > { %242 = vst [vmem:[%s1900_s11 + $0x24] sm:$0xf] %v241_v9  ;;  %244 = vst [vmem:[%s1900_s11 + $0x28] sm:$0xf] %v243_v10  ;;  %v247_v12 = vld [vmem:[%s1895_s10 + $0xf0] sm:$0xf] }
  0x20   : > { %246 = vst [vmem:[%s1900_s11 + $0x2c] sm:$0xf] %v245_v11  ;;  %v249_v13 = vld [vmem:[%s1895_s10 + $0x104] sm:$0xf]  ;;  %v251_v14 = vld [vmem:[%s1895_s10 + $0x118] sm:$0xf] }
  0x21   : > { %248 = vst [vmem:[%s1900_s11 + $0x30] sm:$0xf] %v247_v12  ;;  %250 = vst [vmem:[%s1900_s11 + $0x34] sm:$0xf] %v249_v13  ;;  %v253_v15 = vld [vmem:[%s1895_s10 + $0x12c] sm:$0xf] }
  0x22   : > { %252 = vst [vmem:[%s1900_s11 + $0x38] sm:$0xf] %v251_v14  ;;  %v255_v16 = vld [vmem:[%s1895_s10 + $0x140] sm:$0xf]  ;;  %v257_v17 = vld [vmem:[%s1895_s10 + $0x154] sm:$0xf] }
  0x23   : > { %254 = vst [vmem:[%s1900_s11 + $0x3c] sm:$0xf] %v253_v15  ;;  %256 = vst [vmem:[%s1900_s11 + $0x40] sm:$0xf] %v255_v16  ;;  %v259_v18 = vld [vmem:[%s1895_s10 + $0x168] sm:$0xf] }
  0x24   : > { %258 = vst [vmem:[%s1900_s11 + $0x44] sm:$0xf] %v257_v17  ;;  %v261_v19 = vld [vmem:[%s1895_s10 + $0x17c] sm:$0xf]  ;;  %v263_v20 = vld [vmem:[%s1895_s10 + $0x190] sm:$0xf] }
  0x25   : > { %260 = vst [vmem:[%s1900_s11 + $0x48] sm:$0xf] %v259_v18  ;;  %262 = vst [vmem:[%s1900_s11 + $0x4c] sm:$0xf] %v261_v19  ;;  %v265_v21 = vld [vmem:[%s1895_s10 + $0x1a4] sm:$0xf] }
  0x26   : > { %264 = vst [vmem:[%s1900_s11 + $0x50] sm:$0xf] %v263_v20  ;;  %v267_v22 = vld [vmem:[%s1895_s10 + $0x1b8] sm:$0xf]  ;;  %v269_v23 = vld [vmem:[%s1895_s10 + $0x1cc] sm:$0xf] }
  0x27   : > { %266 = vst [vmem:[%s1900_s11 + $0x54] sm:$0xf] %v265_v21  ;;  %268 = vst [vmem:[%s1900_s11 + $0x58] sm:$0xf] %v267_v22  ;;  %v271_v24 = vld [vmem:[%s1895_s10 + $0x1e0] sm:$0xf] }
  0x28   : > { %270 = vst [vmem:[%s1900_s11 + $0x5c] sm:$0xf] %v269_v23  ;;  %v273_v25 = vld [vmem:[%s1895_s10 + $0x1f4] sm:$0xf]  ;;  %v275_v26 = vld [vmem:[%s1895_s10 + $0x208] sm:$0xf] }
  0x29   : > { %272 = vst [vmem:[%s1900_s11 + $0x60] sm:$0xf] %v271_v24  ;;  %274 = vst [vmem:[%s1900_s11 + $0x64] sm:$0xf] %v273_v25  ;;  %v277_v27 = vld [vmem:[%s1895_s10 + $0x21c] sm:$0xf] }
  0x2a   : > { %276 = vst [vmem:[%s1900_s11 + $0x68] sm:$0xf] %v275_v26  ;;  %v279_v28 = vld [vmem:[%s1895_s10 + $0x230] sm:$0xf]  ;;  %v281_v29 = vld [vmem:[%s1895_s10 + $0x244] sm:$0xf] }
  0x2b   : > { %278 = vst [vmem:[%s1900_s11 + $0x6c] sm:$0xf] %v277_v27  ;;  %280 = vst [vmem:[%s1900_s11 + $0x70] sm:$0xf] %v279_v28  ;;  %v283_v30 = vld [vmem:[%s1895_s10 + $0x258] sm:$0xf] }
  0x2c   : > { %282 = vst [vmem:[%s1900_s11 + $0x74] sm:$0xf] %v281_v29  ;;  %v285_v31 = vld [vmem:[%s1895_s10 + $0x26c] sm:$0xf]  ;;  %284 = vst [vmem:[%s1900_s11 + $0x78] sm:$0xf] %v283_v30 }
  0x2d   : > { %286 = vst [vmem:[%s1900_s11 + $0x7c] sm:$0xf] %v285_v31 }
  0x2e PF: > { %p1388_p7 = scmp.ge.s32.totalorder %s1807_s21, 1  ;;  %p384_p8 = scmp.lt.s32.totalorder %s1807_s21, 11 }
  0x30   : > { %p385_p9 = pnand %p1388_p7, %p384_p8 }
  0x31   : > { %s391_s12 = sand.u32 (!%p385_p9), 1, %s1783_s15   ;;  %s1390_s13 = sshll.u32 (!%p385_p9), %s1791_s17, 4 }
  0x32   : > { %388 = sbr.rel (%p385_p9) target bundleno = 375 (0x177), region = 73  ;;  %s1389_s14 = sshll.u32 (!%p385_p9), %s391_s12, 7 }
  0x33   : > { %p435_p10 = scmp.lt.s32.totalorder (!%p385_p9), %s1390_s13, 79  ;;  %s1392_s24 = sshll.u32 (!%p385_p9), %s1795_s18, 5 }
  0x34   : > { %p450_p11 = scmp.lt.s32.totalorder (!%p385_p9), %s1392_s24, 63  ;;  %s1978_s15 = scalar_lea.vmem (!%p385_p9), [#allocation3], %s1389_s14 }
  0x35   : > { %p1394_p12 = scmp.ne.s32.totalorder (!%p385_p9), %s1791_s17, 0 }
  0x39   : > { %s2135_s13 = smov (!%p435_p10, %s1390_s13), 79  ;;  %s2137_s24 = smov (!%p450_p11, %s1392_s24), 63 }
  0x3a   : > { %s1391_s25 = sshll.u32 %s2135_s13, 2  ;;  %s1393_s30 = sshll.u32 %s2137_s24, 2  ;;  %v1809_v32 = vmov (!%p1394_p12), 0.0  }
  0x3b   : > { %s1971_s29 = scalar_lea.vmem %s2118_s1, %s1391_s25  ;;  %s1976_s7 = scalar_lea.vmem %s2121_s4, %s1393_s30  ;;  %463 = vst [vmem:[#allocation2] sm:$0xff] (!%p1394_p12), %v1809_v32  ;;  %464 = vst [vmem:[#allocation2 + $0x8] sm:$0xff] (!%p1394_p12), %v1809_v32 }
  0x3c   : > { %462 = sbr.rel (%p1394_p12) target bundleno = 75 (0x4b), region = 81  ;;  %465 = vst [vmem:[#allocation2 + $0x10] sm:$0xff] (!%p1394_p12), %v1809_v32  ;;  %466 = vst [vmem:[#allocation2 + $0x18] sm:$0xff] (!%p1394_p12), %v1809_v32 }
  0x3d   : > { %467 = vst [vmem:[#allocation2 + $0x20] sm:$0xff] (!%p1394_p12), %v1809_v32  ;;  %468 = vst [vmem:[#allocation2 + $0x28] sm:$0xff] (!%p1394_p12), %v1809_v32 }
  0x3e   : > { %469 = vst [vmem:[#allocation2 + $0x30] sm:$0xff] (!%p1394_p12), %v1809_v32  ;;  %470 = vst [vmem:[#allocation2 + $0x38] sm:$0xff] (!%p1394_p12), %v1809_v32 }
  0x3f   : > { %471 = vst [vmem:[#allocation2 + $0x40] sm:$0xff] (!%p1394_p12), %v1809_v32  ;;  %472 = vst [vmem:[#allocation2 + $0x48] sm:$0xff] (!%p1394_p12), %v1809_v32 }
  0x40   : > { %473 = vst [vmem:[#allocation2 + $0x50] sm:$0xff] (!%p1394_p12), %v1809_v32  ;;  %474 = vst [vmem:[#allocation2 + $0x58] sm:$0xff] (!%p1394_p12), %v1809_v32 }
  0x41   : > { %475 = vst [vmem:[#allocation2 + $0x60] sm:$0xff] (!%p1394_p12), %v1809_v32  ;;  %476 = vst [vmem:[#allocation2 + $0x68] sm:$0xff] (!%p1394_p12), %v1809_v32 }
  0x42   : > { %477 = vst [vmem:[#allocation2 + $0x70] sm:$0xff] (!%p1394_p12), %v1809_v32  ;;  %478 = vst [vmem:[#allocation2 + $0x78] sm:$0xff] (!%p1394_p12), %v1809_v32 }
  0x43   : > { %479 = vst [vmem:[#allocation2 + $0x80] sm:$0xff] %v1809_v32  ;;  %480 = vst [vmem:[#allocation2 + $0x88] sm:$0xff] %v1809_v32 }
  0x44   : > { %481 = vst [vmem:[#allocation2 + $0x90] sm:$0xff] %v1809_v32  ;;  %482 = vst [vmem:[#allocation2 + $0x98] sm:$0xff] %v1809_v32 }
  0x45   : > { %483 = vst [vmem:[#allocation2 + $0xa0] sm:$0xff] %v1809_v32  ;;  %484 = vst [vmem:[#allocation2 + $0xa8] sm:$0xff] %v1809_v32 }
  0x46   : > { %485 = vst [vmem:[#allocation2 + $0xb0] sm:$0xff] %v1809_v32  ;;  %486 = vst [vmem:[#allocation2 + $0xb8] sm:$0xff] %v1809_v32 }
  0x47   : > { %487 = vst [vmem:[#allocation2 + $0xc0] sm:$0xff] %v1809_v32  ;;  %488 = vst [vmem:[#allocation2 + $0xc8] sm:$0xff] %v1809_v32 }
  0x48   : > { %489 = vst [vmem:[#allocation2 + $0xd0] sm:$0xff] %v1809_v32  ;;  %490 = vst [vmem:[#allocation2 + $0xd8] sm:$0xff] %v1809_v32 }
  0x49   : > { %491 = vst [vmem:[#allocation2 + $0xe0] sm:$0xff] %v1809_v32  ;;  %492 = vst [vmem:[#allocation2 + $0xe8] sm:$0xff] %v1809_v32 }
  0x4a   : > { %493 = vst [vmem:[#allocation2 + $0xf0] sm:$0xff] %v1809_v32  ;;  %494 = vst [vmem:[#allocation2 + $0xf8] sm:$0xff] %v1809_v32 }
  0x4b PF: > { %v1729_v33 = vld [vmem:[%s1971_s29] sm:$0xff]   ;;  %v1730_v34 = vld [vmem:[%s1971_s29 + $0x8] sm:$0xff]   ;;  %v1731_v35 = vld [vmem:[%s1971_s29 + $0x10] sm:$0xff]   ;;  %p1419_p13 = scmp.ne.s32.totalorder %s1791_s17, 4 }
  0x4c   : > { %1607 = vmatprep.subr.bf16.mxu0 %v1729_v33  ;;  %1655 = vmatprep.subr.bf16.mxu1 %v1729_v33  ;;  %v1732_v36 = vld [vmem:[%s1971_s29 + $0x18] sm:$0xff]   ;;  %v1737_v37 = vld [vmem:[%s1978_s15] sm:$0xff]   ;;  %v1734_v40 = vld [vmem:[%s1971_s29 + $0x28] sm:$0xff]  }
  0x4d   : > { %1608 = vmatpush3.bf16.msra.mxu0 %v1729_v33  ;;  %1663 = vmatpush3.bf16.msra.mxu1 %v1729_v33  ;;  %v1738_v38 = vld [vmem:[%s1978_s15 + $0x40] sm:$0xff]   ;;  %v1735_v41 = vld [vmem:[%s1971_s29 + $0x30] sm:$0xff]   ;;  %v1736_v42 = vld [vmem:[%s1971_s29 + $0x38] sm:$0xff]  }
  0x4e   : > { %1609 = vmatprep.subr.bf16.mxu0 %v1730_v34  ;;  %1656 = vmatprep.subr.bf16.mxu1 %v1730_v34  ;;  %v1733_v39 = vld [vmem:[%s1971_s29 + $0x20] sm:$0xff]   ;;  %v1739_v43 = vld [vmem:[%s1978_s15 + $0x8] sm:$0xff]   ;;  %v1741_v45 = vld [vmem:[%s1978_s15 + $0x10] sm:$0xff]  }
  0x4f   : > { %1623 = vmatprep.mubr.bf16.mxu0 %v1737_v37  ;;  %1639 = vmatprep.mubr.bf16.mxu1 %v1738_v38  ;;  %v1740_v44 = vld [vmem:[%s1978_s15 + $0x48] sm:$0xff]   ;;  %v1742_v46 = vld [vmem:[%s1978_s15 + $0x50] sm:$0xff]   ;;  %v1743_v47 = vld [vmem:[%s1978_s15 + $0x18] sm:$0xff]  }
  0x50   : > { %v1744_v48 = vld [vmem:[%s1978_s15 + $0x58] sm:$0xff]   ;;  %v1745_v49 = vld [vmem:[%s1978_s15 + $0x20] sm:$0xff]   ;;  %v1747_v51 = vld [vmem:[%s1978_s15 + $0x28] sm:$0xff]  }
  0x51   : > { %1610 = vmatpush3.bf16.msra.mxu0 %v1730_v34  ;;  %1664 = vmatpush3.bf16.msra.mxu1 %v1730_v34  ;;  %v1746_v50 = vld [vmem:[%s1978_s15 + $0x60] sm:$0xff]   ;;  %v1748_v52 = vld [vmem:[%s1978_s15 + $0x68] sm:$0xff]   ;;  %v1749_v53 = vld [vmem:[%s1978_s15 + $0x30] sm:$0xff]  }
  0x52   : > { %1611 = vmatprep.subr.bf16.mxu0 %v1731_v35  ;;  %1657 = vmatprep.subr.bf16.mxu1 %v1731_v35  ;;  %v1750_v54 = vld [vmem:[%s1978_s15 + $0x70] sm:$0xff]   ;;  %v1751_v55 = vld [vmem:[%s1978_s15 + $0x38] sm:$0xff]   ;;  %v495_v59 = vld [vmem:[#allocation2] sm:$0xff] }
  0x53   : > { %v1752_v56 = vld [vmem:[%s1978_s15 + $0x78] sm:$0xff]   ;;  %v497_v57 = vld [vmem:[#allocation2 + $0x10] sm:$0xff]  ;;  %v511_v60 = vld [vmem:[#allocation2 + $0x80] sm:$0xff] }
  0x54   : > { %v513_v58 = vld [vmem:[#allocation2 + $0x90] sm:$0xff]  ;;  %v498_v63 = vld [vmem:[#allocation2 + $0x18] sm:$0xff]  ;;  %v496_v5 = vld [vmem:[#allocation2 + $0x8] sm:$0xff] }
  0x55   : > { %1612 = vmatpush3.bf16.msra.mxu0 %v1731_v35  ;;  %1665 = vmatpush3.bf16.msra.mxu1 %v1731_v35  ;;  %v514_v0 = vld [vmem:[#allocation2 + $0x98] sm:$0xff]  ;;  %v512_v6 = vld [vmem:[#allocation2 + $0x88] sm:$0xff]  ;;  %v501_v17 = vld [vmem:[#allocation2 + $0x30] sm:$0xff] }
  0x56   : > { %1613 = vmatprep.subr.bf16.mxu0 %v1732_v36  ;;  %1658 = vmatprep.subr.bf16.mxu1 %v1732_v36  ;;  %v517_v18 = vld [vmem:[#allocation2 + $0xb0] sm:$0xff]  ;;  %v499_v19 = vld [vmem:[#allocation2 + $0x20] sm:$0xff]  ;;  %v502_v23 = vld [vmem:[#allocation2 + $0x38] sm:$0xff] }
  0x57   : > { %v515_v20 = vld [vmem:[#allocation2 + $0xa0] sm:$0xff]  ;;  %v518_v24 = vld [vmem:[#allocation2 + $0xb8] sm:$0xff]  ;;  %v500_v29 = vld [vmem:[#allocation2 + $0x28] sm:$0xff] }
  0x58   : > { %v516_v30 = vld [vmem:[#allocation2 + $0xa8] sm:$0xff] }
  0x59   : > { %1614 = vmatpush3.bf16.msra.mxu0 %v1732_v36  ;;  %1666 = vmatpush3.bf16.msra.mxu1 %v1732_v36 }
  0x5a   : > { %1615 = vmatprep.subr.bf16.mxu0 %v1733_v39  ;;  %1659 = vmatprep.subr.bf16.mxu1 %v1733_v39 }
  0x5d   : > { %1616 = vmatpush3.bf16.msra.mxu0 %v1733_v39  ;;  %1667 = vmatpush3.bf16.msra.mxu1 %v1733_v39 }
  0x5e   : > { %1617 = vmatprep.subr.bf16.mxu0 %v1734_v40  ;;  %1660 = vmatprep.subr.bf16.mxu1 %v1734_v40 }
  0x61   : > { %1618 = vmatpush3.bf16.msra.mxu0 %v1734_v40  ;;  %1668 = vmatpush3.bf16.msra.mxu1 %v1734_v40 }
  0x62   : > { %1619 = vmatprep.subr.bf16.mxu0 %v1735_v41  ;;  %1661 = vmatprep.subr.bf16.mxu1 %v1735_v41 }
  0x65   : > { %1620 = vmatpush3.bf16.msra.mxu0 %v1735_v41  ;;  %1669 = vmatpush3.bf16.msra.mxu1 %v1735_v41  ;;  %v505_v41 = vld [vmem:[#allocation2 + $0x50] sm:$0xff] }
  0x66   : > { %1621 = vmatprep.subr.bf16.mxu0 %v1736_v42  ;;  %1662 = vmatprep.subr.bf16.mxu1 %v1736_v42 }
  0x69   : > { %1622 = vmatpush3.bf16.msra.mxu0 %v1736_v42  ;;  %1670 = vmatpush3.bf16.msra.mxu1 %v1736_v42  ;;  %v521_v42 = vld [vmem:[#allocation2 + $0xd0] sm:$0xff] }
  0x6c   : > { %1624 = vmatmul.mubr.bf16.vlgmr.msra.gmra.mrb[0].mxu0 %v1739_v43  ;;  %1640 = vmatmul.mubr.bf16.vlgmr.msra.gmra.mrb[0].mxu1 %v1740_v44  ;;  %v503_v43 = vld [vmem:[#allocation2 + $0x40] sm:$0xff] }
  0x6d   : > { %1627 = vmatprep.mubr.bf16.mxu0 %v1741_v45  ;;  %1643 = vmatprep.mubr.bf16.mxu1 %v1742_v46  ;;  %v519_v44 = vld [vmem:[#allocation2 + $0xc0] sm:$0xff] }
  0x74   : > { %1628 = vmatmul.mubr.bf16.gmra.mrb[4].mxu0 %v1743_v47  ;;  %1644 = vmatmul.mubr.bf16.gmra.mrb[4].mxu1 %v1744_v48  ;;  %v506_v47 = vld [vmem:[#allocation2 + $0x58] sm:$0xff] }
  0x75   : > { %1631 = vmatprep.mubr.bf16.mxu0 %v1745_v49  ;;  %1647 = vmatprep.mubr.bf16.mxu1 %v1746_v50  ;;  %v522_v48 = vld [vmem:[#allocation2 + $0xd8] sm:$0xff] }
  0x7c   : > { %1632 = vmatmul.mubr.bf16.gmra.mrb[8].mxu0 %v1747_v51  ;;  %1648 = vmatmul.mubr.bf16.gmra.mrb[8].mxu1 %v1748_v52 }
  0x7d   : > { %1635 = vmatprep.mubr.bf16.mxu0 %v1749_v53  ;;  %1651 = vmatprep.mubr.bf16.mxu1 %v1750_v54  ;;  %v504_v53 = vld [vmem:[#allocation2 + $0x48] sm:$0xff] }
  0x7e   : > { %v520_v54 = vld [vmem:[#allocation2 + $0xc8] sm:$0xff] }
  0x84   : > { %1636 = vmatmul.mubr.bf16.gmra.mrb[12].mxu0 %v1751_v55  ;;  %1652 = vmatmul.mubr.bf16.gmra.mrb[12].mxu1 %v1752_v56 }
 0x13f   : > { %v1625_v61 = vpop.f32.mrb[0].mxu0  ;;  %v1641_v62 = vpop.f32.mrb[0].mxu1 }
 0x140   : > { %v882_v1 = vadd.f32 %v1625_v61, %v497_v57  ;;  %v898_v2 = vadd.f32 %v1641_v62, %v513_v58  ;;  %v753_v3 = vpop.f32.mrb[1].mxu0  ;;  %v817_v4 = vpop.f32.mrb[1].mxu1 }
 0x141   : > { %v880_v7 = vadd.f32 %v753_v3, %v495_v59  ;;  %v896_v8 = vadd.f32 %v817_v4, %v511_v60  ;;  %v1626_v9 = vpop.f32.mrb[2].mxu0  ;;  %v1642_v10 = vpop.f32.mrb[2].mxu1  ;;  %v507_v3 = vld [vmem:[#allocation2 + $0x60] sm:$0xff] }
 0x142   : > { %914 = vst [vmem:[#allocation2 + $0x10] sm:$0xff] %v882_v1  ;;  %930 = vst [vmem:[#allocation2 + $0x90] sm:$0xff] %v898_v2  ;;  %v883_v11 = vadd.f32 %v1626_v9, %v498_v63  ;;  %v899_v12 = vadd.f32 %v1642_v10, %v514_v0  ;;  %v756_v13 = vpop.f32.mrb[3].mxu0  ;;  %v820_v14 = vpop.f32.mrb[3].mxu1  ;;  %v509_v1 = vld [vmem:[#allocation2 + $0x70] sm:$0xff]  ;;  %v523_v4 = vld [vmem:[#allocation2 + $0xe0] sm:$0xff] }
 0x143   : > { %912 = vst [vmem:[#allocation2] sm:$0xff] %v880_v7  ;;  %928 = vst [vmem:[#allocation2 + $0x80] sm:$0xff] %v896_v8  ;;  %v881_v15 = vadd.f32 %v756_v13, %v496_v5  ;;  %v897_v16 = vadd.f32 %v820_v14, %v512_v6  ;;  %v525_v2 = vld [vmem:[#allocation2 + $0xf0] sm:$0xff]  ;;  %v510_v7 = vld [vmem:[#allocation2 + $0x78] sm:$0xff] }
 0x144   : > { %915 = vst [vmem:[#allocation2 + $0x18] sm:$0xff] %v883_v11  ;;  %931 = vst [vmem:[#allocation2 + $0x98] sm:$0xff] %v899_v12  ;;  %v526_v8 = vld [vmem:[#allocation2 + $0xf8] sm:$0xff]  ;;  %v508_v13 = vld [vmem:[#allocation2 + $0x68] sm:$0xff] }
 0x145   : > { %913 = vst [vmem:[#allocation2 + $0x8] sm:$0xff] %v881_v15  ;;  %929 = vst [vmem:[#allocation2 + $0x88] sm:$0xff] %v897_v16  ;;  %v524_v14 = vld [vmem:[#allocation2 + $0xe8] sm:$0xff] }
 0x147   : > { %v1629_v21 = vpop.f32.mrb[4].mxu0  ;;  %v1645_v22 = vpop.f32.mrb[4].mxu1 }
 0x148   : > { %v886_v25 = vadd.f32 %v1629_v21, %v501_v17  ;;  %v902_v26 = vadd.f32 %v1645_v22, %v517_v18  ;;  %v769_v27 = vpop.f32.mrb[5].mxu0  ;;  %v833_v28 = vpop.f32.mrb[5].mxu1 }
 0x149   : > { %v884_v31 = vadd.f32 %v769_v27, %v499_v19  ;;  %v900_v32 = vadd.f32 %v833_v28, %v515_v20  ;;  %v1630_v33 = vpop.f32.mrb[6].mxu0  ;;  %v1646_v34 = vpop.f32.mrb[6].mxu1  ;;  %v2009_v27 = vld [vmem:[%s2119_s2] ss:$0 sm:$0xff] (!%p1419_p13) }
 0x14a   : > { %918 = vst [vmem:[#allocation2 + $0x30] sm:$0xff] %v886_v25  ;;  %934 = vst [vmem:[#allocation2 + $0xb0] sm:$0xff] %v902_v26  ;;  %v887_v35 = vadd.f32 %v1630_v33, %v502_v23  ;;  %v903_v36 = vadd.f32 %v1646_v34, %v518_v24  ;;  %v772_v37 = vpop.f32.mrb[7].mxu0  ;;  %v836_v38 = vpop.f32.mrb[7].mxu1  ;;  %v948_v25 = vld [vmem:[#allocation2] sm:$0xff] (!%p1419_p13) }
 0x14b   : > { %916 = vst [vmem:[#allocation2 + $0x20] sm:$0xff] %v884_v31  ;;  %932 = vst [vmem:[#allocation2 + $0xa0] sm:$0xff] %v900_v32  ;;  %v885_v39 = vadd.f32 %v772_v37, %v500_v29  ;;  %v901_v40 = vadd.f32 %v836_v38, %v516_v30  ;;  %v987_v28 = vmul.f32 (!%p1419_p13), %v2009_v27, %v948_v25  ;;  %v2016_v30 = vld [vmem:[%s2120_s3] ss:$0 sm:$0xff] (!%p1419_p13)  ;;  %v950_v31 = vld [vmem:[#allocation2 + $0x10] sm:$0xff] (!%p1419_p13) }
 0x14c   : > { %919 = vst [vmem:[#allocation2 + $0x38] sm:$0xff] %v887_v35  ;;  %935 = vst [vmem:[#allocation2 + $0xb8] sm:$0xff] %v903_v36  ;;  %v949_v26 = vld [vmem:[#allocation2 + $0x8] sm:$0xff] (!%p1419_p13)  ;;  %v951_v32 = vld [vmem:[#allocation2 + $0x18] sm:$0xff] (!%p1419_p13)  ;;  %v989_v33 = vmul.f32 (!%p1419_p13), %v2009_v27, %v950_v31 }
 0x14d   : > { %917 = vst [vmem:[#allocation2 + $0x28] sm:$0xff] %v885_v39  ;;  %933 = vst [vmem:[#allocation2 + $0xa8] sm:$0xff] %v901_v40  ;;  %v988_v29 = vmul.f32 (!%p1419_p13), %v2009_v27, %v949_v26  ;;  %v990_v34 = vmul.f32 (!%p1419_p13), %v2009_v27, %v951_v32  ;;  %v1026_v38 = vadd.f32 (!%p1419_p13), %v2016_v30, %v987_v28  ;;  %v966_v31 = vld [vmem:[#allocation2 + $0x90] sm:$0xff] (!%p1419_p13)  ;;  %v967_v32 = vld [vmem:[#allocation2 + $0x98] sm:$0xff] (!%p1419_p13) }
 0x14f   : > { %v1633_v45 = vpop.f32.mrb[8].mxu0  ;;  %v1649_v46 = vpop.f32.mrb[8].mxu1  ;;  %v1027_v39 = vadd.f32 (!%p1419_p13), %v2016_v30, %v988_v29 }
 0x150   : > { %v890_v49 = vadd.f32 %v1633_v45, %v505_v41  ;;  %v906_v50 = vadd.f32 %v1649_v46, %v521_v42  ;;  %v785_v51 = vpop.f32.mrb[9].mxu0  ;;  %v849_v52 = vpop.f32.mrb[9].mxu1 }
 0x151   : > { %v888_v55 = vadd.f32 %v785_v51, %v503_v43  ;;  %v904_v56 = vadd.f32 %v849_v52, %v519_v44  ;;  %v1634_v57 = vpop.f32.mrb[10].mxu0  ;;  %v1650_v58 = vpop.f32.mrb[10].mxu1  ;;  %v954_v37 = vld [vmem:[#allocation2 + $0x30] sm:$0xff] (!%p1419_p13)  ;;  %v1028_v43 = vadd.f32 (!%p1419_p13), %v2016_v30, %v989_v33  ;;  %v1029_v44 = vadd.f32 (!%p1419_p13), %v2016_v30, %v990_v34 }
 0x152   : > { %922 = vst [vmem:[#allocation2 + $0x50] sm:$0xff] %v890_v49  ;;  %938 = vst [vmem:[#allocation2 + $0xd0] sm:$0xff] %v906_v50  ;;  %v891_v59 = vadd.f32 %v1634_v57, %v506_v47  ;;  %v907_v60 = vadd.f32 %v1650_v58, %v522_v48  ;;  %v788_v61 = vpop.f32.mrb[11].mxu0  ;;  %v852_v62 = vpop.f32.mrb[11].mxu1  ;;  %v952_v35 = vld [vmem:[#allocation2 + $0x20] sm:$0xff] (!%p1419_p13)  ;;  %v993_v45 = vmul.f32 (!%p1419_p13), %v2009_v27, %v954_v37  ;;  %v1058_v48 = vmax.f32 (!%p1419_p13), %v1026_v38, 0.0 }
 0x153   : > { %920 = vst [vmem:[#allocation2 + $0x40] sm:$0xff] %v888_v55  ;;  %936 = vst [vmem:[#allocation2 + $0xc0] sm:$0xff] %v904_v56  ;;  %v889_v63 = vadd.f32 %v788_v61, %v504_v53  ;;  %v905_v0 = vadd.f32 %v852_v62, %v520_v54  ;;  %v991_v40 = vmul.f32 (!%p1419_p13), %v2009_v27, %v952_v35  ;;  %v955_v42 = vld [vmem:[#allocation2 + $0x38] sm:$0xff] (!%p1419_p13)  ;;  %v1059_v49 = vmax.f32 (!%p1419_p13), %v1027_v39, 0.0  ;;  %v968_v37 = vld [vmem:[#allocation2 + $0xa0] sm:$0xff] (!%p1419_p13) }
 0x154   : > { %923 = vst [vmem:[#allocation2 + $0x58] sm:$0xff] %v891_v59  ;;  %939 = vst [vmem:[#allocation2 + $0xd8] sm:$0xff] %v907_v60  ;;  %v953_v36 = vld [vmem:[#allocation2 + $0x28] sm:$0xff] (!%p1419_p13)  ;;  %v994_v46 = vmul.f32 (!%p1419_p13), %v2009_v27, %v955_v42  ;;  %v1060_v53 = vmax.f32 (!%p1419_p13), %v1028_v43, 0.0  ;;  %v1061_v54 = vmax.f32 (!%p1419_p13), %v1029_v44, 0.0  ;;  %v1032_v55 = vadd.f32 (!%p1419_p13), %v2016_v30, %v993_v45  ;;  %v970_v43 = vld [vmem:[#allocation2 + $0xb0] sm:$0xff] (!%p1419_p13) }
 0x155   : > { %921 = vst [vmem:[#allocation2 + $0x48] sm:$0xff] %v889_v63  ;;  %937 = vst [vmem:[#allocation2 + $0xc8] sm:$0xff] %v905_v0  ;;  %v992_v41 = vmul.f32 (!%p1419_p13), %v2009_v27, %v953_v36  ;;  %v1030_v50 = vadd.f32 (!%p1419_p13), %v2016_v30, %v991_v40  ;;  %v1491_v59 = vpack.c.bf16 (!%p1419_p13), %v1059_v49, %v1058_v48  ;;  %v969_v38 = vld [vmem:[#allocation2 + $0xa8] sm:$0xff] (!%p1419_p13)  ;;  %v971_v48 = vld [vmem:[#allocation2 + $0xb8] sm:$0xff] (!%p1419_p13) }
 0x156   : > { %v1033_v56 = vadd.f32 (!%p1419_p13), %v2016_v30, %v994_v46  ;;  %v1005_v46 = vmul.f32 (!%p1419_p13), %v2009_v27, %v966_v31 }
 0x157   : > { %v1637_v5 = vpop.f32.mrb[12].mxu0  ;;  %v1653_v6 = vpop.f32.mrb[12].mxu1  ;;  %947 = sbr.rel (%p1419_p13) target bundleno = 375 (0x177), region = 85  ;;  %v1031_v51 = vadd.f32 (!%p1419_p13), %v2016_v30, %v992_v41  ;;  %v1062_v60 = vmax.f32 (!%p1419_p13), %v1030_v50, 0.0  ;;  %1492 = vst [vmem:[%s1976_s7] sm:$0xff] (!%p1419_p13), %v1491_v59  }
 0x158   : > { %v894_v9 = vadd.f32 %v1637_v5, %v509_v1  ;;  %v910_v10 = vadd.f32 %v1653_v6, %v525_v2  ;;  %v801_v11 = vpop.f32.mrb[13].mxu0  ;;  %v865_v12 = vpop.f32.mrb[13].mxu1  ;;  %v1496_v1 = vpack.c.bf16 (!%p1419_p13), %v1061_v54, %v1060_v53  ;;  %v1064_v2 = vmax.f32 (!%p1419_p13), %v1032_v55, 0.0 }
 0x159   : > { %v892_v15 = vadd.f32 %v801_v11, %v507_v3  ;;  %v908_v16 = vadd.f32 %v865_v12, %v523_v4  ;;  %v1638_v17 = vpop.f32.mrb[14].mxu0  ;;  %v1654_v18 = vpop.f32.mrb[14].mxu1  ;;  %v958_v57 = vld [vmem:[#allocation2 + $0x50] sm:$0xff] (!%p1419_p13)  ;;  %v1063_v61 = vmax.f32 (!%p1419_p13), %v1031_v51, 0.0  ;;  %v1065_v3 = vmax.f32 (!%p1419_p13), %v1033_v56, 0.0 }
 0x15a   : > { %926 = vst [vmem:[#allocation2 + $0x70] sm:$0xff] %v894_v9  ;;  %942 = vst [vmem:[#allocation2 + $0xf0] sm:$0xff] %v910_v10  ;;  %v895_v19 = vadd.f32 %v1638_v17, %v510_v7  ;;  %v911_v20 = vadd.f32 %v1654_v18, %v526_v8  ;;  %v804_v21 = vpop.f32.mrb[15].mxu0  ;;  %v868_v22 = vpop.f32.mrb[15].mxu1  ;;  %v956_v47 = vld [vmem:[#allocation2 + $0x40] sm:$0xff] (!%p1419_p13)  ;;  %v997_v8 = vmul.f32 (!%p1419_p13), %v2009_v27, %v958_v57 }
 0x15b   : > { %924 = vst [vmem:[#allocation2 + $0x60] sm:$0xff] %v892_v15  ;;  %940 = vst [vmem:[#allocation2 + $0xe0] sm:$0xff] %v908_v16  ;;  %v893_v23 = vadd.f32 %v804_v21, %v508_v13  ;;  %v909_v24 = vadd.f32 %v868_v22, %v524_v14  ;;  %v959_v58 = vld [vmem:[#allocation2 + $0x58] sm:$0xff] (!%p1419_p13)  ;;  %v995_v62 = vmul.f32 (!%p1419_p13), %v2009_v27, %v956_v47  ;;  %v964_v15 = vld [vmem:[#allocation2 + $0x80] sm:$0xff] (!%p1419_p13) }
 0x15c   : > { %927 = vst [vmem:[#allocation2 + $0x78] sm:$0xff] %v895_v19  ;;  %943 = vst [vmem:[#allocation2 + $0xf8] sm:$0xff] %v911_v20  ;;  %v957_v52 = vld [vmem:[#allocation2 + $0x48] sm:$0xff] (!%p1419_p13)  ;;  %v1501_v6 = vpack.c.bf16 (!%p1419_p13), %v1063_v61, %v1062_v60  ;;  %v998_v9 = vmul.f32 (!%p1419_p13), %v2009_v27, %v959_v58  ;;  %v1506_v11 = vpack.c.bf16 (!%p1419_p13), %v1065_v3, %v1064_v2  ;;  %v972_v53 = vld [vmem:[#allocation2 + $0xc0] sm:$0xff] (!%p1419_p13) }
 0x15d   : > { %925 = vst [vmem:[#allocation2 + $0x68] sm:$0xff] %v893_v23  ;;  %941 = vst [vmem:[#allocation2 + $0xe8] sm:$0xff] %v909_v24  ;;  %v996_v4 = vmul.f32 (!%p1419_p13), %v2009_v27, %v957_v52  ;;  %v1034_v7 = vadd.f32 (!%p1419_p13), %v2016_v30, %v995_v62  ;;  %v1036_v17 = vadd.f32 (!%p1419_p13), %v2016_v30, %v997_v8  ;;  %v965_v24 = vld [vmem:[#allocation2 + $0x88] sm:$0xff] (!%p1419_p13)  ;;  %v974_v3 = vld [vmem:[#allocation2 + $0xd0] sm:$0xff] (!%p1419_p13) }
 0x15e   : > { %1568 = vst [vmem:[%s1976_s7 + $0x8] sm:$0xff] %v1496_v1   ;;  %1569 = vst [vmem:[%s1976_s7 + $0x10] sm:$0xff] %v1501_v6   ;;  %v1037_v18 = vadd.f32 %v2016_v30, %v998_v9  ;;  %v1003_v29 = vmul.f32 %v2009_v27, %v964_v15  ;;  %v1004_v41 = vmul.f32 %v2009_v27, %v965_v24  ;;  %v973_v62 = vld [vmem:[#allocation2 + $0xc8] sm:$0xff] }
 0x15f   : > { %v1035_v12 = vadd.f32 %v2016_v30, %v996_v4  ;;  %v1066_v16 = vmax.f32 %v1034_v7, 0.0  ;;  %1570 = vst [vmem:[%s1976_s7 + $0x18] sm:$0xff] %v1506_v11   ;;  %v1068_v25 = vmax.f32 %v1036_v17, 0.0  ;;  %v1006_v47 = vmul.f32 %v2009_v27, %v967_v32  ;;  %v975_v4 = vld [vmem:[#allocation2 + $0xd8] sm:$0xff] }
 0x160   : > { %v1069_v26 = vmax.f32 %v1037_v18, 0.0  ;;  %v1042_v42 = vadd.f32 %v2016_v30, %v1003_v29  ;;  %v1043_v49 = vadd.f32 %v2016_v30, %v1004_v41  ;;  %v1007_v51 = vmul.f32 %v2009_v27, %v968_v37 }
 0x161   : > { %v962_v5 = vld [vmem:[#allocation2 + $0x70] sm:$0xff]  ;;  %v1067_v20 = vmax.f32 %v1035_v12, 0.0  ;;  %v1008_v52 = vmul.f32 %v2009_v27, %v969_v38  ;;  %v1044_v55 = vadd.f32 %v2016_v30, %v1005_v46  ;;  %v1045_v56 = vadd.f32 %v2016_v30, %v1006_v47 }
 0x162   : > { %v960_v63 = vld [vmem:[#allocation2 + $0x60] sm:$0xff]  ;;  %v1001_v19 = vmul.f32 %v2009_v27, %v962_v5  ;;  %v1516_v39 = vpack.c.bf16 %v1069_v26, %v1068_v25  ;;  %v1074_v50 = vmax.f32 %v1042_v42, 0.0  ;;  %v1009_v57 = vmul.f32 %v2009_v27, %v970_v43  ;;  %v978_v15 = vld [vmem:[#allocation2 + $0xf0] sm:$0xff] }
 0x163   : > { %v963_v10 = vld [vmem:[#allocation2 + $0x78] sm:$0xff]  ;;  %v999_v13 = vmul.f32 %v2009_v27, %v960_v63  ;;  %v1511_v33 = vpack.c.bf16 %v1067_v20, %v1066_v16  ;;  %v1075_v58 = vmax.f32 %v1043_v49, 0.0  ;;  %v1046_v59 = vadd.f32 %v2016_v30, %v1007_v51  ;;  %v976_v9 = vld [vmem:[#allocation2 + $0xe0] sm:$0xff] }
 0x164   : > { %v961_v0 = vld [vmem:[#allocation2 + $0x68] sm:$0xff]  ;;  %v1002_v23 = vmul.f32 %v2009_v27, %v963_v10  ;;  %v1040_v28 = vadd.f32 %v2016_v30, %v1001_v19  ;;  %1572 = vst [vmem:[%s1976_s7 + $0x28] sm:$0xff] %v1516_v39   ;;  %v1047_v60 = vadd.f32 %v2016_v30, %v1008_v52  ;;  %v1010_v61 = vmul.f32 %v2009_v27, %v971_v48  ;;  %v979_v20 = vld [vmem:[#allocation2 + $0xf8] sm:$0xff] }
 0x165   : > { %v1000_v14 = vmul.f32 %v2009_v27, %v961_v0  ;;  %v1038_v21 = vadd.f32 %v2016_v30, %v999_v13  ;;  %1571 = vst [vmem:[%s1976_s7 + $0x20] sm:$0xff] %v1511_v33   ;;  %v1076_v63 = vmax.f32 %v1044_v55, 0.0  ;;  %v1077_v0 = vmax.f32 %v1045_v56, 0.0  ;;  %v977_v10 = vld [vmem:[#allocation2 + $0xe8] sm:$0xff] }
 0x166   : > { %v1041_v36 = vadd.f32 %v2016_v30, %v1002_v23  ;;  %v1072_v40 = vmax.f32 %v1040_v28, 0.0  ;;  %v1048_v1 = vadd.f32 %v2016_v30, %v1009_v57  ;;  %v1011_v2 = vmul.f32 %v2009_v27, %v972_v53 }
 0x167   : > { %v1039_v22 = vadd.f32 %v2016_v30, %v1000_v14  ;;  %v1070_v34 = vmax.f32 %v1038_v21, 0.0  ;;  %v1531_v5 = vpack.c.bf16 %v1075_v58, %v1074_v50  ;;  %v1078_v6 = vmax.f32 %v1046_v59, 0.0 }
 0x168   : > { %v1073_v45 = vmax.f32 %v1041_v36, 0.0  ;;  %v1079_v7 = vmax.f32 %v1047_v60, 0.0  ;;  %v1049_v8 = vadd.f32 %v2016_v30, %v1010_v61  ;;  %v1536_v11 = vpack.c.bf16 %v1077_v0, %v1076_v63 }
 0x169   : > { %v1071_v35 = vmax.f32 %v1039_v22, 0.0  ;;  %v1080_v12 = vmax.f32 %v1048_v1, 0.0  ;;  %v1012_v13 = vmul.f32 %v2009_v27, %v973_v62  ;;  %v1050_v14 = vadd.f32 %v2016_v30, %v1011_v2  ;;  %1575 = vst [vmem:[%s1976_s7 + $0x40] sm:$0xff] %v1531_v5  }
 0x16a   : > { %v1526_v54 = vpack.c.bf16 %v1073_v45, %v1072_v40  ;;  %v1541_v16 = vpack.c.bf16 %v1079_v7, %v1078_v6  ;;  %v1081_v17 = vmax.f32 %v1049_v8, 0.0  ;;  %v1013_v18 = vmul.f32 %v2009_v27, %v974_v3  ;;  %1576 = vst [vmem:[%s1976_s7 + $0x48] sm:$0xff] %v1536_v11  }
 0x16b   : > { %v1521_v44 = vpack.c.bf16 %v1071_v35, %v1070_v34  ;;  %v1014_v19 = vmul.f32 %v2009_v27, %v975_v4  ;;  %v1051_v21 = vadd.f32 %v2016_v30, %v1012_v13  ;;  %v1082_v22 = vmax.f32 %v1050_v14, 0.0 }
 0x16c   : > { %1574 = vst [vmem:[%s1976_s7 + $0x38] sm:$0xff] %v1526_v54   ;;  %v1015_v23 = vmul.f32 %v2009_v27, %v976_v9  ;;  %v1016_v24 = vmul.f32 %v2009_v27, %v977_v10  ;;  %1577 = vst [vmem:[%s1976_s7 + $0x50] sm:$0xff] %v1541_v16   ;;  %v1546_v25 = vpack.c.bf16 %v1081_v17, %v1080_v12 }
 0x16d   : > { %1573 = vst [vmem:[%s1976_s7 + $0x30] sm:$0xff] %v1521_v44   ;;  %v1052_v26 = vadd.f32 %v2016_v30, %v1013_v18  ;;  %v1053_v28 = vadd.f32 %v2016_v30, %v1014_v19  ;;  %v1017_v29 = vmul.f32 %v2009_v27, %v978_v15  ;;  %v1083_v31 = vmax.f32 %v1051_v21, 0.0 }
 0x16e   : > { %v1054_v32 = vadd.f32 %v2016_v30, %v1015_v23  ;;  %v1055_v33 = vadd.f32 %v2016_v30, %v1016_v24  ;;  %v1018_v34 = vmul.f32 %v2009_v27, %v979_v20  ;;  %1578 = vst [vmem:[%s1976_s7 + $0x58] sm:$0xff] %v1546_v25  }
 0x16f   : > { %v1084_v35 = vmax.f32 %v1052_v26, 0.0  ;;  %v1085_v36 = vmax.f32 %v1053_v28, 0.0  ;;  %v1056_v37 = vadd.f32 %v2016_v30, %v1017_v29  ;;  %v1551_v38 = vpack.c.bf16 %v1083_v31, %v1082_v22 }
 0x170   : > { %v1086_v39 = vmax.f32 %v1054_v32, 0.0  ;;  %v1087_v40 = vmax.f32 %v1055_v33, 0.0  ;;  %v1057_v41 = vadd.f32 %v2016_v30, %v1018_v34 }
 0x171   : > { %v1556_v42 = vpack.c.bf16 %v1085_v36, %v1084_v35  ;;  %v1088_v43 = vmax.f32 %v1056_v37, 0.0  ;;  %1579 = vst [vmem:[%s1976_s7 + $0x60] sm:$0xff] %v1551_v38  }
 0x172   : > { %v1561_v44 = vpack.c.bf16 %v1087_v40, %v1086_v39  ;;  %v1089_v45 = vmax.f32 %v1057_v41, 0.0 }
 0x173   : > { %1580 = vst [vmem:[%s1976_s7 + $0x68] sm:$0xff] %v1556_v42  }
 0x174   : > { %1581 = vst [vmem:[%s1976_s7 + $0x70] sm:$0xff] %v1561_v44   ;;  %v1566_v46 = vpack.c.bf16 %v1089_v45, %v1088_v43 }
 0x176   : > { %1582 = vst [vmem:[%s1976_s7 + $0x78] sm:$0xff] %v1566_v46  }
 0x177 PF: > { %s14_s21 = sadd.s32 1, %s1807_s21   ;;  %s2122_s15 = smov %s1787_s16 }
 0x178   : > { %p11_p0 = scmp.ge.s32.totalorder %s14_s21, 12   ;;  %s2123_s16 = smov %s1886_s28 }
 0x179   : > { %s2124_s17 = smov %s1799_s19  ;;  %s2125_s18 = smov %s1803_s20 }
 0x17a   : > { %s2126_s19 = smov %s2129_s22  ;;  %s2127_s20 = smov %s2133_s23 }
 0x17b   :  { %13 = sbr.rel (!%p11_p0) target bundleno = 4 (0x4), region = 129 }

// kernel: _lambda_.15
= control target key start
LH: loop header
LB: loop body
LE: loop exit
PB: predicated region body
PF: predicated region fallthrough
CT: control target
= control target key end

     0   :  { %s230_s0 = inlined_call_operand.vmem [shape: bf16[16,1024], index: 0, kind: input, shape index: {}]   ;;  %s231_s1 = inlined_call_operand.vmem [shape: bf16[16,1024], index: 1, kind: input, shape index: {}]   ;;  %s232_s2 = inlined_call_operand.vmem [shape: bf16[16,1024], index: 2, kind: input, shape index: {}]   ;;  %s233_s3 = inlined_call_operand.vmem [shape: bf16[16,1024], index: 3, kind: input, shape index: {}]   ;;  %s234_s4 = inlined_call_operand.vmem [shape: bf16[16,1024], index: 4, kind: output, shape index: {}]  }
   0x1   :  { %v17_v0 = vld [vmem:[%s230_s0] sm:$0xff]  ;;  %v18_v5 = vld [vmem:[%s230_s0 + $0x8] sm:$0xff]  ;;  %v19_v11 = vld [vmem:[%s230_s0 + $0x10] sm:$0xff] }
   0x2   :  { %v25_v1 = vld [vmem:[%s231_s1] sm:$0xff]  ;;  %v26_v6 = vld [vmem:[%s231_s1 + $0x8] sm:$0xff]  ;;  %v27_v13 = vld [vmem:[%s231_s1 + $0x10] sm:$0xff] }
   0x3   :  { %v41_v2 = vld [vmem:[%s232_s2] sm:$0xff]  ;;  %v33_v3 = vmax.bf16 %v25_v1, %v17_v0  ;;  %v34_v8 = vmax.bf16 %v26_v6, %v18_v5  ;;  %v42_v9 = vld [vmem:[%s232_s2 + $0x8] sm:$0xff]  ;;  %v43_v14 = vld [vmem:[%s232_s2 + $0x10] sm:$0xff]  ;;  %v35_v17 = vmax.bf16 %v27_v13, %v19_v11 }
   0x4   :  { %v49_v4 = vld [vmem:[%s233_s3] sm:$0xff]  ;;  %v50_v10 = vld [vmem:[%s233_s3 + $0x8] sm:$0xff]  ;;  %v51_v15 = vld [vmem:[%s233_s3 + $0x10] sm:$0xff] }
   0x5   :  { %v57_v7 = vmax.bf16 %v49_v4, %v41_v2  ;;  %v58_v12 = vmax.bf16 %v50_v10, %v42_v9  ;;  %v59_v18 = vmax.bf16 %v51_v15, %v43_v14  ;;  %v20_v19 = vld [vmem:[%s230_s0 + $0x18] sm:$0xff]  ;;  %v21_v25 = vld [vmem:[%s230_s0 + $0x20] sm:$0xff]  ;;  %v22_v32 = vld [vmem:[%s230_s0 + $0x28] sm:$0xff] }
   0x6   :  { %v28_v20 = vld [vmem:[%s231_s1 + $0x18] sm:$0xff]  ;;  %v29_v26 = vld [vmem:[%s231_s1 + $0x20] sm:$0xff]  ;;  %v30_v34 = vld [vmem:[%s231_s1 + $0x28] sm:$0xff] }
   0x7   :  { %v65_v16 = vmax.bf16 %v57_v7, %v33_v3  ;;  %v44_v21 = vld [vmem:[%s232_s2 + $0x18] sm:$0xff]  ;;  %v66_v22 = vmax.bf16 %v58_v12, %v34_v8  ;;  %v36_v23 = vmax.bf16 %v28_v20, %v20_v19  ;;  %v67_v27 = vmax.bf16 %v59_v18, %v35_v17  ;;  %v45_v30 = vld [vmem:[%s232_s2 + $0x20] sm:$0xff]  ;;  %v46_v35 = vld [vmem:[%s232_s2 + $0x28] sm:$0xff] }
   0x8   :  { %v52_v24 = vld [vmem:[%s233_s3 + $0x18] sm:$0xff]  ;;  %v37_v29 = vmax.bf16 %v29_v26, %v21_v25  ;;  %v53_v31 = vld [vmem:[%s233_s3 + $0x20] sm:$0xff]  ;;  %v54_v36 = vld [vmem:[%s233_s3 + $0x28] sm:$0xff]  ;;  %v38_v38 = vmax.bf16 %v30_v34, %v22_v32 }
   0x9   :  { %73 = vst [vmem:[%s234_s4] sm:$0xff] %v65_v16  ;;  %v60_v28 = vmax.bf16 %v52_v24, %v44_v21  ;;  %74 = vst [vmem:[%s234_s4 + $0x8] sm:$0xff] %v66_v22  ;;  %v61_v33 = vmax.bf16 %v53_v31, %v45_v30  ;;  %v62_v39 = vmax.bf16 %v54_v36, %v46_v35  ;;  %v23_v40 = vld [vmem:[%s230_s0 + $0x30] sm:$0xff]  ;;  %v24_v46 = vld [vmem:[%s230_s0 + $0x38] sm:$0xff] }
   0xa   :  { %75 = vst [vmem:[%s234_s4 + $0x10] sm:$0xff] %v67_v27  ;;  %v31_v41 = vld [vmem:[%s231_s1 + $0x30] sm:$0xff]  ;;  %v32_v47 = vld [vmem:[%s231_s1 + $0x38] sm:$0xff] }
   0xb   :  { %v68_v37 = vmax.bf16 %v60_v28, %v36_v23  ;;  %v47_v42 = vld [vmem:[%s232_s2 + $0x30] sm:$0xff]  ;;  %v69_v43 = vmax.bf16 %v61_v33, %v37_v29  ;;  %v39_v44 = vmax.bf16 %v31_v41, %v23_v40  ;;  %v70_v48 = vmax.bf16 %v62_v39, %v38_v38  ;;  %v48_v51 = vld [vmem:[%s232_s2 + $0x38] sm:$0xff] }
   0xc   :  { %v55_v45 = vld [vmem:[%s233_s3 + $0x30] sm:$0xff]  ;;  %v40_v50 = vmax.bf16 %v32_v47, %v24_v46  ;;  %v56_v52 = vld [vmem:[%s233_s3 + $0x38] sm:$0xff] }
   0xd   :  { %76 = vst [vmem:[%s234_s4 + $0x18] sm:$0xff] %v68_v37  ;;  %v63_v49 = vmax.bf16 %v55_v45, %v47_v42  ;;  %77 = vst [vmem:[%s234_s4 + $0x20] sm:$0xff] %v69_v43  ;;  %v64_v53 = vmax.bf16 %v56_v52, %v48_v51 }
   0xe   :  { %78 = vst [vmem:[%s234_s4 + $0x28] sm:$0xff] %v70_v48 }
   0xf   :  { %v71_v54 = vmax.bf16 %v63_v49, %v39_v44  ;;  %v72_v55 = vmax.bf16 %v64_v53, %v40_v50 }
  0x11   :  { %79 = vst [vmem:[%s234_s4 + $0x30] sm:$0xff] %v71_v54  ;;  %80 = vst [vmem:[%s234_s4 + $0x38] sm:$0xff] %v72_v55 }

// kernel: _lambda_.16
= control target key start
LH: loop header
LB: loop body
LE: loop exit
PB: predicated region body
PF: predicated region fallthrough
CT: control target
= control target key end

     0   :  { %s2618_s0 = inlined_call_operand.vmem [shape: bf16[128,1152], index: 0, kind: input, shape index: {}]   ;;  %s2619_s1 = inlined_call_operand.vmem [shape: bf16[1152,256], index: 1, kind: input, shape index: {}]   ;;  %s2620_s2 = inlined_call_operand.vmem [shape: f32[1,256], index: 2, kind: input, shape index: {}]   ;;  %s2621_s3 = inlined_call_operand.vmem [shape: f32[1,256], index: 3, kind: input, shape index: {}]   ;;  %s2622_s4 = inlined_call_operand.vmem [shape: bf16[128,256], index: 4, kind: output, shape index: {}]  }
   0x1   :  { %2626 = sst [smem:[#allocation9_spill]] %s2618_s0 }
   0x2   :  { %2627 = sst [smem:[#allocation10_spill]] %s2619_s1 }
   0x3   :  { %s2154_s15 = smov 0   ;;  %s2156_s16 = smov 0  }
   0x4   :  { %s2158_s17 = smov 0   ;;  %s2160_s18 = smov 0  }
   0x5   :  { %s2162_s19 = smov 0   ;;  %s2164_s20 = smov 0  }
   0x6   :  { %s2166_s21 = smov 0   ;;  %s2168_s22 = smov 0  }
   0x7   :  { %s2170_s23 = smov 0   ;;  %s2172_s24 = smov 0  }
   0x8   :  { %s2174_s25 = smov 0  }
   0x9 LB: > { %2628 = sst [smem:[#allocation6_spill]] %s2122_s24  ;;  %s1601_s26 = sadd.s32 4294967295, %s2126_s25   ;;  %s2126_s25 = sphi %s2174_s25, %s14_s25   ;;  %s2122_s24 = sphi %s2172_s24, %s2638_s24   ;;  %s2118_s23 = sphi %s2170_s23, %s2646_s23   ;;  %s2114_s22 = sphi %s2168_s22, %s2636_s22   ;;  %s2110_s21 = sphi %s2166_s21, %s2645_s21   ;;  %s2106_s20 = sphi %s2164_s20, %s2644_s20   ;;  %s2102_s19 = sphi %s2162_s19, %s2643_s19   ;;  %s2098_s18 = sphi %s2160_s18, %s2642_s18   ;;  %s2094_s17 = sphi %s2158_s17, %s2641_s17   ;;  %s2090_s16 = sphi %s2156_s16, %s2640_s16   ;;  %s2086_s15 = sphi %s2154_s15, %s2639_s15  }
   0xa   : > { %s26_s27 = sadd.s32 1, %s2118_s23  ;;  %s29_s28 = sadd.s32 1, %s2122_s24 }
   0xb   : > { %p27_p0 = scmp.ge.s32.totalorder %s26_s27, 3  ;;  %s42_s29 = sadd.s32 1, %s2106_s20 }
   0xc   : > { %p49_p1 = scmp.ne.s32.totalorder %s2106_s20, %s2102_s19  ;;  %p50_p2 = scmp.eq.s32.totalorder %s2126_s25, 0 }
   0xd   : > { %s2648_s27 = smov (%p27_p0, %s26_s27), 0  ;;  %s2650_s28 = smov (!%p27_p0, %s29_s28), %s2122_s24 }
   0xe   : > { %2629 = sst [smem:[#allocation7_spill]] %s2648_s27  ;;  %s38_s30 = ssub.s32 %s2118_s23, %s2648_s27 }
   0xf   : > { %p31_p3 = scmp.ge.s32.totalorder %s2650_s28, 2  ;;  %p40_p4 = scmp.eq.s32.totalorder %s38_s30, 0 }
  0x10   : > { %p2221_p5 = por %p50_p2, %p49_p1  ;;  %s70_s6 = sadd.s32 1, %s2098_s18 }
  0x11   : > { %s2652_s28 = smov (%p31_p3, %s2650_s28), 0  ;;  %p77_p6 = scmp.ne.s32.totalorder %s2098_s18, %s2094_s17 }
  0x12   : > { %2631 = sst [smem:[#allocation8_spill]] %s2652_s28  ;;  %s66_s8 = ssub.s32 %s2122_s24, %s2652_s28 }
  0x13   : > { %s2229_s7 = scalar_select %p40_p4, %s2106_s20, %s42_s29  }
  0x14   : > { %s67_s9 = sor.u32 %s66_s8, %s38_s30  ;;  %p148_p7 = scmp.eq.s32.totalorder %s66_s8, 0 }
  0x15   : > { %p68_p8 = scmp.eq.s32.totalorder %s67_s9, 0  ;;  %p2235_p9 = por %p77_p6, %p50_p2 }
  0x16   : > { %s150_s11 = sadd.s32 1, %s2090_s16  ;;  %p160_p10 = scmp.ne.s32.totalorder %s2090_s16, %s2086_s15 }
  0x17   : > { %s2243_s12 = scalar_select %p68_p8, %s2098_s18, %s70_s6  }
  0x18   : > { %s2246_s13 = scalar_select %p148_p7, %s2090_s16, %s150_s11  }
  0x19   : > { %p161_p11 = scmp.eq.s32.totalorder %s1601_s26, 5  ;;  %p1604_p13 = scmp.ge.s32.totalorder %s2126_s25, 6 }
  0x1b   : > { %p2248_p12 = por %p161_p11, %p160_p10  ;;  %183 = sbr.rel (%p1604_p13) target bundleno = 102 (0x66), region = 16 }
  0x22   : > { %186 = sbr.rel (!%p2221_p5) target bundleno = 61 (0x3d), region = 20  ;;  %s188_s29 = sand.u32 (%p2221_p5), 1, %s2106_s20  }
  0x23   : > { %s1714_s30 = smul.u32 (%p2221_p5), 12, %s2118_s23  ;;  %s2634_s0 = sld [smem:[#allocation9_spill]] (%p2221_p5) }
  0x24   : > { %s1891_s8 = smul.u32 (%p2221_p5), 192, %s188_s29 }
  0x26   : > { %s2265_s26 = scalar_lea.vmem (%p2221_p5), [#allocation3], %s1891_s8 }
  0x29   : > { %s2260_s11 = scalar_lea.vmem %s2634_s0, %s1714_s30 }
  0x2a   : > { %v211_v0 = vld [vmem:[%s2260_s11] sm:$0xff]  ;;  %v215_v2 = vld [vmem:[%s2260_s11 + $0x48] sm:$0xff]  ;;  %v219_v4 = vld [vmem:[%s2260_s11 + $0x90] sm:$0xff] }
  0x2b   : > { %v213_v1 = vld [vmem:[%s2260_s11 + $0x24] sm:$0xff]  ;;  %212 = vst [vmem:[%s2265_s26] sm:$0xff] %v211_v0  ;;  %216 = vst [vmem:[%s2265_s26 + $0x18] sm:$0xff] %v215_v2  ;;  %v217_v3 = vld [vmem:[%s2260_s11 + $0x6c] sm:$0xff] }
  0x2c   : > { %214 = vst [vmem:[%s2265_s26 + $0xc] sm:$0xff] %v213_v1  ;;  %v221_v5 = vld [vmem:[%s2260_s11 + $0xb4] sm:$0xff]  ;;  %218 = vst [vmem:[%s2265_s26 + $0x24] sm:$0xff] %v217_v3  ;;  %v225_v7 = vld [vmem:[%s2260_s11 + $0xfc] sm:$0xff] }
  0x2d   : > { %220 = vst [vmem:[%s2265_s26 + $0x30] sm:$0xff] %v219_v4  ;;  %222 = vst [vmem:[%s2265_s26 + $0x3c] sm:$0xff] %v221_v5  ;;  %v223_v6 = vld [vmem:[%s2260_s11 + $0xd8] sm:$0xff]  ;;  %v227_v8 = vld [vmem:[%s2260_s11 + $0x120] sm:$0xff] }
  0x2e   : > { %224 = vst [vmem:[%s2265_s26 + $0x48] sm:$0xff] %v223_v6  ;;  %226 = vst [vmem:[%s2265_s26 + $0x54] sm:$0xff] %v225_v7  ;;  %v229_v9 = vld [vmem:[%s2260_s11 + $0x144] sm:$0xff]  ;;  %v233_v11 = vld [vmem:[%s2260_s11 + $0x18c] sm:$0xff] }
  0x2f   : > { %228 = vst [vmem:[%s2265_s26 + $0x60] sm:$0xff] %v227_v8  ;;  %v231_v10 = vld [vmem:[%s2260_s11 + $0x168] sm:$0xff]  ;;  %230 = vst [vmem:[%s2265_s26 + $0x6c] sm:$0xff] %v229_v9  ;;  %v235_v12 = vld [vmem:[%s2260_s11 + $0x1b0] sm:$0xff] }
  0x30   : > { %232 = vst [vmem:[%s2265_s26 + $0x78] sm:$0xff] %v231_v10  ;;  %234 = vst [vmem:[%s2265_s26 + $0x84] sm:$0xff] %v233_v11  ;;  %v237_v13 = vld [vmem:[%s2260_s11 + $0x1d4] sm:$0xff]  ;;  %v241_v15 = vld [vmem:[%s2260_s11 + $0x21c] sm:$0xff] }
  0x31   : > { %v239_v14 = vld [vmem:[%s2260_s11 + $0x1f8] sm:$0xff]  ;;  %236 = vst [vmem:[%s2265_s26 + $0x90] sm:$0xff] %v235_v12  ;;  %238 = vst [vmem:[%s2265_s26 + $0x9c] sm:$0xff] %v237_v13  ;;  %v1606_v16 = vld [vmem:[%s2260_s11 + $0x8] sm:$0xf] }
  0x32   : > { %240 = vst [vmem:[%s2265_s26 + $0xa8] sm:$0xff] %v239_v14  ;;  %v1608_v17 = vld [vmem:[%s2260_s11 + $0x2c] sm:$0xf]  ;;  %242 = vst [vmem:[%s2265_s26 + $0xb4] sm:$0xff] %v241_v15  ;;  %v1610_v18 = vld [vmem:[%s2260_s11 + $0x50] sm:$0xf] }
  0x33   : > { %1607 = vst [vmem:[%s2265_s26 + $0x8] sm:$0xf] %v1606_v16  ;;  %1609 = vst [vmem:[%s2265_s26 + $0x14] sm:$0xf] %v1608_v17  ;;  %v1612_v19 = vld [vmem:[%s2260_s11 + $0x74] sm:$0xf] }
  0x34   : > { %v1614_v20 = vld [vmem:[%s2260_s11 + $0x98] sm:$0xf]  ;;  %1611 = vst [vmem:[%s2265_s26 + $0x20] sm:$0xf] %v1610_v18  ;;  %1613 = vst [vmem:[%s2265_s26 + $0x2c] sm:$0xf] %v1612_v19 }
  0x35   : > { %1615 = vst [vmem:[%s2265_s26 + $0x38] sm:$0xf] %v1614_v20  ;;  %v1616_v21 = vld [vmem:[%s2260_s11 + $0xbc] sm:$0xf]  ;;  %v1618_v22 = vld [vmem:[%s2260_s11 + $0xe0] sm:$0xf] }
  0x36   : > { %v1620_v23 = vld [vmem:[%s2260_s11 + $0x104] sm:$0xf]  ;;  %1617 = vst [vmem:[%s2265_s26 + $0x44] sm:$0xf] %v1616_v21  ;;  %1619 = vst [vmem:[%s2265_s26 + $0x50] sm:$0xf] %v1618_v22 }
  0x37   : > { %1621 = vst [vmem:[%s2265_s26 + $0x5c] sm:$0xf] %v1620_v23  ;;  %v1622_v24 = vld [vmem:[%s2260_s11 + $0x128] sm:$0xf]  ;;  %v1624_v25 = vld [vmem:[%s2260_s11 + $0x14c] sm:$0xf] }
  0x38   : > { %v1626_v26 = vld [vmem:[%s2260_s11 + $0x170] sm:$0xf]  ;;  %1623 = vst [vmem:[%s2265_s26 + $0x68] sm:$0xf] %v1622_v24  ;;  %1625 = vst [vmem:[%s2265_s26 + $0x74] sm:$0xf] %v1624_v25 }
  0x39   : > { %1627 = vst [vmem:[%s2265_s26 + $0x80] sm:$0xf] %v1626_v26  ;;  %v1628_v27 = vld [vmem:[%s2260_s11 + $0x194] sm:$0xf]  ;;  %v1630_v28 = vld [vmem:[%s2260_s11 + $0x1b8] sm:$0xf] }
  0x3a   : > { %v1632_v29 = vld [vmem:[%s2260_s11 + $0x1dc] sm:$0xf]  ;;  %1629 = vst [vmem:[%s2265_s26 + $0x8c] sm:$0xf] %v1628_v27  ;;  %1631 = vst [vmem:[%s2265_s26 + $0x98] sm:$0xf] %v1630_v28 }
  0x3b   : > { %1633 = vst [vmem:[%s2265_s26 + $0xa4] sm:$0xf] %v1632_v29  ;;  %v1634_v30 = vld [vmem:[%s2260_s11 + $0x200] sm:$0xf]  ;;  %v1636_v31 = vld [vmem:[%s2260_s11 + $0x224] sm:$0xf] }
  0x3c   : > { %1635 = vst [vmem:[%s2265_s26 + $0xb0] sm:$0xf] %v1634_v30  ;;  %1637 = vst [vmem:[%s2265_s26 + $0xbc] sm:$0xf] %v1636_v31 }
  0x3d PF: > { %287 = sbr.rel (!%p2235_p9) target bundleno = 102 (0x66), region = 46  ;;  %s289_s5 = sand.u32 (%p2235_p9), 1, %s2098_s18  }
  0x3e   : > { %s1715_s29 = smul.u32 (%p2235_p9), 96, %s2118_s23  ;;  %s2635_s1 = sld [smem:[#allocation10_spill]] (%p2235_p9) }
  0x3f   : > { %s1892_s30 = smul.u32 (%p2235_p9), 192, %s289_s5 }
  0x40   : > { %s294_s8 = sadd.s32 (%p2235_p9), %s2122_s24, %s1715_s29 }
  0x41   : > { %s1639_s6 = sshll.u32 (%p2235_p9), %s294_s8, 2  ;;  %s2341_s10 = scalar_lea.vmem (%p2235_p9), [#allocation4], %s1892_s30 }
  0x44   : > { %s2336_s28 = scalar_lea.vmem %s2635_s1, %s1639_s6 }
  0x45   : > { %v312_v32 = vld [vmem:[%s2336_s28] sm:$0xf]  ;;  %v314_v33 = vld [vmem:[%s2336_s28 + $0x8] sm:$0xf]  ;;  %v316_v34 = vld [vmem:[%s2336_s28 + $0x10] sm:$0xf] }
  0x46   : > { %313 = vst [vmem:[%s2341_s10] sm:$0xf] %v312_v32  ;;  %315 = vst [vmem:[%s2341_s10 + $0x4] sm:$0xf] %v314_v33  ;;  %v318_v35 = vld [vmem:[%s2336_s28 + $0x18] sm:$0xf] }
  0x47   : > { %317 = vst [vmem:[%s2341_s10 + $0x8] sm:$0xf] %v316_v34  ;;  %v320_v36 = vld [vmem:[%s2336_s28 + $0x20] sm:$0xf]  ;;  %v322_v37 = vld [vmem:[%s2336_s28 + $0x28] sm:$0xf] }
  0x48   : > { %319 = vst [vmem:[%s2341_s10 + $0xc] sm:$0xf] %v318_v35  ;;  %321 = vst [vmem:[%s2341_s10 + $0x10] sm:$0xf] %v320_v36  ;;  %v324_v38 = vld [vmem:[%s2336_s28 + $0x30] sm:$0xf] }
  0x49   : > { %323 = vst [vmem:[%s2341_s10 + $0x14] sm:$0xf] %v322_v37  ;;  %v326_v39 = vld [vmem:[%s2336_s28 + $0x38] sm:$0xf]  ;;  %v328_v40 = vld [vmem:[%s2336_s28 + $0x40] sm:$0xf] }
  0x4a   : > { %325 = vst [vmem:[%s2341_s10 + $0x18] sm:$0xf] %v324_v38  ;;  %327 = vst [vmem:[%s2341_s10 + $0x1c] sm:$0xf] %v326_v39  ;;  %v330_v41 = vld [vmem:[%s2336_s28 + $0x48] sm:$0xf] }
  0x4b   : > { %329 = vst [vmem:[%s2341_s10 + $0x20] sm:$0xf] %v328_v40  ;;  %v332_v42 = vld [vmem:[%s2336_s28 + $0x50] sm:$0xf]  ;;  %v334_v43 = vld [vmem:[%s2336_s28 + $0x58] sm:$0xf] }
  0x4c   : > { %331 = vst [vmem:[%s2341_s10 + $0x24] sm:$0xf] %v330_v41  ;;  %333 = vst [vmem:[%s2341_s10 + $0x28] sm:$0xf] %v332_v42  ;;  %v336_v44 = vld [vmem:[%s2336_s28 + $0x60] sm:$0xf] }
  0x4d   : > { %335 = vst [vmem:[%s2341_s10 + $0x2c] sm:$0xf] %v334_v43  ;;  %v338_v45 = vld [vmem:[%s2336_s28 + $0x68] sm:$0xf]  ;;  %v340_v46 = vld [vmem:[%s2336_s28 + $0x70] sm:$0xf] }
  0x4e   : > { %337 = vst [vmem:[%s2341_s10 + $0x30] sm:$0xf] %v336_v44  ;;  %339 = vst [vmem:[%s2341_s10 + $0x34] sm:$0xf] %v338_v45  ;;  %v342_v47 = vld [vmem:[%s2336_s28 + $0x78] sm:$0xf] }
  0x4f   : > { %341 = vst [vmem:[%s2341_s10 + $0x38] sm:$0xf] %v340_v46  ;;  %v344_v48 = vld [vmem:[%s2336_s28 + $0x80] sm:$0xf]  ;;  %v346_v49 = vld [vmem:[%s2336_s28 + $0x88] sm:$0xf] }
  0x50   : > { %343 = vst [vmem:[%s2341_s10 + $0x3c] sm:$0xf] %v342_v47  ;;  %345 = vst [vmem:[%s2341_s10 + $0x40] sm:$0xf] %v344_v48  ;;  %v348_v50 = vld [vmem:[%s2336_s28 + $0x90] sm:$0xf] }
  0x51   : > { %347 = vst [vmem:[%s2341_s10 + $0x44] sm:$0xf] %v346_v49  ;;  %v350_v51 = vld [vmem:[%s2336_s28 + $0x98] sm:$0xf]  ;;  %v352_v52 = vld [vmem:[%s2336_s28 + $0xa0] sm:$0xf] }
  0x52   : > { %349 = vst [vmem:[%s2341_s10 + $0x48] sm:$0xf] %v348_v50  ;;  %351 = vst [vmem:[%s2341_s10 + $0x4c] sm:$0xf] %v350_v51  ;;  %v354_v53 = vld [vmem:[%s2336_s28 + $0xa8] sm:$0xf] }
  0x53   : > { %353 = vst [vmem:[%s2341_s10 + $0x50] sm:$0xf] %v352_v52  ;;  %v356_v54 = vld [vmem:[%s2336_s28 + $0xb0] sm:$0xf]  ;;  %v358_v55 = vld [vmem:[%s2336_s28 + $0xb8] sm:$0xf] }
  0x54   : > { %355 = vst [vmem:[%s2341_s10 + $0x54] sm:$0xf] %v354_v53  ;;  %357 = vst [vmem:[%s2341_s10 + $0x58] sm:$0xf] %v356_v54  ;;  %v360_v56 = vld [vmem:[%s2336_s28 + $0xc0] sm:$0xf] }
  0x55   : > { %359 = vst [vmem:[%s2341_s10 + $0x5c] sm:$0xf] %v358_v55  ;;  %v362_v57 = vld [vmem:[%s2336_s28 + $0xc8] sm:$0xf]  ;;  %v364_v58 = vld [vmem:[%s2336_s28 + $0xd0] sm:$0xf] }
  0x56   : > { %361 = vst [vmem:[%s2341_s10 + $0x60] sm:$0xf] %v360_v56  ;;  %363 = vst [vmem:[%s2341_s10 + $0x64] sm:$0xf] %v362_v57  ;;  %v366_v59 = vld [vmem:[%s2336_s28 + $0xd8] sm:$0xf] }
  0x57   : > { %365 = vst [vmem:[%s2341_s10 + $0x68] sm:$0xf] %v364_v58  ;;  %v368_v60 = vld [vmem:[%s2336_s28 + $0xe0] sm:$0xf]  ;;  %v370_v61 = vld [vmem:[%s2336_s28 + $0xe8] sm:$0xf] }
  0x58   : > { %367 = vst [vmem:[%s2341_s10 + $0x6c] sm:$0xf] %v366_v59  ;;  %369 = vst [vmem:[%s2341_s10 + $0x70] sm:$0xf] %v368_v60  ;;  %v372_v62 = vld [vmem:[%s2336_s28 + $0xf0] sm:$0xf] }
  0x59   : > { %371 = vst [vmem:[%s2341_s10 + $0x74] sm:$0xf] %v370_v61  ;;  %v374_v63 = vld [vmem:[%s2336_s28 + $0xf8] sm:$0xf]  ;;  %v376_v0 = vld [vmem:[%s2336_s28 + $0x100] sm:$0xf] }
  0x5a   : > { %373 = vst [vmem:[%s2341_s10 + $0x78] sm:$0xf] %v372_v62  ;;  %375 = vst [vmem:[%s2341_s10 + $0x7c] sm:$0xf] %v374_v63  ;;  %v378_v1 = vld [vmem:[%s2336_s28 + $0x108] sm:$0xf] }
  0x5b   : > { %377 = vst [vmem:[%s2341_s10 + $0x80] sm:$0xf] %v376_v0  ;;  %v380_v2 = vld [vmem:[%s2336_s28 + $0x110] sm:$0xf]  ;;  %v382_v3 = vld [vmem:[%s2336_s28 + $0x118] sm:$0xf] }
  0x5c   : > { %379 = vst [vmem:[%s2341_s10 + $0x84] sm:$0xf] %v378_v1  ;;  %381 = vst [vmem:[%s2341_s10 + $0x88] sm:$0xf] %v380_v2  ;;  %v384_v4 = vld [vmem:[%s2336_s28 + $0x120] sm:$0xf] }
  0x5d   : > { %383 = vst [vmem:[%s2341_s10 + $0x8c] sm:$0xf] %v382_v3  ;;  %v386_v5 = vld [vmem:[%s2336_s28 + $0x128] sm:$0xf]  ;;  %v388_v6 = vld [vmem:[%s2336_s28 + $0x130] sm:$0xf] }
  0x5e   : > { %385 = vst [vmem:[%s2341_s10 + $0x90] sm:$0xf] %v384_v4  ;;  %387 = vst [vmem:[%s2341_s10 + $0x94] sm:$0xf] %v386_v5  ;;  %v390_v7 = vld [vmem:[%s2336_s28 + $0x138] sm:$0xf] }
  0x5f   : > { %389 = vst [vmem:[%s2341_s10 + $0x98] sm:$0xf] %v388_v6  ;;  %v392_v8 = vld [vmem:[%s2336_s28 + $0x140] sm:$0xf]  ;;  %v394_v9 = vld [vmem:[%s2336_s28 + $0x148] sm:$0xf] }
  0x60   : > { %391 = vst [vmem:[%s2341_s10 + $0x9c] sm:$0xf] %v390_v7  ;;  %393 = vst [vmem:[%s2341_s10 + $0xa0] sm:$0xf] %v392_v8  ;;  %v396_v10 = vld [vmem:[%s2336_s28 + $0x150] sm:$0xf] }
  0x61   : > { %395 = vst [vmem:[%s2341_s10 + $0xa4] sm:$0xf] %v394_v9  ;;  %v398_v11 = vld [vmem:[%s2336_s28 + $0x158] sm:$0xf]  ;;  %v400_v12 = vld [vmem:[%s2336_s28 + $0x160] sm:$0xf] }
  0x62   : > { %397 = vst [vmem:[%s2341_s10 + $0xa8] sm:$0xf] %v396_v10  ;;  %399 = vst [vmem:[%s2341_s10 + $0xac] sm:$0xf] %v398_v11  ;;  %v402_v13 = vld [vmem:[%s2336_s28 + $0x168] sm:$0xf] }
  0x63   : > { %401 = vst [vmem:[%s2341_s10 + $0xb0] sm:$0xf] %v400_v12  ;;  %v404_v14 = vld [vmem:[%s2336_s28 + $0x170] sm:$0xf]  ;;  %v406_v15 = vld [vmem:[%s2336_s28 + $0x178] sm:$0xf] }
  0x64   : > { %403 = vst [vmem:[%s2341_s10 + $0xb4] sm:$0xf] %v402_v13  ;;  %405 = vst [vmem:[%s2341_s10 + $0xb8] sm:$0xf] %v404_v14 }
  0x65   : > { %407 = vst [vmem:[%s2341_s10 + $0xbc] sm:$0xf] %v406_v15 }
  0x66 PF: > { %p1640_p0 = scmp.ge.s32.totalorder %s2126_s25, 1  ;;  %p537_p1 = scmp.lt.s32.totalorder %s2126_s25, 7 }
  0x68   : > { %p538_p2 = pnand %p1640_p0, %p537_p1 }
  0x69   : > { %s544_s0 = sand.u32 (!%p538_p2), 1, %s2102_s19   ;;  %s551_s11 = sand.u32 (!%p538_p2), 1, %s2094_s17  }
  0x6a   : > { %541 = sbr.rel (%p538_p2) target bundleno = 462 (0x1ce), region = 95  ;;  %s582_s28 = sand.u32 (!%p538_p2), 1, %s2086_s15  }
  0x6b   : > { %s1893_s26 = smul.u32 (!%p538_p2), 192, %s544_s0  ;;  %s1641_s29 = sshll.u32 (!%p538_p2), %s582_s28, 6 }
  0x6c   : > { %s1894_s5 = smul.u32 (!%p538_p2), 192, %s551_s11  ;;  %p588_p3 = scmp.lt.s32.totalorder (!%p538_p2), %s2114_s22, 1 }
  0x6d   : > { %s2453_s24 = scalar_lea.vmem (!%p538_p2), [#allocation3], %s1893_s26  ;;  %s2457_s15 = scalar_lea.vmem (!%p538_p2), [#allocation5], %s1641_s29 }
  0x6e   : > { %s2455_s17 = scalar_lea.vmem (!%p538_p2), [#allocation4], %s1894_s5  ;;  %p1642_p4 = scmp.ne.s32.totalorder (!%p538_p2), %s2110_s21, 0 }
  0x71   : > { %s2443_s30 = scalar_select %p588_p3, %s2114_s22, 1 }
  0x72   : > { %599 = sbr.rel (%p1642_p4) target bundleno = 123 (0x7b), region = 107  ;;  %v2128_v16 = vmov (!%p1642_p4), 0.0  }
  0x73   : > { %s590_s9 = scalar_lea.vmem %s2620_s2, %s2443_s30  ;;  %s593_s27 = scalar_lea.vmem %s2621_s3, %s2443_s30  ;;  %600 = vst [vmem:[#allocation2] sm:$0xff] (!%p1642_p4), %v2128_v16  ;;  %601 = vst [vmem:[#allocation2 + $0x8] sm:$0xff] (!%p1642_p4), %v2128_v16 }
  0x74   : > { %602 = vst [vmem:[#allocation2 + $0x10] sm:$0xff] (!%p1642_p4), %v2128_v16  ;;  %603 = vst [vmem:[#allocation2 + $0x18] sm:$0xff] (!%p1642_p4), %v2128_v16 }
  0x75   : > { %604 = vst [vmem:[#allocation2 + $0x20] sm:$0xff] (!%p1642_p4), %v2128_v16  ;;  %605 = vst [vmem:[#allocation2 + $0x28] sm:$0xff] (!%p1642_p4), %v2128_v16 }
  0x76   : > { %606 = vst [vmem:[#allocation2 + $0x30] sm:$0xff] (!%p1642_p4), %v2128_v16  ;;  %607 = vst [vmem:[#allocation2 + $0x38] sm:$0xff] (!%p1642_p4), %v2128_v16 }
  0x77   : > { %608 = vst [vmem:[#allocation2 + $0x40] sm:$0xff] (!%p1642_p4), %v2128_v16  ;;  %609 = vst [vmem:[#allocation2 + $0x48] sm:$0xff] (!%p1642_p4), %v2128_v16 }
  0x78   : > { %610 = vst [vmem:[#allocation2 + $0x50] sm:$0xff] (!%p1642_p4), %v2128_v16  ;;  %611 = vst [vmem:[#allocation2 + $0x58] sm:$0xff] (!%p1642_p4), %v2128_v16 }
  0x79   : > { %612 = vst [vmem:[#allocation2 + $0x60] sm:$0xff] %v2128_v16  ;;  %613 = vst [vmem:[#allocation2 + $0x68] sm:$0xff] %v2128_v16 }
  0x7a   : > { %614 = vst [vmem:[#allocation2 + $0x70] sm:$0xff] %v2128_v16  ;;  %615 = vst [vmem:[#allocation2 + $0x78] sm:$0xff] %v2128_v16 }
  0x7b PF: > { %v1984_v17 = vld [vmem:[%s2455_s17 + $0x40] sm:$0xff]   ;;  %v1987_v20 = vld [vmem:[%s2455_s17 + $0x48] sm:$0xff]   ;;  %v1990_v23 = vld [vmem:[%s2455_s17 + $0x50] sm:$0xff]   ;;  %p1691_p5 = scmp.ne.s32.totalorder %s2110_s21, 2 }
  0x7c   : > { %v1985_v18 = vld [vmem:[%s2455_s17] sm:$0xff]   ;;  %1779 = vmatprep.subr.bf16.mxu0 %v1984_v17  ;;  %v1988_v21 = vld [vmem:[%s2455_s17 + $0x8] sm:$0xff]   ;;  %v1991_v24 = vld [vmem:[%s2455_s17 + $0x10] sm:$0xff]  }
  0x7d   : > { %v1986_v19 = vld [vmem:[%s2455_s17 + $0x80] sm:$0xff]   ;;  %1780 = vmatpush3.bf16.msra.mxu0 %v1985_v18  ;;  %v1989_v22 = vld [vmem:[%s2455_s17 + $0x88] sm:$0xff]   ;;  %v1992_v25 = vld [vmem:[%s2455_s17 + $0x90] sm:$0xff]  }
  0x7e   : > { %1859 = vmatprep.subr.bf16.mxu1 %v1986_v19  ;;  %1781 = vmatprep.subr.bf16.mxu0 %v1987_v20  ;;  %v1993_v26 = vld [vmem:[%s2455_s17 + $0x58] sm:$0xff]   ;;  %v1996_v29 = vld [vmem:[%s2455_s17 + $0x60] sm:$0xff]   ;;  %v1999_v32 = vld [vmem:[%s2455_s17 + $0x68] sm:$0xff]  }
  0x7f   : > { %1860 = vmatpush3.bf16.msra.mxu1 %v1986_v19  ;;  %v1994_v27 = vld [vmem:[%s2455_s17 + $0x18] sm:$0xff]   ;;  %v1998_v30 = vld [vmem:[%s2455_s17 + $0xa0] sm:$0xff]   ;;  %v2001_v33 = vld [vmem:[%s2455_s17 + $0xa8] sm:$0xff]  }
  0x80   : > { %1861 = vmatprep.subr.bf16.mxu1 %v1989_v22  ;;  %v1995_v28 = vld [vmem:[%s2455_s17 + $0x98] sm:$0xff]   ;;  %v1997_v31 = vld [vmem:[%s2455_s17 + $0x20] sm:$0xff]   ;;  %v2000_v34 = vld [vmem:[%s2455_s17 + $0x28] sm:$0xff]  }
  0x81   : > { %1782 = vmatpush3.bf16.msra.mxu0 %v1988_v21  ;;  %v2002_v35 = vld [vmem:[%s2455_s17 + $0x70] sm:$0xff]   ;;  %v2005_v38 = vld [vmem:[%s2455_s17 + $0x78] sm:$0xff]   ;;  %v2008_v43 = vld [vmem:[%s2453_s24] ss:$12 sps:$4 sm:$0xff]  }
  0x82   : > { %1783 = vmatprep.subr.bf16.mxu0 %v1990_v23  ;;  %v2003_v36 = vld [vmem:[%s2455_s17 + $0x30] sm:$0xff]   ;;  %v2007_v39 = vld [vmem:[%s2455_s17 + $0xb8] sm:$0xff]   ;;  %v2012_v45 = vld [vmem:[%s2453_s24 + $0x20] ss:$12 sps:$4 sm:$0xff]  }
  0x83   : > { %1862 = vmatpush3.bf16.msra.mxu1 %v1989_v22  ;;  %v2004_v37 = vld [vmem:[%s2455_s17 + $0xb0] sm:$0xff]   ;;  %v2006_v42 = vld [vmem:[%s2455_s17 + $0x38] sm:$0xff]   ;;  %v2028_v53 = vld [vmem:[%s2453_s24 + $0x80] ss:$12 sps:$4 sm:$0xff]  }
  0x84   : > { %1863 = vmatprep.subr.bf16.mxu1 %v1992_v25  ;;  %v2010_v40 = vld [vmem:[%s2453_s24 + $0x4] ss:$12 sps:$4 sm:$0xff]   ;;  %v2011_v41 = vld [vmem:[%s2453_s24 + $0x8] ss:$12 sps:$4 sm:$0xff]   ;;  %v2021_v52 = vld [vmem:[%s2453_s24 + $0x4c] ss:$12 sps:$4 sm:$0xff]  }
  0x85   : > { %1784 = vmatpush3.bf16.msra.mxu0 %v1991_v24  ;;  %1016 = vmatprep.mubr.bf16.mxu0 %v2010_v40  ;;  %v2013_v44 = vld [vmem:[%s2453_s24 + $0x1c] ss:$12 sps:$4 sm:$0xff]   ;;  %v2019_v46 = vld [vmem:[%s2453_s24 + $0x38] ss:$12 sps:$4 sm:$0xff]   ;;  %v2016_v48 = vld [vmem:[%s2453_s24 + $0x34] ss:$12 sps:$4 sm:$0xff]  }
  0x86   : > { %1785 = vmatprep.subr.bf16.mxu0 %v1993_v26  ;;  %1875 = vmatprep.mubr.bf16.mxu1 %v2011_v41  ;;  %v2015_v47 = vld [vmem:[%s2453_s24 + $0x18] ss:$12 sps:$4 sm:$0xff]   ;;  %v2020_v49 = vld [vmem:[%s2453_s24 + $0x50] ss:$12 sps:$4 sm:$0xff]   ;;  %v2027_v50 = vld [vmem:[%s2453_s24 + $0x68] ss:$12 sps:$4 sm:$0xff]  }
  0x87   : > { %1864 = vmatpush3.bf16.msra.mxu1 %v1992_v25  ;;  %v2018_v51 = vld [vmem:[%s2453_s24 + $0x30] ss:$12 sps:$4 sm:$0xff]   ;;  %v2035_v54 = vld [vmem:[%s2453_s24 + $0x98] ss:$12 sps:$4 sm:$0xff]   ;;  %v2023_v55 = vld [vmem:[%s2453_s24 + $0x48] ss:$12 sps:$4 sm:$0xff]  }
  0x88   : > { %1865 = vmatprep.subr.bf16.mxu1 %v1995_v28  ;;  %v2024_v56 = vld [vmem:[%s2453_s24 + $0x64] ss:$12 sps:$4 sm:$0xff]   ;;  %v2026_v58 = vld [vmem:[%s2453_s24 + $0x60] ss:$12 sps:$4 sm:$0xff]   ;;  %v2029_v59 = vld [vmem:[%s2453_s24 + $0x7c] ss:$12 sps:$4 sm:$0xff]  }
  0x89   : > { %1786 = vmatpush3.bf16.msra.mxu0 %v1994_v27  ;;  %v2036_v57 = vld [vmem:[%s2453_s24 + $0xb0] ss:$12 sps:$4 sm:$0xff]   ;;  %v2031_v60 = vld [vmem:[%s2453_s24 + $0x78] ss:$12 sps:$4 sm:$0xff]   ;;  %v2032_v61 = vld [vmem:[%s2453_s24 + $0x94] ss:$12 sps:$4 sm:$0xff]  }
  0x8a   : > { %1787 = vmatprep.subr.bf16.mxu0 %v1996_v29  ;;  %v2034_v62 = vld [vmem:[%s2453_s24 + $0x90] ss:$12 sps:$4 sm:$0xff]   ;;  %v2037_v63 = vld [vmem:[%s2453_s24 + $0xac] ss:$12 sps:$4 sm:$0xff]   ;;  %v2039_v0 = vld [vmem:[%s2453_s24 + $0xa8] ss:$12 sps:$4 sm:$0xff]  }
  0x8b   : > { %1866 = vmatpush3.bf16.msra.mxu1 %v1995_v28  ;;  %v616_v7 = vld [vmem:[#allocation2] sm:$0xff]  ;;  %v617_v12 = vld [vmem:[#allocation2 + $0x8] sm:$0xff]  ;;  %v618_v22 = vld [vmem:[#allocation2 + $0x10] sm:$0xff] }
  0x8c   : > { %1867 = vmatprep.subr.bf16.mxu1 %v1998_v30  ;;  %v619_v28 = vld [vmem:[#allocation2 + $0x18] sm:$0xff] }
  0x8d   : > { %1788 = vmatpush3.bf16.msra.mxu0 %v1997_v31 }
  0x8e   : > { %1789 = vmatprep.subr.bf16.mxu0 %v1999_v32 }
  0x8f   : > { %1868 = vmatpush3.bf16.msra.mxu1 %v1998_v30 }
  0x90   : > { %1869 = vmatprep.subr.bf16.mxu1 %v2001_v33 }
  0x91   : > { %1790 = vmatpush3.bf16.msra.mxu0 %v2000_v34 }
  0x92   : > { %1791 = vmatprep.subr.bf16.mxu0 %v2002_v35 }
  0x93   : > { %1870 = vmatpush3.bf16.msra.mxu1 %v2001_v33 }
  0x94   : > { %1871 = vmatprep.subr.bf16.mxu1 %v2004_v37 }
  0x95   : > { %1792 = vmatpush3.bf16.msra.mxu0 %v2003_v36 }
  0x96   : > { %1793 = vmatprep.subr.bf16.mxu0 %v2005_v38 }
  0x97   : > { %1872 = vmatpush3.bf16.msra.mxu1 %v2004_v37 }
  0x98   : > { %1873 = vmatprep.subr.bf16.mxu1 %v2007_v39 }
  0x99   : > { %1794 = vmatpush3.bf16.msra.mxu0 %v2006_v42 }
  0x9b   : > { %1874 = vmatpush3.bf16.msra.mxu1 %v2007_v39  ;;  %v620_v39 = vld [vmem:[#allocation2 + $0x20] sm:$0xff] }
  0x9c   : > { %1017 = vmatmul.mubr.bf16.vlgmr.msra.gmra.mrb[0].mxu0 %v2008_v43 }
  0x9d   : > { %1024 = vmatprep.mubr.bf16.mxu0 %v2013_v44  ;;  %v621_v44 = vld [vmem:[#allocation2 + $0x28] sm:$0xff] }
  0x9e   : > { %1876 = vmatmul.mubr.bf16.vlgmr.msra.gmra.mrb[0].mxu1 %v2012_v45 }
  0x9f   : > { %1879 = vmatprep.mubr.bf16.mxu1 %v2019_v46 }
  0xa4   : > { %1025 = vmatmul.mubr.bf16.gmra.mrb[4].mxu0 %v2015_v47 }
  0xa5   : > { %1032 = vmatprep.mubr.bf16.mxu0 %v2016_v48 }
  0xa6   : > { %1880 = vmatmul.mubr.bf16.gmra.mrb[4].mxu1 %v2020_v49 }
  0xa7   : > { %1883 = vmatprep.mubr.bf16.mxu1 %v2027_v50 }
  0xac   : > { %1033 = vmatmul.mubr.bf16.gmra.mrb[8].mxu0 %v2018_v51 }
  0xad   : > { %1040 = vmatprep.mubr.bf16.mxu0 %v2021_v52 }
  0xae   : > { %1884 = vmatmul.mubr.bf16.gmra.mrb[8].mxu1 %v2028_v53 }
  0xaf   : > { %1887 = vmatprep.mubr.bf16.mxu1 %v2035_v54  ;;  %v622_v54 = vld [vmem:[#allocation2 + $0x30] sm:$0xff] }
  0xb4   : > { %1041 = vmatmul.mubr.bf16.gmra.mrb[12].mxu0 %v2023_v55 }
  0xb5   : > { %1048 = vmatprep.mubr.bf16.mxu0 %v2024_v56 }
  0xb6   : > { %1888 = vmatmul.mubr.bf16.gmra.mrb[12].mxu1 %v2036_v57 }
  0xbc   : > { %1049 = vmatmul.mubr.bf16.gmra.mrb[16].mxu0 %v2026_v58 }
  0xbd   : > { %1056 = vmatprep.mubr.bf16.mxu0 %v2029_v59 }
  0xc4   : > { %1057 = vmatmul.mubr.bf16.gmra.mrb[20].mxu0 %v2031_v60  ;;  %v623_v60 = vld [vmem:[#allocation2 + $0x38] sm:$0xff] }
  0xc5   : > { %1064 = vmatprep.mubr.bf16.mxu0 %v2032_v61 }
  0xcc   : > { %1065 = vmatmul.mubr.bf16.gmra.mrb[24].mxu0 %v2034_v62 }
  0xcd   : > { %1072 = vmatprep.mubr.bf16.mxu0 %v2037_v63 }
  0xd4   : > { %1073 = vmatmul.mubr.bf16.gmra.mrb[28].mxu0 %v2039_v0 }
 0x16f   : > { %v1795_v1 = vpop.f32.mrb[0].mxu0 }
 0x170   : > { %v1796_v2 = vpop.f32.mrb[1].mxu0 }
 0x171   : > { %v1797_v3 = vadd.f32 %v1796_v2, %v1795_v1  ;;  %v1798_v4 = vpop.f32.mrb[2].mxu0  ;;  %v1877_v5 = vpop.f32.mrb[0].mxu1 }
 0x172   : > { %v1799_v6 = vpop.f32.mrb[3].mxu0  ;;  %v1115_v8 = vpop.f32.mrb[1].mxu1 }
 0x173   : > { %v1800_v9 = vadd.f32 %v1799_v6, %v1798_v4  ;;  %v1116_v10 = vadd.f32 %v1797_v3, %v1115_v8  ;;  %v1878_v11 = vpop.f32.mrb[2].mxu1  ;;  %v624_v6 = vld [vmem:[#allocation2 + $0x40] sm:$0xff] }
 0x174   : > { %v1118_v13 = vpop.f32.mrb[3].mxu1 }
 0x175   : > { %v1178_v14 = vadd.f32 %v1116_v10, %v616_v7  ;;  %v1119_v15 = vadd.f32 %v1800_v9, %v1118_v13  ;;  %v625_v9 = vld [vmem:[#allocation2 + $0x48] sm:$0xff] }
 0x177   : > { %1194 = vst [vmem:[#allocation2] sm:$0xff] %v1178_v14  ;;  %v1179_v16 = vadd.f32 %v1119_v15, %v617_v12  ;;  %v1801_v17 = vpop.f32.mrb[4].mxu0 }
 0x178   : > { %v1802_v18 = vpop.f32.mrb[5].mxu0 }
 0x179   : > { %1195 = vst [vmem:[#allocation2 + $0x8] sm:$0xff] %v1179_v16  ;;  %v1803_v19 = vadd.f32 %v1802_v18, %v1801_v17  ;;  %v1804_v20 = vpop.f32.mrb[6].mxu0  ;;  %v1881_v21 = vpop.f32.mrb[4].mxu1  ;;  %v626_v17 = vld [vmem:[#allocation2 + $0x50] sm:$0xff] }
 0x17a   : > { %v1805_v23 = vpop.f32.mrb[7].mxu0  ;;  %v1131_v24 = vpop.f32.mrb[5].mxu1 }
 0x17b   : > { %v1124_v25 = vadd.f32 %v1877_v5, %v1803_v19  ;;  %v1806_v26 = vadd.f32 %v1805_v23, %v1804_v20  ;;  %v1882_v27 = vpop.f32.mrb[6].mxu1 }
 0x17c   : > { %v1134_v29 = vpop.f32.mrb[7].mxu1 }
 0x17d   : > { %v1180_v30 = vadd.f32 %v1124_v25, %v618_v22  ;;  %v1127_v31 = vadd.f32 %v1878_v11, %v1806_v26 }
 0x17f   : > { %1196 = vst [vmem:[#allocation2 + $0x10] sm:$0xff] %v1180_v30  ;;  %v1181_v32 = vadd.f32 %v1127_v31, %v619_v28  ;;  %v1807_v33 = vpop.f32.mrb[8].mxu0  ;;  %v628_v30 = vld [vmem:[#allocation2 + $0x60] sm:$0xff] }
 0x180   : > { %v1808_v34 = vpop.f32.mrb[9].mxu0 }
 0x181   : > { %1197 = vst [vmem:[#allocation2 + $0x18] sm:$0xff] %v1181_v32  ;;  %v1809_v35 = vadd.f32 %v1808_v34, %v1807_v33  ;;  %v1810_v36 = vpop.f32.mrb[10].mxu0  ;;  %v1885_v37 = vpop.f32.mrb[8].mxu1  ;;  %v629_v33 = vld [vmem:[#allocation2 + $0x68] sm:$0xff] }
 0x182   : > { %v1811_v38 = vpop.f32.mrb[11].mxu0  ;;  %v1147_v40 = vpop.f32.mrb[9].mxu1 }
 0x183   : > { %v1812_v41 = vadd.f32 %v1811_v38, %v1810_v36  ;;  %v1132_v42 = vadd.f32 %v1809_v35, %v1131_v24  ;;  %v1886_v43 = vpop.f32.mrb[10].mxu1 }
 0x184   : > { %v1150_v45 = vpop.f32.mrb[11].mxu1 }
 0x185   : > { %v1182_v46 = vadd.f32 %v1132_v42, %v620_v39  ;;  %v1135_v47 = vadd.f32 %v1812_v41, %v1134_v29  ;;  %v630_v41 = vld [vmem:[#allocation2 + $0x70] sm:$0xff] }
 0x187   : > { %1198 = vst [vmem:[#allocation2 + $0x20] sm:$0xff] %v1182_v46  ;;  %v1183_v48 = vadd.f32 %v1135_v47, %v621_v44  ;;  %v1813_v49 = vpop.f32.mrb[12].mxu0 }
 0x188   : > { %v1814_v50 = vpop.f32.mrb[13].mxu0 }
 0x189   : > { %1199 = vst [vmem:[#allocation2 + $0x28] sm:$0xff] %v1183_v48  ;;  %v1815_v51 = vadd.f32 %v1814_v50, %v1813_v49  ;;  %v1816_v52 = vpop.f32.mrb[14].mxu0  ;;  %v1889_v53 = vpop.f32.mrb[12].mxu1  ;;  %v1214_v49 = vld [vmem:[#allocation2] sm:$0xff] (!%p1691_p5)  ;;  %v1215_v50 = vld [vmem:[#allocation2 + $0x8] sm:$0xff] (!%p1691_p5) }
 0x18a   : > { %v1817_v55 = vpop.f32.mrb[15].mxu0  ;;  %v1163_v56 = vpop.f32.mrb[13].mxu1 }
 0x18b   : > { %v1140_v57 = vadd.f32 %v1881_v21, %v1815_v51  ;;  %v1818_v58 = vadd.f32 %v1817_v55, %v1816_v52  ;;  %v1890_v59 = vpop.f32.mrb[14].mxu1  ;;  %v627_v21 = vld [vmem:[#allocation2 + $0x58] sm:$0xff]  ;;  %v2514_v51 = vld [vmem:[%s590_s9] ss:$0 sm:$0xff] (!%p1691_p5)  ;;  %v1216_v55 = vld [vmem:[#allocation2 + $0x10] sm:$0xff] (!%p1691_p5) }
 0x18c   : > { %v1166_v61 = vpop.f32.mrb[15].mxu1  ;;  %v1237_v52 = vmul.f32 (!%p1691_p5), %v2514_v51, %v1214_v49 }
 0x18d   : > { %v1184_v62 = vadd.f32 %v1140_v57, %v622_v54  ;;  %v1143_v63 = vadd.f32 %v1882_v27, %v1818_v58  ;;  %v2523_v54 = vld [vmem:[%s593_s27] ss:$0 sm:$0xff] (!%p1691_p5)  ;;  %v1239_v57 = vmul.f32 (!%p1691_p5), %v2514_v51, %v1216_v55 }
 0x18f   : > { %1200 = vst [vmem:[#allocation2 + $0x30] sm:$0xff] %v1184_v62  ;;  %v1185_v0 = vadd.f32 %v1143_v63, %v623_v60  ;;  %v1819_v1 = vpop.f32.mrb[16].mxu0  ;;  %v1260_v62 = vadd.f32 (!%p1691_p5), %v2523_v54, %v1237_v52 }
 0x190   : > { %v1820_v2 = vpop.f32.mrb[17].mxu0  ;;  %v1219_v60 = vld [vmem:[#allocation2 + $0x28] sm:$0xff] (!%p1691_p5) }
 0x191   : > { %1201 = vst [vmem:[#allocation2 + $0x38] sm:$0xff] %v1185_v0  ;;  %v1821_v3 = vadd.f32 %v1820_v2, %v1819_v1  ;;  %v1822_v4 = vpop.f32.mrb[18].mxu0  ;;  %v1242_v1 = vmul.f32 (!%p1691_p5), %v2514_v51, %v1219_v60 }
 0x192   : > { %v1823_v5 = vpop.f32.mrb[19].mxu0 }
 0x193   : > { %v1824_v7 = vadd.f32 %v1823_v5, %v1822_v4  ;;  %v1148_v8 = vadd.f32 %v1821_v3, %v1147_v40  ;;  %v1262_v3 = vadd.f32 (!%p1691_p5), %v2523_v54, %v1239_v57 }
 0x195   : > { %v1186_v10 = vadd.f32 %v1148_v8, %v624_v6  ;;  %v1151_v11 = vadd.f32 %v1824_v7, %v1150_v45  ;;  %v631_v45 = vld [vmem:[#allocation2 + $0x78] sm:$0xff]  ;;  %v1276_v8 = vmax.f32 (!%p1691_p5), %v1260_v62, 0.0 }
 0x197   : > { %1202 = vst [vmem:[#allocation2 + $0x40] sm:$0xff] %v1186_v10  ;;  %v1187_v12 = vadd.f32 %v1151_v11, %v625_v9  ;;  %v1825_v13 = vpop.f32.mrb[20].mxu0  ;;  %v1265_v11 = vadd.f32 (!%p1691_p5), %v2523_v54, %v1242_v1 }
 0x198   : > { %v1826_v14 = vpop.f32.mrb[21].mxu0  ;;  %v1221_v2 = vld [vmem:[#allocation2 + $0x38] sm:$0xff] (!%p1691_p5) }
 0x199   : > { %1203 = vst [vmem:[#allocation2 + $0x48] sm:$0xff] %v1187_v12  ;;  %v1827_v15 = vadd.f32 %v1826_v14, %v1825_v13  ;;  %v1828_v16 = vpop.f32.mrb[22].mxu0  ;;  %v1244_v6 = vmul.f32 (!%p1691_p5), %v2514_v51, %v1221_v2  ;;  %v1278_v13 = vmax.f32 (!%p1691_p5), %v1262_v3, 0.0 }
 0x19a   : > { %v1829_v18 = vpop.f32.mrb[23].mxu0 }
 0x19b   : > { %v1156_v19 = vadd.f32 %v1885_v37, %v1827_v15  ;;  %v1830_v20 = vadd.f32 %v1829_v18, %v1828_v16  ;;  %v1267_v16 = vadd.f32 (!%p1691_p5), %v2523_v54, %v1244_v6 }
 0x19d   : > { %v1188_v22 = vadd.f32 %v1156_v19, %v626_v17  ;;  %v1159_v23 = vadd.f32 %v1886_v43, %v1830_v20 }
 0x19e   : > { %v1222_v7 = vld [vmem:[#allocation2 + $0x40] sm:$0xff] (!%p1691_p5) }
 0x19f   : > { %1204 = vst [vmem:[#allocation2 + $0x50] sm:$0xff] %v1188_v22  ;;  %v1189_v24 = vadd.f32 %v1159_v23, %v627_v21  ;;  %v1831_v25 = vpop.f32.mrb[24].mxu0  ;;  %v1281_v21 = vmax.f32 (!%p1691_p5), %v1265_v11, 0.0  ;;  %v1245_v22 = vmul.f32 (!%p1691_p5), %v2514_v51, %v1222_v7 }
 0x1a0   : > { %v1832_v26 = vpop.f32.mrb[25].mxu0  ;;  %v1223_v12 = vld [vmem:[#allocation2 + $0x48] sm:$0xff] (!%p1691_p5) }
 0x1a1   : > { %1205 = vst [vmem:[#allocation2 + $0x58] sm:$0xff] %v1189_v24  ;;  %v1833_v27 = vadd.f32 %v1832_v26, %v1831_v25  ;;  %v1834_v28 = vpop.f32.mrb[26].mxu0 }
 0x1a2   : > { %v1835_v29 = vpop.f32.mrb[27].mxu0 }
 0x1a3   : > { %v1836_v31 = vadd.f32 %v1835_v29, %v1834_v28  ;;  %v1164_v32 = vadd.f32 %v1833_v27, %v1163_v56  ;;  %v1217_v56 = vld [vmem:[#allocation2 + $0x18] sm:$0xff] (!%p1691_p5)  ;;  %v1283_v27 = vmax.f32 (!%p1691_p5), %v1267_v16, 0.0  ;;  %v1246_v28 = vmul.f32 (!%p1691_p5), %v2514_v51, %v1223_v12 }
 0x1a4   : > { %v1240_v58 = vmul.f32 (!%p1691_p5), %v2514_v51, %v1217_v56 }
 0x1a5   : > { %v1190_v34 = vadd.f32 %v1164_v32, %v628_v30  ;;  %v1167_v35 = vadd.f32 %v1836_v31, %v1166_v61  ;;  %v1220_v61 = vld [vmem:[#allocation2 + $0x30] sm:$0xff] (!%p1691_p5)  ;;  %v1268_v31 = vadd.f32 (!%p1691_p5), %v2523_v54, %v1245_v22 }
 0x1a6   : > { %v1263_v4 = vadd.f32 (!%p1691_p5), %v2523_v54, %v1240_v58  ;;  %v1243_v5 = vmul.f32 (!%p1691_p5), %v2514_v51, %v1220_v61  ;;  %v1224_v17 = vld [vmem:[#allocation2 + $0x50] sm:$0xff] (!%p1691_p5) }
 0x1a7   : > { %1206 = vst [vmem:[#allocation2 + $0x60] sm:$0xff] %v1190_v34  ;;  %v1191_v36 = vadd.f32 %v1167_v35, %v629_v33  ;;  %v1837_v37 = vpop.f32.mrb[28].mxu0  ;;  %v1247_v32 = vmul.f32 (!%p1691_p5), %v2514_v51, %v1224_v17 }
 0x1a8   : > { %v1838_v38 = vpop.f32.mrb[29].mxu0  ;;  %v1279_v14 = vmax.f32 (!%p1691_p5), %v1263_v4, 0.0  ;;  %v1266_v15 = vadd.f32 (!%p1691_p5), %v2523_v54, %v1243_v5  ;;  %v1225_v18 = vld [vmem:[#allocation2 + $0x58] sm:$0xff] (!%p1691_p5) }
 0x1a9   : > { %1207 = vst [vmem:[#allocation2 + $0x68] sm:$0xff] %v1191_v36  ;;  %v1839_v39 = vadd.f32 %v1838_v38, %v1837_v37  ;;  %v1840_v40 = vpop.f32.mrb[30].mxu0  ;;  %v1248_v33 = vmul.f32 (!%p1691_p5), %v2514_v51, %v1225_v18  ;;  %v1269_v36 = vadd.f32 (!%p1691_p5), %v2523_v54, %v1246_v28 }
 0x1aa   : > { %v1841_v42 = vpop.f32.mrb[31].mxu0  ;;  %v1740_v25 = vpack.c.bf16 (!%p1691_p5), %v1279_v14, %v1278_v13  ;;  %v1282_v26 = vmax.f32 (!%p1691_p5), %v1266_v15, 0.0 }
 0x1ab   : > { %v1172_v43 = vadd.f32 %v1889_v53, %v1839_v39  ;;  %v1842_v44 = vadd.f32 %v1841_v42, %v1840_v40  ;;  %1213 = sbr.rel (%p1691_p5) target bundleno = 450 (0x1c2), region = 111  ;;  %v1238_v53 = vmul.f32 (!%p1691_p5), %v2514_v51, %v1215_v50  ;;  %v1284_v39 = vmax.f32 (!%p1691_p5), %v1268_v31, 0.0 }
 0x1ac   : > { %1772 = vst [vmem:[%s2457_s15 + $0x8] sm:$0xff] (!%p1691_p5), %v1740_v25   ;;  %v1750_v35 = vpack.c.bf16 (!%p1691_p5), %v1283_v27, %v1282_v26  ;;  %v1270_v40 = vadd.f32 (!%p1691_p5), %v2523_v54, %v1247_v32 }
 0x1ad   : > { %v1192_v46 = vadd.f32 %v1172_v43, %v630_v41  ;;  %v1175_v47 = vadd.f32 %v1890_v59, %v1842_v44  ;;  %v1218_v59 = vld [vmem:[#allocation2 + $0x20] sm:$0xff] (!%p1691_p5)  ;;  %v1261_v63 = vadd.f32 (!%p1691_p5), %v2523_v54, %v1238_v53  ;;  %v1271_v41 = vadd.f32 (!%p1691_p5), %v2523_v54, %v1248_v33 }
 0x1ae   : > { %v1241_v0 = vmul.f32 (!%p1691_p5), %v2514_v51, %v1218_v59  ;;  %v1226_v23 = vld [vmem:[#allocation2 + $0x60] sm:$0xff] (!%p1691_p5)  ;;  %1774 = vst [vmem:[%s2457_s15 + $0x18] sm:$0xff] (!%p1691_p5), %v1750_v35   ;;  %v1285_v43 = vmax.f32 (!%p1691_p5), %v1269_v36, 0.0 }
 0x1af   : > { %1208 = vst [vmem:[#allocation2 + $0x70] sm:$0xff] %v1192_v46  ;;  %v1193_v48 = vadd.f32 %v1175_v47, %v631_v45  ;;  %v1277_v9 = vmax.f32 (!%p1691_p5), %v1261_v63, 0.0  ;;  %v1249_v37 = vmul.f32 (!%p1691_p5), %v2514_v51, %v1226_v23  ;;  %v1286_v47 = vmax.f32 (!%p1691_p5), %v1270_v40, 0.0 }
 0x1b0   : > { %v1264_v10 = vadd.f32 (!%p1691_p5), %v2523_v54, %v1241_v0  ;;  %v1227_v24 = vld [vmem:[#allocation2 + $0x68] sm:$0xff] (!%p1691_p5)  ;;  %v1755_v50 = vpack.c.bf16 (!%p1691_p5), %v1285_v43, %v1284_v39 }
 0x1b1   : > { %1209 = vst [vmem:[#allocation2 + $0x78] sm:$0xff] %v1193_v48  ;;  %v1735_v19 = vpack.c.bf16 (!%p1691_p5), %v1277_v9, %v1276_v8  ;;  %v1250_v38 = vmul.f32 (!%p1691_p5), %v2514_v51, %v1227_v24  ;;  %v1272_v44 = vadd.f32 (!%p1691_p5), %v2523_v54, %v1249_v37  ;;  %v1287_v48 = vmax.f32 (!%p1691_p5), %v1271_v41, 0.0 }
 0x1b2   : > { %v1280_v20 = vmax.f32 %v1264_v10, 0.0  ;;  %1775 = vst [vmem:[%s2457_s15 + $0x20] sm:$0xff] %v1755_v50  }
 0x1b3   : > { %1736 = vst [vmem:[%s2457_s15] sm:$0xff] %v1735_v19   ;;  %v1273_v45 = vadd.f32 %v2523_v54, %v1250_v38  ;;  %v1288_v52 = vmax.f32 %v1272_v44, 0.0  ;;  %v1760_v56 = vpack.c.bf16 %v1287_v48, %v1286_v47 }
 0x1b4   : > { %v1745_v30 = vpack.c.bf16 %v1281_v21, %v1280_v20 }
 0x1b5   : > { %v1289_v53 = vmax.f32 %v1273_v45, 0.0  ;;  %1776 = vst [vmem:[%s2457_s15 + $0x28] sm:$0xff] %v1760_v56  }
 0x1b6   : > { %v1228_v29 = vld [vmem:[#allocation2 + $0x70] sm:$0xff]  ;;  %1773 = vst [vmem:[%s2457_s15 + $0x10] sm:$0xff] %v1745_v30  }
 0x1b7   : > { %v1251_v42 = vmul.f32 %v2514_v51, %v1228_v29  ;;  %v1765_v58 = vpack.c.bf16 %v1289_v53, %v1288_v52 }
 0x1b8   : > { %v1229_v34 = vld [vmem:[#allocation2 + $0x78] sm:$0xff] }
 0x1b9   : > { %v1252_v46 = vmul.f32 %v2514_v51, %v1229_v34  ;;  %v1274_v49 = vadd.f32 %v2523_v54, %v1251_v42  ;;  %1777 = vst [vmem:[%s2457_s15 + $0x30] sm:$0xff] %v1765_v58  }
 0x1bb   : > { %v1275_v55 = vadd.f32 %v2523_v54, %v1252_v46  ;;  %v1290_v57 = vmax.f32 %v1274_v49, 0.0 }
 0x1bd   : > { %v1291_v59 = vmax.f32 %v1275_v55, 0.0 }
 0x1bf   : > { %v1770_v60 = vpack.c.bf16 %v1291_v59, %v1290_v57 }
 0x1c1   : > { %1778 = vst [vmem:[%s2457_s15 + $0x38] sm:$0xff] %v1770_v60  }
 0x1c2 PF: > { %1378 = sbr.rel (!%p2248_p12) target bundleno = 462 (0x1ce), region = 115  ;;  %s1711_s21 = sshll.u32 (%p2248_p12), %s2114_s22, 2  ;;  %v1399_v51 = vld [vmem:[%s2457_s15] sm:$0xf] (%p2248_p12)  ;;  %v1401_v54 = vld [vmem:[%s2457_s15 + $0x4] sm:$0xf] (%p2248_p12) }
 0x1c3   : > { %s1383_s26 = scalar_lea.vmem (%p2248_p12), %s2622_s4, %s1711_s21  ;;  %v1403_v61 = vld [vmem:[%s2457_s15 + $0x8] sm:$0xf] (%p2248_p12)  ;;  %v1405_v62 = vld [vmem:[%s2457_s15 + $0xc] sm:$0xf] (%p2248_p12)  ;;  %v1407_v63 = vld [vmem:[%s2457_s15 + $0x10] sm:$0xf] (%p2248_p12) }
 0x1c4   : > { %1400 = vst [vmem:[%s1383_s26] sm:$0xf] (%p2248_p12), %v1399_v51  ;;  %1402 = vst [vmem:[%s1383_s26 + $0x8] sm:$0xf] (%p2248_p12), %v1401_v54  ;;  %v1409_v0 = vld [vmem:[%s2457_s15 + $0x14] sm:$0xf] (%p2248_p12) }
 0x1c5   : > { %1404 = vst [vmem:[%s1383_s26 + $0x10] sm:$0xf] (%p2248_p12), %v1403_v61  ;;  %1406 = vst [vmem:[%s1383_s26 + $0x18] sm:$0xf] (%p2248_p12), %v1405_v62  ;;  %v1411_v1 = vld [vmem:[%s2457_s15 + $0x18] sm:$0xf] (%p2248_p12) }
 0x1c6   : > { %1408 = vst [vmem:[%s1383_s26 + $0x20] sm:$0xf] (%p2248_p12), %v1407_v63  ;;  %v1413_v2 = vld [vmem:[%s2457_s15 + $0x1c] sm:$0xf] (%p2248_p12)  ;;  %1410 = vst [vmem:[%s1383_s26 + $0x28] sm:$0xf] (%p2248_p12), %v1409_v0 }
 0x1c7   : > { %1412 = vst [vmem:[%s1383_s26 + $0x30] sm:$0xf] (%p2248_p12), %v1411_v1  ;;  %1414 = vst [vmem:[%s1383_s26 + $0x38] sm:$0xf] (%p2248_p12), %v1413_v2  ;;  %v1419_v5 = vld [vmem:[%s2457_s15 + $0x28] sm:$0xf] (%p2248_p12) }
 0x1c8   : > { %1420 = vst [vmem:[%s1383_s26 + $0x50] sm:$0xf] (%p2248_p12), %v1419_v5  ;;  %v1421_v6 = vld [vmem:[%s2457_s15 + $0x2c] sm:$0xf] (%p2248_p12)  ;;  %v1423_v7 = vld [vmem:[%s2457_s15 + $0x30] sm:$0xf] (%p2248_p12) }
 0x1c9   : > { %v1415_v3 = vld [vmem:[%s2457_s15 + $0x20] sm:$0xf]  ;;  %v1417_v4 = vld [vmem:[%s2457_s15 + $0x24] sm:$0xf]  ;;  %v1425_v8 = vld [vmem:[%s2457_s15 + $0x34] sm:$0xf] }
 0x1ca   : > { %1416 = vst [vmem:[%s1383_s26 + $0x40] sm:$0xf] %v1415_v3  ;;  %1418 = vst [vmem:[%s1383_s26 + $0x48] sm:$0xf] %v1417_v4  ;;  %v1427_v9 = vld [vmem:[%s2457_s15 + $0x38] sm:$0xf] }
 0x1cb   : > { %1422 = vst [vmem:[%s1383_s26 + $0x58] sm:$0xf] %v1421_v6  ;;  %1424 = vst [vmem:[%s1383_s26 + $0x60] sm:$0xf] %v1423_v7  ;;  %v1429_v10 = vld [vmem:[%s2457_s15 + $0x3c] sm:$0xf] }
 0x1cc   : > { %1426 = vst [vmem:[%s1383_s26 + $0x68] sm:$0xf] %v1425_v8  ;;  %1428 = vst [vmem:[%s1383_s26 + $0x70] sm:$0xf] %v1427_v9 }
 0x1cd   : > { %1430 = vst [vmem:[%s1383_s26 + $0x78] sm:$0xf] %v1429_v10 }
 0x1ce PF: > { %s14_s25 = sadd.s32 1, %s2126_s25   ;;  %s2636_s22 = sld [smem:[#allocation6_spill]] }
 0x1cf   : > { %p11_p6 = scmp.ge.s32.totalorder %s14_s25, 8   ;;  %s2637_s14 = sld [smem:[#allocation7_spill]] }
 0x1d0   : > { %s2638_s24 = sld [smem:[#allocation8_spill]]  ;;  %s2639_s15 = smov %s2090_s16 }
 0x1d1   : > { %s2640_s16 = smov %s2246_s13  ;;  %s2641_s17 = smov %s2098_s18 }
 0x1d2   : > { %s2642_s18 = smov %s2243_s12  ;;  %s2643_s19 = smov %s2106_s20 }
 0x1d3   : > { %s2644_s20 = smov %s2229_s7  ;;  %s2645_s21 = smov %s2118_s23 }
 0x1d4   :  { %13 = sbr.rel (!%p11_p6) target bundleno = 9 (0x9), region = 207 }
 0x1d5   : > { %s2646_s23 = smov %s2637_s14 }

// kernel: _lambda_.17
= control target key start
LH: loop header
LB: loop body
LE: loop exit
PB: predicated region body
PF: predicated region fallthrough
CT: control target
= control target key end

     0   :  { %s2618_s0 = inlined_call_operand.vmem [shape: bf16[128,2304], index: 0, kind: input, shape index: {}]   ;;  %s2619_s1 = inlined_call_operand.vmem [shape: bf16[2304,256], index: 1, kind: input, shape index: {}]   ;;  %s2620_s2 = inlined_call_operand.vmem [shape: f32[1,256], index: 2, kind: input, shape index: {}]   ;;  %s2621_s3 = inlined_call_operand.vmem [shape: f32[1,256], index: 3, kind: input, shape index: {}]   ;;  %s2622_s4 = inlined_call_operand.vmem [shape: bf16[128,256], index: 4, kind: output, shape index: {}]  }
   0x1   :  { %2626 = sst [smem:[#allocation9_spill]] %s2618_s0 }
   0x2   :  { %2627 = sst [smem:[#allocation10_spill]] %s2619_s1 }
   0x3   :  { %s2154_s15 = smov 0   ;;  %s2156_s16 = smov 0  }
   0x4   :  { %s2158_s17 = smov 0   ;;  %s2160_s18 = smov 0  }
   0x5   :  { %s2162_s19 = smov 0   ;;  %s2164_s20 = smov 0  }
   0x6   :  { %s2166_s21 = smov 0   ;;  %s2168_s22 = smov 0  }
   0x7   :  { %s2170_s23 = smov 0   ;;  %s2172_s24 = smov 0  }
   0x8   :  { %s2174_s25 = smov 0  }
   0x9 LB: > { %2628 = sst [smem:[#allocation6_spill]] %s2122_s24  ;;  %s1601_s26 = sadd.s32 4294967295, %s2126_s25   ;;  %s2126_s25 = sphi %s2174_s25, %s14_s25   ;;  %s2122_s24 = sphi %s2172_s24, %s2638_s24   ;;  %s2118_s23 = sphi %s2170_s23, %s2646_s23   ;;  %s2114_s22 = sphi %s2168_s22, %s2636_s22   ;;  %s2110_s21 = sphi %s2166_s21, %s2645_s21   ;;  %s2106_s20 = sphi %s2164_s20, %s2644_s20   ;;  %s2102_s19 = sphi %s2162_s19, %s2643_s19   ;;  %s2098_s18 = sphi %s2160_s18, %s2642_s18   ;;  %s2094_s17 = sphi %s2158_s17, %s2641_s17   ;;  %s2090_s16 = sphi %s2156_s16, %s2640_s16   ;;  %s2086_s15 = sphi %s2154_s15, %s2639_s15  }
   0xa   : > { %s26_s27 = sadd.s32 1, %s2118_s23  ;;  %s29_s28 = sadd.s32 1, %s2122_s24 }
   0xb   : > { %p27_p0 = scmp.ge.s32.totalorder %s26_s27, 6  ;;  %s42_s29 = sadd.s32 1, %s2106_s20 }
   0xc   : > { %p49_p1 = scmp.ne.s32.totalorder %s2106_s20, %s2102_s19  ;;  %p50_p2 = scmp.eq.s32.totalorder %s2126_s25, 0 }
   0xd   : > { %s2648_s27 = smov (%p27_p0, %s26_s27), 0  ;;  %s2650_s28 = smov (!%p27_p0, %s29_s28), %s2122_s24 }
   0xe   : > { %2629 = sst [smem:[#allocation7_spill]] %s2648_s27  ;;  %s38_s30 = ssub.s32 %s2118_s23, %s2648_s27 }
   0xf   : > { %p31_p3 = scmp.ge.s32.totalorder %s2650_s28, 2  ;;  %p40_p4 = scmp.eq.s32.totalorder %s38_s30, 0 }
  0x10   : > { %p2221_p5 = por %p50_p2, %p49_p1  ;;  %s70_s6 = sadd.s32 1, %s2098_s18 }
  0x11   : > { %s2652_s28 = smov (%p31_p3, %s2650_s28), 0  ;;  %p77_p6 = scmp.ne.s32.totalorder %s2098_s18, %s2094_s17 }
  0x12   : > { %2631 = sst [smem:[#allocation8_spill]] %s2652_s28  ;;  %s66_s8 = ssub.s32 %s2122_s24, %s2652_s28 }
  0x13   : > { %s2229_s7 = scalar_select %p40_p4, %s2106_s20, %s42_s29  }
  0x14   : > { %s67_s9 = sor.u32 %s66_s8, %s38_s30  ;;  %p148_p7 = scmp.eq.s32.totalorder %s66_s8, 0 }
  0x15   : > { %p68_p8 = scmp.eq.s32.totalorder %s67_s9, 0  ;;  %p2235_p9 = por %p77_p6, %p50_p2 }
  0x16   : > { %s150_s11 = sadd.s32 1, %s2090_s16  ;;  %p160_p10 = scmp.ne.s32.totalorder %s2090_s16, %s2086_s15 }
  0x17   : > { %s2243_s12 = scalar_select %p68_p8, %s2098_s18, %s70_s6  }
  0x18   : > { %s2246_s13 = scalar_select %p148_p7, %s2090_s16, %s150_s11  }
  0x19   : > { %p161_p11 = scmp.eq.s32.totalorder %s1601_s26, 11  ;;  %p1604_p13 = scmp.ge.s32.totalorder %s2126_s25, 12 }
  0x1b   : > { %p2248_p12 = por %p161_p11, %p160_p10  ;;  %183 = sbr.rel (%p1604_p13) target bundleno = 102 (0x66), region = 16 }
  0x22   : > { %186 = sbr.rel (!%p2221_p5) target bundleno = 61 (0x3d), region = 20  ;;  %s188_s29 = sand.u32 (%p2221_p5), 1, %s2106_s20  }
  0x23   : > { %s1714_s30 = smul.u32 (%p2221_p5), 12, %s2118_s23  ;;  %s2634_s0 = sld [smem:[#allocation9_spill]] (%p2221_p5) }
  0x24   : > { %s1891_s8 = smul.u32 (%p2221_p5), 192, %s188_s29 }
  0x26   : > { %s2265_s26 = scalar_lea.vmem (%p2221_p5), [#allocation3], %s1891_s8 }
  0x29   : > { %s2260_s11 = scalar_lea.vmem %s2634_s0, %s1714_s30 }
  0x2a   : > { %v211_v0 = vld [vmem:[%s2260_s11] sm:$0xff]  ;;  %v213_v1 = vld [vmem:[%s2260_s11 + $0x48] sm:$0xff]  ;;  %v215_v2 = vld [vmem:[%s2260_s11 + $0x90] sm:$0xff] }
  0x2b   : > { %212 = vst [vmem:[%s2265_s26] sm:$0xff] %v211_v0  ;;  %214 = vst [vmem:[%s2265_s26 + $0xc] sm:$0xff] %v213_v1  ;;  %v217_v3 = vld [vmem:[%s2260_s11 + $0xd8] sm:$0xff]  ;;  %v219_v4 = vld [vmem:[%s2260_s11 + $0x120] sm:$0xff] }
  0x2c   : > { %216 = vst [vmem:[%s2265_s26 + $0x18] sm:$0xff] %v215_v2  ;;  %v221_v5 = vld [vmem:[%s2260_s11 + $0x168] sm:$0xff]  ;;  %218 = vst [vmem:[%s2265_s26 + $0x24] sm:$0xff] %v217_v3  ;;  %v223_v6 = vld [vmem:[%s2260_s11 + $0x1b0] sm:$0xff] }
  0x2d   : > { %220 = vst [vmem:[%s2265_s26 + $0x30] sm:$0xff] %v219_v4  ;;  %222 = vst [vmem:[%s2265_s26 + $0x3c] sm:$0xff] %v221_v5  ;;  %v225_v7 = vld [vmem:[%s2260_s11 + $0x1f8] sm:$0xff]  ;;  %v227_v8 = vld [vmem:[%s2260_s11 + $0x240] sm:$0xff] }
  0x2e   : > { %224 = vst [vmem:[%s2265_s26 + $0x48] sm:$0xff] %v223_v6  ;;  %226 = vst [vmem:[%s2265_s26 + $0x54] sm:$0xff] %v225_v7  ;;  %v229_v9 = vld [vmem:[%s2260_s11 + $0x288] sm:$0xff]  ;;  %v231_v10 = vld [vmem:[%s2260_s11 + $0x2d0] sm:$0xff] }
  0x2f   : > { %228 = vst [vmem:[%s2265_s26 + $0x60] sm:$0xff] %v227_v8  ;;  %v233_v11 = vld [vmem:[%s2260_s11 + $0x318] sm:$0xff]  ;;  %230 = vst [vmem:[%s2265_s26 + $0x6c] sm:$0xff] %v229_v9  ;;  %v235_v12 = vld [vmem:[%s2260_s11 + $0x360] sm:$0xff] }
  0x30   : > { %232 = vst [vmem:[%s2265_s26 + $0x78] sm:$0xff] %v231_v10  ;;  %234 = vst [vmem:[%s2265_s26 + $0x84] sm:$0xff] %v233_v11  ;;  %v237_v13 = vld [vmem:[%s2260_s11 + $0x3a8] sm:$0xff]  ;;  %v239_v14 = vld [vmem:[%s2260_s11 + $0x3f0] sm:$0xff] }
  0x31   : > { %236 = vst [vmem:[%s2265_s26 + $0x90] sm:$0xff] %v235_v12  ;;  %238 = vst [vmem:[%s2265_s26 + $0x9c] sm:$0xff] %v237_v13  ;;  %v241_v15 = vld [vmem:[%s2260_s11 + $0x438] sm:$0xff]  ;;  %v1606_v16 = vld [vmem:[%s2260_s11 + $0x8] sm:$0xf] }
  0x32   : > { %240 = vst [vmem:[%s2265_s26 + $0xa8] sm:$0xff] %v239_v14  ;;  %v1608_v17 = vld [vmem:[%s2260_s11 + $0x50] sm:$0xf]  ;;  %242 = vst [vmem:[%s2265_s26 + $0xb4] sm:$0xff] %v241_v15  ;;  %v1610_v18 = vld [vmem:[%s2260_s11 + $0x98] sm:$0xf] }
  0x33   : > { %1607 = vst [vmem:[%s2265_s26 + $0x8] sm:$0xf] %v1606_v16  ;;  %1609 = vst [vmem:[%s2265_s26 + $0x14] sm:$0xf] %v1608_v17  ;;  %v1612_v19 = vld [vmem:[%s2260_s11 + $0xe0] sm:$0xf] }
  0x34   : > { %v1614_v20 = vld [vmem:[%s2260_s11 + $0x128] sm:$0xf]  ;;  %1611 = vst [vmem:[%s2265_s26 + $0x20] sm:$0xf] %v1610_v18  ;;  %1613 = vst [vmem:[%s2265_s26 + $0x2c] sm:$0xf] %v1612_v19 }
  0x35   : > { %1615 = vst [vmem:[%s2265_s26 + $0x38] sm:$0xf] %v1614_v20  ;;  %v1616_v21 = vld [vmem:[%s2260_s11 + $0x170] sm:$0xf]  ;;  %v1618_v22 = vld [vmem:[%s2260_s11 + $0x1b8] sm:$0xf] }
  0x36   : > { %v1620_v23 = vld [vmem:[%s2260_s11 + $0x200] sm:$0xf]  ;;  %1617 = vst [vmem:[%s2265_s26 + $0x44] sm:$0xf] %v1616_v21  ;;  %1619 = vst [vmem:[%s2265_s26 + $0x50] sm:$0xf] %v1618_v22 }
  0x37   : > { %1621 = vst [vmem:[%s2265_s26 + $0x5c] sm:$0xf] %v1620_v23  ;;  %v1622_v24 = vld [vmem:[%s2260_s11 + $0x248] sm:$0xf]  ;;  %v1624_v25 = vld [vmem:[%s2260_s11 + $0x290] sm:$0xf] }
  0x38   : > { %v1626_v26 = vld [vmem:[%s2260_s11 + $0x2d8] sm:$0xf]  ;;  %1623 = vst [vmem:[%s2265_s26 + $0x68] sm:$0xf] %v1622_v24  ;;  %1625 = vst [vmem:[%s2265_s26 + $0x74] sm:$0xf] %v1624_v25 }
  0x39   : > { %1627 = vst [vmem:[%s2265_s26 + $0x80] sm:$0xf] %v1626_v26  ;;  %v1628_v27 = vld [vmem:[%s2260_s11 + $0x320] sm:$0xf]  ;;  %v1630_v28 = vld [vmem:[%s2260_s11 + $0x368] sm:$0xf] }
  0x3a   : > { %v1632_v29 = vld [vmem:[%s2260_s11 + $0x3b0] sm:$0xf]  ;;  %1629 = vst [vmem:[%s2265_s26 + $0x8c] sm:$0xf] %v1628_v27  ;;  %1631 = vst [vmem:[%s2265_s26 + $0x98] sm:$0xf] %v1630_v28 }
  0x3b   : > { %1633 = vst [vmem:[%s2265_s26 + $0xa4] sm:$0xf] %v1632_v29  ;;  %v1634_v30 = vld [vmem:[%s2260_s11 + $0x3f8] sm:$0xf]  ;;  %v1636_v31 = vld [vmem:[%s2260_s11 + $0x440] sm:$0xf] }
  0x3c   : > { %1635 = vst [vmem:[%s2265_s26 + $0xb0] sm:$0xf] %v1634_v30  ;;  %1637 = vst [vmem:[%s2265_s26 + $0xbc] sm:$0xf] %v1636_v31 }
  0x3d PF: > { %287 = sbr.rel (!%p2235_p9) target bundleno = 102 (0x66), region = 46  ;;  %s289_s5 = sand.u32 (%p2235_p9), 1, %s2098_s18  }
  0x3e   : > { %s1715_s29 = smul.u32 (%p2235_p9), 96, %s2118_s23  ;;  %s2635_s1 = sld [smem:[#allocation10_spill]] (%p2235_p9) }
  0x3f   : > { %s1892_s30 = smul.u32 (%p2235_p9), 192, %s289_s5 }
  0x40   : > { %s294_s8 = sadd.s32 (%p2235_p9), %s2122_s24, %s1715_s29 }
  0x41   : > { %s1639_s6 = sshll.u32 (%p2235_p9), %s294_s8, 2  ;;  %s2341_s10 = scalar_lea.vmem (%p2235_p9), [#allocation4], %s1892_s30 }
  0x44   : > { %s2336_s28 = scalar_lea.vmem %s2635_s1, %s1639_s6 }
  0x45   : > { %v312_v32 = vld [vmem:[%s2336_s28] sm:$0xf]  ;;  %v314_v33 = vld [vmem:[%s2336_s28 + $0x8] sm:$0xf]  ;;  %v316_v34 = vld [vmem:[%s2336_s28 + $0x10] sm:$0xf] }
  0x46   : > { %313 = vst [vmem:[%s2341_s10] sm:$0xf] %v312_v32  ;;  %315 = vst [vmem:[%s2341_s10 + $0x4] sm:$0xf] %v314_v33  ;;  %v318_v35 = vld [vmem:[%s2336_s28 + $0x18] sm:$0xf] }
  0x47   : > { %317 = vst [vmem:[%s2341_s10 + $0x8] sm:$0xf] %v316_v34  ;;  %v320_v36 = vld [vmem:[%s2336_s28 + $0x20] sm:$0xf]  ;;  %v322_v37 = vld [vmem:[%s2336_s28 + $0x28] sm:$0xf] }
  0x48   : > { %319 = vst [vmem:[%s2341_s10 + $0xc] sm:$0xf] %v318_v35  ;;  %321 = vst [vmem:[%s2341_s10 + $0x10] sm:$0xf] %v320_v36  ;;  %v324_v38 = vld [vmem:[%s2336_s28 + $0x30] sm:$0xf] }
  0x49   : > { %323 = vst [vmem:[%s2341_s10 + $0x14] sm:$0xf] %v322_v37  ;;  %v326_v39 = vld [vmem:[%s2336_s28 + $0x38] sm:$0xf]  ;;  %v328_v40 = vld [vmem:[%s2336_s28 + $0x40] sm:$0xf] }
  0x4a   : > { %325 = vst [vmem:[%s2341_s10 + $0x18] sm:$0xf] %v324_v38  ;;  %327 = vst [vmem:[%s2341_s10 + $0x1c] sm:$0xf] %v326_v39  ;;  %v330_v41 = vld [vmem:[%s2336_s28 + $0x48] sm:$0xf] }
  0x4b   : > { %329 = vst [vmem:[%s2341_s10 + $0x20] sm:$0xf] %v328_v40  ;;  %v332_v42 = vld [vmem:[%s2336_s28 + $0x50] sm:$0xf]  ;;  %v334_v43 = vld [vmem:[%s2336_s28 + $0x58] sm:$0xf] }
  0x4c   : > { %331 = vst [vmem:[%s2341_s10 + $0x24] sm:$0xf] %v330_v41  ;;  %333 = vst [vmem:[%s2341_s10 + $0x28] sm:$0xf] %v332_v42  ;;  %v336_v44 = vld [vmem:[%s2336_s28 + $0x60] sm:$0xf] }
  0x4d   : > { %335 = vst [vmem:[%s2341_s10 + $0x2c] sm:$0xf] %v334_v43  ;;  %v338_v45 = vld [vmem:[%s2336_s28 + $0x68] sm:$0xf]  ;;  %v340_v46 = vld [vmem:[%s2336_s28 + $0x70] sm:$0xf] }
  0x4e   : > { %337 = vst [vmem:[%s2341_s10 + $0x30] sm:$0xf] %v336_v44  ;;  %339 = vst [vmem:[%s2341_s10 + $0x34] sm:$0xf] %v338_v45  ;;  %v342_v47 = vld [vmem:[%s2336_s28 + $0x78] sm:$0xf] }
  0x4f   : > { %341 = vst [vmem:[%s2341_s10 + $0x38] sm:$0xf] %v340_v46  ;;  %v344_v48 = vld [vmem:[%s2336_s28 + $0x80] sm:$0xf]  ;;  %v346_v49 = vld [vmem:[%s2336_s28 + $0x88] sm:$0xf] }
  0x50   : > { %343 = vst [vmem:[%s2341_s10 + $0x3c] sm:$0xf] %v342_v47  ;;  %345 = vst [vmem:[%s2341_s10 + $0x40] sm:$0xf] %v344_v48  ;;  %v348_v50 = vld [vmem:[%s2336_s28 + $0x90] sm:$0xf] }
  0x51   : > { %347 = vst [vmem:[%s2341_s10 + $0x44] sm:$0xf] %v346_v49  ;;  %v350_v51 = vld [vmem:[%s2336_s28 + $0x98] sm:$0xf]  ;;  %v352_v52 = vld [vmem:[%s2336_s28 + $0xa0] sm:$0xf] }
  0x52   : > { %349 = vst [vmem:[%s2341_s10 + $0x48] sm:$0xf] %v348_v50  ;;  %351 = vst [vmem:[%s2341_s10 + $0x4c] sm:$0xf] %v350_v51  ;;  %v354_v53 = vld [vmem:[%s2336_s28 + $0xa8] sm:$0xf] }
  0x53   : > { %353 = vst [vmem:[%s2341_s10 + $0x50] sm:$0xf] %v352_v52  ;;  %v356_v54 = vld [vmem:[%s2336_s28 + $0xb0] sm:$0xf]  ;;  %v358_v55 = vld [vmem:[%s2336_s28 + $0xb8] sm:$0xf] }
  0x54   : > { %355 = vst [vmem:[%s2341_s10 + $0x54] sm:$0xf] %v354_v53  ;;  %357 = vst [vmem:[%s2341_s10 + $0x58] sm:$0xf] %v356_v54  ;;  %v360_v56 = vld [vmem:[%s2336_s28 + $0xc0] sm:$0xf] }
  0x55   : > { %359 = vst [vmem:[%s2341_s10 + $0x5c] sm:$0xf] %v358_v55  ;;  %v362_v57 = vld [vmem:[%s2336_s28 + $0xc8] sm:$0xf]  ;;  %v364_v58 = vld [vmem:[%s2336_s28 + $0xd0] sm:$0xf] }
  0x56   : > { %361 = vst [vmem:[%s2341_s10 + $0x60] sm:$0xf] %v360_v56  ;;  %363 = vst [vmem:[%s2341_s10 + $0x64] sm:$0xf] %v362_v57  ;;  %v366_v59 = vld [vmem:[%s2336_s28 + $0xd8] sm:$0xf] }
  0x57   : > { %365 = vst [vmem:[%s2341_s10 + $0x68] sm:$0xf] %v364_v58  ;;  %v368_v60 = vld [vmem:[%s2336_s28 + $0xe0] sm:$0xf]  ;;  %v370_v61 = vld [vmem:[%s2336_s28 + $0xe8] sm:$0xf] }
  0x58   : > { %367 = vst [vmem:[%s2341_s10 + $0x6c] sm:$0xf] %v366_v59  ;;  %369 = vst [vmem:[%s2341_s10 + $0x70] sm:$0xf] %v368_v60  ;;  %v372_v62 = vld [vmem:[%s2336_s28 + $0xf0] sm:$0xf] }
  0x59   : > { %371 = vst [vmem:[%s2341_s10 + $0x74] sm:$0xf] %v370_v61  ;;  %v374_v63 = vld [vmem:[%s2336_s28 + $0xf8] sm:$0xf]  ;;  %v376_v0 = vld [vmem:[%s2336_s28 + $0x100] sm:$0xf] }
  0x5a   : > { %373 = vst [vmem:[%s2341_s10 + $0x78] sm:$0xf] %v372_v62  ;;  %375 = vst [vmem:[%s2341_s10 + $0x7c] sm:$0xf] %v374_v63  ;;  %v378_v1 = vld [vmem:[%s2336_s28 + $0x108] sm:$0xf] }
  0x5b   : > { %377 = vst [vmem:[%s2341_s10 + $0x80] sm:$0xf] %v376_v0  ;;  %v380_v2 = vld [vmem:[%s2336_s28 + $0x110] sm:$0xf]  ;;  %v382_v3 = vld [vmem:[%s2336_s28 + $0x118] sm:$0xf] }
  0x5c   : > { %379 = vst [vmem:[%s2341_s10 + $0x84] sm:$0xf] %v378_v1  ;;  %381 = vst [vmem:[%s2341_s10 + $0x88] sm:$0xf] %v380_v2  ;;  %v384_v4 = vld [vmem:[%s2336_s28 + $0x120] sm:$0xf] }
  0x5d   : > { %383 = vst [vmem:[%s2341_s10 + $0x8c] sm:$0xf] %v382_v3  ;;  %v386_v5 = vld [vmem:[%s2336_s28 + $0x128] sm:$0xf]  ;;  %v388_v6 = vld [vmem:[%s2336_s28 + $0x130] sm:$0xf] }
  0x5e   : > { %385 = vst [vmem:[%s2341_s10 + $0x90] sm:$0xf] %v384_v4  ;;  %387 = vst [vmem:[%s2341_s10 + $0x94] sm:$0xf] %v386_v5  ;;  %v390_v7 = vld [vmem:[%s2336_s28 + $0x138] sm:$0xf] }
  0x5f   : > { %389 = vst [vmem:[%s2341_s10 + $0x98] sm:$0xf] %v388_v6  ;;  %v392_v8 = vld [vmem:[%s2336_s28 + $0x140] sm:$0xf]  ;;  %v394_v9 = vld [vmem:[%s2336_s28 + $0x148] sm:$0xf] }
  0x60   : > { %391 = vst [vmem:[%s2341_s10 + $0x9c] sm:$0xf] %v390_v7  ;;  %393 = vst [vmem:[%s2341_s10 + $0xa0] sm:$0xf] %v392_v8  ;;  %v396_v10 = vld [vmem:[%s2336_s28 + $0x150] sm:$0xf] }
  0x61   : > { %395 = vst [vmem:[%s2341_s10 + $0xa4] sm:$0xf] %v394_v9  ;;  %v398_v11 = vld [vmem:[%s2336_s28 + $0x158] sm:$0xf]  ;;  %v400_v12 = vld [vmem:[%s2336_s28 + $0x160] sm:$0xf] }
  0x62   : > { %397 = vst [vmem:[%s2341_s10 + $0xa8] sm:$0xf] %v396_v10  ;;  %399 = vst [vmem:[%s2341_s10 + $0xac] sm:$0xf] %v398_v11  ;;  %v402_v13 = vld [vmem:[%s2336_s28 + $0x168] sm:$0xf] }
  0x63   : > { %401 = vst [vmem:[%s2341_s10 + $0xb0] sm:$0xf] %v400_v12  ;;  %v404_v14 = vld [vmem:[%s2336_s28 + $0x170] sm:$0xf]  ;;  %v406_v15 = vld [vmem:[%s2336_s28 + $0x178] sm:$0xf] }
  0x64   : > { %403 = vst [vmem:[%s2341_s10 + $0xb4] sm:$0xf] %v402_v13  ;;  %405 = vst [vmem:[%s2341_s10 + $0xb8] sm:$0xf] %v404_v14 }
  0x65   : > { %407 = vst [vmem:[%s2341_s10 + $0xbc] sm:$0xf] %v406_v15 }
  0x66 PF: > { %p1640_p0 = scmp.ge.s32.totalorder %s2126_s25, 1  ;;  %p537_p1 = scmp.lt.s32.totalorder %s2126_s25, 13 }
  0x68   : > { %p538_p2 = pnand %p1640_p0, %p537_p1 }
  0x69   : > { %s544_s0 = sand.u32 (!%p538_p2), 1, %s2102_s19   ;;  %s551_s11 = sand.u32 (!%p538_p2), 1, %s2094_s17  }
  0x6a   : > { %541 = sbr.rel (%p538_p2) target bundleno = 462 (0x1ce), region = 95  ;;  %s582_s28 = sand.u32 (!%p538_p2), 1, %s2086_s15  }
  0x6b   : > { %s1893_s26 = smul.u32 (!%p538_p2), 192, %s544_s0  ;;  %s1641_s29 = sshll.u32 (!%p538_p2), %s582_s28, 6 }
  0x6c   : > { %s1894_s5 = smul.u32 (!%p538_p2), 192, %s551_s11  ;;  %p588_p3 = scmp.lt.s32.totalorder (!%p538_p2), %s2114_s22, 1 }
  0x6d   : > { %s2453_s24 = scalar_lea.vmem (!%p538_p2), [#allocation3], %s1893_s26  ;;  %s2457_s15 = scalar_lea.vmem (!%p538_p2), [#allocation5], %s1641_s29 }
  0x6e   : > { %s2455_s17 = scalar_lea.vmem (!%p538_p2), [#allocation4], %s1894_s5  ;;  %p1642_p4 = scmp.ne.s32.totalorder (!%p538_p2), %s2110_s21, 0 }
  0x71   : > { %s2443_s30 = scalar_select %p588_p3, %s2114_s22, 1 }
  0x72   : > { %599 = sbr.rel (%p1642_p4) target bundleno = 123 (0x7b), region = 107  ;;  %v2128_v16 = vmov (!%p1642_p4), 0.0  }
  0x73   : > { %s590_s9 = scalar_lea.vmem %s2620_s2, %s2443_s30  ;;  %s593_s27 = scalar_lea.vmem %s2621_s3, %s2443_s30  ;;  %600 = vst [vmem:[#allocation2] sm:$0xff] (!%p1642_p4), %v2128_v16  ;;  %601 = vst [vmem:[#allocation2 + $0x8] sm:$0xff] (!%p1642_p4), %v2128_v16 }
  0x74   : > { %602 = vst [vmem:[#allocation2 + $0x10] sm:$0xff] (!%p1642_p4), %v2128_v16  ;;  %603 = vst [vmem:[#allocation2 + $0x18] sm:$0xff] (!%p1642_p4), %v2128_v16 }
  0x75   : > { %604 = vst [vmem:[#allocation2 + $0x20] sm:$0xff] (!%p1642_p4), %v2128_v16  ;;  %605 = vst [vmem:[#allocation2 + $0x28] sm:$0xff] (!%p1642_p4), %v2128_v16 }
  0x76   : > { %606 = vst [vmem:[#allocation2 + $0x30] sm:$0xff] (!%p1642_p4), %v2128_v16  ;;  %607 = vst [vmem:[#allocation2 + $0x38] sm:$0xff] (!%p1642_p4), %v2128_v16 }
  0x77   : > { %608 = vst [vmem:[#allocation2 + $0x40] sm:$0xff] (!%p1642_p4), %v2128_v16  ;;  %609 = vst [vmem:[#allocation2 + $0x48] sm:$0xff] (!%p1642_p4), %v2128_v16 }
  0x78   : > { %610 = vst [vmem:[#allocation2 + $0x50] sm:$0xff] (!%p1642_p4), %v2128_v16  ;;  %611 = vst [vmem:[#allocation2 + $0x58] sm:$0xff] (!%p1642_p4), %v2128_v16 }
  0x79   : > { %612 = vst [vmem:[#allocation2 + $0x60] sm:$0xff] %v2128_v16  ;;  %613 = vst [vmem:[#allocation2 + $0x68] sm:$0xff] %v2128_v16 }
  0x7a   : > { %614 = vst [vmem:[#allocation2 + $0x70] sm:$0xff] %v2128_v16  ;;  %615 = vst [vmem:[#allocation2 + $0x78] sm:$0xff] %v2128_v16 }
  0x7b PF: > { %v1984_v17 = vld [vmem:[%s2455_s17 + $0x40] sm:$0xff]   ;;  %v1987_v20 = vld [vmem:[%s2455_s17 + $0x48] sm:$0xff]   ;;  %v1990_v23 = vld [vmem:[%s2455_s17 + $0x50] sm:$0xff]   ;;  %p1691_p5 = scmp.ne.s32.totalorder %s2110_s21, 5 }
  0x7c   : > { %v1985_v18 = vld [vmem:[%s2455_s17] sm:$0xff]   ;;  %1779 = vmatprep.subr.bf16.mxu0 %v1984_v17  ;;  %v1988_v21 = vld [vmem:[%s2455_s17 + $0x8] sm:$0xff]   ;;  %v1991_v24 = vld [vmem:[%s2455_s17 + $0x10] sm:$0xff]  }
  0x7d   : > { %v1986_v19 = vld [vmem:[%s2455_s17 + $0x80] sm:$0xff]   ;;  %1780 = vmatpush3.bf16.msra.mxu0 %v1985_v18  ;;  %v1989_v22 = vld [vmem:[%s2455_s17 + $0x88] sm:$0xff]   ;;  %v1992_v25 = vld [vmem:[%s2455_s17 + $0x90] sm:$0xff]  }
  0x7e   : > { %1859 = vmatprep.subr.bf16.mxu1 %v1986_v19  ;;  %1781 = vmatprep.subr.bf16.mxu0 %v1987_v20  ;;  %v1993_v26 = vld [vmem:[%s2455_s17 + $0x58] sm:$0xff]   ;;  %v1996_v29 = vld [vmem:[%s2455_s17 + $0x60] sm:$0xff]   ;;  %v1999_v32 = vld [vmem:[%s2455_s17 + $0x68] sm:$0xff]  }
  0x7f   : > { %1860 = vmatpush3.bf16.msra.mxu1 %v1986_v19  ;;  %v1994_v27 = vld [vmem:[%s2455_s17 + $0x18] sm:$0xff]   ;;  %v1998_v30 = vld [vmem:[%s2455_s17 + $0xa0] sm:$0xff]   ;;  %v2001_v33 = vld [vmem:[%s2455_s17 + $0xa8] sm:$0xff]  }
  0x80   : > { %1861 = vmatprep.subr.bf16.mxu1 %v1989_v22  ;;  %v1995_v28 = vld [vmem:[%s2455_s17 + $0x98] sm:$0xff]   ;;  %v1997_v31 = vld [vmem:[%s2455_s17 + $0x20] sm:$0xff]   ;;  %v2000_v34 = vld [vmem:[%s2455_s17 + $0x28] sm:$0xff]  }
  0x81   : > { %1782 = vmatpush3.bf16.msra.mxu0 %v1988_v21  ;;  %v2002_v35 = vld [vmem:[%s2455_s17 + $0x70] sm:$0xff]   ;;  %v2005_v38 = vld [vmem:[%s2455_s17 + $0x78] sm:$0xff]   ;;  %v2008_v43 = vld [vmem:[%s2453_s24] ss:$12 sps:$4 sm:$0xff]  }
  0x82   : > { %1783 = vmatprep.subr.bf16.mxu0 %v1990_v23  ;;  %v2003_v36 = vld [vmem:[%s2455_s17 + $0x30] sm:$0xff]   ;;  %v2007_v39 = vld [vmem:[%s2455_s17 + $0xb8] sm:$0xff]   ;;  %v2012_v45 = vld [vmem:[%s2453_s24 + $0x20] ss:$12 sps:$4 sm:$0xff]  }
  0x83   : > { %1862 = vmatpush3.bf16.msra.mxu1 %v1989_v22  ;;  %v2004_v37 = vld [vmem:[%s2455_s17 + $0xb0] sm:$0xff]   ;;  %v2006_v42 = vld [vmem:[%s2455_s17 + $0x38] sm:$0xff]   ;;  %v2028_v53 = vld [vmem:[%s2453_s24 + $0x80] ss:$12 sps:$4 sm:$0xff]  }
  0x84   : > { %1863 = vmatprep.subr.bf16.mxu1 %v1992_v25  ;;  %v2010_v40 = vld [vmem:[%s2453_s24 + $0x4] ss:$12 sps:$4 sm:$0xff]   ;;  %v2011_v41 = vld [vmem:[%s2453_s24 + $0x8] ss:$12 sps:$4 sm:$0xff]   ;;  %v2021_v52 = vld [vmem:[%s2453_s24 + $0x4c] ss:$12 sps:$4 sm:$0xff]  }
  0x85   : > { %1784 = vmatpush3.bf16.msra.mxu0 %v1991_v24  ;;  %1016 = vmatprep.mubr.bf16.mxu0 %v2010_v40  ;;  %v2013_v44 = vld [vmem:[%s2453_s24 + $0x1c] ss:$12 sps:$4 sm:$0xff]   ;;  %v2019_v46 = vld [vmem:[%s2453_s24 + $0x38] ss:$12 sps:$4 sm:$0xff]   ;;  %v2016_v48 = vld [vmem:[%s2453_s24 + $0x34] ss:$12 sps:$4 sm:$0xff]  }
  0x86   : > { %1785 = vmatprep.subr.bf16.mxu0 %v1993_v26  ;;  %1875 = vmatprep.mubr.bf16.mxu1 %v2011_v41  ;;  %v2015_v47 = vld [vmem:[%s2453_s24 + $0x18] ss:$12 sps:$4 sm:$0xff]   ;;  %v2020_v49 = vld [vmem:[%s2453_s24 + $0x50] ss:$12 sps:$4 sm:$0xff]   ;;  %v2027_v50 = vld [vmem:[%s2453_s24 + $0x68] ss:$12 sps:$4 sm:$0xff]  }
  0x87   : > { %1864 = vmatpush3.bf16.msra.mxu1 %v1992_v25  ;;  %v2018_v51 = vld [vmem:[%s2453_s24 + $0x30] ss:$12 sps:$4 sm:$0xff]   ;;  %v2035_v54 = vld [vmem:[%s2453_s24 + $0x98] ss:$12 sps:$4 sm:$0xff]   ;;  %v2023_v55 = vld [vmem:[%s2453_s24 + $0x48] ss:$12 sps:$4 sm:$0xff]  }
  0x88   : > { %1865 = vmatprep.subr.bf16.mxu1 %v1995_v28  ;;  %v2024_v56 = vld [vmem:[%s2453_s24 + $0x64] ss:$12 sps:$4 sm:$0xff]   ;;  %v2026_v58 = vld [vmem:[%s2453_s24 + $0x60] ss:$12 sps:$4 sm:$0xff]   ;;  %v2029_v59 = vld [vmem:[%s2453_s24 + $0x7c] ss:$12 sps:$4 sm:$0xff]  }
  0x89   : > { %1786 = vmatpush3.bf16.msra.mxu0 %v1994_v27  ;;  %v2036_v57 = vld [vmem:[%s2453_s24 + $0xb0] ss:$12 sps:$4 sm:$0xff]   ;;  %v2031_v60 = vld [vmem:[%s2453_s24 + $0x78] ss:$12 sps:$4 sm:$0xff]   ;;  %v2032_v61 = vld [vmem:[%s2453_s24 + $0x94] ss:$12 sps:$4 sm:$0xff]  }
  0x8a   : > { %1787 = vmatprep.subr.bf16.mxu0 %v1996_v29  ;;  %v2034_v62 = vld [vmem:[%s2453_s24 + $0x90] ss:$12 sps:$4 sm:$0xff]   ;;  %v2037_v63 = vld [vmem:[%s2453_s24 + $0xac] ss:$12 sps:$4 sm:$0xff]   ;;  %v2039_v0 = vld [vmem:[%s2453_s24 + $0xa8] ss:$12 sps:$4 sm:$0xff]  }
  0x8b   : > { %1866 = vmatpush3.bf16.msra.mxu1 %v1995_v28  ;;  %v616_v7 = vld [vmem:[#allocation2] sm:$0xff]  ;;  %v617_v12 = vld [vmem:[#allocation2 + $0x8] sm:$0xff]  ;;  %v618_v22 = vld [vmem:[#allocation2 + $0x10] sm:$0xff] }
  0x8c   : > { %1867 = vmatprep.subr.bf16.mxu1 %v1998_v30  ;;  %v619_v28 = vld [vmem:[#allocation2 + $0x18] sm:$0xff] }
  0x8d   : > { %1788 = vmatpush3.bf16.msra.mxu0 %v1997_v31 }
  0x8e   : > { %1789 = vmatprep.subr.bf16.mxu0 %v1999_v32 }
  0x8f   : > { %1868 = vmatpush3.bf16.msra.mxu1 %v1998_v30 }
  0x90   : > { %1869 = vmatprep.subr.bf16.mxu1 %v2001_v33 }
  0x91   : > { %1790 = vmatpush3.bf16.msra.mxu0 %v2000_v34 }
  0x92   : > { %1791 = vmatprep.subr.bf16.mxu0 %v2002_v35 }
  0x93   : > { %1870 = vmatpush3.bf16.msra.mxu1 %v2001_v33 }
  0x94   : > { %1871 = vmatprep.subr.bf16.mxu1 %v2004_v37 }
  0x95   : > { %1792 = vmatpush3.bf16.msra.mxu0 %v2003_v36 }
  0x96   : > { %1793 = vmatprep.subr.bf16.mxu0 %v2005_v38 }
  0x97   : > { %1872 = vmatpush3.bf16.msra.mxu1 %v2004_v37 }
  0x98   : > { %1873 = vmatprep.subr.bf16.mxu1 %v2007_v39 }
  0x99   : > { %1794 = vmatpush3.bf16.msra.mxu0 %v2006_v42 }
  0x9b   : > { %1874 = vmatpush3.bf16.msra.mxu1 %v2007_v39  ;;  %v620_v39 = vld [vmem:[#allocation2 + $0x20] sm:$0xff] }
  0x9c   : > { %1017 = vmatmul.mubr.bf16.vlgmr.msra.gmra.mrb[0].mxu0 %v2008_v43 }
  0x9d   : > { %1024 = vmatprep.mubr.bf16.mxu0 %v2013_v44  ;;  %v621_v44 = vld [vmem:[#allocation2 + $0x28] sm:$0xff] }
  0x9e   : > { %1876 = vmatmul.mubr.bf16.vlgmr.msra.gmra.mrb[0].mxu1 %v2012_v45 }
  0x9f   : > { %1879 = vmatprep.mubr.bf16.mxu1 %v2019_v46 }
  0xa4   : > { %1025 = vmatmul.mubr.bf16.gmra.mrb[4].mxu0 %v2015_v47 }
  0xa5   : > { %1032 = vmatprep.mubr.bf16.mxu0 %v2016_v48 }
  0xa6   : > { %1880 = vmatmul.mubr.bf16.gmra.mrb[4].mxu1 %v2020_v49 }
  0xa7   : > { %1883 = vmatprep.mubr.bf16.mxu1 %v2027_v50 }
  0xac   : > { %1033 = vmatmul.mubr.bf16.gmra.mrb[8].mxu0 %v2018_v51 }
  0xad   : > { %1040 = vmatprep.mubr.bf16.mxu0 %v2021_v52 }
  0xae   : > { %1884 = vmatmul.mubr.bf16.gmra.mrb[8].mxu1 %v2028_v53 }
  0xaf   : > { %1887 = vmatprep.mubr.bf16.mxu1 %v2035_v54  ;;  %v622_v54 = vld [vmem:[#allocation2 + $0x30] sm:$0xff] }
  0xb4   : > { %1041 = vmatmul.mubr.bf16.gmra.mrb[12].mxu0 %v2023_v55 }
  0xb5   : > { %1048 = vmatprep.mubr.bf16.mxu0 %v2024_v56 }
  0xb6   : > { %1888 = vmatmul.mubr.bf16.gmra.mrb[12].mxu1 %v2036_v57 }
  0xbc   : > { %1049 = vmatmul.mubr.bf16.gmra.mrb[16].mxu0 %v2026_v58 }
  0xbd   : > { %1056 = vmatprep.mubr.bf16.mxu0 %v2029_v59 }
  0xc4   : > { %1057 = vmatmul.mubr.bf16.gmra.mrb[20].mxu0 %v2031_v60  ;;  %v623_v60 = vld [vmem:[#allocation2 + $0x38] sm:$0xff] }
  0xc5   : > { %1064 = vmatprep.mubr.bf16.mxu0 %v2032_v61 }
  0xcc   : > { %1065 = vmatmul.mubr.bf16.gmra.mrb[24].mxu0 %v2034_v62 }
  0xcd   : > { %1072 = vmatprep.mubr.bf16.mxu0 %v2037_v63 }
  0xd4   : > { %1073 = vmatmul.mubr.bf16.gmra.mrb[28].mxu0 %v2039_v0 }
 0x16f   : > { %v1795_v1 = vpop.f32.mrb[0].mxu0 }
 0x170   : > { %v1796_v2 = vpop.f32.mrb[1].mxu0 }
 0x171   : > { %v1797_v3 = vadd.f32 %v1796_v2, %v1795_v1  ;;  %v1798_v4 = vpop.f32.mrb[2].mxu0  ;;  %v1877_v5 = vpop.f32.mrb[0].mxu1 }
 0x172   : > { %v1799_v6 = vpop.f32.mrb[3].mxu0  ;;  %v1115_v8 = vpop.f32.mrb[1].mxu1 }
 0x173   : > { %v1800_v9 = vadd.f32 %v1799_v6, %v1798_v4  ;;  %v1116_v10 = vadd.f32 %v1797_v3, %v1115_v8  ;;  %v1878_v11 = vpop.f32.mrb[2].mxu1  ;;  %v624_v6 = vld [vmem:[#allocation2 + $0x40] sm:$0xff] }
 0x174   : > { %v1118_v13 = vpop.f32.mrb[3].mxu1 }
 0x175   : > { %v1178_v14 = vadd.f32 %v1116_v10, %v616_v7  ;;  %v1119_v15 = vadd.f32 %v1800_v9, %v1118_v13  ;;  %v625_v9 = vld [vmem:[#allocation2 + $0x48] sm:$0xff] }
 0x177   : > { %1194 = vst [vmem:[#allocation2] sm:$0xff] %v1178_v14  ;;  %v1179_v16 = vadd.f32 %v1119_v15, %v617_v12  ;;  %v1801_v17 = vpop.f32.mrb[4].mxu0 }
 0x178   : > { %v1802_v18 = vpop.f32.mrb[5].mxu0 }
 0x179   : > { %1195 = vst [vmem:[#allocation2 + $0x8] sm:$0xff] %v1179_v16  ;;  %v1803_v19 = vadd.f32 %v1802_v18, %v1801_v17  ;;  %v1804_v20 = vpop.f32.mrb[6].mxu0  ;;  %v1881_v21 = vpop.f32.mrb[4].mxu1  ;;  %v626_v17 = vld [vmem:[#allocation2 + $0x50] sm:$0xff] }
 0x17a   : > { %v1805_v23 = vpop.f32.mrb[7].mxu0  ;;  %v1131_v24 = vpop.f32.mrb[5].mxu1 }
 0x17b   : > { %v1124_v25 = vadd.f32 %v1877_v5, %v1803_v19  ;;  %v1806_v26 = vadd.f32 %v1805_v23, %v1804_v20  ;;  %v1882_v27 = vpop.f32.mrb[6].mxu1 }
 0x17c   : > { %v1134_v29 = vpop.f32.mrb[7].mxu1 }
 0x17d   : > { %v1180_v30 = vadd.f32 %v1124_v25, %v618_v22  ;;  %v1127_v31 = vadd.f32 %v1878_v11, %v1806_v26 }
 0x17f   : > { %1196 = vst [vmem:[#allocation2 + $0x10] sm:$0xff] %v1180_v30  ;;  %v1181_v32 = vadd.f32 %v1127_v31, %v619_v28  ;;  %v1807_v33 = vpop.f32.mrb[8].mxu0  ;;  %v628_v30 = vld [vmem:[#allocation2 + $0x60] sm:$0xff] }
 0x180   : > { %v1808_v34 = vpop.f32.mrb[9].mxu0 }
 0x181   : > { %1197 = vst [vmem:[#allocation2 + $0x18] sm:$0xff] %v1181_v32  ;;  %v1809_v35 = vadd.f32 %v1808_v34, %v1807_v33  ;;  %v1810_v36 = vpop.f32.mrb[10].mxu0  ;;  %v1885_v37 = vpop.f32.mrb[8].mxu1  ;;  %v629_v33 = vld [vmem:[#allocation2 + $0x68] sm:$0xff] }
 0x182   : > { %v1811_v38 = vpop.f32.mrb[11].mxu0  ;;  %v1147_v40 = vpop.f32.mrb[9].mxu1 }
 0x183   : > { %v1812_v41 = vadd.f32 %v1811_v38, %v1810_v36  ;;  %v1132_v42 = vadd.f32 %v1809_v35, %v1131_v24  ;;  %v1886_v43 = vpop.f32.mrb[10].mxu1 }
 0x184   : > { %v1150_v45 = vpop.f32.mrb[11].mxu1 }
 0x185   : > { %v1182_v46 = vadd.f32 %v1132_v42, %v620_v39  ;;  %v1135_v47 = vadd.f32 %v1812_v41, %v1134_v29  ;;  %v630_v41 = vld [vmem:[#allocation2 + $0x70] sm:$0xff] }
 0x187   : > { %1198 = vst [vmem:[#allocation2 + $0x20] sm:$0xff] %v1182_v46  ;;  %v1183_v48 = vadd.f32 %v1135_v47, %v621_v44  ;;  %v1813_v49 = vpop.f32.mrb[12].mxu0 }
 0x188   : > { %v1814_v50 = vpop.f32.mrb[13].mxu0 }
 0x189   : > { %1199 = vst [vmem:[#allocation2 + $0x28] sm:$0xff] %v1183_v48  ;;  %v1815_v51 = vadd.f32 %v1814_v50, %v1813_v49  ;;  %v1816_v52 = vpop.f32.mrb[14].mxu0  ;;  %v1889_v53 = vpop.f32.mrb[12].mxu1  ;;  %v1214_v49 = vld [vmem:[#allocation2] sm:$0xff] (!%p1691_p5)  ;;  %v1215_v50 = vld [vmem:[#allocation2 + $0x8] sm:$0xff] (!%p1691_p5) }
 0x18a   : > { %v1817_v55 = vpop.f32.mrb[15].mxu0  ;;  %v1163_v56 = vpop.f32.mrb[13].mxu1 }
 0x18b   : > { %v1140_v57 = vadd.f32 %v1881_v21, %v1815_v51  ;;  %v1818_v58 = vadd.f32 %v1817_v55, %v1816_v52  ;;  %v1890_v59 = vpop.f32.mrb[14].mxu1  ;;  %v627_v21 = vld [vmem:[#allocation2 + $0x58] sm:$0xff]  ;;  %v2514_v51 = vld [vmem:[%s590_s9] ss:$0 sm:$0xff] (!%p1691_p5)  ;;  %v1216_v55 = vld [vmem:[#allocation2 + $0x10] sm:$0xff] (!%p1691_p5) }
 0x18c   : > { %v1166_v61 = vpop.f32.mrb[15].mxu1  ;;  %v1237_v52 = vmul.f32 (!%p1691_p5), %v2514_v51, %v1214_v49 }
 0x18d   : > { %v1184_v62 = vadd.f32 %v1140_v57, %v622_v54  ;;  %v1143_v63 = vadd.f32 %v1882_v27, %v1818_v58  ;;  %v2523_v54 = vld [vmem:[%s593_s27] ss:$0 sm:$0xff] (!%p1691_p5)  ;;  %v1239_v57 = vmul.f32 (!%p1691_p5), %v2514_v51, %v1216_v55 }
 0x18f   : > { %1200 = vst [vmem:[#allocation2 + $0x30] sm:$0xff] %v1184_v62  ;;  %v1185_v0 = vadd.f32 %v1143_v63, %v623_v60  ;;  %v1819_v1 = vpop.f32.mrb[16].mxu0  ;;  %v1260_v62 = vadd.f32 (!%p1691_p5), %v2523_v54, %v1237_v52 }
 0x190   : > { %v1820_v2 = vpop.f32.mrb[17].mxu0  ;;  %v1219_v60 = vld [vmem:[#allocation2 + $0x28] sm:$0xff] (!%p1691_p5) }
 0x191   : > { %1201 = vst [vmem:[#allocation2 + $0x38] sm:$0xff] %v1185_v0  ;;  %v1821_v3 = vadd.f32 %v1820_v2, %v1819_v1  ;;  %v1822_v4 = vpop.f32.mrb[18].mxu0  ;;  %v1242_v1 = vmul.f32 (!%p1691_p5), %v2514_v51, %v1219_v60 }
 0x192   : > { %v1823_v5 = vpop.f32.mrb[19].mxu0 }
 0x193   : > { %v1824_v7 = vadd.f32 %v1823_v5, %v1822_v4  ;;  %v1148_v8 = vadd.f32 %v1821_v3, %v1147_v40  ;;  %v1262_v3 = vadd.f32 (!%p1691_p5), %v2523_v54, %v1239_v57 }
 0x195   : > { %v1186_v10 = vadd.f32 %v1148_v8, %v624_v6  ;;  %v1151_v11 = vadd.f32 %v1824_v7, %v1150_v45  ;;  %v631_v45 = vld [vmem:[#allocation2 + $0x78] sm:$0xff]  ;;  %v1276_v8 = vmax.f32 (!%p1691_p5), %v1260_v62, 0.0 }
 0x197   : > { %1202 = vst [vmem:[#allocation2 + $0x40] sm:$0xff] %v1186_v10  ;;  %v1187_v12 = vadd.f32 %v1151_v11, %v625_v9  ;;  %v1825_v13 = vpop.f32.mrb[20].mxu0  ;;  %v1265_v11 = vadd.f32 (!%p1691_p5), %v2523_v54, %v1242_v1 }
 0x198   : > { %v1826_v14 = vpop.f32.mrb[21].mxu0  ;;  %v1221_v2 = vld [vmem:[#allocation2 + $0x38] sm:$0xff] (!%p1691_p5) }
 0x199   : > { %1203 = vst [vmem:[#allocation2 + $0x48] sm:$0xff] %v1187_v12  ;;  %v1827_v15 = vadd.f32 %v1826_v14, %v1825_v13  ;;  %v1828_v16 = vpop.f32.mrb[22].mxu0  ;;  %v1244_v6 = vmul.f32 (!%p1691_p5), %v2514_v51, %v1221_v2  ;;  %v1278_v13 = vmax.f32 (!%p1691_p5), %v1262_v3, 0.0 }
 0x19a   : > { %v1829_v18 = vpop.f32.mrb[23].mxu0 }
 0x19b   : > { %v1156_v19 = vadd.f32 %v1885_v37, %v1827_v15  ;;  %v1830_v20 = vadd.f32 %v1829_v18, %v1828_v16  ;;  %v1267_v16 = vadd.f32 (!%p1691_p5), %v2523_v54, %v1244_v6 }
 0x19d   : > { %v1188_v22 = vadd.f32 %v1156_v19, %v626_v17  ;;  %v1159_v23 = vadd.f32 %v1886_v43, %v1830_v20 }
 0x19e   : > { %v1222_v7 = vld [vmem:[#allocation2 + $0x40] sm:$0xff] (!%p1691_p5) }
 0x19f   : > { %1204 = vst [vmem:[#allocation2 + $0x50] sm:$0xff] %v1188_v22  ;;  %v1189_v24 = vadd.f32 %v1159_v23, %v627_v21  ;;  %v1831_v25 = vpop.f32.mrb[24].mxu0  ;;  %v1281_v21 = vmax.f32 (!%p1691_p5), %v1265_v11, 0.0  ;;  %v1245_v22 = vmul.f32 (!%p1691_p5), %v2514_v51, %v1222_v7 }
 0x1a0   : > { %v1832_v26 = vpop.f32.mrb[25].mxu0  ;;  %v1223_v12 = vld [vmem:[#allocation2 + $0x48] sm:$0xff] (!%p1691_p5) }
 0x1a1   : > { %1205 = vst [vmem:[#allocation2 + $0x58] sm:$0xff] %v1189_v24  ;;  %v1833_v27 = vadd.f32 %v1832_v26, %v1831_v25  ;;  %v1834_v28 = vpop.f32.mrb[26].mxu0 }
 0x1a2   : > { %v1835_v29 = vpop.f32.mrb[27].mxu0 }
 0x1a3   : > { %v1836_v31 = vadd.f32 %v1835_v29, %v1834_v28  ;;  %v1164_v32 = vadd.f32 %v1833_v27, %v1163_v56  ;;  %v1217_v56 = vld [vmem:[#allocation2 + $0x18] sm:$0xff] (!%p1691_p5)  ;;  %v1283_v27 = vmax.f32 (!%p1691_p5), %v1267_v16, 0.0  ;;  %v1246_v28 = vmul.f32 (!%p1691_p5), %v2514_v51, %v1223_v12 }
 0x1a4   : > { %v1240_v58 = vmul.f32 (!%p1691_p5), %v2514_v51, %v1217_v56 }
 0x1a5   : > { %v1190_v34 = vadd.f32 %v1164_v32, %v628_v30  ;;  %v1167_v35 = vadd.f32 %v1836_v31, %v1166_v61  ;;  %v1220_v61 = vld [vmem:[#allocation2 + $0x30] sm:$0xff] (!%p1691_p5)  ;;  %v1268_v31 = vadd.f32 (!%p1691_p5), %v2523_v54, %v1245_v22 }
 0x1a6   : > { %v1263_v4 = vadd.f32 (!%p1691_p5), %v2523_v54, %v1240_v58  ;;  %v1243_v5 = vmul.f32 (!%p1691_p5), %v2514_v51, %v1220_v61  ;;  %v1224_v17 = vld [vmem:[#allocation2 + $0x50] sm:$0xff] (!%p1691_p5) }
 0x1a7   : > { %1206 = vst [vmem:[#allocation2 + $0x60] sm:$0xff] %v1190_v34  ;;  %v1191_v36 = vadd.f32 %v1167_v35, %v629_v33  ;;  %v1837_v37 = vpop.f32.mrb[28].mxu0  ;;  %v1247_v32 = vmul.f32 (!%p1691_p5), %v2514_v51, %v1224_v17 }
 0x1a8   : > { %v1838_v38 = vpop.f32.mrb[29].mxu0  ;;  %v1279_v14 = vmax.f32 (!%p1691_p5), %v1263_v4, 0.0  ;;  %v1266_v15 = vadd.f32 (!%p1691_p5), %v2523_v54, %v1243_v5  ;;  %v1225_v18 = vld [vmem:[#allocation2 + $0x58] sm:$0xff] (!%p1691_p5) }
 0x1a9   : > { %1207 = vst [vmem:[#allocation2 + $0x68] sm:$0xff] %v1191_v36  ;;  %v1839_v39 = vadd.f32 %v1838_v38, %v1837_v37  ;;  %v1840_v40 = vpop.f32.mrb[30].mxu0  ;;  %v1248_v33 = vmul.f32 (!%p1691_p5), %v2514_v51, %v1225_v18  ;;  %v1269_v36 = vadd.f32 (!%p1691_p5), %v2523_v54, %v1246_v28 }
 0x1aa   : > { %v1841_v42 = vpop.f32.mrb[31].mxu0  ;;  %v1740_v25 = vpack.c.bf16 (!%p1691_p5), %v1279_v14, %v1278_v13  ;;  %v1282_v26 = vmax.f32 (!%p1691_p5), %v1266_v15, 0.0 }
 0x1ab   : > { %v1172_v43 = vadd.f32 %v1889_v53, %v1839_v39  ;;  %v1842_v44 = vadd.f32 %v1841_v42, %v1840_v40  ;;  %1213 = sbr.rel (%p1691_p5) target bundleno = 450 (0x1c2), region = 111  ;;  %v1238_v53 = vmul.f32 (!%p1691_p5), %v2514_v51, %v1215_v50  ;;  %v1284_v39 = vmax.f32 (!%p1691_p5), %v1268_v31, 0.0 }
 0x1ac   : > { %1772 = vst [vmem:[%s2457_s15 + $0x8] sm:$0xff] (!%p1691_p5), %v1740_v25   ;;  %v1750_v35 = vpack.c.bf16 (!%p1691_p5), %v1283_v27, %v1282_v26  ;;  %v1270_v40 = vadd.f32 (!%p1691_p5), %v2523_v54, %v1247_v32 }
 0x1ad   : > { %v1192_v46 = vadd.f32 %v1172_v43, %v630_v41  ;;  %v1175_v47 = vadd.f32 %v1890_v59, %v1842_v44  ;;  %v1218_v59 = vld [vmem:[#allocation2 + $0x20] sm:$0xff] (!%p1691_p5)  ;;  %v1261_v63 = vadd.f32 (!%p1691_p5), %v2523_v54, %v1238_v53  ;;  %v1271_v41 = vadd.f32 (!%p1691_p5), %v2523_v54, %v1248_v33 }
 0x1ae   : > { %v1241_v0 = vmul.f32 (!%p1691_p5), %v2514_v51, %v1218_v59  ;;  %v1226_v23 = vld [vmem:[#allocation2 + $0x60] sm:$0xff] (!%p1691_p5)  ;;  %1774 = vst [vmem:[%s2457_s15 + $0x18] sm:$0xff] (!%p1691_p5), %v1750_v35   ;;  %v1285_v43 = vmax.f32 (!%p1691_p5), %v1269_v36, 0.0 }
 0x1af   : > { %1208 = vst [vmem:[#allocation2 + $0x70] sm:$0xff] %v1192_v46  ;;  %v1193_v48 = vadd.f32 %v1175_v47, %v631_v45  ;;  %v1277_v9 = vmax.f32 (!%p1691_p5), %v1261_v63, 0.0  ;;  %v1249_v37 = vmul.f32 (!%p1691_p5), %v2514_v51, %v1226_v23  ;;  %v1286_v47 = vmax.f32 (!%p1691_p5), %v1270_v40, 0.0 }
 0x1b0   : > { %v1264_v10 = vadd.f32 (!%p1691_p5), %v2523_v54, %v1241_v0  ;;  %v1227_v24 = vld [vmem:[#allocation2 + $0x68] sm:$0xff] (!%p1691_p5)  ;;  %v1755_v50 = vpack.c.bf16 (!%p1691_p5), %v1285_v43, %v1284_v39 }
 0x1b1   : > { %1209 = vst [vmem:[#allocation2 + $0x78] sm:$0xff] %v1193_v48  ;;  %v1735_v19 = vpack.c.bf16 (!%p1691_p5), %v1277_v9, %v1276_v8  ;;  %v1250_v38 = vmul.f32 (!%p1691_p5), %v2514_v51, %v1227_v24  ;;  %v1272_v44 = vadd.f32 (!%p1691_p5), %v2523_v54, %v1249_v37  ;;  %v1287_v48 = vmax.f32 (!%p1691_p5), %v1271_v41, 0.0 }
 0x1b2   : > { %v1280_v20 = vmax.f32 %v1264_v10, 0.0  ;;  %1775 = vst [vmem:[%s2457_s15 + $0x20] sm:$0xff] %v1755_v50  }
 0x1b3   : > { %1736 = vst [vmem:[%s2457_s15] sm:$0xff] %v1735_v19   ;;  %v1273_v45 = vadd.f32 %v2523_v54, %v1250_v38  ;;  %v1288_v52 = vmax.f32 %v1272_v44, 0.0  ;;  %v1760_v56 = vpack.c.bf16 %v1287_v48, %v1286_v47 }
 0x1b4   : > { %v1745_v30 = vpack.c.bf16 %v1281_v21, %v1280_v20 }
 0x1b5   : > { %v1289_v53 = vmax.f32 %v1273_v45, 0.0  ;;  %1776 = vst [vmem:[%s2457_s15 + $0x28] sm:$0xff] %v1760_v56  }
 0x1b6   : > { %v1228_v29 = vld [vmem:[#allocation2 + $0x70] sm:$0xff]  ;;  %1773 = vst [vmem:[%s2457_s15 + $0x10] sm:$0xff] %v1745_v30  }
 0x1b7   : > { %v1251_v42 = vmul.f32 %v2514_v51, %v1228_v29  ;;  %v1765_v58 = vpack.c.bf16 %v1289_v53, %v1288_v52 }
 0x1b8   : > { %v1229_v34 = vld [vmem:[#allocation2 + $0x78] sm:$0xff] }
 0x1b9   : > { %v1252_v46 = vmul.f32 %v2514_v51, %v1229_v34  ;;  %v1274_v49 = vadd.f32 %v2523_v54, %v1251_v42  ;;  %1777 = vst [vmem:[%s2457_s15 + $0x30] sm:$0xff] %v1765_v58  }
 0x1bb   : > { %v1275_v55 = vadd.f32 %v2523_v54, %v1252_v46  ;;  %v1290_v57 = vmax.f32 %v1274_v49, 0.0 }
 0x1bd   : > { %v1291_v59 = vmax.f32 %v1275_v55, 0.0 }
 0x1bf   : > { %v1770_v60 = vpack.c.bf16 %v1291_v59, %v1290_v57 }
 0x1c1   : > { %1778 = vst [vmem:[%s2457_s15 + $0x38] sm:$0xff] %v1770_v60  }
 0x1c2 PF: > { %1378 = sbr.rel (!%p2248_p12) target bundleno = 462 (0x1ce), region = 115  ;;  %s1711_s21 = sshll.u32 (%p2248_p12), %s2114_s22, 2  ;;  %v1399_v51 = vld [vmem:[%s2457_s15] sm:$0xf] (%p2248_p12)  ;;  %v1401_v54 = vld [vmem:[%s2457_s15 + $0x4] sm:$0xf] (%p2248_p12) }
 0x1c3   : > { %s1383_s26 = scalar_lea.vmem (%p2248_p12), %s2622_s4, %s1711_s21  ;;  %v1403_v61 = vld [vmem:[%s2457_s15 + $0x8] sm:$0xf] (%p2248_p12)  ;;  %v1405_v62 = vld [vmem:[%s2457_s15 + $0xc] sm:$0xf] (%p2248_p12)  ;;  %v1407_v63 = vld [vmem:[%s2457_s15 + $0x10] sm:$0xf] (%p2248_p12) }
 0x1c4   : > { %1400 = vst [vmem:[%s1383_s26] sm:$0xf] (%p2248_p12), %v1399_v51  ;;  %1402 = vst [vmem:[%s1383_s26 + $0x8] sm:$0xf] (%p2248_p12), %v1401_v54  ;;  %v1409_v0 = vld [vmem:[%s2457_s15 + $0x14] sm:$0xf] (%p2248_p12) }
 0x1c5   : > { %1404 = vst [vmem:[%s1383_s26 + $0x10] sm:$0xf] (%p2248_p12), %v1403_v61  ;;  %1406 = vst [vmem:[%s1383_s26 + $0x18] sm:$0xf] (%p2248_p12), %v1405_v62  ;;  %v1411_v1 = vld [vmem:[%s2457_s15 + $0x18] sm:$0xf] (%p2248_p12) }
 0x1c6   : > { %1408 = vst [vmem:[%s1383_s26 + $0x20] sm:$0xf] (%p2248_p12), %v1407_v63  ;;  %v1413_v2 = vld [vmem:[%s2457_s15 + $0x1c] sm:$0xf] (%p2248_p12)  ;;  %1410 = vst [vmem:[%s1383_s26 + $0x28] sm:$0xf] (%p2248_p12), %v1409_v0 }
 0x1c7   : > { %1412 = vst [vmem:[%s1383_s26 + $0x30] sm:$0xf] (%p2248_p12), %v1411_v1  ;;  %1414 = vst [vmem:[%s1383_s26 + $0x38] sm:$0xf] (%p2248_p12), %v1413_v2  ;;  %v1419_v5 = vld [vmem:[%s2457_s15 + $0x28] sm:$0xf] (%p2248_p12) }
 0x1c8   : > { %1420 = vst [vmem:[%s1383_s26 + $0x50] sm:$0xf] (%p2248_p12), %v1419_v5  ;;  %v1421_v6 = vld [vmem:[%s2457_s15 + $0x2c] sm:$0xf] (%p2248_p12)  ;;  %v1423_v7 = vld [vmem:[%s2457_s15 + $0x30] sm:$0xf] (%p2248_p12) }
 0x1c9   : > { %v1415_v3 = vld [vmem:[%s2457_s15 + $0x20] sm:$0xf]  ;;  %v1417_v4 = vld [vmem:[%s2457_s15 + $0x24] sm:$0xf]  ;;  %v1425_v8 = vld [vmem:[%s2457_s15 + $0x34] sm:$0xf] }
 0x1ca   : > { %1416 = vst [vmem:[%s1383_s26 + $0x40] sm:$0xf] %v1415_v3  ;;  %1418 = vst [vmem:[%s1383_s26 + $0x48] sm:$0xf] %v1417_v4  ;;  %v1427_v9 = vld [vmem:[%s2457_s15 + $0x38] sm:$0xf] }
 0x1cb   : > { %1422 = vst [vmem:[%s1383_s26 + $0x58] sm:$0xf] %v1421_v6  ;;  %1424 = vst [vmem:[%s1383_s26 + $0x60] sm:$0xf] %v1423_v7  ;;  %v1429_v10 = vld [vmem:[%s2457_s15 + $0x3c] sm:$0xf] }
 0x1cc   : > { %1426 = vst [vmem:[%s1383_s26 + $0x68] sm:$0xf] %v1425_v8  ;;  %1428 = vst [vmem:[%s1383_s26 + $0x70] sm:$0xf] %v1427_v9 }
 0x1cd   : > { %1430 = vst [vmem:[%s1383_s26 + $0x78] sm:$0xf] %v1429_v10 }
 0x1ce PF: > { %s14_s25 = sadd.s32 1, %s2126_s25   ;;  %s2636_s22 = sld [smem:[#allocation6_spill]] }
 0x1cf   : > { %p11_p6 = scmp.ge.s32.totalorder %s14_s25, 14   ;;  %s2637_s14 = sld [smem:[#allocation7_spill]] }
 0x1d0   : > { %s2638_s24 = sld [smem:[#allocation8_spill]]  ;;  %s2639_s15 = smov %s2090_s16 }
 0x1d1   : > { %s2640_s16 = smov %s2246_s13  ;;  %s2641_s17 = smov %s2098_s18 }
 0x1d2   : > { %s2642_s18 = smov %s2243_s12  ;;  %s2643_s19 = smov %s2106_s20 }
 0x1d3   : > { %s2644_s20 = smov %s2229_s7  ;;  %s2645_s21 = smov %s2118_s23 }
 0x1d4   :  { %13 = sbr.rel (!%p11_p6) target bundleno = 9 (0x9), region = 207 }
 0x1d5   : > { %s2646_s23 = smov %s2637_s14 }

// kernel: _lambda_.18
= control target key start
LH: loop header
LB: loop body
LE: loop exit
PB: predicated region body
PF: predicated region fallthrough
CT: control target
= control target key end

     0   :  { %s460_s0 = inlined_call_operand.vmem [shape: bf16[16,2304], index: 0, kind: input, shape index: {}]   ;;  %s461_s1 = inlined_call_operand.vmem [shape: bf16[16,2304], index: 1, kind: input, shape index: {}]   ;;  %s462_s2 = inlined_call_operand.vmem [shape: bf16[16,2304], index: 2, kind: input, shape index: {}]   ;;  %s463_s3 = inlined_call_operand.vmem [shape: bf16[16,2304], index: 3, kind: input, shape index: {}]   ;;  %s464_s4 = inlined_call_operand.vmem [shape: bf16[16,2304], index: 4, kind: output, shape index: {}]  }
   0x1   :  { %v17_v0 = vld [vmem:[%s460_s0] sm:$0xff]  ;;  %v18_v5 = vld [vmem:[%s460_s0 + $0x8] sm:$0xff]  ;;  %v19_v11 = vld [vmem:[%s460_s0 + $0x10] sm:$0xff] }
   0x2   :  { %v35_v1 = vld [vmem:[%s461_s1] sm:$0xff]  ;;  %v36_v6 = vld [vmem:[%s461_s1 + $0x8] sm:$0xff]  ;;  %v37_v13 = vld [vmem:[%s461_s1 + $0x10] sm:$0xff] }
   0x3   :  { %v71_v2 = vld [vmem:[%s462_s2] sm:$0xff]  ;;  %v53_v3 = vmax.bf16 %v35_v1, %v17_v0  ;;  %v54_v8 = vmax.bf16 %v36_v6, %v18_v5  ;;  %v72_v9 = vld [vmem:[%s462_s2 + $0x8] sm:$0xff]  ;;  %v73_v14 = vld [vmem:[%s462_s2 + $0x10] sm:$0xff]  ;;  %v55_v17 = vmax.bf16 %v37_v13, %v19_v11 }
   0x4   :  { %v89_v4 = vld [vmem:[%s463_s3] sm:$0xff]  ;;  %v90_v10 = vld [vmem:[%s463_s3 + $0x8] sm:$0xff]  ;;  %v91_v15 = vld [vmem:[%s463_s3 + $0x10] sm:$0xff] }
   0x5   :  { %v107_v7 = vmax.bf16 %v89_v4, %v71_v2  ;;  %v108_v12 = vmax.bf16 %v90_v10, %v72_v9  ;;  %v109_v18 = vmax.bf16 %v91_v15, %v73_v14  ;;  %v20_v19 = vld [vmem:[%s460_s0 + $0x18] sm:$0xff]  ;;  %v21_v25 = vld [vmem:[%s460_s0 + $0x20] sm:$0xff]  ;;  %v22_v32 = vld [vmem:[%s460_s0 + $0x28] sm:$0xff] }
   0x6   :  { %v38_v20 = vld [vmem:[%s461_s1 + $0x18] sm:$0xff]  ;;  %v39_v26 = vld [vmem:[%s461_s1 + $0x20] sm:$0xff]  ;;  %v40_v34 = vld [vmem:[%s461_s1 + $0x28] sm:$0xff] }
   0x7   :  { %v125_v16 = vmax.bf16 %v107_v7, %v53_v3  ;;  %v74_v21 = vld [vmem:[%s462_s2 + $0x18] sm:$0xff]  ;;  %v126_v22 = vmax.bf16 %v108_v12, %v54_v8  ;;  %v56_v23 = vmax.bf16 %v38_v20, %v20_v19  ;;  %v127_v27 = vmax.bf16 %v109_v18, %v55_v17  ;;  %v75_v30 = vld [vmem:[%s462_s2 + $0x20] sm:$0xff]  ;;  %v76_v35 = vld [vmem:[%s462_s2 + $0x28] sm:$0xff] }
   0x8   :  { %v92_v24 = vld [vmem:[%s463_s3 + $0x18] sm:$0xff]  ;;  %v57_v29 = vmax.bf16 %v39_v26, %v21_v25  ;;  %v93_v31 = vld [vmem:[%s463_s3 + $0x20] sm:$0xff]  ;;  %v94_v36 = vld [vmem:[%s463_s3 + $0x28] sm:$0xff]  ;;  %v58_v38 = vmax.bf16 %v40_v34, %v22_v32 }
   0x9   :  { %143 = vst [vmem:[%s464_s4] sm:$0xff] %v125_v16  ;;  %v110_v28 = vmax.bf16 %v92_v24, %v74_v21  ;;  %144 = vst [vmem:[%s464_s4 + $0x8] sm:$0xff] %v126_v22  ;;  %v111_v33 = vmax.bf16 %v93_v31, %v75_v30  ;;  %v112_v39 = vmax.bf16 %v94_v36, %v76_v35  ;;  %v23_v40 = vld [vmem:[%s460_s0 + $0x30] sm:$0xff]  ;;  %v24_v46 = vld [vmem:[%s460_s0 + $0x38] sm:$0xff] }
   0xa   :  { %145 = vst [vmem:[%s464_s4 + $0x10] sm:$0xff] %v127_v27  ;;  %v41_v41 = vld [vmem:[%s461_s1 + $0x30] sm:$0xff]  ;;  %v42_v47 = vld [vmem:[%s461_s1 + $0x38] sm:$0xff]  ;;  %v25_v53 = vld [vmem:[%s460_s0 + $0x40] sm:$0xff] }
   0xb   :  { %v128_v37 = vmax.bf16 %v110_v28, %v56_v23  ;;  %v77_v42 = vld [vmem:[%s462_s2 + $0x30] sm:$0xff]  ;;  %v129_v43 = vmax.bf16 %v111_v33, %v57_v29  ;;  %v59_v44 = vmax.bf16 %v41_v41, %v23_v40  ;;  %v130_v48 = vmax.bf16 %v112_v39, %v58_v38  ;;  %v78_v51 = vld [vmem:[%s462_s2 + $0x38] sm:$0xff]  ;;  %v43_v55 = vld [vmem:[%s461_s1 + $0x40] sm:$0xff] }
   0xc   :  { %v95_v45 = vld [vmem:[%s463_s3 + $0x30] sm:$0xff]  ;;  %v60_v50 = vmax.bf16 %v42_v47, %v24_v46  ;;  %v96_v52 = vld [vmem:[%s463_s3 + $0x38] sm:$0xff]  ;;  %v79_v56 = vld [vmem:[%s462_s2 + $0x40] sm:$0xff]  ;;  %v61_v59 = vmax.bf16 %v43_v55, %v25_v53 }
   0xd   :  { %146 = vst [vmem:[%s464_s4 + $0x18] sm:$0xff] %v128_v37  ;;  %v113_v49 = vmax.bf16 %v95_v45, %v77_v42  ;;  %147 = vst [vmem:[%s464_s4 + $0x20] sm:$0xff] %v129_v43  ;;  %v114_v54 = vmax.bf16 %v96_v52, %v78_v51  ;;  %v97_v57 = vld [vmem:[%s463_s3 + $0x40] sm:$0xff]  ;;  %v26_v61 = vld [vmem:[%s460_s0 + $0x48] sm:$0xff] }
   0xe   :  { %148 = vst [vmem:[%s464_s4 + $0x28] sm:$0xff] %v130_v48  ;;  %v115_v60 = vmax.bf16 %v97_v57, %v79_v56  ;;  %v44_v62 = vld [vmem:[%s461_s1 + $0x48] sm:$0xff]  ;;  %v27_v3 = vld [vmem:[%s460_s0 + $0x50] sm:$0xff]  ;;  %v28_v10 = vld [vmem:[%s460_s0 + $0x58] sm:$0xff] }
   0xf   :  { %v131_v58 = vmax.bf16 %v113_v49, %v59_v44  ;;  %v80_v63 = vld [vmem:[%s462_s2 + $0x48] sm:$0xff]  ;;  %v132_v0 = vmax.bf16 %v114_v54, %v60_v50  ;;  %v62_v1 = vmax.bf16 %v44_v62, %v26_v61  ;;  %v45_v4 = vld [vmem:[%s461_s1 + $0x50] sm:$0xff]  ;;  %v46_v12 = vld [vmem:[%s461_s1 + $0x58] sm:$0xff] }
  0x10   :  { %v98_v2 = vld [vmem:[%s463_s3 + $0x48] sm:$0xff]  ;;  %v133_v5 = vmax.bf16 %v115_v60, %v61_v59  ;;  %v63_v7 = vmax.bf16 %v45_v4, %v27_v3  ;;  %v81_v8 = vld [vmem:[%s462_s2 + $0x50] sm:$0xff]  ;;  %v82_v13 = vld [vmem:[%s462_s2 + $0x58] sm:$0xff]  ;;  %v64_v16 = vmax.bf16 %v46_v12, %v28_v10 }
  0x11   :  { %149 = vst [vmem:[%s464_s4 + $0x30] sm:$0xff] %v131_v58  ;;  %v116_v6 = vmax.bf16 %v98_v2, %v80_v63  ;;  %v99_v9 = vld [vmem:[%s463_s3 + $0x50] sm:$0xff]  ;;  %150 = vst [vmem:[%s464_s4 + $0x38] sm:$0xff] %v132_v0  ;;  %v100_v14 = vld [vmem:[%s463_s3 + $0x58] sm:$0xff] }
  0x12   :  { %v117_v11 = vmax.bf16 %v99_v9, %v81_v8  ;;  %151 = vst [vmem:[%s464_s4 + $0x40] sm:$0xff] %v133_v5  ;;  %v118_v17 = vmax.bf16 %v100_v14, %v82_v13  ;;  %v29_v18 = vld [vmem:[%s460_s0 + $0x60] sm:$0xff]  ;;  %v30_v24 = vld [vmem:[%s460_s0 + $0x68] sm:$0xff]  ;;  %v31_v31 = vld [vmem:[%s460_s0 + $0x70] sm:$0xff] }
  0x13   :  { %v134_v15 = vmax.bf16 %v116_v6, %v62_v1  ;;  %v47_v19 = vld [vmem:[%s461_s1 + $0x60] sm:$0xff]  ;;  %v48_v25 = vld [vmem:[%s461_s1 + $0x68] sm:$0xff]  ;;  %v49_v33 = vld [vmem:[%s461_s1 + $0x70] sm:$0xff] }
  0x14   :  { %v83_v20 = vld [vmem:[%s462_s2 + $0x60] sm:$0xff]  ;;  %v135_v21 = vmax.bf16 %v117_v11, %v63_v7  ;;  %v65_v22 = vmax.bf16 %v47_v19, %v29_v18  ;;  %v136_v26 = vmax.bf16 %v118_v17, %v64_v16  ;;  %v66_v28 = vmax.bf16 %v48_v25, %v30_v24  ;;  %v84_v29 = vld [vmem:[%s462_s2 + $0x68] sm:$0xff]  ;;  %v85_v34 = vld [vmem:[%s462_s2 + $0x70] sm:$0xff] }
  0x15   :  { %v101_v23 = vld [vmem:[%s463_s3 + $0x60] sm:$0xff]  ;;  %152 = vst [vmem:[%s464_s4 + $0x48] sm:$0xff] %v134_v15  ;;  %v102_v30 = vld [vmem:[%s463_s3 + $0x68] sm:$0xff]  ;;  %v103_v35 = vld [vmem:[%s463_s3 + $0x70] sm:$0xff]  ;;  %v67_v37 = vmax.bf16 %v49_v33, %v31_v31 }
  0x16   :  { %v119_v27 = vmax.bf16 %v101_v23, %v83_v20  ;;  %153 = vst [vmem:[%s464_s4 + $0x50] sm:$0xff] %v135_v21  ;;  %v120_v32 = vmax.bf16 %v102_v30, %v84_v29  ;;  %154 = vst [vmem:[%s464_s4 + $0x58] sm:$0xff] %v136_v26  ;;  %v121_v38 = vmax.bf16 %v103_v35, %v85_v34  ;;  %v32_v39 = vld [vmem:[%s460_s0 + $0x78] sm:$0xff]  ;;  %v33_v45 = vld [vmem:[%s460_s0 + $0x80] sm:$0xff] }
  0x17   :  { %v50_v40 = vld [vmem:[%s461_s1 + $0x78] sm:$0xff]  ;;  %v51_v46 = vld [vmem:[%s461_s1 + $0x80] sm:$0xff]  ;;  %v34_v52 = vld [vmem:[%s460_s0 + $0x88] sm:$0xff] }
  0x18   :  { %v137_v36 = vmax.bf16 %v119_v27, %v65_v22  ;;  %v86_v41 = vld [vmem:[%s462_s2 + $0x78] sm:$0xff]  ;;  %v138_v42 = vmax.bf16 %v120_v32, %v66_v28  ;;  %v68_v43 = vmax.bf16 %v50_v40, %v32_v39  ;;  %v139_v47 = vmax.bf16 %v121_v38, %v67_v37  ;;  %v87_v50 = vld [vmem:[%s462_s2 + $0x80] sm:$0xff]  ;;  %v52_v54 = vld [vmem:[%s461_s1 + $0x88] sm:$0xff] }
  0x19   :  { %v104_v44 = vld [vmem:[%s463_s3 + $0x78] sm:$0xff]  ;;  %v69_v49 = vmax.bf16 %v51_v46, %v33_v45  ;;  %v105_v51 = vld [vmem:[%s463_s3 + $0x80] sm:$0xff]  ;;  %v88_v55 = vld [vmem:[%s462_s2 + $0x88] sm:$0xff]  ;;  %v70_v58 = vmax.bf16 %v52_v54, %v34_v52 }
  0x1a   :  { %155 = vst [vmem:[%s464_s4 + $0x60] sm:$0xff] %v137_v36  ;;  %v122_v48 = vmax.bf16 %v104_v44, %v86_v41  ;;  %156 = vst [vmem:[%s464_s4 + $0x68] sm:$0xff] %v138_v42  ;;  %v123_v53 = vmax.bf16 %v105_v51, %v87_v50  ;;  %v106_v56 = vld [vmem:[%s463_s3 + $0x88] sm:$0xff] }
  0x1b   :  { %157 = vst [vmem:[%s464_s4 + $0x70] sm:$0xff] %v139_v47  ;;  %v124_v59 = vmax.bf16 %v106_v56, %v88_v55 }
  0x1c   :  { %v140_v57 = vmax.bf16 %v122_v48, %v68_v43  ;;  %v141_v60 = vmax.bf16 %v123_v53, %v69_v49 }
  0x1d   :  { %v142_v61 = vmax.bf16 %v124_v59, %v70_v58 }
  0x1e   :  { %158 = vst [vmem:[%s464_s4 + $0x78] sm:$0xff] %v140_v57  ;;  %159 = vst [vmem:[%s464_s4 + $0x80] sm:$0xff] %v141_v60 }
  0x1f   :  { %160 = vst [vmem:[%s464_s4 + $0x88] sm:$0xff] %v142_v61 }

// kernel: _lambda_.19
= control target key start
LH: loop header
LB: loop body
LE: loop exit
PB: predicated region body
PF: predicated region fallthrough
CT: control target
= control target key end

     0   :  { %s2507_s0 = inlined_call_operand.vmem [shape: bf16[80,2304], index: 0, kind: input, shape index: {}]   ;;  %s2508_s1 = inlined_call_operand.vmem [shape: bf16[2304,512], index: 1, kind: input, shape index: {}]   ;;  %s2509_s2 = inlined_call_operand.vmem [shape: f32[1,512], index: 2, kind: input, shape index: {}]   ;;  %s2510_s3 = inlined_call_operand.vmem [shape: f32[1,512], index: 3, kind: input, shape index: {}]   ;;  %s2511_s4 = inlined_call_operand.vmem [shape: bf16[80,512], index: 4, kind: output, shape index: {}]  }
   0x1   :  { %2514 = sst [smem:[#allocation8_spill]] %s2507_s0 }
   0x2   :  { %2515 = sst [smem:[#allocation9_spill]] %s2508_s1 }
   0x3   :  { %s2040_s15 = smov 0   ;;  %s2042_s16 = smov 0  }
   0x4   :  { %s2044_s17 = smov 0   ;;  %s2046_s18 = smov 0  }
   0x5   :  { %s2048_s19 = smov 0   ;;  %s2050_s20 = smov 0  }
   0x6   :  { %s2052_s21 = smov 0   ;;  %s2054_s22 = smov 0  }
   0x7   :  { %s2056_s23 = smov 0   ;;  %s2058_s24 = smov 0  }
   0x8   :  { %s2060_s25 = smov 0  }
   0x9 LB: > { %s1595_s26 = sadd.s32 4294967295, %s2011_s25   ;;  %s26_s27 = sadd.s32 1, %s2003_s23  ;;  %s2011_s25 = sphi %s2060_s25, %s14_s25   ;;  %s2007_s24 = sphi %s2058_s24, %s2534_s24   ;;  %s2003_s23 = sphi %s2056_s23, %s2533_s23   ;;  %s1999_s22 = sphi %s2054_s22, %s2532_s22   ;;  %s1995_s21 = sphi %s2052_s21, %s2531_s21   ;;  %s1991_s20 = sphi %s2050_s20, %s2530_s20   ;;  %s1987_s19 = sphi %s2048_s19, %s2529_s19   ;;  %s1983_s18 = sphi %s2046_s18, %s2528_s18   ;;  %s1979_s17 = sphi %s2044_s17, %s2527_s17   ;;  %s1975_s16 = sphi %s2042_s16, %s2526_s16   ;;  %s1971_s15 = sphi %s2040_s15, %s2525_s15  }
   0xa   : > { %p27_p0 = scmp.ge.s32.totalorder %s26_s27, 6  ;;  %s29_s28 = sadd.s32 1, %s2007_s24 }
   0xb   : > { %s42_s29 = sadd.s32 1, %s1991_s20  ;;  %p49_p1 = scmp.ne.s32.totalorder %s1991_s20, %s1987_s19 }
   0xc   : > { %s2536_s27 = smov (%p27_p0, %s26_s27), 0  ;;  %s2538_s28 = smov (!%p27_p0, %s29_s28), %s2007_s24 }
   0xd   : > { %2516 = sst [smem:[#allocation6_spill]] %s2536_s27  ;;  %s38_s30 = ssub.s32 %s2003_s23, %s2536_s27 }
   0xe   : > { %p50_p2 = scmp.eq.s32.totalorder %s2011_s25, 0  ;;  %p31_p3 = scmp.ge.s32.totalorder %s2538_s28, 2 }
   0xf   : > { %p40_p4 = scmp.eq.s32.totalorder %s38_s30, 0  ;;  %s70_s6 = sadd.s32 1, %s1983_s18 }
  0x10   : > { %p2107_p5 = por %p50_p2, %p49_p1  ;;  %s2540_s28 = smov (%p31_p3, %s2538_s28), 0 }
  0x11   : > { %2518 = sst [smem:[#allocation7_spill]] %s2540_s28  ;;  %s66_s8 = ssub.s32 %s2007_s24, %s2540_s28 }
  0x12   : > { %s2115_s7 = scalar_select %p40_p4, %s1991_s20, %s42_s29  }
  0x13   : > { %p77_p6 = scmp.ne.s32.totalorder %s1983_s18, %s1979_s17  ;;  %s67_s9 = sor.u32 %s66_s8, %s38_s30 }
  0x14   : > { %p148_p7 = scmp.eq.s32.totalorder %s66_s8, 0  ;;  %p68_p8 = scmp.eq.s32.totalorder %s67_s9, 0 }
  0x15   : > { %p2121_p9 = por %p77_p6, %p50_p2  ;;  %s150_s11 = sadd.s32 1, %s1975_s16 }
  0x16   : > { %p160_p10 = scmp.ne.s32.totalorder %s1975_s16, %s1971_s15  ;;  %p161_p11 = scmp.eq.s32.totalorder %s1595_s26, 11 }
  0x17   : > { %s2129_s12 = scalar_select %p68_p8, %s1983_s18, %s70_s6  }
  0x18   : > { %s2132_s13 = scalar_select %p148_p7, %s1975_s16, %s150_s11  }
  0x19   : > { %p2134_p12 = por %p161_p11, %p160_p10  ;;  %p1598_p13 = scmp.ge.s32.totalorder %s2011_s25, 12 }
  0x1b   : > { %183 = sbr.rel (%p1598_p13) target bundleno = 88 (0x58), region = 16 }
  0x22   : > { %186 = sbr.rel (!%p2107_p5) target bundleno = 54 (0x36), region = 20  ;;  %s188_s29 = sand.u32 (%p2107_p5), 1, %s1991_s20  }
  0x23   : > { %s1705_s30 = smul.u32 (%p2107_p5), 12, %s2003_s23  ;;  %s2521_s0 = sld [smem:[#allocation8_spill]] (%p2107_p5) }
  0x24   : > { %s1738_s8 = smul.u32 (%p2107_p5), 120, %s188_s29 }
  0x26   : > { %s2151_s26 = scalar_lea.vmem (%p2107_p5), [#allocation3], %s1738_s8 }
  0x29   : > { %s2146_s11 = scalar_lea.vmem %s2521_s0, %s1705_s30 }
  0x2a   : > { %v211_v0 = vld [vmem:[%s2146_s11] sm:$0xff]  ;;  %v213_v1 = vld [vmem:[%s2146_s11 + $0x48] sm:$0xff]  ;;  %v215_v2 = vld [vmem:[%s2146_s11 + $0x90] sm:$0xff] }
  0x2b   : > { %212 = vst [vmem:[%s2151_s26] sm:$0xff] %v211_v0  ;;  %214 = vst [vmem:[%s2151_s26 + $0xc] sm:$0xff] %v213_v1  ;;  %v217_v3 = vld [vmem:[%s2146_s11 + $0xd8] sm:$0xff]  ;;  %v219_v4 = vld [vmem:[%s2146_s11 + $0x120] sm:$0xff] }
  0x2c   : > { %216 = vst [vmem:[%s2151_s26 + $0x18] sm:$0xff] %v215_v2  ;;  %v221_v5 = vld [vmem:[%s2146_s11 + $0x168] sm:$0xff]  ;;  %218 = vst [vmem:[%s2151_s26 + $0x24] sm:$0xff] %v217_v3  ;;  %v223_v6 = vld [vmem:[%s2146_s11 + $0x1b0] sm:$0xff] }
  0x2d   : > { %220 = vst [vmem:[%s2151_s26 + $0x30] sm:$0xff] %v219_v4  ;;  %222 = vst [vmem:[%s2151_s26 + $0x3c] sm:$0xff] %v221_v5  ;;  %v225_v7 = vld [vmem:[%s2146_s11 + $0x1f8] sm:$0xff]  ;;  %v227_v8 = vld [vmem:[%s2146_s11 + $0x240] sm:$0xff] }
  0x2e   : > { %224 = vst [vmem:[%s2151_s26 + $0x48] sm:$0xff] %v223_v6  ;;  %226 = vst [vmem:[%s2151_s26 + $0x54] sm:$0xff] %v225_v7  ;;  %v229_v9 = vld [vmem:[%s2146_s11 + $0x288] sm:$0xff]  ;;  %v1602_v11 = vld [vmem:[%s2146_s11 + $0x50] sm:$0xf] }
  0x2f   : > { %228 = vst [vmem:[%s2151_s26 + $0x60] sm:$0xff] %v227_v8  ;;  %v1600_v10 = vld [vmem:[%s2146_s11 + $0x8] sm:$0xf]  ;;  %230 = vst [vmem:[%s2151_s26 + $0x6c] sm:$0xff] %v229_v9  ;;  %v1604_v12 = vld [vmem:[%s2146_s11 + $0x98] sm:$0xf] }
  0x30   : > { %1601 = vst [vmem:[%s2151_s26 + $0x8] sm:$0xf] %v1600_v10  ;;  %1603 = vst [vmem:[%s2151_s26 + $0x14] sm:$0xf] %v1602_v11  ;;  %v1606_v13 = vld [vmem:[%s2146_s11 + $0xe0] sm:$0xf] }
  0x31   : > { %v1608_v14 = vld [vmem:[%s2146_s11 + $0x128] sm:$0xf]  ;;  %1605 = vst [vmem:[%s2151_s26 + $0x20] sm:$0xf] %v1604_v12  ;;  %1607 = vst [vmem:[%s2151_s26 + $0x2c] sm:$0xf] %v1606_v13 }
  0x32   : > { %1609 = vst [vmem:[%s2151_s26 + $0x38] sm:$0xf] %v1608_v14  ;;  %v1610_v15 = vld [vmem:[%s2146_s11 + $0x170] sm:$0xf]  ;;  %v1612_v16 = vld [vmem:[%s2146_s11 + $0x1b8] sm:$0xf] }
  0x33   : > { %v1614_v17 = vld [vmem:[%s2146_s11 + $0x200] sm:$0xf]  ;;  %1611 = vst [vmem:[%s2151_s26 + $0x44] sm:$0xf] %v1610_v15  ;;  %1613 = vst [vmem:[%s2151_s26 + $0x50] sm:$0xf] %v1612_v16 }
  0x34   : > { %1615 = vst [vmem:[%s2151_s26 + $0x5c] sm:$0xf] %v1614_v17  ;;  %v1616_v18 = vld [vmem:[%s2146_s11 + $0x248] sm:$0xf]  ;;  %v1618_v19 = vld [vmem:[%s2146_s11 + $0x290] sm:$0xf] }
  0x35   : > { %1617 = vst [vmem:[%s2151_s26 + $0x68] sm:$0xf] %v1616_v18  ;;  %1619 = vst [vmem:[%s2151_s26 + $0x74] sm:$0xf] %v1618_v19 }
  0x36 PF: > { %263 = sbr.rel (!%p2121_p9) target bundleno = 88 (0x58), region = 46  ;;  %s265_s5 = sand.u32 (%p2121_p9), 1, %s1983_s18  }
  0x37   : > { %s1739_s29 = smul.u32 (%p2121_p9), 384, %s265_s5  ;;  %s1620_s30 = sshll.u32 (%p2121_p9), %s2007_s24, 1 }
  0x38   : > { %s1706_s8 = smul.u32 (%p2121_p9), 192, %s2003_s23  ;;  %s2522_s1 = sld [smem:[#allocation9_spill]] (%p2121_p9) }
  0x39   : > { %s2203_s10 = scalar_lea.vmem (%p2121_p9), [#allocation4], %s1739_s29 }
  0x3a   : > { %s271_s6 = sadd.s32 (%p2121_p9), %s1706_s8, %s1620_s30 }
  0x3b   : > { %s1622_s9 = sshll.u32 (%p2121_p9), %s271_s6, 2 }
  0x3e   : > { %s2198_s27 = scalar_lea.vmem %s2522_s1, %s1622_s9 }
  0x3f   : > { %v395_v20 = vld [vmem:[%s2198_s27] sm:$0xff]  ;;  %v397_v21 = vld [vmem:[%s2198_s27 + $0x10] sm:$0xff] }
  0x40   : > { %v399_v22 = vld [vmem:[%s2198_s27 + $0x20] sm:$0xff]  ;;  %396 = vst [vmem:[%s2203_s10] sm:$0xff] %v395_v20  ;;  %398 = vst [vmem:[%s2203_s10 + $0x8] sm:$0xff] %v397_v21  ;;  %v401_v23 = vld [vmem:[%s2198_s27 + $0x30] sm:$0xff] }
  0x41   : > { %400 = vst [vmem:[%s2203_s10 + $0x10] sm:$0xff] %v399_v22  ;;  %v403_v24 = vld [vmem:[%s2198_s27 + $0x40] sm:$0xff]  ;;  %v405_v25 = vld [vmem:[%s2198_s27 + $0x50] sm:$0xff]  ;;  %402 = vst [vmem:[%s2203_s10 + $0x18] sm:$0xff] %v401_v23 }
  0x42   : > { %404 = vst [vmem:[%s2203_s10 + $0x20] sm:$0xff] %v403_v24  ;;  %406 = vst [vmem:[%s2203_s10 + $0x28] sm:$0xff] %v405_v25  ;;  %v407_v26 = vld [vmem:[%s2198_s27 + $0x60] sm:$0xff]  ;;  %v409_v27 = vld [vmem:[%s2198_s27 + $0x70] sm:$0xff] }
  0x43   : > { %v411_v28 = vld [vmem:[%s2198_s27 + $0x80] sm:$0xff]  ;;  %408 = vst [vmem:[%s2203_s10 + $0x30] sm:$0xff] %v407_v26  ;;  %410 = vst [vmem:[%s2203_s10 + $0x38] sm:$0xff] %v409_v27  ;;  %v413_v29 = vld [vmem:[%s2198_s27 + $0x90] sm:$0xff] }
  0x44   : > { %412 = vst [vmem:[%s2203_s10 + $0x40] sm:$0xff] %v411_v28  ;;  %v415_v30 = vld [vmem:[%s2198_s27 + $0xa0] sm:$0xff]  ;;  %v417_v31 = vld [vmem:[%s2198_s27 + $0xb0] sm:$0xff]  ;;  %414 = vst [vmem:[%s2203_s10 + $0x48] sm:$0xff] %v413_v29 }
  0x45   : > { %416 = vst [vmem:[%s2203_s10 + $0x50] sm:$0xff] %v415_v30  ;;  %418 = vst [vmem:[%s2203_s10 + $0x58] sm:$0xff] %v417_v31  ;;  %v419_v32 = vld [vmem:[%s2198_s27 + $0xc0] sm:$0xff]  ;;  %v421_v33 = vld [vmem:[%s2198_s27 + $0xd0] sm:$0xff] }
  0x46   : > { %v423_v34 = vld [vmem:[%s2198_s27 + $0xe0] sm:$0xff]  ;;  %420 = vst [vmem:[%s2203_s10 + $0x60] sm:$0xff] %v419_v32  ;;  %422 = vst [vmem:[%s2203_s10 + $0x68] sm:$0xff] %v421_v33  ;;  %v425_v35 = vld [vmem:[%s2198_s27 + $0xf0] sm:$0xff] }
  0x47   : > { %424 = vst [vmem:[%s2203_s10 + $0x70] sm:$0xff] %v423_v34  ;;  %v427_v36 = vld [vmem:[%s2198_s27 + $0x100] sm:$0xff]  ;;  %v429_v37 = vld [vmem:[%s2198_s27 + $0x110] sm:$0xff]  ;;  %426 = vst [vmem:[%s2203_s10 + $0x78] sm:$0xff] %v425_v35 }
  0x48   : > { %428 = vst [vmem:[%s2203_s10 + $0x80] sm:$0xff] %v427_v36  ;;  %430 = vst [vmem:[%s2203_s10 + $0x88] sm:$0xff] %v429_v37  ;;  %v431_v38 = vld [vmem:[%s2198_s27 + $0x120] sm:$0xff]  ;;  %v433_v39 = vld [vmem:[%s2198_s27 + $0x130] sm:$0xff] }
  0x49   : > { %v435_v40 = vld [vmem:[%s2198_s27 + $0x140] sm:$0xff]  ;;  %432 = vst [vmem:[%s2203_s10 + $0x90] sm:$0xff] %v431_v38  ;;  %434 = vst [vmem:[%s2203_s10 + $0x98] sm:$0xff] %v433_v39  ;;  %v437_v41 = vld [vmem:[%s2198_s27 + $0x150] sm:$0xff] }
  0x4a   : > { %436 = vst [vmem:[%s2203_s10 + $0xa0] sm:$0xff] %v435_v40  ;;  %v439_v42 = vld [vmem:[%s2198_s27 + $0x160] sm:$0xff]  ;;  %v441_v43 = vld [vmem:[%s2198_s27 + $0x170] sm:$0xff]  ;;  %438 = vst [vmem:[%s2203_s10 + $0xa8] sm:$0xff] %v437_v41 }
  0x4b   : > { %440 = vst [vmem:[%s2203_s10 + $0xb0] sm:$0xff] %v439_v42  ;;  %442 = vst [vmem:[%s2203_s10 + $0xb8] sm:$0xff] %v441_v43  ;;  %v443_v44 = vld [vmem:[%s2198_s27 + $0x180] sm:$0xff]  ;;  %v445_v45 = vld [vmem:[%s2198_s27 + $0x190] sm:$0xff] }
  0x4c   : > { %v447_v46 = vld [vmem:[%s2198_s27 + $0x1a0] sm:$0xff]  ;;  %444 = vst [vmem:[%s2203_s10 + $0xc0] sm:$0xff] %v443_v44  ;;  %446 = vst [vmem:[%s2203_s10 + $0xc8] sm:$0xff] %v445_v45  ;;  %v449_v47 = vld [vmem:[%s2198_s27 + $0x1b0] sm:$0xff] }
  0x4d   : > { %448 = vst [vmem:[%s2203_s10 + $0xd0] sm:$0xff] %v447_v46  ;;  %v451_v48 = vld [vmem:[%s2198_s27 + $0x1c0] sm:$0xff]  ;;  %v453_v49 = vld [vmem:[%s2198_s27 + $0x1d0] sm:$0xff]  ;;  %450 = vst [vmem:[%s2203_s10 + $0xd8] sm:$0xff] %v449_v47 }
  0x4e   : > { %452 = vst [vmem:[%s2203_s10 + $0xe0] sm:$0xff] %v451_v48  ;;  %454 = vst [vmem:[%s2203_s10 + $0xe8] sm:$0xff] %v453_v49  ;;  %v455_v50 = vld [vmem:[%s2198_s27 + $0x1e0] sm:$0xff]  ;;  %v457_v51 = vld [vmem:[%s2198_s27 + $0x1f0] sm:$0xff] }
  0x4f   : > { %v459_v52 = vld [vmem:[%s2198_s27 + $0x200] sm:$0xff]  ;;  %456 = vst [vmem:[%s2203_s10 + $0xf0] sm:$0xff] %v455_v50  ;;  %458 = vst [vmem:[%s2203_s10 + $0xf8] sm:$0xff] %v457_v51  ;;  %v461_v53 = vld [vmem:[%s2198_s27 + $0x210] sm:$0xff] }
  0x50   : > { %460 = vst [vmem:[%s2203_s10 + $0x100] sm:$0xff] %v459_v52  ;;  %v463_v54 = vld [vmem:[%s2198_s27 + $0x220] sm:$0xff]  ;;  %v465_v55 = vld [vmem:[%s2198_s27 + $0x230] sm:$0xff]  ;;  %462 = vst [vmem:[%s2203_s10 + $0x108] sm:$0xff] %v461_v53 }
  0x51   : > { %464 = vst [vmem:[%s2203_s10 + $0x110] sm:$0xff] %v463_v54  ;;  %466 = vst [vmem:[%s2203_s10 + $0x118] sm:$0xff] %v465_v55  ;;  %v467_v56 = vld [vmem:[%s2198_s27 + $0x240] sm:$0xff]  ;;  %v469_v57 = vld [vmem:[%s2198_s27 + $0x250] sm:$0xff] }
  0x52   : > { %v471_v58 = vld [vmem:[%s2198_s27 + $0x260] sm:$0xff]  ;;  %468 = vst [vmem:[%s2203_s10 + $0x120] sm:$0xff] %v467_v56  ;;  %470 = vst [vmem:[%s2203_s10 + $0x128] sm:$0xff] %v469_v57  ;;  %v473_v59 = vld [vmem:[%s2198_s27 + $0x270] sm:$0xff] }
  0x53   : > { %472 = vst [vmem:[%s2203_s10 + $0x130] sm:$0xff] %v471_v58  ;;  %v475_v60 = vld [vmem:[%s2198_s27 + $0x280] sm:$0xff]  ;;  %v477_v61 = vld [vmem:[%s2198_s27 + $0x290] sm:$0xff]  ;;  %474 = vst [vmem:[%s2203_s10 + $0x138] sm:$0xff] %v473_v59 }
  0x54   : > { %476 = vst [vmem:[%s2203_s10 + $0x140] sm:$0xff] %v475_v60  ;;  %478 = vst [vmem:[%s2203_s10 + $0x148] sm:$0xff] %v477_v61  ;;  %v479_v62 = vld [vmem:[%s2198_s27 + $0x2a0] sm:$0xff]  ;;  %v481_v63 = vld [vmem:[%s2198_s27 + $0x2b0] sm:$0xff] }
  0x55   : > { %v483_v0 = vld [vmem:[%s2198_s27 + $0x2c0] sm:$0xff]  ;;  %480 = vst [vmem:[%s2203_s10 + $0x150] sm:$0xff] %v479_v62  ;;  %482 = vst [vmem:[%s2203_s10 + $0x158] sm:$0xff] %v481_v63  ;;  %v485_v1 = vld [vmem:[%s2198_s27 + $0x2d0] sm:$0xff] }
  0x56   : > { %484 = vst [vmem:[%s2203_s10 + $0x160] sm:$0xff] %v483_v0  ;;  %v487_v2 = vld [vmem:[%s2198_s27 + $0x2e0] sm:$0xff]  ;;  %v489_v3 = vld [vmem:[%s2198_s27 + $0x2f0] sm:$0xff]  ;;  %486 = vst [vmem:[%s2203_s10 + $0x168] sm:$0xff] %v485_v1 }
  0x57   : > { %488 = vst [vmem:[%s2203_s10 + $0x170] sm:$0xff] %v487_v2  ;;  %490 = vst [vmem:[%s2203_s10 + $0x178] sm:$0xff] %v489_v3 }
  0x58 PF: > { %p1623_p0 = scmp.ge.s32.totalorder %s2011_s25, 1  ;;  %p511_p1 = scmp.lt.s32.totalorder %s2011_s25, 13 }
  0x5a   : > { %p512_p2 = pnand %p1623_p0, %p511_p1 }
  0x5b   : > { %s518_s0 = sand.u32 (!%p512_p2), 1, %s1987_s19   ;;  %s525_s28 = sand.u32 (!%p512_p2), 1, %s1979_s17  }
  0x5c   : > { %515 = sbr.rel (%p512_p2) target bundleno = 453 (0x1c5), region = 92  ;;  %s558_s26 = sand.u32 (!%p512_p2), 1, %s1971_s15  }
  0x5d   : > { %s1740_s11 = smul.u32 (!%p512_p2), 120, %s518_s0  ;;  %s1624_s5 = sshll.u32 (!%p512_p2), %s1999_s22, 1 }
  0x5e   : > { %s1741_s27 = smul.u32 (!%p512_p2), 384, %s525_s28  ;;  %p566_p3 = scmp.lt.s32.totalorder (!%p512_p2), %s1624_s5, 3 }
  0x5f   : > { %s1742_s29 = smul.u32 (!%p512_p2), 80, %s558_s26  ;;  %s2314_s19 = scalar_lea.vmem (!%p512_p2), [#allocation3], %s1740_s11 }
  0x60   : > { %s2316_s17 = scalar_lea.vmem (!%p512_p2), [#allocation4], %s1741_s27  ;;  %p1626_p4 = scmp.ne.s32.totalorder (!%p512_p2), %s1995_s21, 0 }
  0x61   : > { %s2318_s15 = scalar_lea.vmem (!%p512_p2), [#allocation5], %s1742_s29 }
  0x63   : > { %s2542_s5 = smov (!%p566_p3, %s1624_s5), 3  ;;  %581 = sbr.rel (%p1626_p4) target bundleno = 111 (0x6f), region = 104 }
  0x64   : > { %s568_s6 = scalar_lea.vmem %s2509_s2, %s2542_s5  ;;  %s573_s1 = scalar_lea.vmem %s2510_s3, %s2542_s5  ;;  %v2013_v4 = vmov (!%p1626_p4), 0.0  }
  0x65   : > { %582 = vst [vmem:[#allocation2] sm:$0xff] (!%p1626_p4), %v2013_v4  ;;  %583 = vst [vmem:[#allocation2 + $0x8] sm:$0xff] (!%p1626_p4), %v2013_v4 }
  0x66   : > { %584 = vst [vmem:[#allocation2 + $0x10] sm:$0xff] (!%p1626_p4), %v2013_v4  ;;  %585 = vst [vmem:[#allocation2 + $0x18] sm:$0xff] (!%p1626_p4), %v2013_v4 }
  0x67   : > { %586 = vst [vmem:[#allocation2 + $0x20] sm:$0xff] (!%p1626_p4), %v2013_v4  ;;  %587 = vst [vmem:[#allocation2 + $0x28] sm:$0xff] (!%p1626_p4), %v2013_v4 }
  0x68   : > { %588 = vst [vmem:[#allocation2 + $0x30] sm:$0xff] (!%p1626_p4), %v2013_v4  ;;  %589 = vst [vmem:[#allocation2 + $0x38] sm:$0xff] (!%p1626_p4), %v2013_v4 }
  0x69   : > { %590 = vst [vmem:[#allocation2 + $0x40] sm:$0xff] (!%p1626_p4), %v2013_v4  ;;  %591 = vst [vmem:[#allocation2 + $0x48] sm:$0xff] (!%p1626_p4), %v2013_v4 }
  0x6a   : > { %592 = vst [vmem:[#allocation2 + $0x50] sm:$0xff] %v2013_v4  ;;  %593 = vst [vmem:[#allocation2 + $0x58] sm:$0xff] %v2013_v4 }
  0x6b   : > { %594 = vst [vmem:[#allocation2 + $0x60] sm:$0xff] %v2013_v4  ;;  %595 = vst [vmem:[#allocation2 + $0x68] sm:$0xff] %v2013_v4 }
  0x6c   : > { %596 = vst [vmem:[#allocation2 + $0x70] sm:$0xff] %v2013_v4  ;;  %597 = vst [vmem:[#allocation2 + $0x78] sm:$0xff] %v2013_v4 }
  0x6d   : > { %598 = vst [vmem:[#allocation2 + $0x80] sm:$0xff] %v2013_v4  ;;  %599 = vst [vmem:[#allocation2 + $0x88] sm:$0xff] %v2013_v4 }
  0x6e   : > { %600 = vst [vmem:[#allocation2 + $0x90] sm:$0xff] %v2013_v4  ;;  %601 = vst [vmem:[#allocation2 + $0x98] sm:$0xff] %v2013_v4 }
  0x6f PF: > { %v1833_v5 = vld [vmem:[%s2316_s17 + $0x4] ss:$8 sps:$4 sm:$0xff]   ;;  %v1835_v6 = vld [vmem:[%s2316_s17] ss:$8 sps:$4 sm:$0xff]   ;;  %v2014_v7 = vmov 0   ;;  %p1690_p5 = scmp.ne.s32.totalorder %s1995_s21, 5 }
  0x70   : > { %1125 = vmatprep.mubr.bf16.mxu0 %v2014_v7  ;;  %1010 = vmatprep.subr.bf16.mxu1 %v1833_v5  ;;  %v1836_v8 = vld [vmem:[%s2316_s17 + $0x14] ss:$8 sps:$4 sm:$0xff]   ;;  %v1838_v9 = vld [vmem:[%s2316_s17 + $0x10] ss:$8 sps:$4 sm:$0xff]   ;;  %v1839_v10 = vld [vmem:[%s2316_s17 + $0x24] ss:$8 sps:$4 sm:$0xff]  }
  0x71   : > { %1011 = vmatpush1.bf16.msra.mxu1 %v1835_v6  ;;  %v1841_v11 = vld [vmem:[%s2316_s17 + $0x20] ss:$8 sps:$4 sm:$0xff]   ;;  %v1842_v12 = vld [vmem:[%s2316_s17 + $0x34] ss:$8 sps:$4 sm:$0xff]   ;;  %v1844_v13 = vld [vmem:[%s2316_s17 + $0x30] ss:$8 sps:$4 sm:$0xff]  }
  0x72   : > { %1012 = vmatprep.subr.bf16.mxu1 %v1836_v8  ;;  %v1857_v14 = vld [vmem:[%s2316_s17 + $0x104] ss:$8 sps:$4 sm:$0xff]   ;;  %v1859_v15 = vld [vmem:[%s2316_s17 + $0x100] ss:$8 sps:$4 sm:$0xff]   ;;  %v1863_v17 = vld [vmem:[%s2316_s17 + $0x114] ss:$8 sps:$4 sm:$0xff]  }
  0x73   : > { %v1845_v16 = vld [vmem:[%s2316_s17 + $0x44] ss:$8 sps:$4 sm:$0xff]   ;;  %1093 = vmatprep.subr.bf16.mxu0 %v1857_v14  ;;  %v1865_v18 = vld [vmem:[%s2316_s17 + $0x110] ss:$8 sps:$4 sm:$0xff]   ;;  %v1847_v19 = vld [vmem:[%s2316_s17 + $0x40] ss:$8 sps:$4 sm:$0xff]  }
  0x74   : > { %1094 = vmatpush1.bf16.msra.mxu0 %v1859_v15  ;;  %v1848_v20 = vld [vmem:[%s2316_s17 + $0x54] ss:$8 sps:$4 sm:$0xff]   ;;  %v1869_v21 = vld [vmem:[%s2316_s17 + $0x124] ss:$8 sps:$4 sm:$0xff]   ;;  %v1871_v22 = vld [vmem:[%s2316_s17 + $0x120] ss:$8 sps:$4 sm:$0xff]  }
  0x75   : > { %1013 = vmatpush1.bf16.msra.mxu1 %v1838_v9  ;;  %1095 = vmatprep.subr.bf16.mxu0 %v1863_v17  ;;  %v1850_v23 = vld [vmem:[%s2316_s17 + $0x50] ss:$8 sps:$4 sm:$0xff]   ;;  %v1875_v24 = vld [vmem:[%s2316_s17 + $0x134] ss:$8 sps:$4 sm:$0xff]   ;;  %v1851_v25 = vld [vmem:[%s2316_s17 + $0x64] ss:$8 sps:$4 sm:$0xff]  }
  0x76   : > { %1014 = vmatprep.subr.bf16.mxu1 %v1839_v10  ;;  %v1877_v26 = vld [vmem:[%s2316_s17 + $0x130] ss:$8 sps:$4 sm:$0xff]   ;;  %v1853_v27 = vld [vmem:[%s2316_s17 + $0x60] ss:$8 sps:$4 sm:$0xff]   ;;  %v1881_v28 = vld [vmem:[%s2316_s17 + $0x144] ss:$8 sps:$4 sm:$0xff]  }
  0x77   : > { %v1854_v29 = vld [vmem:[%s2316_s17 + $0x74] ss:$8 sps:$4 sm:$0xff]   ;;  %v1883_v30 = vld [vmem:[%s2316_s17 + $0x140] ss:$8 sps:$4 sm:$0xff]   ;;  %v1856_v31 = vld [vmem:[%s2316_s17 + $0x70] ss:$8 sps:$4 sm:$0xff]  }
  0x78   : > { %1096 = vmatpush1.bf16.msra.mxu0 %v1865_v18  ;;  %v1887_v32 = vld [vmem:[%s2316_s17 + $0x154] ss:$8 sps:$4 sm:$0xff]   ;;  %v1860_v33 = vld [vmem:[%s2316_s17 + $0x84] ss:$8 sps:$4 sm:$0xff]   ;;  %v1889_v34 = vld [vmem:[%s2316_s17 + $0x150] ss:$8 sps:$4 sm:$0xff]  }
  0x79   : > { %1015 = vmatpush1.bf16.msra.mxu1 %v1841_v11  ;;  %1097 = vmatprep.subr.bf16.mxu0 %v1869_v21  ;;  %v1862_v35 = vld [vmem:[%s2316_s17 + $0x80] ss:$8 sps:$4 sm:$0xff]   ;;  %v1893_v36 = vld [vmem:[%s2316_s17 + $0x164] ss:$8 sps:$4 sm:$0xff]   ;;  %v1866_v37 = vld [vmem:[%s2316_s17 + $0x94] ss:$8 sps:$4 sm:$0xff]  }
  0x7a   : > { %1016 = vmatprep.subr.bf16.mxu1 %v1842_v12  ;;  %v1868_v38 = vld [vmem:[%s2316_s17 + $0x90] ss:$8 sps:$4 sm:$0xff]   ;;  %v1895_v39 = vld [vmem:[%s2316_s17 + $0x160] ss:$8 sps:$4 sm:$0xff]   ;;  %v1899_v41 = vld [vmem:[%s2316_s17 + $0x174] ss:$8 sps:$4 sm:$0xff]  }
  0x7b   : > { %v1908_v40 = vld [vmem:[%s2314_s19 + $0x4] ss:$12 sps:$4 sm:$0xff]   ;;  %v1905_v46 = vld [vmem:[%s2314_s19 + $0x8] ss:$12 sps:$4 sm:$0xff]   ;;  %v1909_v51 = vld [vmem:[%s2314_s19 + $0x20] ss:$12 sps:$4 sm:$0xff]  }
  0x7c   : > { %1098 = vmatpush1.bf16.msra.mxu0 %v1871_v22  ;;  %v1872_v42 = vld [vmem:[%s2316_s17 + $0xa4] ss:$8 sps:$4 sm:$0xff]   ;;  %1042 = vmatprep.mubr.bf16.mxu1 %v1908_v40  ;;  %v1901_v43 = vld [vmem:[%s2316_s17 + $0x170] ss:$8 sps:$4 sm:$0xff]   ;;  %v1874_v44 = vld [vmem:[%s2316_s17 + $0xa0] ss:$8 sps:$4 sm:$0xff]  }
  0x7d   : > { %1017 = vmatpush1.bf16.msra.mxu1 %v1844_v13  ;;  %1099 = vmatprep.subr.bf16.mxu0 %v1875_v24  ;;  %v1878_v45 = vld [vmem:[%s2316_s17 + $0xb4] ss:$8 sps:$4 sm:$0xff]   ;;  %v1880_v47 = vld [vmem:[%s2316_s17 + $0xb0] ss:$8 sps:$4 sm:$0xff]   ;;  %v1884_v48 = vld [vmem:[%s2316_s17 + $0xc4] ss:$8 sps:$4 sm:$0xff]  }
  0x7e   : > { %1018 = vmatprep.subr.bf16.mxu1 %v1845_v16  ;;  %v1886_v49 = vld [vmem:[%s2316_s17 + $0xc0] ss:$8 sps:$4 sm:$0xff]   ;;  %v1890_v50 = vld [vmem:[%s2316_s17 + $0xd4] ss:$8 sps:$4 sm:$0xff]   ;;  %v1892_v52 = vld [vmem:[%s2316_s17 + $0xd0] ss:$8 sps:$4 sm:$0xff]  }
  0x7f   : > { %v1896_v53 = vld [vmem:[%s2316_s17 + $0xe4] ss:$8 sps:$4 sm:$0xff]   ;;  %v1898_v54 = vld [vmem:[%s2316_s17 + $0xe0] ss:$8 sps:$4 sm:$0xff]   ;;  %v1902_v55 = vld [vmem:[%s2316_s17 + $0xf4] ss:$8 sps:$4 sm:$0xff]  }
  0x80   : > { %1100 = vmatpush1.bf16.msra.mxu0 %v1877_v26  ;;  %v1913_v56 = vld [vmem:[%s2314_s19 + $0x38] ss:$12 sps:$4 sm:$0xff]   ;;  %v1904_v57 = vld [vmem:[%s2316_s17 + $0xf0] ss:$8 sps:$4 sm:$0xff]  }
  0x81   : > { %1019 = vmatpush1.bf16.msra.mxu1 %v1847_v19  ;;  %1101 = vmatprep.subr.bf16.mxu0 %v1881_v28  ;;  %v1906_v58 = vld [vmem:[%s2314_s19] ss:$12 sps:$4 sm:$0xff]   ;;  %v1910_v59 = vld [vmem:[%s2314_s19 + $0x1c] ss:$12 sps:$4 sm:$0xff]   ;;  %v1912_v61 = vld [vmem:[%s2314_s19 + $0x18] ss:$12 sps:$4 sm:$0xff]  }
  0x82   : > { %1020 = vmatprep.subr.bf16.mxu1 %v1848_v20  ;;  %v1917_v60 = vld [vmem:[%s2314_s19 + $0x50] ss:$12 sps:$4 sm:$0xff]   ;;  %v1914_v62 = vld [vmem:[%s2314_s19 + $0x34] ss:$12 sps:$4 sm:$0xff]   ;;  %v1918_v1 = vld [vmem:[%s2314_s19 + $0x4c] ss:$12 sps:$4 sm:$0xff]  }
  0x83   : > { %v1921_v63 = vld [vmem:[%s2314_s19 + $0x68] ss:$12 sps:$4 sm:$0xff]   ;;  %v1916_v0 = vld [vmem:[%s2314_s19 + $0x30] ss:$12 sps:$4 sm:$0xff]   ;;  %v1924_v4 = vld [vmem:[%s2314_s19 + $0x60] ss:$12 sps:$4 sm:$0xff]  }
  0x84   : > { %1102 = vmatpush1.bf16.msra.mxu0 %v1883_v30  ;;  %v1920_v2 = vld [vmem:[%s2314_s19 + $0x48] ss:$12 sps:$4 sm:$0xff]   ;;  %v1922_v3 = vld [vmem:[%s2314_s19 + $0x64] ss:$12 sps:$4 sm:$0xff]  }
  0x85   : > { %1021 = vmatpush1.bf16.msra.mxu1 %v1850_v23  ;;  %1103 = vmatprep.subr.bf16.mxu0 %v1887_v32  ;;  %v602_v17 = vld [vmem:[#allocation2] sm:$0xff]  ;;  %v603_v20 = vld [vmem:[#allocation2 + $0x8] sm:$0xff]  ;;  %v604_v23 = vld [vmem:[#allocation2 + $0x10] sm:$0xff] }
  0x86   : > { %1022 = vmatprep.subr.bf16.mxu1 %v1851_v25  ;;  %v607_v40 = vld [vmem:[#allocation2 + $0x28] sm:$0xff] }
  0x88   : > { %1104 = vmatpush1.bf16.msra.mxu0 %v1889_v34 }
  0x89   : > { %1023 = vmatpush1.bf16.msra.mxu1 %v1853_v27  ;;  %1105 = vmatprep.subr.bf16.mxu0 %v1893_v36  ;;  %v605_v27 = vld [vmem:[#allocation2 + $0x18] sm:$0xff] }
  0x8a   : > { %1024 = vmatprep.subr.bf16.mxu1 %v1854_v29 }
  0x8c   : > { %1106 = vmatpush1.bf16.msra.mxu0 %v1895_v39 }
  0x8d   : > { %1025 = vmatpush1.bf16.msra.mxu1 %v1856_v31  ;;  %1107 = vmatprep.subr.bf16.mxu0 %v1899_v41 }
  0x8e   : > { %1026 = vmatprep.subr.bf16.mxu1 %v1860_v33 }
  0x90   : > { %1108 = vmatpush1.bf16.msra.mxu0 %v1901_v43  ;;  %v608_v43 = vld [vmem:[#allocation2 + $0x30] sm:$0xff] }
  0x91   : > { %1027 = vmatpush1.bf16.msra.mxu1 %v1862_v35 }
  0x92   : > { %1028 = vmatprep.subr.bf16.mxu1 %v1866_v37  ;;  %v606_v37 = vld [vmem:[#allocation2 + $0x20] sm:$0xff] }
  0x93   : > { %1126 = vmatmul.mubr.bf16.vlgmr.msra.gmra.mrb[0].mxu0 %v1905_v46 }
  0x94   : > { %1135 = vmatprep.mubr.bf16.mxu0 %v2014_v7 }
  0x95   : > { %1029 = vmatpush1.bf16.msra.mxu1 %v1868_v38 }
  0x96   : > { %1030 = vmatprep.subr.bf16.mxu1 %v1872_v42 }
  0x99   : > { %1031 = vmatpush1.bf16.msra.mxu1 %v1874_v44 }
  0x9a   : > { %1032 = vmatprep.subr.bf16.mxu1 %v1878_v45 }
  0x9b   : > { %1136 = vmatmul.mubr.bf16.gmra.mrb[4].mxu0 %v1909_v51 }
  0x9c   : > { %1145 = vmatprep.mubr.bf16.mxu0 %v2014_v7 }
  0x9d   : > { %1033 = vmatpush1.bf16.msra.mxu1 %v1880_v47  ;;  %v609_v47 = vld [vmem:[#allocation2 + $0x38] sm:$0xff] }
  0x9e   : > { %1034 = vmatprep.subr.bf16.mxu1 %v1884_v48 }
  0xa1   : > { %1035 = vmatpush1.bf16.msra.mxu1 %v1886_v49 }
  0xa2   : > { %1036 = vmatprep.subr.bf16.mxu1 %v1890_v50 }
  0xa3   : > { %1146 = vmatmul.mubr.bf16.gmra.mrb[8].mxu0 %v1913_v56 }
  0xa4   : > { %1155 = vmatprep.mubr.bf16.mxu0 %v2014_v7 }
  0xa5   : > { %1037 = vmatpush1.bf16.msra.mxu1 %v1892_v52 }
  0xa6   : > { %1038 = vmatprep.subr.bf16.mxu1 %v1896_v53 }
  0xa9   : > { %1039 = vmatpush1.bf16.msra.mxu1 %v1898_v54 }
  0xaa   : > { %1040 = vmatprep.subr.bf16.mxu1 %v1902_v55 }
  0xab   : > { %1156 = vmatmul.mubr.bf16.gmra.mrb[12].mxu0 %v1917_v60  ;;  %v611_v60 = vld [vmem:[#allocation2 + $0x48] sm:$0xff] }
  0xac   : > { %1165 = vmatprep.mubr.bf16.mxu0 %v2014_v7 }
  0xad   : > { %1041 = vmatpush1.bf16.msra.mxu1 %v1904_v57  ;;  %v610_v57 = vld [vmem:[#allocation2 + $0x40] sm:$0xff] }
  0xb0   : > { %1043 = vmatmul.mubr.bf16.vlgmr.msra.gmra.mrb[0].mxu1 %v1906_v58 }
  0xb1   : > { %1052 = vmatprep.mubr.bf16.mxu1 %v1910_v59 }
  0xb3   : > { %1166 = vmatmul.mubr.bf16.gmra.mrb[16].mxu0 %v1921_v63  ;;  %v612_v63 = vld [vmem:[#allocation2 + $0x50] sm:$0xff] }
  0xb8   : > { %1053 = vmatmul.mubr.bf16.gmra.mrb[4].mxu1 %v1912_v61 }
  0xb9   : > { %1062 = vmatprep.mubr.bf16.mxu1 %v1914_v62 }
  0xc0   : > { %1063 = vmatmul.mubr.bf16.gmra.mrb[8].mxu1 %v1916_v0 }
  0xc1   : > { %1072 = vmatprep.mubr.bf16.mxu1 %v1918_v1 }
  0xc8   : > { %1073 = vmatmul.mubr.bf16.gmra.mrb[12].mxu1 %v1920_v2 }
  0xc9   : > { %1082 = vmatprep.mubr.bf16.mxu1 %v1922_v3  ;;  %v613_v3 = vld [vmem:[#allocation2 + $0x58] sm:$0xff] }
  0xd0   : > { %1083 = vmatmul.mubr.bf16.gmra.mrb[16].mxu1 %v1924_v4 }
 0x166   : > { %v1127_v5 = vpop.f32.mrb[0].mxu0 }
 0x167   : > { %v1129_v6 = vpop.f32.mrb[1].mxu0 }
 0x168   : > { %v1131_v8 = vpop.f32.mrb[2].mxu0 }
 0x169   : > { %v1133_v9 = vpop.f32.mrb[3].mxu0 }
 0x16e   : > { %v1137_v7 = vpop.f32.mrb[4].mxu0 }
 0x16f   : > { %v1139_v10 = vpop.f32.mrb[5].mxu0 }
 0x170   : > { %v1141_v11 = vpop.f32.mrb[6].mxu0 }
 0x171   : > { %v1143_v12 = vpop.f32.mrb[7].mxu0 }
 0x176   : > { %v1147_v13 = vpop.f32.mrb[8].mxu0 }
 0x177   : > { %v1149_v14 = vpop.f32.mrb[9].mxu0 }
 0x178   : > { %v1151_v15 = vpop.f32.mrb[10].mxu0 }
 0x179   : > { %v1153_v16 = vpop.f32.mrb[11].mxu0 }
 0x17e   : > { %v1157_v29 = vpop.f32.mrb[12].mxu0 }
 0x17f   : > { %v1159_v32 = vpop.f32.mrb[13].mxu0 }
 0x180   : > { %v1161_v34 = vpop.f32.mrb[14].mxu0 }
 0x181   : > { %v1163_v36 = vpop.f32.mrb[15].mxu0 }
 0x183   : > { %v1044_v18 = vpop.f32.mrb[0].mxu1 }
 0x184   : > { %v1128_v19 = vadd.f32 %v1127_v5, %v1044_v18  ;;  %v1046_v21 = vpop.f32.mrb[1].mxu1 }
 0x185   : > { %v1130_v22 = vadd.f32 %v1129_v6, %v1046_v21  ;;  %v1048_v24 = vpop.f32.mrb[2].mxu1 }
 0x186   : > { %v1176_v25 = vadd.f32 %v1128_v19, %v602_v17  ;;  %v1132_v26 = vadd.f32 %v1131_v8, %v1048_v24  ;;  %v1050_v28 = vpop.f32.mrb[3].mxu1  ;;  %v1167_v49 = vpop.f32.mrb[16].mxu0  ;;  %v616_v17 = vld [vmem:[#allocation2 + $0x70] sm:$0xff] }
 0x187   : > { %v1177_v30 = vadd.f32 %v1130_v22, %v603_v20  ;;  %v1134_v31 = vadd.f32 %v1133_v9, %v1050_v28  ;;  %v1169_v52 = vpop.f32.mrb[17].mxu0  ;;  %v617_v20 = vld [vmem:[#allocation2 + $0x78] sm:$0xff]  ;;  %v619_v28 = vld [vmem:[#allocation2 + $0x88] sm:$0xff] }
 0x188   : > { %1196 = vst [vmem:[#allocation2] sm:$0xff] %v1176_v25  ;;  %v1178_v33 = vadd.f32 %v1132_v26, %v604_v23  ;;  %v1171_v54 = vpop.f32.mrb[18].mxu0  ;;  %v618_v25 = vld [vmem:[#allocation2 + $0x80] sm:$0xff] }
 0x189   : > { %1197 = vst [vmem:[#allocation2 + $0x8] sm:$0xff] %v1177_v30  ;;  %v1179_v35 = vadd.f32 %v1134_v31, %v605_v27  ;;  %v1173_v56 = vpop.f32.mrb[19].mxu0  ;;  %v620_v31 = vld [vmem:[#allocation2 + $0x90] sm:$0xff] }
 0x18a   : > { %1198 = vst [vmem:[#allocation2 + $0x10] sm:$0xff] %v1178_v33 }
 0x18b   : > { %1199 = vst [vmem:[#allocation2 + $0x18] sm:$0xff] %v1179_v35  ;;  %v1054_v38 = vpop.f32.mrb[4].mxu1  ;;  %v621_v35 = vld [vmem:[#allocation2 + $0x98] sm:$0xff] }
 0x18c   : > { %v1138_v39 = vadd.f32 %v1137_v7, %v1054_v38  ;;  %v1056_v41 = vpop.f32.mrb[5].mxu1  ;;  %v614_v7 = vld [vmem:[#allocation2 + $0x60] sm:$0xff] }
 0x18d   : > { %v1140_v42 = vadd.f32 %v1139_v10, %v1056_v41  ;;  %v1058_v44 = vpop.f32.mrb[6].mxu1  ;;  %v1242_v41 = vlaneseq (!%p1690_p5) }
 0x18e   : > { %v1180_v45 = vadd.f32 %v1138_v39, %v606_v37  ;;  %v1142_v46 = vadd.f32 %v1141_v11, %v1058_v44  ;;  %v1060_v48 = vpop.f32.mrb[7].mxu1  ;;  %v1272_v44 = vld [vmem:[%s573_s1] sm:$0x3] (!%p1690_p5) }
 0x18f   : > { %v1181_v50 = vadd.f32 %v1140_v42, %v607_v40  ;;  %v1144_v51 = vadd.f32 %v1143_v12, %v1060_v48  ;;  %v615_v12 = vld [vmem:[#allocation2 + $0x68] sm:$0xff]  ;;  %v1243_v42 = vshrl.u32 (!%p1690_p5), %v1242_v41, 7 }
 0x190   : > { %1200 = vst [vmem:[#allocation2 + $0x20] sm:$0xff] %v1180_v45  ;;  %v1182_v53 = vadd.f32 %v1142_v46, %v608_v43  ;;  %v1240_v43 = vld [vmem:[%s568_s6] sm:$0x3] (!%p1690_p5)  ;;  %v1221_v46 = vld [vmem:[#allocation2 + $0x8] sm:$0xff] (!%p1690_p5) }
 0x191   : > { %1201 = vst [vmem:[#allocation2 + $0x28] sm:$0xff] %v1181_v50  ;;  %v1183_v55 = vadd.f32 %v1144_v51, %v609_v47  ;;  %v1220_v45 = vld [vmem:[#allocation2] sm:$0xff] (!%p1690_p5)  ;;  %v1244_v47 = vsub.s32 (!%p1690_p5), 0, %v1243_v42  ;;  %v1248_v48 = vsub.s32 (!%p1690_p5), 1, %v1243_v42 }
 0x192   : > { %1202 = vst [vmem:[#allocation2 + $0x30] sm:$0xff] %v1182_v53  ;;  %v1223_v50 = vld [vmem:[#allocation2 + $0x18] sm:$0xff] (!%p1690_p5) }
 0x193   : > { %1203 = vst [vmem:[#allocation2 + $0x38] sm:$0xff] %v1183_v55  ;;  %v1064_v58 = vpop.f32.mrb[8].mxu1  ;;  %v2402_v53 = vrot.slane (!%p1690_p5), %v1240_v43, %v1248_v48  ;;  %v2406_v55 = vrot.slane (!%p1690_p5), %v1272_v44, %v1248_v48 }
 0x194   : > { %v1148_v59 = vadd.f32 %v1147_v13, %v1064_v58  ;;  %v1066_v61 = vpop.f32.mrb[9].mxu1 }
 0x195   : > { %v1150_v62 = vadd.f32 %v1149_v14, %v1066_v61  ;;  %v1068_v0 = vpop.f32.mrb[10].mxu1 }
 0x196   : > { %v1184_v1 = vadd.f32 %v1148_v59, %v610_v57  ;;  %v1152_v2 = vadd.f32 %v1151_v15, %v1068_v0  ;;  %v1070_v4 = vpop.f32.mrb[11].mxu1 }
 0x197   : > { %v1185_v5 = vadd.f32 %v1150_v62, %v611_v60  ;;  %v1154_v6 = vadd.f32 %v1153_v16, %v1070_v4  ;;  %v1224_v51 = vld [vmem:[#allocation2 + $0x20] sm:$0xff] (!%p1690_p5)  ;;  %v1253_v60 = vmul.f32 (!%p1690_p5), %v2402_v53, %v1221_v46  ;;  %v1255_v62 = vmul.f32 (!%p1690_p5), %v2402_v53, %v1223_v50 }
 0x198   : > { %1204 = vst [vmem:[#allocation2 + $0x40] sm:$0xff] %v1184_v1  ;;  %v1186_v8 = vadd.f32 %v1152_v2, %v612_v63 }
 0x199   : > { %1205 = vst [vmem:[#allocation2 + $0x48] sm:$0xff] %v1185_v5  ;;  %v1187_v9 = vadd.f32 %v1154_v6, %v613_v3  ;;  %v1226_v57 = vld [vmem:[#allocation2 + $0x30] sm:$0xff] (!%p1690_p5)  ;;  %v1285_v4 = vadd.f32 (!%p1690_p5), %v2406_v55, %v1253_v60  ;;  %v1287_v6 = vadd.f32 (!%p1690_p5), %v2406_v55, %v1255_v62 }
 0x19a   : > { %1206 = vst [vmem:[#allocation2 + $0x50] sm:$0xff] %v1186_v8  ;;  %v1227_v58 = vld [vmem:[#allocation2 + $0x38] sm:$0xff] (!%p1690_p5) }
 0x19b   : > { %1207 = vst [vmem:[#allocation2 + $0x58] sm:$0xff] %v1187_v9  ;;  %v1074_v10 = vpop.f32.mrb[12].mxu1  ;;  %v1259_v2 = vmul.f32 (!%p1690_p5), %v2402_v53, %v1227_v58 }
 0x19c   : > { %v1158_v11 = vadd.f32 %v1157_v29, %v1074_v10  ;;  %v1076_v13 = vpop.f32.mrb[13].mxu1 }
 0x19d   : > { %v1160_v14 = vadd.f32 %v1159_v32, %v1076_v13  ;;  %v1078_v18 = vpop.f32.mrb[14].mxu1  ;;  %v1291_v10 = vadd.f32 (!%p1690_p5), %v2406_v55, %v1259_v2 }
 0x19e   : > { %v1188_v19 = vadd.f32 %v1158_v11, %v614_v7  ;;  %v1162_v15 = vadd.f32 %v1161_v34, %v1078_v18  ;;  %v1080_v21 = vpop.f32.mrb[15].mxu1  ;;  %v1307_v18 = vmax.f32 (!%p1690_p5), %v1287_v6, 0.0 }
 0x19f   : > { %v1189_v22 = vadd.f32 %v1160_v14, %v615_v12  ;;  %v1164_v16 = vadd.f32 %v1163_v36, %v1080_v21  ;;  %v1228_v11 = vld [vmem:[#allocation2 + $0x40] sm:$0xff] (!%p1690_p5)  ;;  %v1305_v14 = vmax.f32 (!%p1690_p5), %v1285_v4, 0.0 }
 0x1a0   : > { %1208 = vst [vmem:[#allocation2 + $0x60] sm:$0xff] %v1188_v19  ;;  %v1190_v23 = vadd.f32 %v1162_v15, %v616_v17  ;;  %v1229_v12 = vld [vmem:[#allocation2 + $0x48] sm:$0xff] (!%p1690_p5) }
 0x1a1   : > { %1209 = vst [vmem:[#allocation2 + $0x68] sm:$0xff] %v1189_v22  ;;  %v1191_v24 = vadd.f32 %v1164_v16, %v617_v20  ;;  %v1230_v19 = vld [vmem:[#allocation2 + $0x50] sm:$0xff] (!%p1690_p5)  ;;  %v1311_v16 = vmax.f32 (!%p1690_p5), %v1291_v10, 0.0 }
 0x1a2   : > { %1210 = vst [vmem:[#allocation2 + $0x70] sm:$0xff] %v1190_v23  ;;  %v1231_v15 = vld [vmem:[#allocation2 + $0x58] sm:$0xff] (!%p1690_p5) }
 0x1a3   : > { %1211 = vst [vmem:[#allocation2 + $0x78] sm:$0xff] %v1191_v24  ;;  %v1084_v26 = vpop.f32.mrb[16].mxu1 }
 0x1a4   : > { %v1168_v27 = vadd.f32 %v1167_v49, %v1084_v26  ;;  %v1086_v29 = vpop.f32.mrb[17].mxu1  ;;  %v1222_v49 = vld [vmem:[#allocation2 + $0x10] sm:$0xff] (!%p1690_p5) }
 0x1a5   : > { %v1170_v30 = vadd.f32 %v1169_v52, %v1086_v29  ;;  %v1088_v32 = vpop.f32.mrb[18].mxu1  ;;  %1219 = sbr.rel (%p1690_p5) target bundleno = 445 (0x1bd), region = 108  ;;  %v2400_v52 = vrot.slane (!%p1690_p5), %v1240_v43, %v1244_v47 }
 0x1a6   : > { %v1192_v33 = vadd.f32 %v1168_v27, %v618_v25  ;;  %v1172_v34 = vadd.f32 %v1171_v54, %v1088_v32  ;;  %v1090_v37 = vpop.f32.mrb[19].mxu1  ;;  %v2404_v54 = vrot.slane (!%p1690_p5), %v1272_v44, %v1244_v47 }
 0x1a7   : > { %v1193_v38 = vadd.f32 %v1170_v30, %v619_v28  ;;  %v1174_v36 = vadd.f32 %v1173_v56, %v1090_v37  ;;  %v1225_v56 = vld [vmem:[#allocation2 + $0x28] sm:$0xff] (!%p1690_p5)  ;;  %v1252_v59 = vmul.f32 (!%p1690_p5), %v2400_v52, %v1220_v45  ;;  %v1254_v61 = vmul.f32 (!%p1690_p5), %v2400_v52, %v1222_v49  ;;  %v1232_v23 = vld [vmem:[#allocation2 + $0x60] sm:$0xff] (!%p1690_p5) }
 0x1a8   : > { %1212 = vst [vmem:[#allocation2 + $0x80] sm:$0xff] %v1192_v33  ;;  %v1194_v39 = vadd.f32 %v1172_v34, %v620_v31  ;;  %v1256_v63 = vmul.f32 (!%p1690_p5), %v2400_v52, %v1224_v51  ;;  %v1257_v0 = vmul.f32 (!%p1690_p5), %v2402_v53, %v1225_v56  ;;  %v1258_v1 = vmul.f32 (!%p1690_p5), %v2400_v52, %v1226_v57  ;;  %v1233_v24 = vld [vmem:[#allocation2 + $0x68] sm:$0xff] (!%p1690_p5) }
 0x1a9   : > { %1213 = vst [vmem:[#allocation2 + $0x88] sm:$0xff] %v1193_v38  ;;  %v1195_v40 = vadd.f32 %v1174_v36, %v621_v35  ;;  %v1284_v3 = vadd.f32 (!%p1690_p5), %v2404_v54, %v1252_v59  ;;  %v1286_v5 = vadd.f32 (!%p1690_p5), %v2404_v54, %v1254_v61  ;;  %v1260_v27 = vmul.f32 (!%p1690_p5), %v2400_v52, %v1228_v11  ;;  %v1234_v29 = vld [vmem:[#allocation2 + $0x70] sm:$0xff] (!%p1690_p5) }
 0x1aa   : > { %1214 = vst [vmem:[#allocation2 + $0x90] sm:$0xff] %v1194_v39  ;;  %v1288_v8 = vadd.f32 (!%p1690_p5), %v2404_v54, %v1256_v63  ;;  %v1289_v9 = vadd.f32 (!%p1690_p5), %v2406_v55, %v1257_v0  ;;  %v1290_v7 = vadd.f32 (!%p1690_p5), %v2404_v54, %v1258_v1  ;;  %v1261_v28 = vmul.f32 (!%p1690_p5), %v2402_v53, %v1229_v12  ;;  %v1235_v30 = vld [vmem:[#allocation2 + $0x78] sm:$0xff] (!%p1690_p5) }
 0x1ab   : > { %1215 = vst [vmem:[#allocation2 + $0x98] sm:$0xff] %v1195_v40  ;;  %v1304_v13 = vmax.f32 (!%p1690_p5), %v1284_v3, 0.0  ;;  %v1306_v17 = vmax.f32 (!%p1690_p5), %v1286_v5, 0.0  ;;  %v1262_v33 = vmul.f32 (!%p1690_p5), %v2400_v52, %v1230_v19  ;;  %v1263_v34 = vmul.f32 (!%p1690_p5), %v2402_v53, %v1231_v15 }
 0x1ac   : > { %v1308_v20 = vmax.f32 %v1288_v8, 0.0  ;;  %v1309_v21 = vmax.f32 %v1289_v9, 0.0  ;;  %v1310_v22 = vmax.f32 %v1290_v7, 0.0  ;;  %v1292_v35 = vadd.f32 %v2404_v54, %v1260_v27 }
 0x1ad   : > { %v1707_v25 = vpack.c.bf16 %v1305_v14, %v1304_v13  ;;  %v1708_v26 = vpack.c.bf16 %v1307_v18, %v1306_v17  ;;  %v1293_v37 = vadd.f32 %v2406_v55, %v1261_v28  ;;  %v1264_v38 = vmul.f32 %v2400_v52, %v1232_v23 }
 0x1ae   : > { %v1709_v31 = vpack.c.bf16 %v1309_v21, %v1308_v20  ;;  %v1710_v32 = vpack.c.bf16 %v1311_v16, %v1310_v22  ;;  %v1265_v36 = vmul.f32 %v2402_v53, %v1233_v24  ;;  %v1294_v39 = vadd.f32 %v2404_v54, %v1262_v33 }
 0x1af   : > { %1384 = vst [vmem:[%s2318_s15] sm:$0xff] %v1707_v25  ;;  %1385 = vst [vmem:[%s2318_s15 + $0x8] sm:$0xff] %v1708_v26  ;;  %v1295_v40 = vadd.f32 %v2406_v55, %v1263_v34  ;;  %v1266_v41 = vmul.f32 %v2400_v52, %v1234_v29  ;;  %v1267_v42 = vmul.f32 %v2402_v53, %v1235_v30  ;;  %v1236_v43 = vld [vmem:[#allocation2 + $0x80] sm:$0xff]  ;;  %v1312_v44 = vmax.f32 %v1292_v35, 0.0 }
 0x1b0   : > { %1386 = vst [vmem:[%s2318_s15 + $0x10] sm:$0xff] %v1709_v31  ;;  %1387 = vst [vmem:[%s2318_s15 + $0x18] sm:$0xff] %v1710_v32  ;;  %v1313_v45 = vmax.f32 %v1293_v37, 0.0  ;;  %v1296_v46 = vadd.f32 %v2404_v54, %v1264_v38  ;;  %v1297_v47 = vadd.f32 %v2406_v55, %v1265_v36  ;;  %v1237_v48 = vld [vmem:[#allocation2 + $0x88] sm:$0xff]  ;;  %v1314_v49 = vmax.f32 %v1294_v39, 0.0 }
 0x1b1   : > { %v1315_v50 = vmax.f32 %v1295_v40, 0.0  ;;  %v1298_v51 = vadd.f32 %v2404_v54, %v1266_v41  ;;  %v1299_v56 = vadd.f32 %v2406_v55, %v1267_v42  ;;  %v1238_v57 = vld [vmem:[#allocation2 + $0x90] sm:$0xff]  ;;  %v1268_v62 = vmul.f32 %v2400_v52, %v1236_v43 }
 0x1b2   : > { %v1239_v58 = vld [vmem:[#allocation2 + $0x98] sm:$0xff]  ;;  %v1711_v59 = vpack.c.bf16 %v1313_v45, %v1312_v44  ;;  %v1316_v60 = vmax.f32 %v1296_v46, 0.0  ;;  %v1317_v61 = vmax.f32 %v1297_v47, 0.0  ;;  %v1269_v2 = vmul.f32 %v2402_v53, %v1237_v48 }
 0x1b3   : > { %v1712_v63 = vpack.c.bf16 %v1315_v50, %v1314_v49  ;;  %v1318_v0 = vmax.f32 %v1298_v51, 0.0  ;;  %v1319_v1 = vmax.f32 %v1299_v56, 0.0  ;;  %v1300_v4 = vadd.f32 %v2404_v54, %v1268_v62 }
 0x1b4   : > { %1388 = vst [vmem:[%s2318_s15 + $0x20] sm:$0xff] %v1711_v59  ;;  %v1713_v3 = vpack.c.bf16 %v1317_v61, %v1316_v60  ;;  %v1270_v5 = vmul.f32 %v2400_v52, %v1238_v57  ;;  %v1271_v6 = vmul.f32 %v2402_v53, %v1239_v58  ;;  %v1301_v9 = vadd.f32 %v2406_v55, %v1269_v2 }
 0x1b5   : > { %1389 = vst [vmem:[%s2318_s15 + $0x28] sm:$0xff] %v1712_v63  ;;  %v1714_v8 = vpack.c.bf16 %v1319_v1, %v1318_v0  ;;  %v1320_v7 = vmax.f32 %v1300_v4, 0.0 }
 0x1b6   : > { %1390 = vst [vmem:[%s2318_s15 + $0x30] sm:$0xff] %v1713_v3  ;;  %v1302_v10 = vadd.f32 %v2404_v54, %v1270_v5  ;;  %v1303_v11 = vadd.f32 %v2406_v55, %v1271_v6  ;;  %v1321_v12 = vmax.f32 %v1301_v9, 0.0 }
 0x1b7   : > { %1391 = vst [vmem:[%s2318_s15 + $0x38] sm:$0xff] %v1714_v8 }
 0x1b8   : > { %v1322_v13 = vmax.f32 %v1302_v10, 0.0  ;;  %v1323_v14 = vmax.f32 %v1303_v11, 0.0  ;;  %v1715_v17 = vpack.c.bf16 %v1321_v12, %v1320_v7 }
 0x1ba   : > { %v1716_v18 = vpack.c.bf16 %v1323_v14, %v1322_v13  ;;  %1392 = vst [vmem:[%s2318_s15 + $0x40] sm:$0xff] %v1715_v17 }
 0x1bc   : > { %1393 = vst [vmem:[%s2318_s15 + $0x48] sm:$0xff] %v1716_v18 }
 0x1bd PF: > { %1400 = sbr.rel (!%p2134_p12) target bundleno = 453 (0x1c5), region = 112  ;;  %s1717_s1 = sshll.u32 (%p2134_p12), %s1999_s22, 3  ;;  %v1452_v52 = vld [vmem:[%s2318_s15] sm:$0xff] (%p2134_p12)  ;;  %v1454_v53 = vld [vmem:[%s2318_s15 + $0x8] sm:$0xff] (%p2134_p12)  ;;  %v1456_v54 = vld [vmem:[%s2318_s15 + $0x10] sm:$0xff] (%p2134_p12) }
 0x1be   : > { %s1406_s5 = scalar_lea.vmem (%p2134_p12), %s2511_s4, %s1717_s1  ;;  %v1458_v55 = vld [vmem:[%s2318_s15 + $0x18] sm:$0xff] (%p2134_p12)  ;;  %v1460_v19 = vld [vmem:[%s2318_s15 + $0x20] sm:$0xff] (%p2134_p12)  ;;  %v1462_v15 = vld [vmem:[%s2318_s15 + $0x28] sm:$0xff] (%p2134_p12) }
 0x1bf   : > { %1453 = vst [vmem:[%s1406_s5] sm:$0xff] (%p2134_p12), %v1452_v52  ;;  %1455 = vst [vmem:[%s1406_s5 + $0x10] sm:$0xff] (%p2134_p12), %v1454_v53  ;;  %v1464_v20 = vld [vmem:[%s2318_s15 + $0x30] sm:$0xff] (%p2134_p12)  ;;  %v1466_v21 = vld [vmem:[%s2318_s15 + $0x38] sm:$0xff] (%p2134_p12) }
 0x1c0   : > { %1457 = vst [vmem:[%s1406_s5 + $0x20] sm:$0xff] (%p2134_p12), %v1456_v54  ;;  %1459 = vst [vmem:[%s1406_s5 + $0x30] sm:$0xff] (%p2134_p12), %v1458_v55 }
 0x1c1   : > { %1461 = vst [vmem:[%s1406_s5 + $0x40] sm:$0xff] (%p2134_p12), %v1460_v19  ;;  %1463 = vst [vmem:[%s1406_s5 + $0x50] sm:$0xff] (%p2134_p12), %v1462_v15  ;;  %v1468_v22 = vld [vmem:[%s2318_s15 + $0x40] sm:$0xff] (%p2134_p12) }
 0x1c2   : > { %1465 = vst [vmem:[%s1406_s5 + $0x60] sm:$0xff] (%p2134_p12), %v1464_v20  ;;  %1467 = vst [vmem:[%s1406_s5 + $0x70] sm:$0xff] (%p2134_p12), %v1466_v21 }
 0x1c3   : > { %1469 = vst [vmem:[%s1406_s5 + $0x80] sm:$0xff] (%p2134_p12), %v1468_v22  ;;  %v1470_v16 = vld [vmem:[%s2318_s15 + $0x48] sm:$0xff] (%p2134_p12) }
 0x1c4   : > { %1471 = vst [vmem:[%s1406_s5 + $0x90] sm:$0xff] %v1470_v16 }
 0x1c5 PF: > { %s14_s25 = sadd.s32 1, %s2011_s25   ;;  %s2523_s14 = sld [smem:[#allocation6_spill]] }
 0x1c6   : > { %p11_p6 = scmp.ge.s32.totalorder %s14_s25, 14   ;;  %s2524_s29 = sld [smem:[#allocation7_spill]] }
 0x1c7   : > { %s2525_s15 = smov %s1975_s16  ;;  %s2526_s16 = smov %s2132_s13 }
 0x1c8   : > { %s2527_s17 = smov %s1983_s18  ;;  %s2528_s18 = smov %s2129_s12 }
 0x1c9   : > { %s2529_s19 = smov %s1991_s20  ;;  %s2530_s20 = smov %s2115_s7 }
 0x1ca   : > { %s2531_s21 = smov %s2003_s23  ;;  %s2532_s22 = smov %s2007_s24 }
 0x1cb   : > { %s2533_s23 = smov %s2523_s14  ;;  %13 = sbr.rel (!%p11_p6) target bundleno = 9 (0x9), region = 201 }
 0x1cc   : > { %s2534_s24 = smov %s2524_s29 }

// kernel: _lambda_.20
= control target key start
LH: loop header
LB: loop body
LE: loop exit
PB: predicated region body
PF: predicated region fallthrough
CT: control target
= control target key end

     0   :  { %s2756_s0 = inlined_call_operand.vmem [shape: bf16[80,4608], index: 0, kind: input, shape index: {}]   ;;  %s2757_s1 = inlined_call_operand.vmem [shape: bf16[4608,512], index: 1, kind: input, shape index: {}]   ;;  %s2758_s2 = inlined_call_operand.vmem [shape: f32[1,512], index: 2, kind: input, shape index: {}]   ;;  %s2759_s3 = inlined_call_operand.vmem [shape: f32[1,512], index: 3, kind: input, shape index: {}]   ;;  %s2760_s4 = inlined_call_operand.vmem [shape: bf16[80,512], index: 4, kind: output, shape index: {}]  }
   0x1   :  { %2763 = sst [smem:[#allocation8_spill]] %s2756_s0 }
   0x2   :  { %2764 = sst [smem:[#allocation9_spill]] %s2757_s1 }
   0x3   :  { %s2241_s15 = smov 0   ;;  %s2243_s16 = smov 0  }
   0x4   :  { %s2245_s17 = smov 0   ;;  %s2247_s18 = smov 0  }
   0x5   :  { %s2249_s19 = smov 0   ;;  %s2251_s20 = smov 0  }
   0x6   :  { %s2253_s21 = smov 0   ;;  %s2255_s22 = smov 0  }
   0x7   :  { %s2257_s23 = smov 0   ;;  %s2259_s24 = smov 0  }
   0x8   :  { %s2261_s25 = smov 0  }
   0x9 LB: > { %s1761_s26 = sadd.s32 4294967295, %s2213_s25   ;;  %s26_s27 = sadd.s32 1, %s2205_s23  ;;  %s2213_s25 = sphi %s2261_s25, %s14_s25   ;;  %s2209_s24 = sphi %s2259_s24, %s2783_s24   ;;  %s2205_s23 = sphi %s2257_s23, %s2782_s23   ;;  %s2201_s22 = sphi %s2255_s22, %s2781_s22   ;;  %s2197_s21 = sphi %s2253_s21, %s2780_s21   ;;  %s2193_s20 = sphi %s2251_s20, %s2779_s20   ;;  %s2189_s19 = sphi %s2249_s19, %s2778_s19   ;;  %s2185_s18 = sphi %s2247_s18, %s2777_s18   ;;  %s2181_s17 = sphi %s2245_s17, %s2776_s17   ;;  %s2177_s16 = sphi %s2243_s16, %s2775_s16   ;;  %s2173_s15 = sphi %s2241_s15, %s2774_s15  }
   0xa   : > { %p27_p0 = scmp.ge.s32.totalorder %s26_s27, 9  ;;  %s29_s28 = sadd.s32 1, %s2209_s24 }
   0xb   : > { %s42_s29 = sadd.s32 1, %s2193_s20  ;;  %p49_p1 = scmp.ne.s32.totalorder %s2193_s20, %s2189_s19 }
   0xc   : > { %s2785_s27 = smov (%p27_p0, %s26_s27), 0  ;;  %s2787_s28 = smov (!%p27_p0, %s29_s28), %s2209_s24 }
   0xd   : > { %2765 = sst [smem:[#allocation6_spill]] %s2785_s27  ;;  %s38_s30 = ssub.s32 %s2205_s23, %s2785_s27 }
   0xe   : > { %p50_p2 = scmp.eq.s32.totalorder %s2213_s25, 0  ;;  %p31_p3 = scmp.ge.s32.totalorder %s2787_s28, 2 }
   0xf   : > { %p40_p4 = scmp.eq.s32.totalorder %s38_s30, 0  ;;  %s70_s6 = sadd.s32 1, %s2185_s18 }
  0x10   : > { %p2308_p5 = por %p50_p2, %p49_p1  ;;  %s2789_s28 = smov (%p31_p3, %s2787_s28), 0 }
  0x11   : > { %2767 = sst [smem:[#allocation7_spill]] %s2789_s28  ;;  %s66_s8 = ssub.s32 %s2209_s24, %s2789_s28 }
  0x12   : > { %s2316_s7 = scalar_select %p40_p4, %s2193_s20, %s42_s29  }
  0x13   : > { %p77_p6 = scmp.ne.s32.totalorder %s2185_s18, %s2181_s17  ;;  %s67_s9 = sor.u32 %s66_s8, %s38_s30 }
  0x14   : > { %p148_p7 = scmp.eq.s32.totalorder %s66_s8, 0  ;;  %p68_p8 = scmp.eq.s32.totalorder %s67_s9, 0 }
  0x15   : > { %p2322_p9 = por %p77_p6, %p50_p2  ;;  %s150_s11 = sadd.s32 1, %s2177_s16 }
  0x16   : > { %p160_p10 = scmp.ne.s32.totalorder %s2177_s16, %s2173_s15  ;;  %p161_p11 = scmp.eq.s32.totalorder %s1761_s26, 17 }
  0x17   : > { %s2330_s12 = scalar_select %p68_p8, %s2185_s18, %s70_s6  }
  0x18   : > { %s2333_s13 = scalar_select %p148_p7, %s2177_s16, %s150_s11  }
  0x19   : > { %p2335_p12 = por %p161_p11, %p160_p10  ;;  %p1764_p13 = scmp.ge.s32.totalorder %s2213_s25, 18 }
  0x1b   : > { %183 = sbr.rel (%p1764_p13) target bundleno = 97 (0x61), region = 16 }
  0x22   : > { %186 = sbr.rel (!%p2308_p5) target bundleno = 55 (0x37), region = 20  ;;  %s188_s29 = sand.u32 (%p2308_p5), 1, %s2193_s20  }
  0x23   : > { %s1876_s30 = sshll.u32 (%p2308_p5), %s2205_s23, 4  ;;  %s1909_s8 = smul.u32 (%p2308_p5), 160, %s188_s29 }
  0x24   : > { %s2770_s0 = sld [smem:[#allocation8_spill]] (%p2308_p5) }
  0x25   : > { %s2355_s26 = scalar_lea.vmem (%p2308_p5), [#allocation3], %s1909_s8 }
  0x2a   : > { %s2347_s11 = scalar_lea.vmem %s2770_s0, %s1876_s30 }
  0x2b   : > { %v209_v0 = vld [vmem:[%s2347_s11] sm:$0xff]  ;;  %v211_v1 = vld [vmem:[%s2347_s11 + $0x8] sm:$0xff]  ;;  %v213_v2 = vld [vmem:[%s2347_s11 + $0x90] sm:$0xff] }
  0x2c   : > { %v215_v3 = vld [vmem:[%s2347_s11 + $0x98] sm:$0xff]  ;;  %v217_v4 = vld [vmem:[%s2347_s11 + $0x120] sm:$0xff]  ;;  %v219_v5 = vld [vmem:[%s2347_s11 + $0x128] sm:$0xff]  ;;  %210 = vst [vmem:[%s2355_s26] sm:$0xff] %v209_v0 }
  0x2d   : > { %212 = vst [vmem:[%s2355_s26 + $0x8] sm:$0xff] %v211_v1  ;;  %214 = vst [vmem:[%s2355_s26 + $0x10] sm:$0xff] %v213_v2  ;;  %v221_v6 = vld [vmem:[%s2347_s11 + $0x1b0] sm:$0xff]  ;;  %v223_v7 = vld [vmem:[%s2347_s11 + $0x1b8] sm:$0xff] }
  0x2e   : > { %216 = vst [vmem:[%s2355_s26 + $0x18] sm:$0xff] %v215_v3  ;;  %218 = vst [vmem:[%s2355_s26 + $0x20] sm:$0xff] %v217_v4  ;;  %v225_v8 = vld [vmem:[%s2347_s11 + $0x240] sm:$0xff]  ;;  %v227_v9 = vld [vmem:[%s2347_s11 + $0x248] sm:$0xff] }
  0x2f   : > { %220 = vst [vmem:[%s2355_s26 + $0x28] sm:$0xff] %v219_v5  ;;  %222 = vst [vmem:[%s2355_s26 + $0x30] sm:$0xff] %v221_v6  ;;  %v229_v10 = vld [vmem:[%s2347_s11 + $0x2d0] sm:$0xff]  ;;  %v231_v11 = vld [vmem:[%s2347_s11 + $0x2d8] sm:$0xff] }
  0x30   : > { %224 = vst [vmem:[%s2355_s26 + $0x38] sm:$0xff] %v223_v7  ;;  %226 = vst [vmem:[%s2355_s26 + $0x40] sm:$0xff] %v225_v8  ;;  %v233_v12 = vld [vmem:[%s2347_s11 + $0x360] sm:$0xff]  ;;  %v235_v13 = vld [vmem:[%s2347_s11 + $0x368] sm:$0xff] }
  0x31   : > { %228 = vst [vmem:[%s2355_s26 + $0x48] sm:$0xff] %v227_v9  ;;  %230 = vst [vmem:[%s2355_s26 + $0x50] sm:$0xff] %v229_v10  ;;  %v237_v14 = vld [vmem:[%s2347_s11 + $0x3f0] sm:$0xff]  ;;  %v239_v15 = vld [vmem:[%s2347_s11 + $0x3f8] sm:$0xff] }
  0x32   : > { %232 = vst [vmem:[%s2355_s26 + $0x58] sm:$0xff] %v231_v11  ;;  %234 = vst [vmem:[%s2355_s26 + $0x60] sm:$0xff] %v233_v12  ;;  %v241_v16 = vld [vmem:[%s2347_s11 + $0x480] sm:$0xff]  ;;  %v243_v17 = vld [vmem:[%s2347_s11 + $0x488] sm:$0xff] }
  0x33   : > { %236 = vst [vmem:[%s2355_s26 + $0x68] sm:$0xff] %v235_v13  ;;  %238 = vst [vmem:[%s2355_s26 + $0x70] sm:$0xff] %v237_v14  ;;  %v245_v18 = vld [vmem:[%s2347_s11 + $0x510] sm:$0xff]  ;;  %v247_v19 = vld [vmem:[%s2347_s11 + $0x518] sm:$0xff] }
  0x34   : > { %240 = vst [vmem:[%s2355_s26 + $0x78] sm:$0xff] %v239_v15  ;;  %242 = vst [vmem:[%s2355_s26 + $0x80] sm:$0xff] %v241_v16 }
  0x35   : > { %244 = vst [vmem:[%s2355_s26 + $0x88] sm:$0xff] %v243_v17  ;;  %246 = vst [vmem:[%s2355_s26 + $0x90] sm:$0xff] %v245_v18 }
  0x36   : > { %248 = vst [vmem:[%s2355_s26 + $0x98] sm:$0xff] %v247_v19 }
  0x37 PF: > { %254 = sbr.rel (!%p2322_p9) target bundleno = 97 (0x61), region = 43  ;;  %s256_s5 = sand.u32 (%p2322_p9), 1, %s2185_s18  }
  0x38   : > { %s1769_s29 = sshll.u32 (%p2322_p9), %s2209_s24, 1  ;;  %s1767_s30 = sshll.u32 (%p2322_p9), %s256_s5, 9 }
  0x39   : > { %s1877_s8 = sshll.u32 (%p2322_p9), %s2205_s23, 8  ;;  %s2771_s1 = sld [smem:[#allocation9_spill]] (%p2322_p9) }
  0x3a   : > { %s262_s6 = sadd.s32 (%p2322_p9), %s1877_s8, %s1769_s29  ;;  %s2404_s10 = scalar_lea.vmem (%p2322_p9), [#allocation4], %s1767_s30 }
  0x3b   : > { %s1771_s9 = sshll.u32 (%p2322_p9), %s262_s6, 2 }
  0x3f   : > { %s2399_s27 = scalar_lea.vmem %s2771_s1, %s1771_s9 }
  0x40   : > { %v418_v20 = vld [vmem:[%s2399_s27] sm:$0xff]  ;;  %v420_v21 = vld [vmem:[%s2399_s27 + $0x10] sm:$0xff] }
  0x41   : > { %v422_v22 = vld [vmem:[%s2399_s27 + $0x20] sm:$0xff]  ;;  %419 = vst [vmem:[%s2404_s10] sm:$0xff] %v418_v20  ;;  %421 = vst [vmem:[%s2404_s10 + $0x8] sm:$0xff] %v420_v21  ;;  %v424_v23 = vld [vmem:[%s2399_s27 + $0x30] sm:$0xff] }
  0x42   : > { %423 = vst [vmem:[%s2404_s10 + $0x10] sm:$0xff] %v422_v22  ;;  %v426_v24 = vld [vmem:[%s2399_s27 + $0x40] sm:$0xff]  ;;  %v428_v25 = vld [vmem:[%s2399_s27 + $0x50] sm:$0xff]  ;;  %425 = vst [vmem:[%s2404_s10 + $0x18] sm:$0xff] %v424_v23 }
  0x43   : > { %427 = vst [vmem:[%s2404_s10 + $0x20] sm:$0xff] %v426_v24  ;;  %429 = vst [vmem:[%s2404_s10 + $0x28] sm:$0xff] %v428_v25  ;;  %v430_v26 = vld [vmem:[%s2399_s27 + $0x60] sm:$0xff]  ;;  %v432_v27 = vld [vmem:[%s2399_s27 + $0x70] sm:$0xff] }
  0x44   : > { %v434_v28 = vld [vmem:[%s2399_s27 + $0x80] sm:$0xff]  ;;  %431 = vst [vmem:[%s2404_s10 + $0x30] sm:$0xff] %v430_v26  ;;  %433 = vst [vmem:[%s2404_s10 + $0x38] sm:$0xff] %v432_v27  ;;  %v436_v29 = vld [vmem:[%s2399_s27 + $0x90] sm:$0xff] }
  0x45   : > { %435 = vst [vmem:[%s2404_s10 + $0x40] sm:$0xff] %v434_v28  ;;  %v438_v30 = vld [vmem:[%s2399_s27 + $0xa0] sm:$0xff]  ;;  %v440_v31 = vld [vmem:[%s2399_s27 + $0xb0] sm:$0xff]  ;;  %437 = vst [vmem:[%s2404_s10 + $0x48] sm:$0xff] %v436_v29 }
  0x46   : > { %439 = vst [vmem:[%s2404_s10 + $0x50] sm:$0xff] %v438_v30  ;;  %441 = vst [vmem:[%s2404_s10 + $0x58] sm:$0xff] %v440_v31  ;;  %v442_v32 = vld [vmem:[%s2399_s27 + $0xc0] sm:$0xff]  ;;  %v444_v33 = vld [vmem:[%s2399_s27 + $0xd0] sm:$0xff] }
  0x47   : > { %v446_v34 = vld [vmem:[%s2399_s27 + $0xe0] sm:$0xff]  ;;  %443 = vst [vmem:[%s2404_s10 + $0x60] sm:$0xff] %v442_v32  ;;  %445 = vst [vmem:[%s2404_s10 + $0x68] sm:$0xff] %v444_v33  ;;  %v448_v35 = vld [vmem:[%s2399_s27 + $0xf0] sm:$0xff] }
  0x48   : > { %447 = vst [vmem:[%s2404_s10 + $0x70] sm:$0xff] %v446_v34  ;;  %v450_v36 = vld [vmem:[%s2399_s27 + $0x100] sm:$0xff]  ;;  %v452_v37 = vld [vmem:[%s2399_s27 + $0x110] sm:$0xff]  ;;  %449 = vst [vmem:[%s2404_s10 + $0x78] sm:$0xff] %v448_v35 }
  0x49   : > { %451 = vst [vmem:[%s2404_s10 + $0x80] sm:$0xff] %v450_v36  ;;  %453 = vst [vmem:[%s2404_s10 + $0x88] sm:$0xff] %v452_v37  ;;  %v454_v38 = vld [vmem:[%s2399_s27 + $0x120] sm:$0xff]  ;;  %v456_v39 = vld [vmem:[%s2399_s27 + $0x130] sm:$0xff] }
  0x4a   : > { %v458_v40 = vld [vmem:[%s2399_s27 + $0x140] sm:$0xff]  ;;  %455 = vst [vmem:[%s2404_s10 + $0x90] sm:$0xff] %v454_v38  ;;  %457 = vst [vmem:[%s2404_s10 + $0x98] sm:$0xff] %v456_v39  ;;  %v460_v41 = vld [vmem:[%s2399_s27 + $0x150] sm:$0xff] }
  0x4b   : > { %459 = vst [vmem:[%s2404_s10 + $0xa0] sm:$0xff] %v458_v40  ;;  %v462_v42 = vld [vmem:[%s2399_s27 + $0x160] sm:$0xff]  ;;  %v464_v43 = vld [vmem:[%s2399_s27 + $0x170] sm:$0xff]  ;;  %461 = vst [vmem:[%s2404_s10 + $0xa8] sm:$0xff] %v460_v41 }
  0x4c   : > { %463 = vst [vmem:[%s2404_s10 + $0xb0] sm:$0xff] %v462_v42  ;;  %465 = vst [vmem:[%s2404_s10 + $0xb8] sm:$0xff] %v464_v43  ;;  %v466_v44 = vld [vmem:[%s2399_s27 + $0x180] sm:$0xff]  ;;  %v468_v45 = vld [vmem:[%s2399_s27 + $0x190] sm:$0xff] }
  0x4d   : > { %v470_v46 = vld [vmem:[%s2399_s27 + $0x1a0] sm:$0xff]  ;;  %467 = vst [vmem:[%s2404_s10 + $0xc0] sm:$0xff] %v466_v44  ;;  %469 = vst [vmem:[%s2404_s10 + $0xc8] sm:$0xff] %v468_v45  ;;  %v472_v47 = vld [vmem:[%s2399_s27 + $0x1b0] sm:$0xff] }
  0x4e   : > { %471 = vst [vmem:[%s2404_s10 + $0xd0] sm:$0xff] %v470_v46  ;;  %v474_v48 = vld [vmem:[%s2399_s27 + $0x1c0] sm:$0xff]  ;;  %v476_v49 = vld [vmem:[%s2399_s27 + $0x1d0] sm:$0xff]  ;;  %473 = vst [vmem:[%s2404_s10 + $0xd8] sm:$0xff] %v472_v47 }
  0x4f   : > { %475 = vst [vmem:[%s2404_s10 + $0xe0] sm:$0xff] %v474_v48  ;;  %477 = vst [vmem:[%s2404_s10 + $0xe8] sm:$0xff] %v476_v49  ;;  %v478_v50 = vld [vmem:[%s2399_s27 + $0x1e0] sm:$0xff]  ;;  %v480_v51 = vld [vmem:[%s2399_s27 + $0x1f0] sm:$0xff] }
  0x50   : > { %v482_v52 = vld [vmem:[%s2399_s27 + $0x200] sm:$0xff]  ;;  %479 = vst [vmem:[%s2404_s10 + $0xf0] sm:$0xff] %v478_v50  ;;  %481 = vst [vmem:[%s2404_s10 + $0xf8] sm:$0xff] %v480_v51  ;;  %v484_v53 = vld [vmem:[%s2399_s27 + $0x210] sm:$0xff] }
  0x51   : > { %483 = vst [vmem:[%s2404_s10 + $0x100] sm:$0xff] %v482_v52  ;;  %v486_v54 = vld [vmem:[%s2399_s27 + $0x220] sm:$0xff]  ;;  %v488_v55 = vld [vmem:[%s2399_s27 + $0x230] sm:$0xff]  ;;  %485 = vst [vmem:[%s2404_s10 + $0x108] sm:$0xff] %v484_v53 }
  0x52   : > { %487 = vst [vmem:[%s2404_s10 + $0x110] sm:$0xff] %v486_v54  ;;  %489 = vst [vmem:[%s2404_s10 + $0x118] sm:$0xff] %v488_v55  ;;  %v490_v56 = vld [vmem:[%s2399_s27 + $0x240] sm:$0xff]  ;;  %v492_v57 = vld [vmem:[%s2399_s27 + $0x250] sm:$0xff] }
  0x53   : > { %v494_v58 = vld [vmem:[%s2399_s27 + $0x260] sm:$0xff]  ;;  %491 = vst [vmem:[%s2404_s10 + $0x120] sm:$0xff] %v490_v56  ;;  %493 = vst [vmem:[%s2404_s10 + $0x128] sm:$0xff] %v492_v57  ;;  %v496_v59 = vld [vmem:[%s2399_s27 + $0x270] sm:$0xff] }
  0x54   : > { %495 = vst [vmem:[%s2404_s10 + $0x130] sm:$0xff] %v494_v58  ;;  %v498_v60 = vld [vmem:[%s2399_s27 + $0x280] sm:$0xff]  ;;  %v500_v61 = vld [vmem:[%s2399_s27 + $0x290] sm:$0xff]  ;;  %497 = vst [vmem:[%s2404_s10 + $0x138] sm:$0xff] %v496_v59 }
  0x55   : > { %499 = vst [vmem:[%s2404_s10 + $0x140] sm:$0xff] %v498_v60  ;;  %501 = vst [vmem:[%s2404_s10 + $0x148] sm:$0xff] %v500_v61  ;;  %v502_v62 = vld [vmem:[%s2399_s27 + $0x2a0] sm:$0xff]  ;;  %v504_v63 = vld [vmem:[%s2399_s27 + $0x2b0] sm:$0xff] }
  0x56   : > { %v506_v0 = vld [vmem:[%s2399_s27 + $0x2c0] sm:$0xff]  ;;  %503 = vst [vmem:[%s2404_s10 + $0x150] sm:$0xff] %v502_v62  ;;  %505 = vst [vmem:[%s2404_s10 + $0x158] sm:$0xff] %v504_v63  ;;  %v508_v1 = vld [vmem:[%s2399_s27 + $0x2d0] sm:$0xff] }
  0x57   : > { %507 = vst [vmem:[%s2404_s10 + $0x160] sm:$0xff] %v506_v0  ;;  %v510_v2 = vld [vmem:[%s2399_s27 + $0x2e0] sm:$0xff]  ;;  %v512_v3 = vld [vmem:[%s2399_s27 + $0x2f0] sm:$0xff]  ;;  %509 = vst [vmem:[%s2404_s10 + $0x168] sm:$0xff] %v508_v1 }
  0x58   : > { %511 = vst [vmem:[%s2404_s10 + $0x170] sm:$0xff] %v510_v2  ;;  %513 = vst [vmem:[%s2404_s10 + $0x178] sm:$0xff] %v512_v3  ;;  %v514_v4 = vld [vmem:[%s2399_s27 + $0x300] sm:$0xff]  ;;  %v516_v5 = vld [vmem:[%s2399_s27 + $0x310] sm:$0xff] }
  0x59   : > { %v518_v6 = vld [vmem:[%s2399_s27 + $0x320] sm:$0xff]  ;;  %515 = vst [vmem:[%s2404_s10 + $0x180] sm:$0xff] %v514_v4  ;;  %517 = vst [vmem:[%s2404_s10 + $0x188] sm:$0xff] %v516_v5  ;;  %v520_v7 = vld [vmem:[%s2399_s27 + $0x330] sm:$0xff] }
  0x5a   : > { %519 = vst [vmem:[%s2404_s10 + $0x190] sm:$0xff] %v518_v6  ;;  %v522_v8 = vld [vmem:[%s2399_s27 + $0x340] sm:$0xff]  ;;  %v524_v9 = vld [vmem:[%s2399_s27 + $0x350] sm:$0xff]  ;;  %521 = vst [vmem:[%s2404_s10 + $0x198] sm:$0xff] %v520_v7 }
  0x5b   : > { %523 = vst [vmem:[%s2404_s10 + $0x1a0] sm:$0xff] %v522_v8  ;;  %525 = vst [vmem:[%s2404_s10 + $0x1a8] sm:$0xff] %v524_v9  ;;  %v526_v10 = vld [vmem:[%s2399_s27 + $0x360] sm:$0xff]  ;;  %v528_v11 = vld [vmem:[%s2399_s27 + $0x370] sm:$0xff] }
  0x5c   : > { %v530_v12 = vld [vmem:[%s2399_s27 + $0x380] sm:$0xff]  ;;  %527 = vst [vmem:[%s2404_s10 + $0x1b0] sm:$0xff] %v526_v10  ;;  %529 = vst [vmem:[%s2404_s10 + $0x1b8] sm:$0xff] %v528_v11  ;;  %v532_v13 = vld [vmem:[%s2399_s27 + $0x390] sm:$0xff] }
  0x5d   : > { %531 = vst [vmem:[%s2404_s10 + $0x1c0] sm:$0xff] %v530_v12  ;;  %v534_v14 = vld [vmem:[%s2399_s27 + $0x3a0] sm:$0xff]  ;;  %v536_v15 = vld [vmem:[%s2399_s27 + $0x3b0] sm:$0xff]  ;;  %533 = vst [vmem:[%s2404_s10 + $0x1c8] sm:$0xff] %v532_v13 }
  0x5e   : > { %535 = vst [vmem:[%s2404_s10 + $0x1d0] sm:$0xff] %v534_v14  ;;  %537 = vst [vmem:[%s2404_s10 + $0x1d8] sm:$0xff] %v536_v15  ;;  %v538_v16 = vld [vmem:[%s2399_s27 + $0x3c0] sm:$0xff]  ;;  %v540_v17 = vld [vmem:[%s2399_s27 + $0x3d0] sm:$0xff] }
  0x5f   : > { %v542_v18 = vld [vmem:[%s2399_s27 + $0x3e0] sm:$0xff]  ;;  %539 = vst [vmem:[%s2404_s10 + $0x1e0] sm:$0xff] %v538_v16  ;;  %541 = vst [vmem:[%s2404_s10 + $0x1e8] sm:$0xff] %v540_v17  ;;  %v544_v19 = vld [vmem:[%s2399_s27 + $0x3f0] sm:$0xff] }
  0x60   : > { %543 = vst [vmem:[%s2404_s10 + $0x1f0] sm:$0xff] %v542_v18  ;;  %545 = vst [vmem:[%s2404_s10 + $0x1f8] sm:$0xff] %v544_v19 }
  0x61 PF: > { %p1772_p0 = scmp.ge.s32.totalorder %s2213_s25, 1  ;;  %p566_p1 = scmp.lt.s32.totalorder %s2213_s25, 19 }
  0x63   : > { %p567_p2 = pnand %p1772_p0, %p566_p1 }
  0x64   : > { %s573_s0 = sand.u32 (!%p567_p2), 1, %s2189_s19   ;;  %s580_s28 = sand.u32 (!%p567_p2), 1, %s2181_s17  }
  0x65   : > { %570 = sbr.rel (%p567_p2) target bundleno = 462 (0x1ce), region = 89  ;;  %s1773_s26 = sshll.u32 (!%p567_p2), %s580_s28, 9 }
  0x66   : > { %s1910_s11 = smul.u32 (!%p567_p2), 160, %s573_s0  ;;  %s613_s5 = sand.u32 (!%p567_p2), 1, %s2173_s15  }
  0x67   : > { %s1911_s29 = smul.u32 (!%p567_p2), 80, %s613_s5  ;;  %s1774_s27 = sshll.u32 (!%p567_p2), %s2201_s22, 1 }
  0x68   : > { %p621_p3 = scmp.lt.s32.totalorder (!%p567_p2), %s1774_s27, 3  ;;  %s2547_s19 = scalar_lea.vmem (!%p567_p2), [#allocation3], %s1910_s11 }
  0x69   : > { %s2549_s17 = scalar_lea.vmem (!%p567_p2), [#allocation4], %s1773_s26  ;;  %s2551_s15 = scalar_lea.vmem (!%p567_p2), [#allocation5], %s1911_s29 }
  0x6a   : > { %p1776_p4 = scmp.ne.s32.totalorder (!%p567_p2), %s2197_s21, 0 }
  0x6c   : > { %s2791_s27 = smov (!%p621_p3, %s1774_s27), 3  ;;  %635 = sbr.rel (%p1776_p4) target bundleno = 120 (0x78), region = 101 }
  0x6d   : > { %s623_s6 = scalar_lea.vmem %s2758_s2, %s2791_s27  ;;  %s628_s1 = scalar_lea.vmem %s2759_s3, %s2791_s27  ;;  %v2215_v20 = vmov (!%p1776_p4), 0.0  }
  0x6e   : > { %636 = vst [vmem:[#allocation2] sm:$0xff] (!%p1776_p4), %v2215_v20  ;;  %637 = vst [vmem:[#allocation2 + $0x8] sm:$0xff] (!%p1776_p4), %v2215_v20 }
  0x6f   : > { %638 = vst [vmem:[#allocation2 + $0x10] sm:$0xff] (!%p1776_p4), %v2215_v20  ;;  %639 = vst [vmem:[#allocation2 + $0x18] sm:$0xff] (!%p1776_p4), %v2215_v20 }
  0x70   : > { %640 = vst [vmem:[#allocation2 + $0x20] sm:$0xff] (!%p1776_p4), %v2215_v20  ;;  %641 = vst [vmem:[#allocation2 + $0x28] sm:$0xff] (!%p1776_p4), %v2215_v20 }
  0x71   : > { %642 = vst [vmem:[#allocation2 + $0x30] sm:$0xff] (!%p1776_p4), %v2215_v20  ;;  %643 = vst [vmem:[#allocation2 + $0x38] sm:$0xff] (!%p1776_p4), %v2215_v20 }
  0x72   : > { %644 = vst [vmem:[#allocation2 + $0x40] sm:$0xff] (!%p1776_p4), %v2215_v20  ;;  %645 = vst [vmem:[#allocation2 + $0x48] sm:$0xff] (!%p1776_p4), %v2215_v20 }
  0x73   : > { %646 = vst [vmem:[#allocation2 + $0x50] sm:$0xff] %v2215_v20  ;;  %647 = vst [vmem:[#allocation2 + $0x58] sm:$0xff] %v2215_v20 }
  0x74   : > { %648 = vst [vmem:[#allocation2 + $0x60] sm:$0xff] %v2215_v20  ;;  %649 = vst [vmem:[#allocation2 + $0x68] sm:$0xff] %v2215_v20 }
  0x75   : > { %650 = vst [vmem:[#allocation2 + $0x70] sm:$0xff] %v2215_v20  ;;  %651 = vst [vmem:[#allocation2 + $0x78] sm:$0xff] %v2215_v20 }
  0x76   : > { %652 = vst [vmem:[#allocation2 + $0x80] sm:$0xff] %v2215_v20  ;;  %653 = vst [vmem:[#allocation2 + $0x88] sm:$0xff] %v2215_v20 }
  0x77   : > { %654 = vst [vmem:[#allocation2 + $0x90] sm:$0xff] %v2215_v20  ;;  %655 = vst [vmem:[#allocation2 + $0x98] sm:$0xff] %v2215_v20 }
  0x78 PF: > { %v2001_v21 = vld [vmem:[%s2549_s17 + $0x4] ss:$8 sps:$4 sm:$0xff]   ;;  %v2005_v23 = vld [vmem:[%s2549_s17] ss:$8 sps:$4 sm:$0xff]   ;;  %v2007_v25 = vld [vmem:[%s2549_s17 + $0x14] ss:$8 sps:$4 sm:$0xff]  }
  0x79   : > { %v2003_v22 = vld [vmem:[%s2549_s17 + $0x104] ss:$8 sps:$4 sm:$0xff]   ;;  %1180 = vmatprep.subr.bf16.mxu1 %v2001_v21  ;;  %v2006_v24 = vld [vmem:[%s2549_s17 + $0x100] ss:$8 sps:$4 sm:$0xff]   ;;  %v2009_v26 = vld [vmem:[%s2549_s17 + $0x114] ss:$8 sps:$4 sm:$0xff]  }
  0x7a   : > { %1263 = vmatprep.subr.bf16.mxu0 %v2003_v22  ;;  %1181 = vmatpush1.bf16.msra.mxu1 %v2005_v23  ;;  %v2011_v27 = vld [vmem:[%s2549_s17 + $0x10] ss:$8 sps:$4 sm:$0xff]   ;;  %v2013_v29 = vld [vmem:[%s2549_s17 + $0x24] ss:$8 sps:$4 sm:$0xff]   ;;  %v2017_v31 = vld [vmem:[%s2549_s17 + $0x20] ss:$8 sps:$4 sm:$0xff]  }
  0x7b   : > { %1264 = vmatpush1.bf16.msra.mxu0 %v2006_v24  ;;  %1182 = vmatprep.subr.bf16.mxu1 %v2007_v25  ;;  %v2012_v28 = vld [vmem:[%s2549_s17 + $0x110] ss:$8 sps:$4 sm:$0xff]   ;;  %v2015_v30 = vld [vmem:[%s2549_s17 + $0x124] ss:$8 sps:$4 sm:$0xff]   ;;  %v2018_v32 = vld [vmem:[%s2549_s17 + $0x120] ss:$8 sps:$4 sm:$0xff]  }
  0x7c   : > { %1265 = vmatprep.subr.bf16.mxu0 %v2009_v26  ;;  %v2019_v33 = vld [vmem:[%s2549_s17 + $0x34] ss:$8 sps:$4 sm:$0xff]   ;;  %v2023_v35 = vld [vmem:[%s2549_s17 + $0x30] ss:$8 sps:$4 sm:$0xff]   ;;  %v2025_v37 = vld [vmem:[%s2549_s17 + $0x44] ss:$8 sps:$4 sm:$0xff]  }
  0x7d   : > { %v2021_v34 = vld [vmem:[%s2549_s17 + $0x134] ss:$8 sps:$4 sm:$0xff]   ;;  %v2024_v36 = vld [vmem:[%s2549_s17 + $0x130] ss:$8 sps:$4 sm:$0xff]   ;;  %v2027_v38 = vld [vmem:[%s2549_s17 + $0x144] ss:$8 sps:$4 sm:$0xff]  }
  0x7e   : > { %1183 = vmatpush1.bf16.msra.mxu1 %v2011_v27  ;;  %v2029_v39 = vld [vmem:[%s2549_s17 + $0x40] ss:$8 sps:$4 sm:$0xff]   ;;  %v2031_v41 = vld [vmem:[%s2549_s17 + $0x54] ss:$8 sps:$4 sm:$0xff]   ;;  %v2035_v43 = vld [vmem:[%s2549_s17 + $0x50] ss:$8 sps:$4 sm:$0xff]  }
  0x7f   : > { %1266 = vmatpush1.bf16.msra.mxu0 %v2012_v28  ;;  %1184 = vmatprep.subr.bf16.mxu1 %v2013_v29  ;;  %v2030_v40 = vld [vmem:[%s2549_s17 + $0x140] ss:$8 sps:$4 sm:$0xff]   ;;  %v2033_v42 = vld [vmem:[%s2549_s17 + $0x154] ss:$8 sps:$4 sm:$0xff]   ;;  %v2036_v44 = vld [vmem:[%s2549_s17 + $0x150] ss:$8 sps:$4 sm:$0xff]  }
  0x80   : > { %1267 = vmatprep.subr.bf16.mxu0 %v2015_v30  ;;  %v2037_v45 = vld [vmem:[%s2549_s17 + $0x64] ss:$8 sps:$4 sm:$0xff]   ;;  %v2041_v47 = vld [vmem:[%s2549_s17 + $0x60] ss:$8 sps:$4 sm:$0xff]   ;;  %v2043_v49 = vld [vmem:[%s2549_s17 + $0x74] ss:$8 sps:$4 sm:$0xff]  }
  0x81   : > { %v2039_v46 = vld [vmem:[%s2549_s17 + $0x164] ss:$8 sps:$4 sm:$0xff]   ;;  %v2042_v48 = vld [vmem:[%s2549_s17 + $0x160] ss:$8 sps:$4 sm:$0xff]   ;;  %v2045_v50 = vld [vmem:[%s2549_s17 + $0x174] ss:$8 sps:$4 sm:$0xff]  }
  0x82   : > { %1185 = vmatpush1.bf16.msra.mxu1 %v2017_v31  ;;  %v2047_v51 = vld [vmem:[%s2549_s17 + $0x70] ss:$8 sps:$4 sm:$0xff]   ;;  %v2049_v53 = vld [vmem:[%s2549_s17 + $0x84] ss:$8 sps:$4 sm:$0xff]   ;;  %v2053_v55 = vld [vmem:[%s2549_s17 + $0x80] ss:$8 sps:$4 sm:$0xff]  }
  0x83   : > { %1268 = vmatpush1.bf16.msra.mxu0 %v2018_v32  ;;  %1186 = vmatprep.subr.bf16.mxu1 %v2019_v33  ;;  %v2048_v52 = vld [vmem:[%s2549_s17 + $0x170] ss:$8 sps:$4 sm:$0xff]   ;;  %v2051_v54 = vld [vmem:[%s2549_s17 + $0x184] ss:$8 sps:$4 sm:$0xff]   ;;  %v2054_v56 = vld [vmem:[%s2549_s17 + $0x180] ss:$8 sps:$4 sm:$0xff]  }
  0x84   : > { %1269 = vmatprep.subr.bf16.mxu0 %v2021_v34  ;;  %v2055_v57 = vld [vmem:[%s2549_s17 + $0x94] ss:$8 sps:$4 sm:$0xff]   ;;  %v2059_v59 = vld [vmem:[%s2549_s17 + $0x90] ss:$8 sps:$4 sm:$0xff]   ;;  %v2061_v61 = vld [vmem:[%s2549_s17 + $0xa4] ss:$8 sps:$4 sm:$0xff]  }
  0x85   : > { %v2057_v58 = vld [vmem:[%s2549_s17 + $0x194] ss:$8 sps:$4 sm:$0xff]   ;;  %v2060_v60 = vld [vmem:[%s2549_s17 + $0x190] ss:$8 sps:$4 sm:$0xff]   ;;  %v2063_v62 = vld [vmem:[%s2549_s17 + $0x1a4] ss:$8 sps:$4 sm:$0xff]  }
  0x86   : > { %1187 = vmatpush1.bf16.msra.mxu1 %v2023_v35  ;;  %v2065_v63 = vld [vmem:[%s2549_s17 + $0xa0] ss:$8 sps:$4 sm:$0xff]   ;;  %v2067_v1 = vld [vmem:[%s2549_s17 + $0xb4] ss:$8 sps:$4 sm:$0xff]   ;;  %v2071_v3 = vld [vmem:[%s2549_s17 + $0xb0] ss:$8 sps:$4 sm:$0xff]  }
  0x87   : > { %1270 = vmatpush1.bf16.msra.mxu0 %v2024_v36  ;;  %1188 = vmatprep.subr.bf16.mxu1 %v2025_v37  ;;  %v2066_v0 = vld [vmem:[%s2549_s17 + $0x1a0] ss:$8 sps:$4 sm:$0xff]   ;;  %v2069_v2 = vld [vmem:[%s2549_s17 + $0x1b4] ss:$8 sps:$4 sm:$0xff]   ;;  %v2072_v4 = vld [vmem:[%s2549_s17 + $0x1b0] ss:$8 sps:$4 sm:$0xff]  }
  0x88   : > { %1271 = vmatprep.subr.bf16.mxu0 %v2027_v38  ;;  %v2073_v5 = vld [vmem:[%s2549_s17 + $0xc4] ss:$8 sps:$4 sm:$0xff]   ;;  %v2077_v9 = vld [vmem:[%s2549_s17 + $0xc0] ss:$8 sps:$4 sm:$0xff]   ;;  %v2079_v11 = vld [vmem:[%s2549_s17 + $0xd4] ss:$8 sps:$4 sm:$0xff]  }
  0x89   : > { %v2099_v6 = vld [vmem:[%s2547_s19 + $0x4] ss:$16 sps:$4 sm:$0xff]   ;;  %v2102_v8 = vld [vmem:[%s2547_s19 + $0xc] ss:$16 sps:$4 sm:$0xff]   ;;  %v2078_v10 = vld [vmem:[%s2549_s17 + $0x1c0] ss:$8 sps:$4 sm:$0xff]  }
  0x8a   : > { %1189 = vmatpush1.bf16.msra.mxu1 %v2029_v39  ;;  %v2075_v7 = vld [vmem:[%s2549_s17 + $0x1c4] ss:$8 sps:$4 sm:$0xff]   ;;  %1212 = vmatprep.mubr.bf16.mxu1 %v2099_v6  ;;  %v2081_v12 = vld [vmem:[%s2549_s17 + $0x1d4] ss:$8 sps:$4 sm:$0xff]   ;;  %v2083_v13 = vld [vmem:[%s2549_s17 + $0xd0] ss:$8 sps:$4 sm:$0xff]  }
  0x8b   : > { %1272 = vmatpush1.bf16.msra.mxu0 %v2030_v40  ;;  %1190 = vmatprep.subr.bf16.mxu1 %v2031_v41  ;;  %v2084_v14 = vld [vmem:[%s2549_s17 + $0x1d0] ss:$8 sps:$4 sm:$0xff]   ;;  %v2085_v15 = vld [vmem:[%s2549_s17 + $0xe4] ss:$8 sps:$4 sm:$0xff]   ;;  %v2089_v17 = vld [vmem:[%s2549_s17 + $0xe0] ss:$8 sps:$4 sm:$0xff]  }
  0x8c   : > { %1273 = vmatprep.subr.bf16.mxu0 %v2033_v42  ;;  %1295 = vmatprep.mubr.bf16.mxu0 %v2102_v8  ;;  %v2087_v16 = vld [vmem:[%s2549_s17 + $0x1e4] ss:$8 sps:$4 sm:$0xff]   ;;  %v2090_v18 = vld [vmem:[%s2549_s17 + $0x1e0] ss:$8 sps:$4 sm:$0xff]   ;;  %v2091_v19 = vld [vmem:[%s2549_s17 + $0xf4] ss:$8 sps:$4 sm:$0xff]  }
  0x8d   : > { %v2093_v20 = vld [vmem:[%s2549_s17 + $0x1f4] ss:$8 sps:$4 sm:$0xff]   ;;  %v2095_v21 = vld [vmem:[%s2549_s17 + $0xf0] ss:$8 sps:$4 sm:$0xff]   ;;  %v656_v42 = vld [vmem:[#allocation2] sm:$0xff]  ;;  %p1861_p5 = scmp.ne.s32.totalorder %s2197_s21, 8 }
  0x8e   : > { %1191 = vmatpush1.bf16.msra.mxu1 %v2035_v43  ;;  %v2096_v22 = vld [vmem:[%s2549_s17 + $0x1f0] ss:$8 sps:$4 sm:$0xff]   ;;  %v2103_v25 = vld [vmem:[%s2547_s19 + $0x24] ss:$16 sps:$4 sm:$0xff]   ;;  %v2105_v26 = vld [vmem:[%s2547_s19 + $0x2c] ss:$16 sps:$4 sm:$0xff]  }
  0x8f   : > { %1274 = vmatpush1.bf16.msra.mxu0 %v2036_v44  ;;  %1192 = vmatprep.subr.bf16.mxu1 %v2037_v45  ;;  %v2097_v23 = vld [vmem:[%s2547_s19] ss:$16 sps:$4 sm:$0xff]   ;;  %v2100_v24 = vld [vmem:[%s2547_s19 + $0x8] ss:$16 sps:$4 sm:$0xff]   ;;  %v2109_v29 = vld [vmem:[%s2547_s19 + $0x44] ss:$16 sps:$4 sm:$0xff]  }
  0x90   : > { %1275 = vmatprep.subr.bf16.mxu0 %v2039_v46  ;;  %v2107_v27 = vld [vmem:[%s2547_s19 + $0x20] ss:$16 sps:$4 sm:$0xff]   ;;  %v2108_v28 = vld [vmem:[%s2547_s19 + $0x28] ss:$16 sps:$4 sm:$0xff]   ;;  %v2111_v30 = vld [vmem:[%s2547_s19 + $0x4c] ss:$16 sps:$4 sm:$0xff]  }
  0x91   : > { %v2113_v31 = vld [vmem:[%s2547_s19 + $0x40] ss:$16 sps:$4 sm:$0xff]   ;;  %v2114_v32 = vld [vmem:[%s2547_s19 + $0x48] ss:$16 sps:$4 sm:$0xff]   ;;  %v2115_v33 = vld [vmem:[%s2547_s19 + $0x64] ss:$16 sps:$4 sm:$0xff]  }
  0x92   : > { %1193 = vmatpush1.bf16.msra.mxu1 %v2041_v47  ;;  %v2117_v34 = vld [vmem:[%s2547_s19 + $0x6c] ss:$16 sps:$4 sm:$0xff]   ;;  %v2119_v35 = vld [vmem:[%s2547_s19 + $0x60] ss:$16 sps:$4 sm:$0xff]   ;;  %v2120_v36 = vld [vmem:[%s2547_s19 + $0x68] ss:$16 sps:$4 sm:$0xff]  }
  0x93   : > { %1276 = vmatpush1.bf16.msra.mxu0 %v2042_v48  ;;  %1194 = vmatprep.subr.bf16.mxu1 %v2043_v49  ;;  %v2121_v37 = vld [vmem:[%s2547_s19 + $0x84] ss:$16 sps:$4 sm:$0xff]   ;;  %v2123_v38 = vld [vmem:[%s2547_s19 + $0x8c] ss:$16 sps:$4 sm:$0xff]   ;;  %v2125_v39 = vld [vmem:[%s2547_s19 + $0x80] ss:$16 sps:$4 sm:$0xff]  }
  0x94   : > { %1277 = vmatprep.subr.bf16.mxu0 %v2045_v50  ;;  %v2126_v40 = vld [vmem:[%s2547_s19 + $0x88] ss:$16 sps:$4 sm:$0xff]   ;;  %v658_v50 = vld [vmem:[#allocation2 + $0x10] sm:$0xff] }
  0x95   : > { %v657_v46 = vld [vmem:[#allocation2 + $0x8] sm:$0xff]  ;;  %v662_v6 = vld [vmem:[#allocation2 + $0x30] sm:$0xff] }
  0x96   : > { %1195 = vmatpush1.bf16.msra.mxu1 %v2047_v51 }
  0x97   : > { %1278 = vmatpush1.bf16.msra.mxu0 %v2048_v52  ;;  %1196 = vmatprep.subr.bf16.mxu1 %v2049_v53 }
  0x98   : > { %1279 = vmatprep.subr.bf16.mxu0 %v2051_v54 }
  0x9a   : > { %1197 = vmatpush1.bf16.msra.mxu1 %v2053_v55  ;;  %v659_v55 = vld [vmem:[#allocation2 + $0x18] sm:$0xff] }
  0x9b   : > { %1280 = vmatpush1.bf16.msra.mxu0 %v2054_v56  ;;  %1198 = vmatprep.subr.bf16.mxu1 %v2055_v57 }
  0x9c   : > { %1281 = vmatprep.subr.bf16.mxu0 %v2057_v58 }
  0x9e   : > { %1199 = vmatpush1.bf16.msra.mxu1 %v2059_v59 }
  0x9f   : > { %1282 = vmatpush1.bf16.msra.mxu0 %v2060_v60  ;;  %1200 = vmatprep.subr.bf16.mxu1 %v2061_v61 }
  0xa0   : > { %1283 = vmatprep.subr.bf16.mxu0 %v2063_v62  ;;  %v660_v62 = vld [vmem:[#allocation2 + $0x20] sm:$0xff] }
  0xa2   : > { %1201 = vmatpush1.bf16.msra.mxu1 %v2065_v63 }
  0xa3   : > { %1284 = vmatpush1.bf16.msra.mxu0 %v2066_v0  ;;  %1202 = vmatprep.subr.bf16.mxu1 %v2067_v1 }
  0xa4   : > { %1285 = vmatprep.subr.bf16.mxu0 %v2069_v2  ;;  %v661_v2 = vld [vmem:[#allocation2 + $0x28] sm:$0xff] }
  0xa6   : > { %1203 = vmatpush1.bf16.msra.mxu1 %v2071_v3 }
  0xa7   : > { %1286 = vmatpush1.bf16.msra.mxu0 %v2072_v4  ;;  %1204 = vmatprep.subr.bf16.mxu1 %v2073_v5 }
  0xa8   : > { %1287 = vmatprep.subr.bf16.mxu0 %v2075_v7 }
  0xaa   : > { %1205 = vmatpush1.bf16.msra.mxu1 %v2077_v9 }
  0xab   : > { %1288 = vmatpush1.bf16.msra.mxu0 %v2078_v10  ;;  %1206 = vmatprep.subr.bf16.mxu1 %v2079_v11  ;;  %v663_v11 = vld [vmem:[#allocation2 + $0x38] sm:$0xff] }
  0xac   : > { %1289 = vmatprep.subr.bf16.mxu0 %v2081_v12 }
  0xae   : > { %1207 = vmatpush1.bf16.msra.mxu1 %v2083_v13 }
  0xaf   : > { %1290 = vmatpush1.bf16.msra.mxu0 %v2084_v14  ;;  %1208 = vmatprep.subr.bf16.mxu1 %v2085_v15 }
  0xb0   : > { %1291 = vmatprep.subr.bf16.mxu0 %v2087_v16 }
  0xb2   : > { %1209 = vmatpush1.bf16.msra.mxu1 %v2089_v17 }
  0xb3   : > { %1292 = vmatpush1.bf16.msra.mxu0 %v2090_v18  ;;  %1210 = vmatprep.subr.bf16.mxu1 %v2091_v19  ;;  %v664_v18 = vld [vmem:[#allocation2 + $0x40] sm:$0xff] }
  0xb4   : > { %1293 = vmatprep.subr.bf16.mxu0 %v2093_v20 }
  0xb6   : > { %1211 = vmatpush1.bf16.msra.mxu1 %v2095_v21 }
  0xb7   : > { %1294 = vmatpush1.bf16.msra.mxu0 %v2096_v22  ;;  %v665_v22 = vld [vmem:[#allocation2 + $0x48] sm:$0xff] }
  0xb9   : > { %1213 = vmatmul.mubr.bf16.vlgmr.msra.gmra.mrb[0].mxu1 %v2097_v23 }
  0xba   : > { %1296 = vmatmul.mubr.bf16.vlgmr.msra.gmra.mrb[0].mxu0 %v2100_v24  ;;  %1222 = vmatprep.mubr.bf16.mxu1 %v2103_v25 }
  0xbb   : > { %1305 = vmatprep.mubr.bf16.mxu0 %v2105_v26  ;;  %v666_v26 = vld [vmem:[#allocation2 + $0x50] sm:$0xff] }
  0xc1   : > { %1223 = vmatmul.mubr.bf16.gmra.mrb[4].mxu1 %v2107_v27 }
  0xc2   : > { %1306 = vmatmul.mubr.bf16.gmra.mrb[4].mxu0 %v2108_v28  ;;  %1232 = vmatprep.mubr.bf16.mxu1 %v2109_v29 }
  0xc3   : > { %1315 = vmatprep.mubr.bf16.mxu0 %v2111_v30 }
  0xc9   : > { %1233 = vmatmul.mubr.bf16.gmra.mrb[8].mxu1 %v2113_v31  ;;  %v667_v31 = vld [vmem:[#allocation2 + $0x58] sm:$0xff] }
  0xca   : > { %1316 = vmatmul.mubr.bf16.gmra.mrb[8].mxu0 %v2114_v32  ;;  %1242 = vmatprep.mubr.bf16.mxu1 %v2115_v33 }
  0xcb   : > { %1325 = vmatprep.mubr.bf16.mxu0 %v2117_v34 }
  0xd1   : > { %1243 = vmatmul.mubr.bf16.gmra.mrb[12].mxu1 %v2119_v35 }
  0xd2   : > { %1326 = vmatmul.mubr.bf16.gmra.mrb[12].mxu0 %v2120_v36  ;;  %1252 = vmatprep.mubr.bf16.mxu1 %v2121_v37 }
  0xd3   : > { %1335 = vmatprep.mubr.bf16.mxu0 %v2123_v38  ;;  %v668_v38 = vld [vmem:[#allocation2 + $0x60] sm:$0xff] }
  0xd9   : > { %1253 = vmatmul.mubr.bf16.gmra.mrb[16].mxu1 %v2125_v39 }
  0xda   : > { %1336 = vmatmul.mubr.bf16.gmra.mrb[16].mxu0 %v2126_v40 }
 0x18c   : > { %v1214_v41 = vpop.f32.mrb[0].mxu1 }
 0x18d   : > { %v1297_v43 = vpop.f32.mrb[0].mxu0  ;;  %v1216_v45 = vpop.f32.mrb[1].mxu1 }
 0x18e   : > { %v1298_v44 = vadd.f32 %v1297_v43, %v1214_v41  ;;  %v1299_v47 = vpop.f32.mrb[1].mxu0  ;;  %v1218_v49 = vpop.f32.mrb[2].mxu1 }
 0x18f   : > { %v1300_v48 = vadd.f32 %v1299_v47, %v1216_v45  ;;  %v1301_v51 = vpop.f32.mrb[2].mxu0  ;;  %v1220_v54 = vpop.f32.mrb[3].mxu1 }
 0x190   : > { %v1346_v52 = vadd.f32 %v1298_v44, %v656_v42  ;;  %v1302_v53 = vadd.f32 %v1301_v51, %v1218_v49  ;;  %v1303_v56 = vpop.f32.mrb[3].mxu0  ;;  %v669_v42 = vld [vmem:[#allocation2 + $0x68] sm:$0xff]  ;;  %v671_v51 = vld [vmem:[#allocation2 + $0x78] sm:$0xff] }
 0x191   : > { %v1347_v57 = vadd.f32 %v1300_v48, %v657_v46  ;;  %v1304_v58 = vadd.f32 %v1303_v56, %v1220_v54  ;;  %v670_v46 = vld [vmem:[#allocation2 + $0x70] sm:$0xff] }
 0x192   : > { %1366 = vst [vmem:[#allocation2] sm:$0xff] %v1346_v52  ;;  %v1348_v59 = vadd.f32 %v1302_v53, %v658_v50 }
 0x193   : > { %1367 = vst [vmem:[#allocation2 + $0x8] sm:$0xff] %v1347_v57  ;;  %v1349_v60 = vadd.f32 %v1304_v58, %v659_v55  ;;  %v672_v58 = vld [vmem:[#allocation2 + $0x80] sm:$0xff] }
 0x194   : > { %1368 = vst [vmem:[#allocation2 + $0x10] sm:$0xff] %v1348_v59  ;;  %v1224_v61 = vpop.f32.mrb[4].mxu1 }
 0x195   : > { %1369 = vst [vmem:[#allocation2 + $0x18] sm:$0xff] %v1349_v60  ;;  %v1307_v63 = vpop.f32.mrb[4].mxu0  ;;  %v1226_v1 = vpop.f32.mrb[5].mxu1 }
 0x196   : > { %v1308_v0 = vadd.f32 %v1307_v63, %v1224_v61  ;;  %v1309_v3 = vpop.f32.mrb[5].mxu0  ;;  %v1228_v5 = vpop.f32.mrb[6].mxu1 }
 0x197   : > { %v1310_v4 = vadd.f32 %v1309_v3, %v1226_v1  ;;  %v1311_v7 = vpop.f32.mrb[6].mxu0  ;;  %v1230_v10 = vpop.f32.mrb[7].mxu1 }
 0x198   : > { %v1350_v8 = vadd.f32 %v1308_v0, %v660_v62  ;;  %v1312_v9 = vadd.f32 %v1311_v7, %v1228_v5  ;;  %v1313_v12 = vpop.f32.mrb[7].mxu0  ;;  %v673_v62 = vld [vmem:[#allocation2 + $0x88] sm:$0xff]  ;;  %v675_v7 = vld [vmem:[#allocation2 + $0x98] sm:$0xff] }
 0x199   : > { %v1351_v13 = vadd.f32 %v1310_v4, %v661_v2  ;;  %v1314_v14 = vadd.f32 %v1313_v12, %v1230_v10  ;;  %v674_v2 = vld [vmem:[#allocation2 + $0x90] sm:$0xff] }
 0x19a   : > { %1370 = vst [vmem:[#allocation2 + $0x20] sm:$0xff] %v1350_v8  ;;  %v1352_v15 = vadd.f32 %v1312_v9, %v662_v6 }
 0x19b   : > { %1371 = vst [vmem:[#allocation2 + $0x28] sm:$0xff] %v1351_v13  ;;  %v1353_v16 = vadd.f32 %v1314_v14, %v663_v11  ;;  %v1412_v13 = vlaneseq (!%p1861_p5) }
 0x19c   : > { %1372 = vst [vmem:[#allocation2 + $0x30] sm:$0xff] %v1352_v15  ;;  %v1234_v17 = vpop.f32.mrb[8].mxu1  ;;  %v1410_v15 = vld [vmem:[%s623_s6] sm:$0x3] (!%p1861_p5) }
 0x19d   : > { %1373 = vst [vmem:[#allocation2 + $0x38] sm:$0xff] %v1353_v16  ;;  %v1317_v19 = vpop.f32.mrb[8].mxu0  ;;  %v1236_v21 = vpop.f32.mrb[9].mxu1  ;;  %v1413_v14 = vshrl.u32 (!%p1861_p5), %v1412_v13, 7  ;;  %v1442_v16 = vld [vmem:[%s628_s1] sm:$0x3] (!%p1861_p5) }
 0x19e   : > { %v1318_v20 = vadd.f32 %v1317_v19, %v1234_v17  ;;  %v1319_v23 = vpop.f32.mrb[9].mxu0  ;;  %v1238_v25 = vpop.f32.mrb[10].mxu1  ;;  %v1390_v17 = vld [vmem:[#allocation2] sm:$0xff] (!%p1861_p5) }
 0x19f   : > { %v1320_v24 = vadd.f32 %v1319_v23, %v1236_v21  ;;  %v1321_v27 = vpop.f32.mrb[10].mxu0  ;;  %v1240_v30 = vpop.f32.mrb[11].mxu1  ;;  %v1414_v19 = vsub.s32 (!%p1861_p5), 0, %v1413_v14  ;;  %v1392_v21 = vld [vmem:[#allocation2 + $0x10] sm:$0xff] (!%p1861_p5) }
 0x1a0   : > { %v1354_v28 = vadd.f32 %v1318_v20, %v664_v18  ;;  %v1322_v29 = vadd.f32 %v1321_v27, %v1238_v25  ;;  %v1323_v32 = vpop.f32.mrb[11].mxu0  ;;  %v1391_v18 = vld [vmem:[#allocation2 + $0x8] sm:$0xff] (!%p1861_p5)  ;;  %v1418_v20 = vsub.s32 (!%p1861_p5), 1, %v1413_v14 }
 0x1a1   : > { %v1355_v33 = vadd.f32 %v1320_v24, %v665_v22  ;;  %v1324_v34 = vadd.f32 %v1323_v32, %v1240_v30  ;;  %v1393_v22 = vld [vmem:[#allocation2 + $0x18] sm:$0xff] (!%p1861_p5)  ;;  %v1394_v23 = vld [vmem:[#allocation2 + $0x20] sm:$0xff] (!%p1861_p5)  ;;  %v2649_v24 = vrot.slane (!%p1861_p5), %v1410_v15, %v1414_v19 }
 0x1a2   : > { %1374 = vst [vmem:[#allocation2 + $0x40] sm:$0xff] %v1354_v28  ;;  %v1356_v35 = vadd.f32 %v1322_v29, %v666_v26  ;;  %v2651_v25 = vrot.slane (!%p1861_p5), %v1410_v15, %v1418_v20  ;;  %v2653_v26 = vrot.slane (!%p1861_p5), %v1442_v16, %v1414_v19  ;;  %v2655_v27 = vrot.slane (!%p1861_p5), %v1442_v16, %v1418_v20  ;;  %v1395_v28 = vld [vmem:[#allocation2 + $0x28] sm:$0xff] (!%p1861_p5) }
 0x1a3   : > { %1375 = vst [vmem:[#allocation2 + $0x48] sm:$0xff] %v1355_v33  ;;  %v1357_v36 = vadd.f32 %v1324_v34, %v667_v31  ;;  %v1396_v29 = vld [vmem:[#allocation2 + $0x30] sm:$0xff] (!%p1861_p5)  ;;  %v1422_v31 = vmul.f32 (!%p1861_p5), %v2649_v24, %v1390_v17  ;;  %v1424_v33 = vmul.f32 (!%p1861_p5), %v2649_v24, %v1392_v21 }
 0x1a4   : > { %1376 = vst [vmem:[#allocation2 + $0x50] sm:$0xff] %v1356_v35  ;;  %v1244_v37 = vpop.f32.mrb[12].mxu1  ;;  %v1397_v30 = vld [vmem:[#allocation2 + $0x38] sm:$0xff] (!%p1861_p5)  ;;  %v1423_v32 = vmul.f32 (!%p1861_p5), %v2651_v25, %v1391_v18  ;;  %v1425_v34 = vmul.f32 (!%p1861_p5), %v2651_v25, %v1393_v22  ;;  %v1426_v35 = vmul.f32 (!%p1861_p5), %v2649_v24, %v1394_v23 }
 0x1a5   : > { %1377 = vst [vmem:[#allocation2 + $0x58] sm:$0xff] %v1357_v36  ;;  %v1327_v39 = vpop.f32.mrb[12].mxu0  ;;  %v1246_v41 = vpop.f32.mrb[13].mxu1  ;;  %v1427_v36 = vmul.f32 (!%p1861_p5), %v2651_v25, %v1395_v28 }
 0x1a6   : > { %v1328_v40 = vadd.f32 %v1327_v39, %v1244_v37  ;;  %v1329_v43 = vpop.f32.mrb[13].mxu0  ;;  %v1248_v45 = vpop.f32.mrb[14].mxu1  ;;  %v1428_v37 = vmul.f32 (!%p1861_p5), %v2649_v24, %v1396_v29  ;;  %v1454_v39 = vadd.f32 (!%p1861_p5), %v2653_v26, %v1422_v31 }
 0x1a7   : > { %v1330_v44 = vadd.f32 %v1329_v43, %v1246_v41  ;;  %v1331_v47 = vpop.f32.mrb[14].mxu0  ;;  %v1250_v50 = vpop.f32.mrb[15].mxu1  ;;  %v1456_v41 = vadd.f32 (!%p1861_p5), %v2653_v26, %v1424_v33  ;;  %v1458_v43 = vadd.f32 (!%p1861_p5), %v2653_v26, %v1426_v35 }
 0x1a8   : > { %v1358_v48 = vadd.f32 %v1328_v40, %v668_v38  ;;  %v1332_v49 = vadd.f32 %v1331_v47, %v1248_v45  ;;  %v1333_v52 = vpop.f32.mrb[15].mxu0  ;;  %v1429_v38 = vmul.f32 (!%p1861_p5), %v2651_v25, %v1397_v30  ;;  %v1455_v40 = vadd.f32 (!%p1861_p5), %v2655_v27, %v1423_v32 }
 0x1a9   : > { %v1359_v53 = vadd.f32 %v1330_v44, %v669_v42  ;;  %v1334_v54 = vadd.f32 %v1333_v52, %v1250_v50  ;;  %v1457_v42 = vadd.f32 (!%p1861_p5), %v2655_v27, %v1425_v34  ;;  %v1459_v44 = vadd.f32 (!%p1861_p5), %v2655_v27, %v1427_v36  ;;  %v1398_v47 = vld [vmem:[#allocation2 + $0x40] sm:$0xff] (!%p1861_p5) }
 0x1aa   : > { %1378 = vst [vmem:[#allocation2 + $0x60] sm:$0xff] %v1358_v48  ;;  %v1360_v55 = vadd.f32 %v1332_v49, %v670_v46  ;;  %v1460_v45 = vadd.f32 (!%p1861_p5), %v2653_v26, %v1428_v37  ;;  %v1461_v46 = vadd.f32 (!%p1861_p5), %v2655_v27, %v1429_v38  ;;  %v1399_v48 = vld [vmem:[#allocation2 + $0x48] sm:$0xff] (!%p1861_p5)  ;;  %v1474_v49 = vmax.f32 (!%p1861_p5), %v1454_v39, 0.0 }
 0x1ab   : > { %1379 = vst [vmem:[#allocation2 + $0x68] sm:$0xff] %v1359_v53  ;;  %v1361_v56 = vadd.f32 %v1334_v54, %v671_v51  ;;  %v1475_v50 = vmax.f32 (!%p1861_p5), %v1455_v40, 0.0  ;;  %v1476_v51 = vmax.f32 (!%p1861_p5), %v1456_v41, 0.0  ;;  %v1477_v52 = vmax.f32 (!%p1861_p5), %v1457_v42, 0.0  ;;  %v1400_v53 = vld [vmem:[#allocation2 + $0x50] sm:$0xff] (!%p1861_p5) }
 0x1ac   : > { %1380 = vst [vmem:[#allocation2 + $0x70] sm:$0xff] %v1360_v55  ;;  %v1254_v57 = vpop.f32.mrb[16].mxu1  ;;  %v1401_v54 = vld [vmem:[#allocation2 + $0x58] sm:$0xff] (!%p1861_p5)  ;;  %v1478_v55 = vmax.f32 (!%p1861_p5), %v1458_v43, 0.0 }
 0x1ad   : > { %1381 = vst [vmem:[#allocation2 + $0x78] sm:$0xff] %v1361_v56  ;;  %v1337_v59 = vpop.f32.mrb[16].mxu0  ;;  %v1256_v61 = vpop.f32.mrb[17].mxu1  ;;  %v1479_v56 = vmax.f32 (!%p1861_p5), %v1459_v44, 0.0 }
 0x1ae   : > { %v1338_v60 = vadd.f32 %v1337_v59, %v1254_v57  ;;  %v1339_v63 = vpop.f32.mrb[17].mxu0  ;;  %v1258_v1 = vpop.f32.mrb[18].mxu1  ;;  %v1480_v57 = vmax.f32 (!%p1861_p5), %v1460_v45, 0.0 }
 0x1af   : > { %v1340_v0 = vadd.f32 %v1339_v63, %v1256_v61  ;;  %v1341_v3 = vpop.f32.mrb[18].mxu0  ;;  %v1260_v6 = vpop.f32.mrb[19].mxu1  ;;  %1389 = sbr.rel (%p1861_p5) target bundleno = 454 (0x1c6), region = 105  ;;  %v1878_v61 = vpack.c.bf16 (!%p1861_p5), %v1475_v50, %v1474_v49  ;;  %v1430_v63 = vmul.f32 (!%p1861_p5), %v2649_v24, %v1398_v47 }
 0x1b0   : > { %v1362_v4 = vadd.f32 %v1338_v60, %v672_v58  ;;  %v1342_v5 = vadd.f32 %v1341_v3, %v1258_v1  ;;  %v1343_v8 = vpop.f32.mrb[19].mxu0  ;;  %v1481_v58 = vmax.f32 (!%p1861_p5), %v1461_v46, 0.0  ;;  %v1880_v3 = vpack.c.bf16 (!%p1861_p5), %v1479_v56, %v1478_v55 }
 0x1b1   : > { %v1363_v9 = vadd.f32 %v1340_v0, %v673_v62  ;;  %v1344_v10 = vadd.f32 %v1343_v8, %v1260_v6  ;;  %v1402_v59 = vld [vmem:[#allocation2 + $0x60] sm:$0xff] (!%p1861_p5)  ;;  %v1879_v62 = vpack.c.bf16 (!%p1861_p5), %v1477_v52, %v1476_v51  ;;  %v1431_v0 = vmul.f32 (!%p1861_p5), %v2651_v25, %v1399_v48  ;;  %1554 = vst [vmem:[%s2551_s15] sm:$0xff] (!%p1861_p5), %v1878_v61 }
 0x1b2   : > { %1382 = vst [vmem:[#allocation2 + $0x80] sm:$0xff] %v1362_v4  ;;  %v1364_v11 = vadd.f32 %v1342_v5, %v674_v2  ;;  %v1403_v60 = vld [vmem:[#allocation2 + $0x68] sm:$0xff] (!%p1861_p5)  ;;  %v1881_v4 = vpack.c.bf16 (!%p1861_p5), %v1481_v58, %v1480_v57  ;;  %v1432_v5 = vmul.f32 (!%p1861_p5), %v2649_v24, %v1400_v53  ;;  %v1433_v6 = vmul.f32 (!%p1861_p5), %v2651_v25, %v1401_v54 }
 0x1b3   : > { %1383 = vst [vmem:[#allocation2 + $0x88] sm:$0xff] %v1363_v9  ;;  %v1365_v12 = vadd.f32 %v1344_v10, %v675_v7  ;;  %v1404_v1 = vld [vmem:[#allocation2 + $0x70] sm:$0xff] (!%p1861_p5)  ;;  %1555 = vst [vmem:[%s2551_s15 + $0x8] sm:$0xff] (!%p1861_p5), %v1879_v62  ;;  %v1462_v7 = vadd.f32 (!%p1861_p5), %v2653_v26, %v1430_v63  ;;  %v1463_v8 = vadd.f32 (!%p1861_p5), %v2655_v27, %v1431_v0 }
 0x1b4   : > { %1384 = vst [vmem:[#allocation2 + $0x90] sm:$0xff] %v1364_v11  ;;  %v1405_v2 = vld [vmem:[#allocation2 + $0x78] sm:$0xff] (!%p1861_p5)  ;;  %v1434_v9 = vmul.f32 (!%p1861_p5), %v2649_v24, %v1402_v59  ;;  %v1435_v10 = vmul.f32 (!%p1861_p5), %v2651_v25, %v1403_v60  ;;  %1556 = vst [vmem:[%s2551_s15 + $0x10] sm:$0xff] (!%p1861_p5), %v1880_v3  ;;  %v1464_v11 = vadd.f32 (!%p1861_p5), %v2653_v26, %v1432_v5 }
 0x1b5   : > { %1385 = vst [vmem:[#allocation2 + $0x98] sm:$0xff] %v1365_v12  ;;  %1557 = vst [vmem:[%s2551_s15 + $0x18] sm:$0xff] (!%p1861_p5), %v1881_v4  ;;  %v1465_v12 = vadd.f32 (!%p1861_p5), %v2655_v27, %v1433_v6  ;;  %v1436_v13 = vmul.f32 (!%p1861_p5), %v2649_v24, %v1404_v1  ;;  %v1437_v14 = vmul.f32 (!%p1861_p5), %v2651_v25, %v1405_v2  ;;  %v1482_v16 = vmax.f32 (!%p1861_p5), %v1462_v7, 0.0 }
 0x1b6   : > { %v1483_v17 = vmax.f32 %v1463_v8, 0.0  ;;  %v1466_v18 = vadd.f32 %v2653_v26, %v1434_v9  ;;  %v1467_v19 = vadd.f32 %v2655_v27, %v1435_v10  ;;  %v1484_v21 = vmax.f32 %v1464_v11, 0.0 }
 0x1b7   : > { %v1485_v22 = vmax.f32 %v1465_v12, 0.0  ;;  %v1468_v23 = vadd.f32 %v2653_v26, %v1436_v13  ;;  %v1469_v28 = vadd.f32 %v2655_v27, %v1437_v14 }
 0x1b8   : > { %v1882_v31 = vpack.c.bf16 %v1483_v17, %v1482_v16  ;;  %v1486_v32 = vmax.f32 %v1466_v18, 0.0  ;;  %v1487_v33 = vmax.f32 %v1467_v19, 0.0 }
 0x1b9   : > { %v1406_v15 = vld [vmem:[#allocation2 + $0x80] sm:$0xff]  ;;  %v1883_v35 = vpack.c.bf16 %v1485_v22, %v1484_v21  ;;  %v1488_v36 = vmax.f32 %v1468_v23, 0.0  ;;  %v1489_v37 = vmax.f32 %v1469_v28, 0.0 }
 0x1ba   : > { %v1407_v20 = vld [vmem:[#allocation2 + $0x88] sm:$0xff]  ;;  %v1438_v34 = vmul.f32 %v2649_v24, %v1406_v15  ;;  %1558 = vst [vmem:[%s2551_s15 + $0x20] sm:$0xff] %v1882_v31  ;;  %v1884_v39 = vpack.c.bf16 %v1487_v33, %v1486_v32 }
 0x1bb   : > { %v1408_v29 = vld [vmem:[#allocation2 + $0x90] sm:$0xff]  ;;  %v1439_v38 = vmul.f32 %v2651_v25, %v1407_v20  ;;  %1559 = vst [vmem:[%s2551_s15 + $0x28] sm:$0xff] %v1883_v35  ;;  %v1885_v43 = vpack.c.bf16 %v1489_v37, %v1488_v36 }
 0x1bc   : > { %v1409_v30 = vld [vmem:[#allocation2 + $0x98] sm:$0xff]  ;;  %v1470_v40 = vadd.f32 %v2653_v26, %v1438_v34  ;;  %v1440_v41 = vmul.f32 %v2649_v24, %v1408_v29  ;;  %1560 = vst [vmem:[%s2551_s15 + $0x30] sm:$0xff] %v1884_v39 }
 0x1bd   : > { %v1441_v42 = vmul.f32 %v2651_v25, %v1409_v30  ;;  %v1471_v44 = vadd.f32 %v2655_v27, %v1439_v38  ;;  %1561 = vst [vmem:[%s2551_s15 + $0x38] sm:$0xff] %v1885_v43 }
 0x1be   : > { %v1490_v45 = vmax.f32 %v1470_v40, 0.0  ;;  %v1472_v46 = vadd.f32 %v2653_v26, %v1440_v41 }
 0x1bf   : > { %v1473_v47 = vadd.f32 %v2655_v27, %v1441_v42  ;;  %v1491_v48 = vmax.f32 %v1471_v44, 0.0 }
 0x1c0   : > { %v1492_v49 = vmax.f32 %v1472_v46, 0.0 }
 0x1c1   : > { %v1493_v50 = vmax.f32 %v1473_v47, 0.0  ;;  %v1886_v51 = vpack.c.bf16 %v1491_v48, %v1490_v45 }
 0x1c3   : > { %v1887_v52 = vpack.c.bf16 %v1493_v50, %v1492_v49  ;;  %1562 = vst [vmem:[%s2551_s15 + $0x40] sm:$0xff] %v1886_v51 }
 0x1c5   : > { %1563 = vst [vmem:[%s2551_s15 + $0x48] sm:$0xff] %v1887_v52 }
 0x1c6 PF: > { %1570 = sbr.rel (!%p2335_p12) target bundleno = 462 (0x1ce), region = 109  ;;  %s1888_s1 = sshll.u32 (%p2335_p12), %s2201_s22, 3  ;;  %v1630_v53 = vld [vmem:[%s2551_s15 + $0x20] sm:$0xff] (%p2335_p12)  ;;  %v1632_v54 = vld [vmem:[%s2551_s15 + $0x28] sm:$0xff] (%p2335_p12)  ;;  %v1634_v55 = vld [vmem:[%s2551_s15 + $0x30] sm:$0xff] (%p2335_p12) }
 0x1c7   : > { %s1576_s29 = scalar_lea.vmem (%p2335_p12), %s2760_s4, %s1888_s1  ;;  %v1636_v56 = vld [vmem:[%s2551_s15 + $0x38] sm:$0xff] (%p2335_p12) }
 0x1c8   : > { %v1622_v24 = vld [vmem:[%s2551_s15] sm:$0xff] (%p2335_p12)  ;;  %1631 = vst [vmem:[%s1576_s29 + $0x40] sm:$0xff] (%p2335_p12), %v1630_v53  ;;  %1633 = vst [vmem:[%s1576_s29 + $0x50] sm:$0xff] (%p2335_p12), %v1632_v54 }
 0x1c9   : > { %1623 = vst [vmem:[%s1576_s29] sm:$0xff] (%p2335_p12), %v1622_v24  ;;  %1635 = vst [vmem:[%s1576_s29 + $0x60] sm:$0xff] (%p2335_p12), %v1634_v55 }
 0x1ca   : > { %v1624_v25 = vld [vmem:[%s2551_s15 + $0x8] sm:$0xff] (%p2335_p12)  ;;  %v1638_v57 = vld [vmem:[%s2551_s15 + $0x40] sm:$0xff] (%p2335_p12)  ;;  %1637 = vst [vmem:[%s1576_s29 + $0x70] sm:$0xff] (%p2335_p12), %v1636_v56 }
 0x1cb   : > { %v1626_v26 = vld [vmem:[%s2551_s15 + $0x10] sm:$0xff] (%p2335_p12)  ;;  %1625 = vst [vmem:[%s1576_s29 + $0x10] sm:$0xff] (%p2335_p12), %v1624_v25  ;;  %1639 = vst [vmem:[%s1576_s29 + $0x80] sm:$0xff] (%p2335_p12), %v1638_v57 }
 0x1cc   : > { %v1628_v27 = vld [vmem:[%s2551_s15 + $0x18] sm:$0xff] (%p2335_p12)  ;;  %1627 = vst [vmem:[%s1576_s29 + $0x20] sm:$0xff] (%p2335_p12), %v1626_v26  ;;  %v1640_v58 = vld [vmem:[%s2551_s15 + $0x48] sm:$0xff] (%p2335_p12) }
 0x1cd   : > { %1629 = vst [vmem:[%s1576_s29 + $0x30] sm:$0xff] %v1628_v27  ;;  %1641 = vst [vmem:[%s1576_s29 + $0x90] sm:$0xff] %v1640_v58 }
 0x1ce PF: > { %s14_s25 = sadd.s32 1, %s2213_s25   ;;  %s2772_s14 = sld [smem:[#allocation6_spill]] }
 0x1cf   : > { %p11_p6 = scmp.ge.s32.totalorder %s14_s25, 20   ;;  %s2773_s27 = sld [smem:[#allocation7_spill]] }
 0x1d0   : > { %s2774_s15 = smov %s2177_s16  ;;  %s2775_s16 = smov %s2333_s13 }
 0x1d1   : > { %s2776_s17 = smov %s2185_s18  ;;  %s2777_s18 = smov %s2330_s12 }
 0x1d2   : > { %s2778_s19 = smov %s2193_s20  ;;  %s2779_s20 = smov %s2316_s7 }
 0x1d3   : > { %s2780_s21 = smov %s2205_s23  ;;  %s2781_s22 = smov %s2209_s24 }
 0x1d4   : > { %s2782_s23 = smov %s2772_s14  ;;  %13 = sbr.rel (!%p11_p6) target bundleno = 9 (0x9), region = 192 }
 0x1d5   : > { %s2783_s24 = smov %s2773_s27 }

// kernel: _lambda_.21
= control target key start
LH: loop header
LB: loop body
LE: loop exit
PB: predicated region body
PF: predicated region fallthrough
CT: control target
= control target key end

     0   :  { %s966_s0 = inlined_call_operand.vmem [shape: bf16[16,5120], index: 0, kind: input, shape index: {}]   ;;  %s967_s1 = inlined_call_operand.vmem [shape: bf16[16,5120], index: 1, kind: input, shape index: {}]   ;;  %s968_s2 = inlined_call_operand.vmem [shape: bf16[16,5120], index: 2, kind: input, shape index: {}]   ;;  %s969_s3 = inlined_call_operand.vmem [shape: bf16[16,5120], index: 3, kind: input, shape index: {}]   ;;  %s970_s4 = inlined_call_operand.vmem [shape: bf16[16,5120], index: 4, kind: output, shape index: {}]  }
   0x1   :  { %v17_v0 = vld [vmem:[%s966_s0] sm:$0xff]  ;;  %v18_v5 = vld [vmem:[%s966_s0 + $0x8] sm:$0xff]  ;;  %v19_v11 = vld [vmem:[%s966_s0 + $0x10] sm:$0xff] }
   0x2   :  { %v57_v1 = vld [vmem:[%s967_s1] sm:$0xff]  ;;  %v58_v6 = vld [vmem:[%s967_s1 + $0x8] sm:$0xff]  ;;  %v59_v13 = vld [vmem:[%s967_s1 + $0x10] sm:$0xff] }
   0x3   :  { %v137_v2 = vld [vmem:[%s968_s2] sm:$0xff]  ;;  %v97_v3 = vmax.bf16 %v57_v1, %v17_v0  ;;  %v98_v8 = vmax.bf16 %v58_v6, %v18_v5  ;;  %v138_v9 = vld [vmem:[%s968_s2 + $0x8] sm:$0xff]  ;;  %v139_v14 = vld [vmem:[%s968_s2 + $0x10] sm:$0xff]  ;;  %v99_v17 = vmax.bf16 %v59_v13, %v19_v11 }
   0x4   :  { %v177_v4 = vld [vmem:[%s969_s3] sm:$0xff]  ;;  %v178_v10 = vld [vmem:[%s969_s3 + $0x8] sm:$0xff]  ;;  %v179_v15 = vld [vmem:[%s969_s3 + $0x10] sm:$0xff] }
   0x5   :  { %v217_v7 = vmax.bf16 %v177_v4, %v137_v2  ;;  %v218_v12 = vmax.bf16 %v178_v10, %v138_v9  ;;  %v219_v18 = vmax.bf16 %v179_v15, %v139_v14  ;;  %v20_v19 = vld [vmem:[%s966_s0 + $0x18] sm:$0xff]  ;;  %v21_v25 = vld [vmem:[%s966_s0 + $0x20] sm:$0xff]  ;;  %v22_v32 = vld [vmem:[%s966_s0 + $0x28] sm:$0xff] }
   0x6   :  { %v60_v20 = vld [vmem:[%s967_s1 + $0x18] sm:$0xff]  ;;  %v61_v26 = vld [vmem:[%s967_s1 + $0x20] sm:$0xff]  ;;  %v62_v34 = vld [vmem:[%s967_s1 + $0x28] sm:$0xff] }
   0x7   :  { %v257_v16 = vmax.bf16 %v217_v7, %v97_v3  ;;  %v140_v21 = vld [vmem:[%s968_s2 + $0x18] sm:$0xff]  ;;  %v258_v22 = vmax.bf16 %v218_v12, %v98_v8  ;;  %v100_v23 = vmax.bf16 %v60_v20, %v20_v19  ;;  %v259_v27 = vmax.bf16 %v219_v18, %v99_v17  ;;  %v141_v30 = vld [vmem:[%s968_s2 + $0x20] sm:$0xff]  ;;  %v142_v35 = vld [vmem:[%s968_s2 + $0x28] sm:$0xff] }
   0x8   :  { %v180_v24 = vld [vmem:[%s969_s3 + $0x18] sm:$0xff]  ;;  %v101_v29 = vmax.bf16 %v61_v26, %v21_v25  ;;  %v181_v31 = vld [vmem:[%s969_s3 + $0x20] sm:$0xff]  ;;  %v182_v36 = vld [vmem:[%s969_s3 + $0x28] sm:$0xff]  ;;  %v102_v38 = vmax.bf16 %v62_v34, %v22_v32 }
   0x9   :  { %297 = vst [vmem:[%s970_s4] sm:$0xff] %v257_v16  ;;  %v220_v28 = vmax.bf16 %v180_v24, %v140_v21  ;;  %298 = vst [vmem:[%s970_s4 + $0x8] sm:$0xff] %v258_v22  ;;  %v221_v33 = vmax.bf16 %v181_v31, %v141_v30  ;;  %v222_v39 = vmax.bf16 %v182_v36, %v142_v35  ;;  %v23_v40 = vld [vmem:[%s966_s0 + $0x30] sm:$0xff]  ;;  %v24_v46 = vld [vmem:[%s966_s0 + $0x38] sm:$0xff] }
   0xa   :  { %299 = vst [vmem:[%s970_s4 + $0x10] sm:$0xff] %v259_v27  ;;  %v63_v41 = vld [vmem:[%s967_s1 + $0x30] sm:$0xff]  ;;  %v64_v47 = vld [vmem:[%s967_s1 + $0x38] sm:$0xff]  ;;  %v25_v53 = vld [vmem:[%s966_s0 + $0x40] sm:$0xff] }
   0xb   :  { %v260_v37 = vmax.bf16 %v220_v28, %v100_v23  ;;  %v143_v42 = vld [vmem:[%s968_s2 + $0x30] sm:$0xff]  ;;  %v261_v43 = vmax.bf16 %v221_v33, %v101_v29  ;;  %v103_v44 = vmax.bf16 %v63_v41, %v23_v40  ;;  %v262_v48 = vmax.bf16 %v222_v39, %v102_v38  ;;  %v144_v51 = vld [vmem:[%s968_s2 + $0x38] sm:$0xff]  ;;  %v65_v55 = vld [vmem:[%s967_s1 + $0x40] sm:$0xff] }
   0xc   :  { %v183_v45 = vld [vmem:[%s969_s3 + $0x30] sm:$0xff]  ;;  %v104_v50 = vmax.bf16 %v64_v47, %v24_v46  ;;  %v184_v52 = vld [vmem:[%s969_s3 + $0x38] sm:$0xff]  ;;  %v145_v56 = vld [vmem:[%s968_s2 + $0x40] sm:$0xff]  ;;  %v105_v59 = vmax.bf16 %v65_v55, %v25_v53 }
   0xd   :  { %300 = vst [vmem:[%s970_s4 + $0x18] sm:$0xff] %v260_v37  ;;  %v223_v49 = vmax.bf16 %v183_v45, %v143_v42  ;;  %301 = vst [vmem:[%s970_s4 + $0x20] sm:$0xff] %v261_v43  ;;  %v224_v54 = vmax.bf16 %v184_v52, %v144_v51  ;;  %v185_v57 = vld [vmem:[%s969_s3 + $0x40] sm:$0xff]  ;;  %v26_v61 = vld [vmem:[%s966_s0 + $0x48] sm:$0xff] }
   0xe   :  { %302 = vst [vmem:[%s970_s4 + $0x28] sm:$0xff] %v262_v48  ;;  %v225_v60 = vmax.bf16 %v185_v57, %v145_v56  ;;  %v66_v62 = vld [vmem:[%s967_s1 + $0x48] sm:$0xff]  ;;  %v27_v3 = vld [vmem:[%s966_s0 + $0x50] sm:$0xff]  ;;  %v28_v10 = vld [vmem:[%s966_s0 + $0x58] sm:$0xff] }
   0xf   :  { %v263_v58 = vmax.bf16 %v223_v49, %v103_v44  ;;  %v146_v63 = vld [vmem:[%s968_s2 + $0x48] sm:$0xff]  ;;  %v264_v0 = vmax.bf16 %v224_v54, %v104_v50  ;;  %v106_v1 = vmax.bf16 %v66_v62, %v26_v61  ;;  %v67_v4 = vld [vmem:[%s967_s1 + $0x50] sm:$0xff]  ;;  %v68_v12 = vld [vmem:[%s967_s1 + $0x58] sm:$0xff] }
  0x10   :  { %v186_v2 = vld [vmem:[%s969_s3 + $0x48] sm:$0xff]  ;;  %v265_v5 = vmax.bf16 %v225_v60, %v105_v59  ;;  %v107_v7 = vmax.bf16 %v67_v4, %v27_v3  ;;  %v147_v8 = vld [vmem:[%s968_s2 + $0x50] sm:$0xff]  ;;  %v148_v13 = vld [vmem:[%s968_s2 + $0x58] sm:$0xff]  ;;  %v108_v16 = vmax.bf16 %v68_v12, %v28_v10 }
  0x11   :  { %303 = vst [vmem:[%s970_s4 + $0x30] sm:$0xff] %v263_v58  ;;  %v226_v6 = vmax.bf16 %v186_v2, %v146_v63  ;;  %v187_v9 = vld [vmem:[%s969_s3 + $0x50] sm:$0xff]  ;;  %304 = vst [vmem:[%s970_s4 + $0x38] sm:$0xff] %v264_v0  ;;  %v188_v14 = vld [vmem:[%s969_s3 + $0x58] sm:$0xff] }
  0x12   :  { %v227_v11 = vmax.bf16 %v187_v9, %v147_v8  ;;  %305 = vst [vmem:[%s970_s4 + $0x40] sm:$0xff] %v265_v5  ;;  %v228_v17 = vmax.bf16 %v188_v14, %v148_v13  ;;  %v29_v18 = vld [vmem:[%s966_s0 + $0x60] sm:$0xff]  ;;  %v30_v24 = vld [vmem:[%s966_s0 + $0x68] sm:$0xff]  ;;  %v31_v31 = vld [vmem:[%s966_s0 + $0x70] sm:$0xff] }
  0x13   :  { %v266_v15 = vmax.bf16 %v226_v6, %v106_v1  ;;  %v69_v19 = vld [vmem:[%s967_s1 + $0x60] sm:$0xff]  ;;  %v70_v25 = vld [vmem:[%s967_s1 + $0x68] sm:$0xff]  ;;  %v71_v33 = vld [vmem:[%s967_s1 + $0x70] sm:$0xff] }
  0x14   :  { %v149_v20 = vld [vmem:[%s968_s2 + $0x60] sm:$0xff]  ;;  %v267_v21 = vmax.bf16 %v227_v11, %v107_v7  ;;  %v109_v22 = vmax.bf16 %v69_v19, %v29_v18  ;;  %v268_v26 = vmax.bf16 %v228_v17, %v108_v16  ;;  %v110_v28 = vmax.bf16 %v70_v25, %v30_v24  ;;  %v150_v29 = vld [vmem:[%s968_s2 + $0x68] sm:$0xff]  ;;  %v151_v34 = vld [vmem:[%s968_s2 + $0x70] sm:$0xff] }
  0x15   :  { %v189_v23 = vld [vmem:[%s969_s3 + $0x60] sm:$0xff]  ;;  %306 = vst [vmem:[%s970_s4 + $0x48] sm:$0xff] %v266_v15  ;;  %v190_v30 = vld [vmem:[%s969_s3 + $0x68] sm:$0xff]  ;;  %v191_v35 = vld [vmem:[%s969_s3 + $0x70] sm:$0xff]  ;;  %v111_v37 = vmax.bf16 %v71_v33, %v31_v31 }
  0x16   :  { %v229_v27 = vmax.bf16 %v189_v23, %v149_v20  ;;  %307 = vst [vmem:[%s970_s4 + $0x50] sm:$0xff] %v267_v21  ;;  %v230_v32 = vmax.bf16 %v190_v30, %v150_v29  ;;  %308 = vst [vmem:[%s970_s4 + $0x58] sm:$0xff] %v268_v26  ;;  %v231_v38 = vmax.bf16 %v191_v35, %v151_v34  ;;  %v32_v39 = vld [vmem:[%s966_s0 + $0x78] sm:$0xff]  ;;  %v33_v45 = vld [vmem:[%s966_s0 + $0x80] sm:$0xff] }
  0x17   :  { %v72_v40 = vld [vmem:[%s967_s1 + $0x78] sm:$0xff]  ;;  %v73_v46 = vld [vmem:[%s967_s1 + $0x80] sm:$0xff]  ;;  %v34_v52 = vld [vmem:[%s966_s0 + $0x88] sm:$0xff] }
  0x18   :  { %v269_v36 = vmax.bf16 %v229_v27, %v109_v22  ;;  %v152_v41 = vld [vmem:[%s968_s2 + $0x78] sm:$0xff]  ;;  %v270_v42 = vmax.bf16 %v230_v32, %v110_v28  ;;  %v112_v43 = vmax.bf16 %v72_v40, %v32_v39  ;;  %v271_v47 = vmax.bf16 %v231_v38, %v111_v37  ;;  %v153_v50 = vld [vmem:[%s968_s2 + $0x80] sm:$0xff]  ;;  %v74_v54 = vld [vmem:[%s967_s1 + $0x88] sm:$0xff] }
  0x19   :  { %v192_v44 = vld [vmem:[%s969_s3 + $0x78] sm:$0xff]  ;;  %v113_v49 = vmax.bf16 %v73_v46, %v33_v45  ;;  %v193_v51 = vld [vmem:[%s969_s3 + $0x80] sm:$0xff]  ;;  %v154_v55 = vld [vmem:[%s968_s2 + $0x88] sm:$0xff]  ;;  %v114_v58 = vmax.bf16 %v74_v54, %v34_v52 }
  0x1a   :  { %309 = vst [vmem:[%s970_s4 + $0x60] sm:$0xff] %v269_v36  ;;  %v232_v48 = vmax.bf16 %v192_v44, %v152_v41  ;;  %310 = vst [vmem:[%s970_s4 + $0x68] sm:$0xff] %v270_v42  ;;  %v233_v53 = vmax.bf16 %v193_v51, %v153_v50  ;;  %v194_v56 = vld [vmem:[%s969_s3 + $0x88] sm:$0xff]  ;;  %v35_v60 = vld [vmem:[%s966_s0 + $0x90] sm:$0xff] }
  0x1b   :  { %311 = vst [vmem:[%s970_s4 + $0x70] sm:$0xff] %v271_v47  ;;  %v234_v59 = vmax.bf16 %v194_v56, %v154_v55  ;;  %v75_v61 = vld [vmem:[%s967_s1 + $0x90] sm:$0xff]  ;;  %v36_v2 = vld [vmem:[%s966_s0 + $0x98] sm:$0xff]  ;;  %v37_v9 = vld [vmem:[%s966_s0 + $0xa0] sm:$0xff] }
  0x1c   :  { %v272_v57 = vmax.bf16 %v232_v48, %v112_v43  ;;  %v155_v62 = vld [vmem:[%s968_s2 + $0x90] sm:$0xff]  ;;  %v273_v63 = vmax.bf16 %v233_v53, %v113_v49  ;;  %v115_v0 = vmax.bf16 %v75_v61, %v35_v60  ;;  %v76_v3 = vld [vmem:[%s967_s1 + $0x98] sm:$0xff]  ;;  %v77_v11 = vld [vmem:[%s967_s1 + $0xa0] sm:$0xff] }
  0x1d   :  { %v195_v1 = vld [vmem:[%s969_s3 + $0x90] sm:$0xff]  ;;  %v274_v4 = vmax.bf16 %v234_v59, %v114_v58  ;;  %v116_v6 = vmax.bf16 %v76_v3, %v36_v2  ;;  %v156_v7 = vld [vmem:[%s968_s2 + $0x98] sm:$0xff]  ;;  %v157_v12 = vld [vmem:[%s968_s2 + $0xa0] sm:$0xff]  ;;  %v117_v15 = vmax.bf16 %v77_v11, %v37_v9 }
  0x1e   :  { %312 = vst [vmem:[%s970_s4 + $0x78] sm:$0xff] %v272_v57  ;;  %v235_v5 = vmax.bf16 %v195_v1, %v155_v62  ;;  %v196_v8 = vld [vmem:[%s969_s3 + $0x98] sm:$0xff]  ;;  %313 = vst [vmem:[%s970_s4 + $0x80] sm:$0xff] %v273_v63  ;;  %v197_v13 = vld [vmem:[%s969_s3 + $0xa0] sm:$0xff] }
  0x1f   :  { %v236_v10 = vmax.bf16 %v196_v8, %v156_v7  ;;  %314 = vst [vmem:[%s970_s4 + $0x88] sm:$0xff] %v274_v4  ;;  %v237_v16 = vmax.bf16 %v197_v13, %v157_v12  ;;  %v38_v17 = vld [vmem:[%s966_s0 + $0xa8] sm:$0xff]  ;;  %v39_v23 = vld [vmem:[%s966_s0 + $0xb0] sm:$0xff]  ;;  %v40_v30 = vld [vmem:[%s966_s0 + $0xb8] sm:$0xff] }
  0x20   :  { %v275_v14 = vmax.bf16 %v235_v5, %v115_v0  ;;  %v78_v18 = vld [vmem:[%s967_s1 + $0xa8] sm:$0xff]  ;;  %v79_v24 = vld [vmem:[%s967_s1 + $0xb0] sm:$0xff]  ;;  %v80_v32 = vld [vmem:[%s967_s1 + $0xb8] sm:$0xff] }
  0x21   :  { %v158_v19 = vld [vmem:[%s968_s2 + $0xa8] sm:$0xff]  ;;  %v276_v20 = vmax.bf16 %v236_v10, %v116_v6  ;;  %v118_v21 = vmax.bf16 %v78_v18, %v38_v17  ;;  %v277_v25 = vmax.bf16 %v237_v16, %v117_v15  ;;  %v119_v27 = vmax.bf16 %v79_v24, %v39_v23  ;;  %v159_v28 = vld [vmem:[%s968_s2 + $0xb0] sm:$0xff]  ;;  %v160_v33 = vld [vmem:[%s968_s2 + $0xb8] sm:$0xff] }
  0x22   :  { %v198_v22 = vld [vmem:[%s969_s3 + $0xa8] sm:$0xff]  ;;  %315 = vst [vmem:[%s970_s4 + $0x90] sm:$0xff] %v275_v14  ;;  %v199_v29 = vld [vmem:[%s969_s3 + $0xb0] sm:$0xff]  ;;  %v200_v34 = vld [vmem:[%s969_s3 + $0xb8] sm:$0xff]  ;;  %v120_v36 = vmax.bf16 %v80_v32, %v40_v30 }
  0x23   :  { %v238_v26 = vmax.bf16 %v198_v22, %v158_v19  ;;  %316 = vst [vmem:[%s970_s4 + $0x98] sm:$0xff] %v276_v20  ;;  %v239_v31 = vmax.bf16 %v199_v29, %v159_v28  ;;  %317 = vst [vmem:[%s970_s4 + $0xa0] sm:$0xff] %v277_v25  ;;  %v240_v37 = vmax.bf16 %v200_v34, %v160_v33  ;;  %v41_v38 = vld [vmem:[%s966_s0 + $0xc0] sm:$0xff]  ;;  %v42_v44 = vld [vmem:[%s966_s0 + $0xc8] sm:$0xff] }
  0x24   :  { %v81_v39 = vld [vmem:[%s967_s1 + $0xc0] sm:$0xff]  ;;  %v82_v45 = vld [vmem:[%s967_s1 + $0xc8] sm:$0xff]  ;;  %v43_v51 = vld [vmem:[%s966_s0 + $0xd0] sm:$0xff] }
  0x25   :  { %v278_v35 = vmax.bf16 %v238_v26, %v118_v21  ;;  %v161_v40 = vld [vmem:[%s968_s2 + $0xc0] sm:$0xff]  ;;  %v279_v41 = vmax.bf16 %v239_v31, %v119_v27  ;;  %v121_v42 = vmax.bf16 %v81_v39, %v41_v38  ;;  %v280_v46 = vmax.bf16 %v240_v37, %v120_v36  ;;  %v162_v49 = vld [vmem:[%s968_s2 + $0xc8] sm:$0xff]  ;;  %v83_v53 = vld [vmem:[%s967_s1 + $0xd0] sm:$0xff] }
  0x26   :  { %v201_v43 = vld [vmem:[%s969_s3 + $0xc0] sm:$0xff]  ;;  %v122_v48 = vmax.bf16 %v82_v45, %v42_v44  ;;  %v202_v50 = vld [vmem:[%s969_s3 + $0xc8] sm:$0xff]  ;;  %v163_v54 = vld [vmem:[%s968_s2 + $0xd0] sm:$0xff]  ;;  %v123_v57 = vmax.bf16 %v83_v53, %v43_v51 }
  0x27   :  { %318 = vst [vmem:[%s970_s4 + $0xa8] sm:$0xff] %v278_v35  ;;  %v241_v47 = vmax.bf16 %v201_v43, %v161_v40  ;;  %319 = vst [vmem:[%s970_s4 + $0xb0] sm:$0xff] %v279_v41  ;;  %v242_v52 = vmax.bf16 %v202_v50, %v162_v49  ;;  %v203_v55 = vld [vmem:[%s969_s3 + $0xd0] sm:$0xff]  ;;  %v44_v59 = vld [vmem:[%s966_s0 + $0xd8] sm:$0xff] }
  0x28   :  { %320 = vst [vmem:[%s970_s4 + $0xb8] sm:$0xff] %v280_v46  ;;  %v243_v58 = vmax.bf16 %v203_v55, %v163_v54  ;;  %v84_v60 = vld [vmem:[%s967_s1 + $0xd8] sm:$0xff]  ;;  %v45_v1 = vld [vmem:[%s966_s0 + $0xe0] sm:$0xff]  ;;  %v46_v8 = vld [vmem:[%s966_s0 + $0xe8] sm:$0xff] }
  0x29   :  { %v281_v56 = vmax.bf16 %v241_v47, %v121_v42  ;;  %v164_v61 = vld [vmem:[%s968_s2 + $0xd8] sm:$0xff]  ;;  %v282_v62 = vmax.bf16 %v242_v52, %v122_v48  ;;  %v124_v63 = vmax.bf16 %v84_v60, %v44_v59  ;;  %v85_v2 = vld [vmem:[%s967_s1 + $0xe0] sm:$0xff]  ;;  %v86_v10 = vld [vmem:[%s967_s1 + $0xe8] sm:$0xff] }
  0x2a   :  { %v204_v0 = vld [vmem:[%s969_s3 + $0xd8] sm:$0xff]  ;;  %v283_v3 = vmax.bf16 %v243_v58, %v123_v57  ;;  %v125_v5 = vmax.bf16 %v85_v2, %v45_v1  ;;  %v165_v6 = vld [vmem:[%s968_s2 + $0xe0] sm:$0xff]  ;;  %v166_v11 = vld [vmem:[%s968_s2 + $0xe8] sm:$0xff]  ;;  %v126_v14 = vmax.bf16 %v86_v10, %v46_v8 }
  0x2b   :  { %321 = vst [vmem:[%s970_s4 + $0xc0] sm:$0xff] %v281_v56  ;;  %v244_v4 = vmax.bf16 %v204_v0, %v164_v61  ;;  %v205_v7 = vld [vmem:[%s969_s3 + $0xe0] sm:$0xff]  ;;  %322 = vst [vmem:[%s970_s4 + $0xc8] sm:$0xff] %v282_v62  ;;  %v206_v12 = vld [vmem:[%s969_s3 + $0xe8] sm:$0xff] }
  0x2c   :  { %v245_v9 = vmax.bf16 %v205_v7, %v165_v6  ;;  %323 = vst [vmem:[%s970_s4 + $0xd0] sm:$0xff] %v283_v3  ;;  %v246_v15 = vmax.bf16 %v206_v12, %v166_v11  ;;  %v47_v16 = vld [vmem:[%s966_s0 + $0xf0] sm:$0xff]  ;;  %v48_v22 = vld [vmem:[%s966_s0 + $0xf8] sm:$0xff]  ;;  %v49_v29 = vld [vmem:[%s966_s0 + $0x100] sm:$0xff] }
  0x2d   :  { %v284_v13 = vmax.bf16 %v244_v4, %v124_v63  ;;  %v87_v17 = vld [vmem:[%s967_s1 + $0xf0] sm:$0xff]  ;;  %v88_v23 = vld [vmem:[%s967_s1 + $0xf8] sm:$0xff]  ;;  %v89_v31 = vld [vmem:[%s967_s1 + $0x100] sm:$0xff] }
  0x2e   :  { %v167_v18 = vld [vmem:[%s968_s2 + $0xf0] sm:$0xff]  ;;  %v285_v19 = vmax.bf16 %v245_v9, %v125_v5  ;;  %v127_v20 = vmax.bf16 %v87_v17, %v47_v16  ;;  %v286_v24 = vmax.bf16 %v246_v15, %v126_v14  ;;  %v128_v26 = vmax.bf16 %v88_v23, %v48_v22  ;;  %v168_v27 = vld [vmem:[%s968_s2 + $0xf8] sm:$0xff]  ;;  %v169_v32 = vld [vmem:[%s968_s2 + $0x100] sm:$0xff] }
  0x2f   :  { %v207_v21 = vld [vmem:[%s969_s3 + $0xf0] sm:$0xff]  ;;  %324 = vst [vmem:[%s970_s4 + $0xd8] sm:$0xff] %v284_v13  ;;  %v208_v28 = vld [vmem:[%s969_s3 + $0xf8] sm:$0xff]  ;;  %v209_v33 = vld [vmem:[%s969_s3 + $0x100] sm:$0xff]  ;;  %v129_v35 = vmax.bf16 %v89_v31, %v49_v29 }
  0x30   :  { %v247_v25 = vmax.bf16 %v207_v21, %v167_v18  ;;  %325 = vst [vmem:[%s970_s4 + $0xe0] sm:$0xff] %v285_v19  ;;  %v248_v30 = vmax.bf16 %v208_v28, %v168_v27  ;;  %326 = vst [vmem:[%s970_s4 + $0xe8] sm:$0xff] %v286_v24  ;;  %v249_v36 = vmax.bf16 %v209_v33, %v169_v32  ;;  %v50_v37 = vld [vmem:[%s966_s0 + $0x108] sm:$0xff]  ;;  %v51_v43 = vld [vmem:[%s966_s0 + $0x110] sm:$0xff] }
  0x31   :  { %v90_v38 = vld [vmem:[%s967_s1 + $0x108] sm:$0xff]  ;;  %v91_v44 = vld [vmem:[%s967_s1 + $0x110] sm:$0xff]  ;;  %v52_v50 = vld [vmem:[%s966_s0 + $0x118] sm:$0xff] }
  0x32   :  { %v287_v34 = vmax.bf16 %v247_v25, %v127_v20  ;;  %v170_v39 = vld [vmem:[%s968_s2 + $0x108] sm:$0xff]  ;;  %v288_v40 = vmax.bf16 %v248_v30, %v128_v26  ;;  %v130_v41 = vmax.bf16 %v90_v38, %v50_v37  ;;  %v289_v45 = vmax.bf16 %v249_v36, %v129_v35  ;;  %v171_v48 = vld [vmem:[%s968_s2 + $0x110] sm:$0xff]  ;;  %v92_v52 = vld [vmem:[%s967_s1 + $0x118] sm:$0xff] }
  0x33   :  { %v210_v42 = vld [vmem:[%s969_s3 + $0x108] sm:$0xff]  ;;  %v131_v47 = vmax.bf16 %v91_v44, %v51_v43  ;;  %v211_v49 = vld [vmem:[%s969_s3 + $0x110] sm:$0xff]  ;;  %v172_v53 = vld [vmem:[%s968_s2 + $0x118] sm:$0xff]  ;;  %v132_v56 = vmax.bf16 %v92_v52, %v52_v50 }
  0x34   :  { %327 = vst [vmem:[%s970_s4 + $0xf0] sm:$0xff] %v287_v34  ;;  %v250_v46 = vmax.bf16 %v210_v42, %v170_v39  ;;  %328 = vst [vmem:[%s970_s4 + $0xf8] sm:$0xff] %v288_v40  ;;  %v251_v51 = vmax.bf16 %v211_v49, %v171_v48  ;;  %v212_v54 = vld [vmem:[%s969_s3 + $0x118] sm:$0xff]  ;;  %v53_v58 = vld [vmem:[%s966_s0 + $0x120] sm:$0xff] }
  0x35   :  { %329 = vst [vmem:[%s970_s4 + $0x100] sm:$0xff] %v289_v45  ;;  %v252_v57 = vmax.bf16 %v212_v54, %v172_v53  ;;  %v93_v59 = vld [vmem:[%s967_s1 + $0x120] sm:$0xff]  ;;  %v54_v0 = vld [vmem:[%s966_s0 + $0x128] sm:$0xff]  ;;  %v55_v7 = vld [vmem:[%s966_s0 + $0x130] sm:$0xff] }
  0x36   :  { %v290_v55 = vmax.bf16 %v250_v46, %v130_v41  ;;  %v173_v60 = vld [vmem:[%s968_s2 + $0x120] sm:$0xff]  ;;  %v291_v61 = vmax.bf16 %v251_v51, %v131_v47  ;;  %v133_v62 = vmax.bf16 %v93_v59, %v53_v58  ;;  %v94_v1 = vld [vmem:[%s967_s1 + $0x128] sm:$0xff]  ;;  %v95_v9 = vld [vmem:[%s967_s1 + $0x130] sm:$0xff] }
  0x37   :  { %v213_v63 = vld [vmem:[%s969_s3 + $0x120] sm:$0xff]  ;;  %v292_v2 = vmax.bf16 %v252_v57, %v132_v56  ;;  %v134_v4 = vmax.bf16 %v94_v1, %v54_v0  ;;  %v174_v5 = vld [vmem:[%s968_s2 + $0x128] sm:$0xff]  ;;  %v175_v10 = vld [vmem:[%s968_s2 + $0x130] sm:$0xff]  ;;  %v135_v13 = vmax.bf16 %v95_v9, %v55_v7 }
  0x38   :  { %330 = vst [vmem:[%s970_s4 + $0x108] sm:$0xff] %v290_v55  ;;  %v253_v3 = vmax.bf16 %v213_v63, %v173_v60  ;;  %v214_v6 = vld [vmem:[%s969_s3 + $0x128] sm:$0xff]  ;;  %331 = vst [vmem:[%s970_s4 + $0x110] sm:$0xff] %v291_v61  ;;  %v215_v11 = vld [vmem:[%s969_s3 + $0x130] sm:$0xff] }
  0x39   :  { %v254_v8 = vmax.bf16 %v214_v6, %v174_v5  ;;  %332 = vst [vmem:[%s970_s4 + $0x118] sm:$0xff] %v292_v2  ;;  %v255_v14 = vmax.bf16 %v215_v11, %v175_v10  ;;  %v56_v15 = vld [vmem:[%s966_s0 + $0x138] sm:$0xff] }
  0x3a   :  { %v293_v12 = vmax.bf16 %v253_v3, %v133_v62  ;;  %v96_v16 = vld [vmem:[%s967_s1 + $0x138] sm:$0xff] }
  0x3b   :  { %v176_v17 = vld [vmem:[%s968_s2 + $0x138] sm:$0xff]  ;;  %v294_v18 = vmax.bf16 %v254_v8, %v134_v4  ;;  %v136_v19 = vmax.bf16 %v96_v16, %v56_v15  ;;  %v295_v21 = vmax.bf16 %v255_v14, %v135_v13 }
  0x3c   :  { %v216_v20 = vld [vmem:[%s969_s3 + $0x138] sm:$0xff]  ;;  %333 = vst [vmem:[%s970_s4 + $0x120] sm:$0xff] %v293_v12 }
  0x3d   :  { %v256_v22 = vmax.bf16 %v216_v20, %v176_v17  ;;  %334 = vst [vmem:[%s970_s4 + $0x128] sm:$0xff] %v294_v18  ;;  %335 = vst [vmem:[%s970_s4 + $0x130] sm:$0xff] %v295_v21 }
  0x3f   :  { %v296_v23 = vmax.bf16 %v256_v22, %v136_v19 }
  0x41   :  { %336 = vst [vmem:[%s970_s4 + $0x138] sm:$0xff] %v296_v23 }

// kernel: _lambda_.23
= control target key start
LH: loop header
LB: loop body
LE: loop exit
PB: predicated region body
PF: predicated region fallthrough
CT: control target
= control target key end

     0   :  { %s784_s1 = inlined_call_operand.vmem [shape: bf16[512,128], index: 1, kind: input, shape index: {}]   ;;  %s785_s0 = inlined_call_operand.vmem [shape: bf16[32,512], index: 0, kind: input, shape index: {}]   ;;  %s786_s2 = inlined_call_operand.vmem [shape: f32[1,128], index: 2, kind: input, shape index: {}]   ;;  %s787_s3 = inlined_call_operand.vmem [shape: f32[32,128], index: 3, kind: output, shape index: {}]  }
   0x1   :  { %v569_v0 = vld [vmem:[%s784_s1 + $0x40] sm:$0xff]   ;;  %v573_v4 = vld [vmem:[%s784_s1 + $0x48] sm:$0xff]   ;;  %v577_v8 = vld [vmem:[%s784_s1 + $0x50] sm:$0xff]  }
   0x2   :  { %v570_v1 = vld [vmem:[%s784_s1 + $0xc0] sm:$0xff]   ;;  %513 = vmatprep.subr.bf16.mxu0 %v569_v0  ;;  %v574_v5 = vld [vmem:[%s784_s1 + $0xc8] sm:$0xff]   ;;  %v578_v9 = vld [vmem:[%s784_s1 + $0xd0] sm:$0xff]  }
   0x3   :  { %v571_v2 = vld [vmem:[%s784_s1] sm:$0xff]   ;;  %541 = vmatprep.subr.bf16.mxu1 %v570_v1  ;;  %v575_v6 = vld [vmem:[%s784_s1 + $0x8] sm:$0xff]   ;;  %v579_v10 = vld [vmem:[%s784_s1 + $0x10] sm:$0xff]  }
   0x4   :  { %v572_v3 = vld [vmem:[%s784_s1 + $0x80] sm:$0xff]   ;;  %514 = vmatpush3.bf16.msra.mxu0 %v571_v2  ;;  %v576_v7 = vld [vmem:[%s784_s1 + $0x88] sm:$0xff]   ;;  %v580_v11 = vld [vmem:[%s784_s1 + $0x90] sm:$0xff]  }
   0x5   :  { %542 = vmatpush3.bf16.msra.mxu1 %v572_v3  ;;  %515 = vmatprep.subr.bf16.mxu0 %v573_v4  ;;  %v581_v12 = vld [vmem:[%s784_s1 + $0x58] sm:$0xff]   ;;  %v585_v16 = vld [vmem:[%s784_s1 + $0x60] sm:$0xff]   ;;  %v589_v20 = vld [vmem:[%s784_s1 + $0x68] sm:$0xff]  }
   0x6   :  { %543 = vmatprep.subr.bf16.mxu1 %v574_v5  ;;  %v582_v13 = vld [vmem:[%s784_s1 + $0xd8] sm:$0xff]   ;;  %v586_v17 = vld [vmem:[%s784_s1 + $0xe0] sm:$0xff]   ;;  %v590_v21 = vld [vmem:[%s784_s1 + $0xe8] sm:$0xff]  }
   0x7   :  { %v583_v14 = vld [vmem:[%s784_s1 + $0x18] sm:$0xff]   ;;  %v587_v18 = vld [vmem:[%s784_s1 + $0x20] sm:$0xff]   ;;  %v591_v22 = vld [vmem:[%s784_s1 + $0x28] sm:$0xff]  }
   0x8   :  { %516 = vmatpush3.bf16.msra.mxu0 %v575_v6  ;;  %v584_v15 = vld [vmem:[%s784_s1 + $0x98] sm:$0xff]   ;;  %v588_v19 = vld [vmem:[%s784_s1 + $0xa0] sm:$0xff]   ;;  %v592_v23 = vld [vmem:[%s784_s1 + $0xa8] sm:$0xff]  }
   0x9   :  { %544 = vmatpush3.bf16.msra.mxu1 %v576_v7  ;;  %517 = vmatprep.subr.bf16.mxu0 %v577_v8  ;;  %v593_v24 = vld [vmem:[%s784_s1 + $0x70] sm:$0xff]   ;;  %v597_v28 = vld [vmem:[%s784_s1 + $0x78] sm:$0xff]   ;;  %v472_v42 = vld [vmem:[%s786_s2] ss:$0 sm:$0xff] }
   0xa   :  { %545 = vmatprep.subr.bf16.mxu1 %v578_v9  ;;  %v594_v25 = vld [vmem:[%s784_s1 + $0xf0] sm:$0xff]   ;;  %v598_v29 = vld [vmem:[%s784_s1 + $0xf8] sm:$0xff]  }
   0xb   :  { %v595_v26 = vld [vmem:[%s784_s1 + $0x30] sm:$0xff]   ;;  %v599_v30 = vld [vmem:[%s784_s1 + $0x38] sm:$0xff]  }
   0xc   :  { %518 = vmatpush3.bf16.msra.mxu0 %v579_v10  ;;  %v596_v27 = vld [vmem:[%s784_s1 + $0xb0] sm:$0xff]   ;;  %v600_v31 = vld [vmem:[%s784_s1 + $0xb8] sm:$0xff]  }
   0xd   :  { %546 = vmatpush3.bf16.msra.mxu1 %v580_v11  ;;  %519 = vmatprep.subr.bf16.mxu0 %v581_v12  ;;  %v601_v32 = vld [vmem:[%s785_s0] ss:$16 sps:$4 sm:$0xff]   ;;  %v603_v33 = vld [vmem:[%s785_s0 + $0x4] ss:$16 sps:$4 sm:$0xff]   ;;  %v604_v34 = vld [vmem:[%s785_s0 + $0x8] ss:$16 sps:$4 sm:$0xff]  }
   0xe   :  { %547 = vmatprep.subr.bf16.mxu1 %v582_v13  ;;  %v606_v35 = vld [vmem:[%s785_s0 + $0xc] ss:$16 sps:$4 sm:$0xff]   ;;  %358 = vmatprep.mubr.bf16.mxu0 %v603_v33  ;;  %v607_v36 = vld [vmem:[%s785_s0 + $0x24] ss:$16 sps:$4 sm:$0xff]   ;;  %v611_v38 = vld [vmem:[%s785_s0 + $0x20] ss:$16 sps:$4 sm:$0xff]  }
   0xf   :  { %407 = vmatprep.mubr.bf16.mxu1 %v606_v35  ;;  %v609_v37 = vld [vmem:[%s785_s0 + $0x2c] ss:$16 sps:$4 sm:$0xff]   ;;  %v612_v39 = vld [vmem:[%s785_s0 + $0x28] ss:$16 sps:$4 sm:$0xff]  }
  0x10   :  { %520 = vmatpush3.bf16.msra.mxu0 %v583_v14 }
  0x11   :  { %548 = vmatpush3.bf16.msra.mxu1 %v584_v15  ;;  %521 = vmatprep.subr.bf16.mxu0 %v585_v16 }
  0x12   :  { %549 = vmatprep.subr.bf16.mxu1 %v586_v17 }
  0x14   :  { %522 = vmatpush3.bf16.msra.mxu0 %v587_v18 }
  0x15   :  { %550 = vmatpush3.bf16.msra.mxu1 %v588_v19  ;;  %523 = vmatprep.subr.bf16.mxu0 %v589_v20 }
  0x16   :  { %551 = vmatprep.subr.bf16.mxu1 %v590_v21 }
  0x18   :  { %524 = vmatpush3.bf16.msra.mxu0 %v591_v22 }
  0x19   :  { %552 = vmatpush3.bf16.msra.mxu1 %v592_v23  ;;  %525 = vmatprep.subr.bf16.mxu0 %v593_v24 }
  0x1a   :  { %553 = vmatprep.subr.bf16.mxu1 %v594_v25 }
  0x1c   :  { %526 = vmatpush3.bf16.msra.mxu0 %v595_v26 }
  0x1d   :  { %554 = vmatpush3.bf16.msra.mxu1 %v596_v27  ;;  %527 = vmatprep.subr.bf16.mxu0 %v597_v28 }
  0x1e   :  { %555 = vmatprep.subr.bf16.mxu1 %v598_v29 }
  0x20   :  { %528 = vmatpush3.bf16.msra.mxu0 %v599_v30 }
  0x21   :  { %556 = vmatpush3.bf16.msra.mxu1 %v600_v31 }
  0x23   :  { %359 = vmatmul.mubr.bf16.vlgmr.msra.gmra.mrb[0].mxu0 %v601_v32 }
  0x24   :  { %408 = vmatmul.mubr.bf16.vlgmr.msra.gmra.mrb[0].mxu1 %v604_v34  ;;  %366 = vmatprep.mubr.bf16.mxu0 %v607_v36 }
  0x25   :  { %415 = vmatprep.mubr.bf16.mxu1 %v609_v37 }
  0x2b   :  { %367 = vmatmul.mubr.bf16.gmra.mrb[4].mxu0 %v611_v38 }
  0x2c   :  { %416 = vmatmul.mubr.bf16.gmra.mrb[4].mxu1 %v612_v39 }
  0xf6   :  { %v529_v40 = vpop.f32.mrb[0].mxu0 }
  0xf7   :  { %v557_v41 = vpop.f32.mrb[0].mxu1  ;;  %v530_v43 = vpop.f32.mrb[1].mxu0 }
  0xf8   :  { %v531_v44 = vadd.f32 %v530_v43, %v529_v40  ;;  %v558_v45 = vpop.f32.mrb[1].mxu1  ;;  %v532_v46 = vpop.f32.mrb[2].mxu0 }
  0xf9   :  { %v559_v47 = vadd.f32 %v558_v45, %v557_v41  ;;  %v560_v48 = vpop.f32.mrb[2].mxu1  ;;  %v533_v49 = vpop.f32.mrb[3].mxu0 }
  0xfa   :  { %v361_v50 = vadd.f32 %v531_v44, %v472_v42  ;;  %v534_v51 = vadd.f32 %v533_v49, %v532_v46  ;;  %v561_v52 = vpop.f32.mrb[3].mxu1 }
  0xfb   :  { %v562_v53 = vadd.f32 %v561_v52, %v560_v48 }
  0xfc   :  { %v364_v54 = vadd.f32 %v534_v51, %v472_v42  ;;  %v410_v55 = vadd.f32 %v559_v47, %v361_v50 }
  0xfe   :  { %v535_v56 = vpop.f32.mrb[4].mxu0  ;;  %424 = vmax.xlane.f32.xlu0 %v410_v55  ;;  %v413_v57 = vadd.f32 %v562_v53, %v364_v54 }
  0xff   :  { %v563_v58 = vpop.f32.mrb[4].mxu1  ;;  %v536_v59 = vpop.f32.mrb[5].mxu0 }
 0x100   :  { %v537_v60 = vadd.f32 %v536_v59, %v535_v56  ;;  %v564_v61 = vpop.f32.mrb[5].mxu1  ;;  %v538_v62 = vpop.f32.mrb[6].mxu0 }
 0x101   :  { %v565_v63 = vadd.f32 %v564_v61, %v563_v58  ;;  %v566_v0 = vpop.f32.mrb[6].mxu1  ;;  %v539_v1 = vpop.f32.mrb[7].mxu0 }
 0x102   :  { %v369_v2 = vadd.f32 %v537_v60, %v472_v42  ;;  %v540_v3 = vadd.f32 %v539_v1, %v538_v62  ;;  %v567_v4 = vpop.f32.mrb[7].mxu1  ;;  %426 = vmax.xlane.f32.xlu0 %v413_v57 }
 0x103   :  { %v568_v5 = vadd.f32 %v567_v4, %v566_v0 }
 0x104   :  { %v372_v6 = vadd.f32 %v540_v3, %v472_v42  ;;  %v418_v7 = vadd.f32 %v565_v63, %v369_v2 }
 0x106   :  { %428 = vmax.xlane.f32.xlu1 %v418_v7  ;;  %v421_v8 = vadd.f32 %v568_v5, %v372_v6 }
 0x10a   :  { %430 = vmax.xlane.f32.xlu1 %v421_v8 }
 0x18b   :  { %v425_v9 = vpop.xlane.xlu0 %424 }
 0x18c   :  { %v432_v10 = vsub.f32 %v410_v55, %v425_v9 }
 0x18e   :  { %v436_v11 = vmul.f32 1.442695, %v432_v10 }
 0x18f   :  { %v427_v12 = vpop.xlane.xlu0 %426 }
 0x190   :  { %613 = vpow2.f32 %v436_v11  ;;  %v433_v13 = vsub.f32 %v413_v57, %v427_v12 }
 0x192   :  { %v438_v14 = vmul.f32 1.442695, %v433_v13 }
 0x193   :  { %v429_v15 = vpop.xlane.xlu1 %428 }
 0x194   :  { %615 = vpow2.f32 %v438_v14  ;;  %v434_v16 = vsub.f32 %v418_v7, %v429_v15 }
 0x196   :  { %v440_v17 = vmul.f32 1.442695, %v434_v16 }
 0x197   :  { %v431_v18 = vpop.xlane.xlu1 %430 }
 0x198   :  { %617 = vpow2.f32 %v440_v17  ;;  %v435_v19 = vsub.f32 %v421_v8, %v431_v18 }
 0x19a   :  { %v614_v20 = vpop.eup %613  ;;  %v442_v21 = vmul.f32 1.442695, %v435_v19 }
 0x19b   :  { %444 = vadd.xlane.f32.xlu0 %v614_v20 }
 0x19c   :  { %619 = vpow2.f32 %v442_v21 }
 0x19e   :  { %v616_v22 = vpop.eup %615 }
 0x19f   :  { %446 = vadd.xlane.f32.xlu1 %v616_v22 }
 0x1a2   :  { %v618_v23 = vpop.eup %617 }
 0x1a3   :  { %448 = vadd.xlane.f32.xlu0 %v618_v23 }
 0x1a6   :  { %v620_v24 = vpop.eup %619 }
 0x1a7   :  { %450 = vadd.xlane.f32.xlu1 %v620_v24 }
 0x228   :  { %v445_v25 = vpop.xlane.xlu0 %444 }
 0x229   :  { %621 = vlog2.f32 %v445_v25 }
 0x22c   :  { %v447_v26 = vpop.xlane.xlu1 %446 }
 0x22d   :  { %623 = vlog2.f32 %v447_v26 }
 0x230   :  { %v449_v27 = vpop.xlane.xlu0 %448 }
 0x231   :  { %625 = vlog2.f32 %v449_v27 }
 0x233   :  { %v622_v28 = vpop.eup %621 }
 0x234   :  { %v453_v29 = vmul.f32 0.6931472, %v622_v28  ;;  %v451_v30 = vpop.xlane.xlu1 %450 }
 0x235   :  { %627 = vlog2.f32 %v451_v30 }
 0x236   :  { %v460_v31 = vsub.f32 %v432_v10, %v453_v29 }
 0x237   :  { %v624_v32 = vpop.eup %623 }
 0x238   :  { %464 = vst [vmem:[%s787_s3] sm:$0xff] %v460_v31  ;;  %v455_v33 = vmul.f32 0.6931472, %v624_v32 }
 0x23a   :  { %v461_v34 = vsub.f32 %v433_v13, %v455_v33 }
 0x23b   :  { %v626_v35 = vpop.eup %625 }
 0x23c   :  { %465 = vst [vmem:[%s787_s3 + $0x8] sm:$0xff] %v461_v34  ;;  %v457_v36 = vmul.f32 0.6931472, %v626_v35 }
 0x23e   :  { %v462_v37 = vsub.f32 %v434_v16, %v457_v36 }
 0x23f   :  { %v628_v38 = vpop.eup %627 }
 0x240   :  { %466 = vst [vmem:[%s787_s3 + $0x10] sm:$0xff] %v462_v37  ;;  %v459_v39 = vmul.f32 0.6931472, %v628_v38 }
 0x242   :  { %v463_v40 = vsub.f32 %v435_v19, %v459_v39 }
 0x244   :  { %467 = vst [vmem:[%s787_s3 + $0x18] sm:$0xff] %v463_v40 }

// kernel: _lambda_.22
= control target key start
LH: loop header
LB: loop body
LE: loop exit
PB: predicated region body
PF: predicated region fallthrough
CT: control target
= control target key end

     0   :  { %s2269_s0 = inlined_call_operand.vmem [shape: bf16[32,2048], index: 0, kind: input, shape index: {}]   ;;  %s2270_s1 = inlined_call_operand.vmem [shape: bf16[2048,512], index: 1, kind: input, shape index: {}]   ;;  %s2271_s2 = inlined_call_operand.vmem [shape: f32[1,512], index: 2, kind: input, shape index: {}]   ;;  %s2272_s3 = inlined_call_operand.vmem [shape: f32[1,512], index: 3, kind: input, shape index: {}]   ;;  %s2273_s4 = inlined_call_operand.vmem [shape: bf16[32,512], index: 4, kind: output, shape index: {}]  }
   0x1   :  { %2276 = sst [smem:[#allocation8_spill]] %s2269_s0 }
   0x2   :  { %2277 = sst [smem:[#allocation9_spill]] %s2270_s1 }
   0x3   :  { %s1870_s15 = smov 0   ;;  %s1872_s16 = smov 0  }
   0x4   :  { %s1874_s17 = smov 0   ;;  %s1876_s18 = smov 0  }
   0x5   :  { %s1878_s19 = smov 0   ;;  %s1880_s20 = smov 0  }
   0x6   :  { %s1882_s21 = smov 0   ;;  %s1884_s22 = smov 0  }
   0x7   :  { %s1886_s23 = smov 0   ;;  %s1888_s24 = smov 0  }
   0x8   :  { %s1890_s25 = smov 0  }
   0x9 LB: > { %s1443_s26 = sadd.s32 4294967295, %s1842_s25   ;;  %s26_s27 = sadd.s32 1, %s1834_s23  ;;  %s1842_s25 = sphi %s1890_s25, %s14_s25   ;;  %s1838_s24 = sphi %s1888_s24, %s2296_s24   ;;  %s1834_s23 = sphi %s1886_s23, %s2295_s23   ;;  %s1830_s22 = sphi %s1884_s22, %s2294_s22   ;;  %s1826_s21 = sphi %s1882_s21, %s2293_s21   ;;  %s1822_s20 = sphi %s1880_s20, %s2292_s20   ;;  %s1818_s19 = sphi %s1878_s19, %s2291_s19   ;;  %s1814_s18 = sphi %s1876_s18, %s2290_s18   ;;  %s1810_s17 = sphi %s1874_s17, %s2289_s17   ;;  %s1806_s16 = sphi %s1872_s16, %s2288_s16   ;;  %s1802_s15 = sphi %s1870_s15, %s2287_s15  }
   0xa   : > { %p27_p0 = scmp.ge.s32.totalorder %s26_s27, 4  ;;  %s29_s28 = sadd.s32 1, %s1838_s24 }
   0xb   : > { %s42_s29 = sadd.s32 1, %s1822_s20  ;;  %p49_p1 = scmp.ne.s32.totalorder %s1822_s20, %s1818_s19 }
   0xc   : > { %s2298_s27 = smov (%p27_p0, %s26_s27), 0  ;;  %s2300_s28 = smov (!%p27_p0, %s29_s28), %s1838_s24 }
   0xd   : > { %2278 = sst [smem:[#allocation6_spill]] %s2298_s27  ;;  %s38_s30 = ssub.s32 %s1834_s23, %s2298_s27 }
   0xe   : > { %p50_p2 = scmp.eq.s32.totalorder %s1842_s25, 0  ;;  %p31_p3 = scmp.ge.s32.totalorder %s2300_s28, 2 }
   0xf   : > { %p40_p4 = scmp.eq.s32.totalorder %s38_s30, 0  ;;  %s70_s6 = sadd.s32 1, %s1814_s18 }
  0x10   : > { %p1937_p5 = por %p50_p2, %p49_p1  ;;  %s2302_s28 = smov (%p31_p3, %s2300_s28), 0 }
  0x11   : > { %2280 = sst [smem:[#allocation7_spill]] %s2302_s28  ;;  %s66_s8 = ssub.s32 %s1838_s24, %s2302_s28 }
  0x12   : > { %s1945_s7 = scalar_select %p40_p4, %s1822_s20, %s42_s29  }
  0x13   : > { %p77_p6 = scmp.ne.s32.totalorder %s1814_s18, %s1810_s17  ;;  %s67_s9 = sor.u32 %s66_s8, %s38_s30 }
  0x14   : > { %p148_p7 = scmp.eq.s32.totalorder %s66_s8, 0  ;;  %p68_p8 = scmp.eq.s32.totalorder %s67_s9, 0 }
  0x15   : > { %p1951_p9 = por %p77_p6, %p50_p2  ;;  %s150_s11 = sadd.s32 1, %s1806_s16 }
  0x16   : > { %p160_p10 = scmp.ne.s32.totalorder %s1806_s16, %s1802_s15  ;;  %p161_p11 = scmp.eq.s32.totalorder %s1443_s26, 7 }
  0x17   : > { %s1959_s12 = scalar_select %p68_p8, %s1814_s18, %s70_s6  }
  0x18   : > { %s1962_s13 = scalar_select %p148_p7, %s1806_s16, %s150_s11  }
  0x19   : > { %p1964_p12 = por %p161_p11, %p160_p10  ;;  %p1446_p13 = scmp.ge.s32.totalorder %s1842_s25, 8 }
  0x1b   : > { %183 = sbr.rel (%p1446_p13) target bundleno = 90 (0x5a), region = 16 }
  0x22   : > { %186 = sbr.rel (!%p1937_p5) target bundleno = 48 (0x30), region = 20  ;;  %s188_s29 = sand.u32 (%p1937_p5), 1, %s1822_s20  }
  0x23   : > { %s1544_s30 = sshll.u32 (%p1937_p5), %s1834_s23, 4  ;;  %s1447_s8 = sshll.u32 (%p1937_p5), %s188_s29, 6 }
  0x24   : > { %s2283_s0 = sld [smem:[#allocation8_spill]] (%p1937_p5)  ;;  %s190_s26 = scalar_lea.vmem (%p1937_p5), [#allocation3], %s1447_s8 }
  0x2a   : > { %s196_s11 = scalar_lea.vmem %s2283_s0, %s1544_s30 }
  0x2b   : > { %v209_v0 = vld [vmem:[%s196_s11] sm:$0xff]  ;;  %v211_v1 = vld [vmem:[%s196_s11 + $0x8] sm:$0xff] }
  0x2c   : > { %v213_v2 = vld [vmem:[%s196_s11 + $0x40] sm:$0xff]  ;;  %210 = vst [vmem:[%s190_s26] sm:$0xff] %v209_v0  ;;  %212 = vst [vmem:[%s190_s26 + $0x8] sm:$0xff] %v211_v1  ;;  %v215_v3 = vld [vmem:[%s196_s11 + $0x48] sm:$0xff] }
  0x2d   : > { %214 = vst [vmem:[%s190_s26 + $0x10] sm:$0xff] %v213_v2  ;;  %v217_v4 = vld [vmem:[%s196_s11 + $0x80] sm:$0xff]  ;;  %v219_v5 = vld [vmem:[%s196_s11 + $0x88] sm:$0xff]  ;;  %216 = vst [vmem:[%s190_s26 + $0x18] sm:$0xff] %v215_v3 }
  0x2e   : > { %218 = vst [vmem:[%s190_s26 + $0x20] sm:$0xff] %v217_v4  ;;  %220 = vst [vmem:[%s190_s26 + $0x28] sm:$0xff] %v219_v5  ;;  %v221_v6 = vld [vmem:[%s196_s11 + $0xc0] sm:$0xff]  ;;  %v223_v7 = vld [vmem:[%s196_s11 + $0xc8] sm:$0xff] }
  0x2f   : > { %222 = vst [vmem:[%s190_s26 + $0x30] sm:$0xff] %v221_v6  ;;  %224 = vst [vmem:[%s190_s26 + $0x38] sm:$0xff] %v223_v7 }
  0x30 PF: > { %230 = sbr.rel (!%p1951_p9) target bundleno = 90 (0x5a), region = 43  ;;  %s232_s5 = sand.u32 (%p1951_p9), 1, %s1814_s18  }
  0x31   : > { %s1452_s29 = sshll.u32 (%p1951_p9), %s1838_s24, 1  ;;  %s1450_s30 = sshll.u32 (%p1951_p9), %s232_s5, 9 }
  0x32   : > { %s1545_s8 = sshll.u32 (%p1951_p9), %s1834_s23, 8  ;;  %s2284_s1 = sld [smem:[#allocation9_spill]] (%p1951_p9) }
  0x33   : > { %s238_s6 = sadd.s32 (%p1951_p9), %s1545_s8, %s1452_s29  ;;  %s1989_s10 = scalar_lea.vmem (%p1951_p9), [#allocation4], %s1450_s30 }
  0x34   : > { %s1454_s9 = sshll.u32 (%p1951_p9), %s238_s6, 2 }
  0x38   : > { %s1984_s27 = scalar_lea.vmem %s2284_s1, %s1454_s9 }
  0x39   : > { %v394_v8 = vld [vmem:[%s1984_s27] sm:$0xff]  ;;  %v396_v9 = vld [vmem:[%s1984_s27 + $0x10] sm:$0xff] }
  0x3a   : > { %v398_v10 = vld [vmem:[%s1984_s27 + $0x20] sm:$0xff]  ;;  %395 = vst [vmem:[%s1989_s10] sm:$0xff] %v394_v8  ;;  %397 = vst [vmem:[%s1989_s10 + $0x8] sm:$0xff] %v396_v9  ;;  %v400_v11 = vld [vmem:[%s1984_s27 + $0x30] sm:$0xff] }
  0x3b   : > { %399 = vst [vmem:[%s1989_s10 + $0x10] sm:$0xff] %v398_v10  ;;  %v402_v12 = vld [vmem:[%s1984_s27 + $0x40] sm:$0xff]  ;;  %v404_v13 = vld [vmem:[%s1984_s27 + $0x50] sm:$0xff]  ;;  %401 = vst [vmem:[%s1989_s10 + $0x18] sm:$0xff] %v400_v11 }
  0x3c   : > { %403 = vst [vmem:[%s1989_s10 + $0x20] sm:$0xff] %v402_v12  ;;  %405 = vst [vmem:[%s1989_s10 + $0x28] sm:$0xff] %v404_v13  ;;  %v406_v14 = vld [vmem:[%s1984_s27 + $0x60] sm:$0xff]  ;;  %v408_v15 = vld [vmem:[%s1984_s27 + $0x70] sm:$0xff] }
  0x3d   : > { %v410_v16 = vld [vmem:[%s1984_s27 + $0x80] sm:$0xff]  ;;  %407 = vst [vmem:[%s1989_s10 + $0x30] sm:$0xff] %v406_v14  ;;  %409 = vst [vmem:[%s1989_s10 + $0x38] sm:$0xff] %v408_v15  ;;  %v412_v17 = vld [vmem:[%s1984_s27 + $0x90] sm:$0xff] }
  0x3e   : > { %411 = vst [vmem:[%s1989_s10 + $0x40] sm:$0xff] %v410_v16  ;;  %v414_v18 = vld [vmem:[%s1984_s27 + $0xa0] sm:$0xff]  ;;  %v416_v19 = vld [vmem:[%s1984_s27 + $0xb0] sm:$0xff]  ;;  %413 = vst [vmem:[%s1989_s10 + $0x48] sm:$0xff] %v412_v17 }
  0x3f   : > { %415 = vst [vmem:[%s1989_s10 + $0x50] sm:$0xff] %v414_v18  ;;  %417 = vst [vmem:[%s1989_s10 + $0x58] sm:$0xff] %v416_v19  ;;  %v418_v20 = vld [vmem:[%s1984_s27 + $0xc0] sm:$0xff]  ;;  %v420_v21 = vld [vmem:[%s1984_s27 + $0xd0] sm:$0xff] }
  0x40   : > { %v422_v22 = vld [vmem:[%s1984_s27 + $0xe0] sm:$0xff]  ;;  %419 = vst [vmem:[%s1989_s10 + $0x60] sm:$0xff] %v418_v20  ;;  %421 = vst [vmem:[%s1989_s10 + $0x68] sm:$0xff] %v420_v21  ;;  %v424_v23 = vld [vmem:[%s1984_s27 + $0xf0] sm:$0xff] }
  0x41   : > { %423 = vst [vmem:[%s1989_s10 + $0x70] sm:$0xff] %v422_v22  ;;  %v426_v24 = vld [vmem:[%s1984_s27 + $0x100] sm:$0xff]  ;;  %v428_v25 = vld [vmem:[%s1984_s27 + $0x110] sm:$0xff]  ;;  %425 = vst [vmem:[%s1989_s10 + $0x78] sm:$0xff] %v424_v23 }
  0x42   : > { %427 = vst [vmem:[%s1989_s10 + $0x80] sm:$0xff] %v426_v24  ;;  %429 = vst [vmem:[%s1989_s10 + $0x88] sm:$0xff] %v428_v25  ;;  %v430_v26 = vld [vmem:[%s1984_s27 + $0x120] sm:$0xff]  ;;  %v432_v27 = vld [vmem:[%s1984_s27 + $0x130] sm:$0xff] }
  0x43   : > { %v434_v28 = vld [vmem:[%s1984_s27 + $0x140] sm:$0xff]  ;;  %431 = vst [vmem:[%s1989_s10 + $0x90] sm:$0xff] %v430_v26  ;;  %433 = vst [vmem:[%s1989_s10 + $0x98] sm:$0xff] %v432_v27  ;;  %v436_v29 = vld [vmem:[%s1984_s27 + $0x150] sm:$0xff] }
  0x44   : > { %435 = vst [vmem:[%s1989_s10 + $0xa0] sm:$0xff] %v434_v28  ;;  %v438_v30 = vld [vmem:[%s1984_s27 + $0x160] sm:$0xff]  ;;  %v440_v31 = vld [vmem:[%s1984_s27 + $0x170] sm:$0xff]  ;;  %437 = vst [vmem:[%s1989_s10 + $0xa8] sm:$0xff] %v436_v29 }
  0x45   : > { %439 = vst [vmem:[%s1989_s10 + $0xb0] sm:$0xff] %v438_v30  ;;  %441 = vst [vmem:[%s1989_s10 + $0xb8] sm:$0xff] %v440_v31  ;;  %v442_v32 = vld [vmem:[%s1984_s27 + $0x180] sm:$0xff]  ;;  %v444_v33 = vld [vmem:[%s1984_s27 + $0x190] sm:$0xff] }
  0x46   : > { %v446_v34 = vld [vmem:[%s1984_s27 + $0x1a0] sm:$0xff]  ;;  %443 = vst [vmem:[%s1989_s10 + $0xc0] sm:$0xff] %v442_v32  ;;  %445 = vst [vmem:[%s1989_s10 + $0xc8] sm:$0xff] %v444_v33  ;;  %v448_v35 = vld [vmem:[%s1984_s27 + $0x1b0] sm:$0xff] }
  0x47   : > { %447 = vst [vmem:[%s1989_s10 + $0xd0] sm:$0xff] %v446_v34  ;;  %v450_v36 = vld [vmem:[%s1984_s27 + $0x1c0] sm:$0xff]  ;;  %v452_v37 = vld [vmem:[%s1984_s27 + $0x1d0] sm:$0xff]  ;;  %449 = vst [vmem:[%s1989_s10 + $0xd8] sm:$0xff] %v448_v35 }
  0x48   : > { %451 = vst [vmem:[%s1989_s10 + $0xe0] sm:$0xff] %v450_v36  ;;  %453 = vst [vmem:[%s1989_s10 + $0xe8] sm:$0xff] %v452_v37  ;;  %v454_v38 = vld [vmem:[%s1984_s27 + $0x1e0] sm:$0xff]  ;;  %v456_v39 = vld [vmem:[%s1984_s27 + $0x1f0] sm:$0xff] }
  0x49   : > { %v458_v40 = vld [vmem:[%s1984_s27 + $0x200] sm:$0xff]  ;;  %455 = vst [vmem:[%s1989_s10 + $0xf0] sm:$0xff] %v454_v38  ;;  %457 = vst [vmem:[%s1989_s10 + $0xf8] sm:$0xff] %v456_v39  ;;  %v460_v41 = vld [vmem:[%s1984_s27 + $0x210] sm:$0xff] }
  0x4a   : > { %459 = vst [vmem:[%s1989_s10 + $0x100] sm:$0xff] %v458_v40  ;;  %v462_v42 = vld [vmem:[%s1984_s27 + $0x220] sm:$0xff]  ;;  %v464_v43 = vld [vmem:[%s1984_s27 + $0x230] sm:$0xff]  ;;  %461 = vst [vmem:[%s1989_s10 + $0x108] sm:$0xff] %v460_v41 }
  0x4b   : > { %463 = vst [vmem:[%s1989_s10 + $0x110] sm:$0xff] %v462_v42  ;;  %465 = vst [vmem:[%s1989_s10 + $0x118] sm:$0xff] %v464_v43  ;;  %v466_v44 = vld [vmem:[%s1984_s27 + $0x240] sm:$0xff]  ;;  %v468_v45 = vld [vmem:[%s1984_s27 + $0x250] sm:$0xff] }
  0x4c   : > { %v470_v46 = vld [vmem:[%s1984_s27 + $0x260] sm:$0xff]  ;;  %467 = vst [vmem:[%s1989_s10 + $0x120] sm:$0xff] %v466_v44  ;;  %469 = vst [vmem:[%s1989_s10 + $0x128] sm:$0xff] %v468_v45  ;;  %v472_v47 = vld [vmem:[%s1984_s27 + $0x270] sm:$0xff] }
  0x4d   : > { %471 = vst [vmem:[%s1989_s10 + $0x130] sm:$0xff] %v470_v46  ;;  %v474_v48 = vld [vmem:[%s1984_s27 + $0x280] sm:$0xff]  ;;  %v476_v49 = vld [vmem:[%s1984_s27 + $0x290] sm:$0xff]  ;;  %473 = vst [vmem:[%s1989_s10 + $0x138] sm:$0xff] %v472_v47 }
  0x4e   : > { %475 = vst [vmem:[%s1989_s10 + $0x140] sm:$0xff] %v474_v48  ;;  %477 = vst [vmem:[%s1989_s10 + $0x148] sm:$0xff] %v476_v49  ;;  %v478_v50 = vld [vmem:[%s1984_s27 + $0x2a0] sm:$0xff]  ;;  %v480_v51 = vld [vmem:[%s1984_s27 + $0x2b0] sm:$0xff] }
  0x4f   : > { %v482_v52 = vld [vmem:[%s1984_s27 + $0x2c0] sm:$0xff]  ;;  %479 = vst [vmem:[%s1989_s10 + $0x150] sm:$0xff] %v478_v50  ;;  %481 = vst [vmem:[%s1989_s10 + $0x158] sm:$0xff] %v480_v51  ;;  %v484_v53 = vld [vmem:[%s1984_s27 + $0x2d0] sm:$0xff] }
  0x50   : > { %483 = vst [vmem:[%s1989_s10 + $0x160] sm:$0xff] %v482_v52  ;;  %v486_v54 = vld [vmem:[%s1984_s27 + $0x2e0] sm:$0xff]  ;;  %v488_v55 = vld [vmem:[%s1984_s27 + $0x2f0] sm:$0xff]  ;;  %485 = vst [vmem:[%s1989_s10 + $0x168] sm:$0xff] %v484_v53 }
  0x51   : > { %487 = vst [vmem:[%s1989_s10 + $0x170] sm:$0xff] %v486_v54  ;;  %489 = vst [vmem:[%s1989_s10 + $0x178] sm:$0xff] %v488_v55  ;;  %v490_v56 = vld [vmem:[%s1984_s27 + $0x300] sm:$0xff]  ;;  %v492_v57 = vld [vmem:[%s1984_s27 + $0x310] sm:$0xff] }
  0x52   : > { %v494_v58 = vld [vmem:[%s1984_s27 + $0x320] sm:$0xff]  ;;  %491 = vst [vmem:[%s1989_s10 + $0x180] sm:$0xff] %v490_v56  ;;  %493 = vst [vmem:[%s1989_s10 + $0x188] sm:$0xff] %v492_v57  ;;  %v496_v59 = vld [vmem:[%s1984_s27 + $0x330] sm:$0xff] }
  0x53   : > { %495 = vst [vmem:[%s1989_s10 + $0x190] sm:$0xff] %v494_v58  ;;  %v498_v60 = vld [vmem:[%s1984_s27 + $0x340] sm:$0xff]  ;;  %v500_v61 = vld [vmem:[%s1984_s27 + $0x350] sm:$0xff]  ;;  %497 = vst [vmem:[%s1989_s10 + $0x198] sm:$0xff] %v496_v59 }
  0x54   : > { %499 = vst [vmem:[%s1989_s10 + $0x1a0] sm:$0xff] %v498_v60  ;;  %501 = vst [vmem:[%s1989_s10 + $0x1a8] sm:$0xff] %v500_v61  ;;  %v502_v62 = vld [vmem:[%s1984_s27 + $0x360] sm:$0xff]  ;;  %v504_v63 = vld [vmem:[%s1984_s27 + $0x370] sm:$0xff] }
  0x55   : > { %v506_v0 = vld [vmem:[%s1984_s27 + $0x380] sm:$0xff]  ;;  %503 = vst [vmem:[%s1989_s10 + $0x1b0] sm:$0xff] %v502_v62  ;;  %505 = vst [vmem:[%s1989_s10 + $0x1b8] sm:$0xff] %v504_v63  ;;  %v508_v1 = vld [vmem:[%s1984_s27 + $0x390] sm:$0xff] }
  0x56   : > { %507 = vst [vmem:[%s1989_s10 + $0x1c0] sm:$0xff] %v506_v0  ;;  %v510_v2 = vld [vmem:[%s1984_s27 + $0x3a0] sm:$0xff]  ;;  %v512_v3 = vld [vmem:[%s1984_s27 + $0x3b0] sm:$0xff]  ;;  %509 = vst [vmem:[%s1989_s10 + $0x1c8] sm:$0xff] %v508_v1 }
  0x57   : > { %511 = vst [vmem:[%s1989_s10 + $0x1d0] sm:$0xff] %v510_v2  ;;  %513 = vst [vmem:[%s1989_s10 + $0x1d8] sm:$0xff] %v512_v3  ;;  %v514_v4 = vld [vmem:[%s1984_s27 + $0x3c0] sm:$0xff]  ;;  %v516_v5 = vld [vmem:[%s1984_s27 + $0x3d0] sm:$0xff] }
  0x58   : > { %v518_v6 = vld [vmem:[%s1984_s27 + $0x3e0] sm:$0xff]  ;;  %515 = vst [vmem:[%s1989_s10 + $0x1e0] sm:$0xff] %v514_v4  ;;  %517 = vst [vmem:[%s1989_s10 + $0x1e8] sm:$0xff] %v516_v5  ;;  %v520_v7 = vld [vmem:[%s1984_s27 + $0x3f0] sm:$0xff] }
  0x59   : > { %519 = vst [vmem:[%s1989_s10 + $0x1f0] sm:$0xff] %v518_v6  ;;  %521 = vst [vmem:[%s1989_s10 + $0x1f8] sm:$0xff] %v520_v7 }
  0x5a PF: > { %p1455_p0 = scmp.ge.s32.totalorder %s1842_s25, 1  ;;  %p542_p1 = scmp.lt.s32.totalorder %s1842_s25, 9 }
  0x5c   : > { %p543_p2 = pnand %p1455_p0, %p542_p1 }
  0x5d   : > { %s549_s0 = sand.u32 (!%p543_p2), 1, %s1818_s19   ;;  %s556_s28 = sand.u32 (!%p543_p2), 1, %s1810_s17  }
  0x5e   : > { %546 = sbr.rel (%p543_p2) target bundleno = 426 (0x1aa), region = 89  ;;  %s1456_s11 = sshll.u32 (!%p543_p2), %s549_s0, 6 }
  0x5f   : > { %s1457_s26 = sshll.u32 (!%p543_p2), %s556_s28, 9  ;;  %s589_s5 = sand.u32 (!%p543_p2), 1, %s1802_s15  }
  0x60   : > { %s1459_s29 = sshll.u32 (!%p543_p2), %s1830_s22, 1  ;;  %s1458_s27 = sshll.u32 (!%p543_p2), %s589_s5, 5 }
  0x61   : > { %p597_p3 = scmp.lt.s32.totalorder (!%p543_p2), %s1459_s29, 3  ;;  %s2132_s19 = scalar_lea.vmem (!%p543_p2), [#allocation3], %s1456_s11 }
  0x62   : > { %s2134_s17 = scalar_lea.vmem (!%p543_p2), [#allocation4], %s1457_s26  ;;  %s2136_s15 = scalar_lea.vmem (!%p543_p2), [#allocation5], %s1458_s27 }
  0x63   : > { %p1461_p4 = scmp.ne.s32.totalorder (!%p543_p2), %s1826_s21, 0 }
  0x65   : > { %s2304_s29 = smov (!%p597_p3, %s1459_s29), 3  ;;  %611 = sbr.rel (%p1461_p4) target bundleno = 108 (0x6c), region = 101 }
  0x66   : > { %s599_s6 = scalar_lea.vmem %s2271_s2, %s2304_s29  ;;  %s604_s1 = scalar_lea.vmem %s2272_s3, %s2304_s29  ;;  %v1844_v8 = vmov (!%p1461_p4), 0.0  }
  0x67   : > { %612 = vst [vmem:[#allocation2] sm:$0xff] (!%p1461_p4), %v1844_v8  ;;  %613 = vst [vmem:[#allocation2 + $0x8] sm:$0xff] (!%p1461_p4), %v1844_v8 }
  0x68   : > { %614 = vst [vmem:[#allocation2 + $0x10] sm:$0xff] (!%p1461_p4), %v1844_v8  ;;  %615 = vst [vmem:[#allocation2 + $0x18] sm:$0xff] (!%p1461_p4), %v1844_v8 }
  0x69   : > { %616 = vst [vmem:[#allocation2 + $0x20] sm:$0xff] (!%p1461_p4), %v1844_v8  ;;  %617 = vst [vmem:[#allocation2 + $0x28] sm:$0xff] (!%p1461_p4), %v1844_v8 }
  0x6a   : > { %618 = vst [vmem:[#allocation2 + $0x30] sm:$0xff] (!%p1461_p4), %v1844_v8  ;;  %619 = vst [vmem:[#allocation2 + $0x38] sm:$0xff] (!%p1461_p4), %v1844_v8 }
  0x6c PF: > { %v1648_v9 = vld [vmem:[%s2134_s17 + $0x4] ss:$8 sps:$4 sm:$0xff]   ;;  %v1652_v11 = vld [vmem:[%s2134_s17] ss:$8 sps:$4 sm:$0xff]   ;;  %v1654_v13 = vld [vmem:[%s2134_s17 + $0x14] ss:$8 sps:$4 sm:$0xff]  }
  0x6d   : > { %v1650_v10 = vld [vmem:[%s2134_s17 + $0x104] ss:$8 sps:$4 sm:$0xff]   ;;  %1060 = vmatprep.subr.bf16.mxu1 %v1648_v9  ;;  %v1653_v12 = vld [vmem:[%s2134_s17 + $0x100] ss:$8 sps:$4 sm:$0xff]   ;;  %v1656_v14 = vld [vmem:[%s2134_s17 + $0x114] ss:$8 sps:$4 sm:$0xff]  }
  0x6e   : > { %1113 = vmatprep.subr.bf16.mxu0 %v1650_v10  ;;  %1061 = vmatpush1.bf16.msra.mxu1 %v1652_v11  ;;  %v1658_v15 = vld [vmem:[%s2134_s17 + $0x10] ss:$8 sps:$4 sm:$0xff]   ;;  %v1660_v17 = vld [vmem:[%s2134_s17 + $0x24] ss:$8 sps:$4 sm:$0xff]   ;;  %v1664_v19 = vld [vmem:[%s2134_s17 + $0x20] ss:$8 sps:$4 sm:$0xff]  }
  0x6f   : > { %1114 = vmatpush1.bf16.msra.mxu0 %v1653_v12  ;;  %1062 = vmatprep.subr.bf16.mxu1 %v1654_v13  ;;  %v1659_v16 = vld [vmem:[%s2134_s17 + $0x110] ss:$8 sps:$4 sm:$0xff]   ;;  %v1662_v18 = vld [vmem:[%s2134_s17 + $0x124] ss:$8 sps:$4 sm:$0xff]   ;;  %v1665_v20 = vld [vmem:[%s2134_s17 + $0x120] ss:$8 sps:$4 sm:$0xff]  }
  0x70   : > { %1115 = vmatprep.subr.bf16.mxu0 %v1656_v14  ;;  %v1666_v21 = vld [vmem:[%s2134_s17 + $0x34] ss:$8 sps:$4 sm:$0xff]   ;;  %v1670_v23 = vld [vmem:[%s2134_s17 + $0x30] ss:$8 sps:$4 sm:$0xff]   ;;  %v1672_v25 = vld [vmem:[%s2134_s17 + $0x44] ss:$8 sps:$4 sm:$0xff]  }
  0x71   : > { %v1668_v22 = vld [vmem:[%s2134_s17 + $0x134] ss:$8 sps:$4 sm:$0xff]   ;;  %v1671_v24 = vld [vmem:[%s2134_s17 + $0x130] ss:$8 sps:$4 sm:$0xff]   ;;  %v1674_v26 = vld [vmem:[%s2134_s17 + $0x144] ss:$8 sps:$4 sm:$0xff]  }
  0x72   : > { %1063 = vmatpush1.bf16.msra.mxu1 %v1658_v15  ;;  %v1676_v27 = vld [vmem:[%s2134_s17 + $0x40] ss:$8 sps:$4 sm:$0xff]   ;;  %v1678_v29 = vld [vmem:[%s2134_s17 + $0x54] ss:$8 sps:$4 sm:$0xff]   ;;  %v1682_v31 = vld [vmem:[%s2134_s17 + $0x50] ss:$8 sps:$4 sm:$0xff]  }
  0x73   : > { %1116 = vmatpush1.bf16.msra.mxu0 %v1659_v16  ;;  %1064 = vmatprep.subr.bf16.mxu1 %v1660_v17  ;;  %v1677_v28 = vld [vmem:[%s2134_s17 + $0x140] ss:$8 sps:$4 sm:$0xff]   ;;  %v1680_v30 = vld [vmem:[%s2134_s17 + $0x154] ss:$8 sps:$4 sm:$0xff]   ;;  %v1683_v32 = vld [vmem:[%s2134_s17 + $0x150] ss:$8 sps:$4 sm:$0xff]  }
  0x74   : > { %1117 = vmatprep.subr.bf16.mxu0 %v1662_v18  ;;  %v1684_v33 = vld [vmem:[%s2134_s17 + $0x64] ss:$8 sps:$4 sm:$0xff]   ;;  %v1688_v35 = vld [vmem:[%s2134_s17 + $0x60] ss:$8 sps:$4 sm:$0xff]   ;;  %v1690_v37 = vld [vmem:[%s2134_s17 + $0x74] ss:$8 sps:$4 sm:$0xff]  }
  0x75   : > { %v1686_v34 = vld [vmem:[%s2134_s17 + $0x164] ss:$8 sps:$4 sm:$0xff]   ;;  %v1689_v36 = vld [vmem:[%s2134_s17 + $0x160] ss:$8 sps:$4 sm:$0xff]   ;;  %v1692_v38 = vld [vmem:[%s2134_s17 + $0x174] ss:$8 sps:$4 sm:$0xff]  }
  0x76   : > { %1065 = vmatpush1.bf16.msra.mxu1 %v1664_v19  ;;  %v1694_v39 = vld [vmem:[%s2134_s17 + $0x70] ss:$8 sps:$4 sm:$0xff]   ;;  %v1696_v41 = vld [vmem:[%s2134_s17 + $0x84] ss:$8 sps:$4 sm:$0xff]   ;;  %v1700_v43 = vld [vmem:[%s2134_s17 + $0x80] ss:$8 sps:$4 sm:$0xff]  }
  0x77   : > { %1118 = vmatpush1.bf16.msra.mxu0 %v1665_v20  ;;  %1066 = vmatprep.subr.bf16.mxu1 %v1666_v21  ;;  %v1695_v40 = vld [vmem:[%s2134_s17 + $0x170] ss:$8 sps:$4 sm:$0xff]   ;;  %v1698_v42 = vld [vmem:[%s2134_s17 + $0x184] ss:$8 sps:$4 sm:$0xff]   ;;  %v1701_v44 = vld [vmem:[%s2134_s17 + $0x180] ss:$8 sps:$4 sm:$0xff]  }
  0x78   : > { %1119 = vmatprep.subr.bf16.mxu0 %v1668_v22  ;;  %v1702_v45 = vld [vmem:[%s2134_s17 + $0x94] ss:$8 sps:$4 sm:$0xff]   ;;  %v1706_v47 = vld [vmem:[%s2134_s17 + $0x90] ss:$8 sps:$4 sm:$0xff]   ;;  %v1708_v49 = vld [vmem:[%s2134_s17 + $0xa4] ss:$8 sps:$4 sm:$0xff]  }
  0x79   : > { %v1704_v46 = vld [vmem:[%s2134_s17 + $0x194] ss:$8 sps:$4 sm:$0xff]   ;;  %v1707_v48 = vld [vmem:[%s2134_s17 + $0x190] ss:$8 sps:$4 sm:$0xff]   ;;  %v1710_v50 = vld [vmem:[%s2134_s17 + $0x1a4] ss:$8 sps:$4 sm:$0xff]  }
  0x7a   : > { %1067 = vmatpush1.bf16.msra.mxu1 %v1670_v23  ;;  %v1712_v51 = vld [vmem:[%s2134_s17 + $0xa0] ss:$8 sps:$4 sm:$0xff]   ;;  %v1714_v53 = vld [vmem:[%s2134_s17 + $0xb4] ss:$8 sps:$4 sm:$0xff]   ;;  %v1718_v55 = vld [vmem:[%s2134_s17 + $0xb0] ss:$8 sps:$4 sm:$0xff]  }
  0x7b   : > { %1120 = vmatpush1.bf16.msra.mxu0 %v1671_v24  ;;  %1068 = vmatprep.subr.bf16.mxu1 %v1672_v25  ;;  %v1713_v52 = vld [vmem:[%s2134_s17 + $0x1a0] ss:$8 sps:$4 sm:$0xff]   ;;  %v1716_v54 = vld [vmem:[%s2134_s17 + $0x1b4] ss:$8 sps:$4 sm:$0xff]   ;;  %v1719_v56 = vld [vmem:[%s2134_s17 + $0x1b0] ss:$8 sps:$4 sm:$0xff]  }
  0x7c   : > { %1121 = vmatprep.subr.bf16.mxu0 %v1674_v26  ;;  %v1720_v57 = vld [vmem:[%s2134_s17 + $0xc4] ss:$8 sps:$4 sm:$0xff]   ;;  %v1724_v61 = vld [vmem:[%s2134_s17 + $0xc0] ss:$8 sps:$4 sm:$0xff]   ;;  %v1726_v63 = vld [vmem:[%s2134_s17 + $0xd4] ss:$8 sps:$4 sm:$0xff]  }
  0x7d   : > { %v1746_v58 = vld [vmem:[%s2132_s19 + $0x4] ss:$16 sps:$4 sm:$0xff]   ;;  %v1749_v60 = vld [vmem:[%s2132_s19 + $0xc] ss:$16 sps:$4 sm:$0xff]   ;;  %v1725_v62 = vld [vmem:[%s2134_s17 + $0x1c0] ss:$8 sps:$4 sm:$0xff]  }
  0x7e   : > { %1069 = vmatpush1.bf16.msra.mxu1 %v1676_v27  ;;  %v1722_v59 = vld [vmem:[%s2134_s17 + $0x1c4] ss:$8 sps:$4 sm:$0xff]   ;;  %1092 = vmatprep.mubr.bf16.mxu1 %v1746_v58  ;;  %v1728_v0 = vld [vmem:[%s2134_s17 + $0x1d4] ss:$8 sps:$4 sm:$0xff]   ;;  %v1730_v1 = vld [vmem:[%s2134_s17 + $0xd0] ss:$8 sps:$4 sm:$0xff]  }
  0x7f   : > { %1122 = vmatpush1.bf16.msra.mxu0 %v1677_v28  ;;  %1070 = vmatprep.subr.bf16.mxu1 %v1678_v29  ;;  %v1731_v2 = vld [vmem:[%s2134_s17 + $0x1d0] ss:$8 sps:$4 sm:$0xff]   ;;  %v1732_v3 = vld [vmem:[%s2134_s17 + $0xe4] ss:$8 sps:$4 sm:$0xff]   ;;  %v1736_v5 = vld [vmem:[%s2134_s17 + $0xe0] ss:$8 sps:$4 sm:$0xff]  }
  0x80   : > { %1123 = vmatprep.subr.bf16.mxu0 %v1680_v30  ;;  %1145 = vmatprep.mubr.bf16.mxu0 %v1749_v60  ;;  %v1734_v4 = vld [vmem:[%s2134_s17 + $0x1e4] ss:$8 sps:$4 sm:$0xff]   ;;  %v1737_v6 = vld [vmem:[%s2134_s17 + $0x1e0] ss:$8 sps:$4 sm:$0xff]   ;;  %v1738_v7 = vld [vmem:[%s2134_s17 + $0xf4] ss:$8 sps:$4 sm:$0xff]  }
  0x81   : > { %v1740_v8 = vld [vmem:[%s2134_s17 + $0x1f4] ss:$8 sps:$4 sm:$0xff]   ;;  %v1742_v9 = vld [vmem:[%s2134_s17 + $0xf0] ss:$8 sps:$4 sm:$0xff]   ;;  %v620_v18 = vld [vmem:[#allocation2] sm:$0xff]  ;;  %p1534_p5 = scmp.ne.s32.totalorder %s1826_s21, 3 }
  0x82   : > { %1071 = vmatpush1.bf16.msra.mxu1 %v1682_v31  ;;  %v1743_v10 = vld [vmem:[%s2134_s17 + $0x1f0] ss:$8 sps:$4 sm:$0xff]   ;;  %v1750_v13 = vld [vmem:[%s2132_s19 + $0x24] ss:$16 sps:$4 sm:$0xff]   ;;  %v1752_v14 = vld [vmem:[%s2132_s19 + $0x2c] ss:$16 sps:$4 sm:$0xff]  }
  0x83   : > { %1124 = vmatpush1.bf16.msra.mxu0 %v1683_v32  ;;  %1072 = vmatprep.subr.bf16.mxu1 %v1684_v33  ;;  %v1744_v11 = vld [vmem:[%s2132_s19] ss:$16 sps:$4 sm:$0xff]   ;;  %v1747_v12 = vld [vmem:[%s2132_s19 + $0x8] ss:$16 sps:$4 sm:$0xff]  }
  0x84   : > { %1125 = vmatprep.subr.bf16.mxu0 %v1686_v34  ;;  %v1754_v15 = vld [vmem:[%s2132_s19 + $0x20] ss:$16 sps:$4 sm:$0xff]   ;;  %v1755_v16 = vld [vmem:[%s2132_s19 + $0x28] ss:$16 sps:$4 sm:$0xff]  }
  0x85   : > { %v621_v22 = vld [vmem:[#allocation2 + $0x8] sm:$0xff]  ;;  %v622_v26 = vld [vmem:[#allocation2 + $0x10] sm:$0xff]  ;;  %v623_v31 = vld [vmem:[#allocation2 + $0x18] sm:$0xff] }
  0x86   : > { %1073 = vmatpush1.bf16.msra.mxu1 %v1688_v35  ;;  %v1214_v60 = vld [vmem:[%s604_s1] sm:$0x3] (!%p1534_p5) }
  0x87   : > { %1126 = vmatpush1.bf16.msra.mxu0 %v1689_v36  ;;  %1074 = vmatprep.subr.bf16.mxu1 %v1690_v37 }
  0x88   : > { %1127 = vmatprep.subr.bf16.mxu0 %v1692_v38  ;;  %v624_v38 = vld [vmem:[#allocation2 + $0x20] sm:$0xff] }
  0x8a   : > { %1075 = vmatpush1.bf16.msra.mxu1 %v1694_v39 }
  0x8b   : > { %1128 = vmatpush1.bf16.msra.mxu0 %v1695_v40  ;;  %1076 = vmatprep.subr.bf16.mxu1 %v1696_v41 }
  0x8c   : > { %1129 = vmatprep.subr.bf16.mxu0 %v1698_v42  ;;  %v625_v42 = vld [vmem:[#allocation2 + $0x28] sm:$0xff] }
  0x8e   : > { %1077 = vmatpush1.bf16.msra.mxu1 %v1700_v43 }
  0x8f   : > { %1130 = vmatpush1.bf16.msra.mxu0 %v1701_v44  ;;  %1078 = vmatprep.subr.bf16.mxu1 %v1702_v45 }
  0x90   : > { %1131 = vmatprep.subr.bf16.mxu0 %v1704_v46  ;;  %v626_v46 = vld [vmem:[#allocation2 + $0x30] sm:$0xff] }
  0x92   : > { %1079 = vmatpush1.bf16.msra.mxu1 %v1706_v47 }
  0x93   : > { %1132 = vmatpush1.bf16.msra.mxu0 %v1707_v48  ;;  %1080 = vmatprep.subr.bf16.mxu1 %v1708_v49 }
  0x94   : > { %1133 = vmatprep.subr.bf16.mxu0 %v1710_v50 }
  0x96   : > { %1081 = vmatpush1.bf16.msra.mxu1 %v1712_v51  ;;  %v627_v51 = vld [vmem:[#allocation2 + $0x38] sm:$0xff] }
  0x97   : > { %1134 = vmatpush1.bf16.msra.mxu0 %v1713_v52  ;;  %1082 = vmatprep.subr.bf16.mxu1 %v1714_v53 }
  0x98   : > { %1135 = vmatprep.subr.bf16.mxu0 %v1716_v54 }
  0x9a   : > { %1083 = vmatpush1.bf16.msra.mxu1 %v1718_v55 }
  0x9b   : > { %1136 = vmatpush1.bf16.msra.mxu0 %v1719_v56  ;;  %1084 = vmatprep.subr.bf16.mxu1 %v1720_v57  ;;  %v1196_v57 = vlaneseq (!%p1534_p5) }
  0x9c   : > { %1137 = vmatprep.subr.bf16.mxu0 %v1722_v59  ;;  %v1194_v59 = vld [vmem:[%s599_s6] sm:$0x3] (!%p1534_p5) }
  0x9d   : > { %v1197_v58 = vshrl.u32 (!%p1534_p5), %v1196_v57, 7 }
  0x9e   : > { %1085 = vmatpush1.bf16.msra.mxu1 %v1724_v61 }
  0x9f   : > { %1138 = vmatpush1.bf16.msra.mxu0 %v1725_v62  ;;  %1086 = vmatprep.subr.bf16.mxu1 %v1726_v63  ;;  %v1198_v63 = vsub.s32 (!%p1534_p5), 0, %v1197_v58 }
  0xa0   : > { %1139 = vmatprep.subr.bf16.mxu0 %v1728_v0  ;;  %v1202_v0 = vsub.s32 (!%p1534_p5), 1, %v1197_v58 }
  0xa2   : > { %1087 = vmatpush1.bf16.msra.mxu1 %v1730_v1 }
  0xa3   : > { %1140 = vmatpush1.bf16.msra.mxu0 %v1731_v2  ;;  %1088 = vmatprep.subr.bf16.mxu1 %v1732_v3 }
  0xa4   : > { %1141 = vmatprep.subr.bf16.mxu0 %v1734_v4  ;;  %v1199_v4 = vrot.slane (!%p1534_p5), %v1194_v59, %v1198_v63 }
  0xa6   : > { %1089 = vmatpush1.bf16.msra.mxu1 %v1736_v5  ;;  %v1203_v5 = vrot.slane (!%p1534_p5), %v1194_v59, %v1202_v0 }
  0xa7   : > { %1142 = vmatpush1.bf16.msra.mxu0 %v1737_v6  ;;  %1090 = vmatprep.subr.bf16.mxu1 %v1738_v7  ;;  %v1219_v6 = vrot.slane (!%p1534_p5), %v1214_v60, %v1198_v63  ;;  %v1223_v7 = vrot.slane (!%p1534_p5), %v1214_v60, %v1202_v0 }
  0xa8   : > { %1143 = vmatprep.subr.bf16.mxu0 %v1740_v8 }
  0xaa   : > { %1091 = vmatpush1.bf16.msra.mxu1 %v1742_v9 }
  0xab   : > { %1144 = vmatpush1.bf16.msra.mxu0 %v1743_v10 }
  0xad   : > { %1093 = vmatmul.mubr.bf16.vlgmr.msra.gmra.mrb[0].mxu1 %v1744_v11 }
  0xae   : > { %1146 = vmatmul.mubr.bf16.vlgmr.msra.gmra.mrb[0].mxu0 %v1747_v12  ;;  %1102 = vmatprep.mubr.bf16.mxu1 %v1750_v13 }
  0xaf   : > { %1155 = vmatprep.mubr.bf16.mxu0 %v1752_v14 }
  0xb5   : > { %1103 = vmatmul.mubr.bf16.gmra.mrb[4].mxu1 %v1754_v15 }
  0xb6   : > { %1156 = vmatmul.mubr.bf16.gmra.mrb[4].mxu0 %v1755_v16 }
 0x180   : > { %v1094_v17 = vpop.f32.mrb[0].mxu1 }
 0x181   : > { %v1147_v19 = vpop.f32.mrb[0].mxu0  ;;  %v1096_v21 = vpop.f32.mrb[1].mxu1 }
 0x182   : > { %v1148_v20 = vadd.f32 %v1147_v19, %v1094_v17  ;;  %v1149_v23 = vpop.f32.mrb[1].mxu0  ;;  %v1098_v25 = vpop.f32.mrb[2].mxu1 }
 0x183   : > { %v1150_v24 = vadd.f32 %v1149_v23, %v1096_v21  ;;  %v1151_v27 = vpop.f32.mrb[2].mxu0  ;;  %v1100_v30 = vpop.f32.mrb[3].mxu1 }
 0x184   : > { %v1166_v28 = vadd.f32 %v1148_v20, %v620_v18  ;;  %v1152_v29 = vadd.f32 %v1151_v27, %v1098_v25  ;;  %v1153_v32 = vpop.f32.mrb[3].mxu0 }
 0x185   : > { %v1167_v33 = vadd.f32 %v1150_v24, %v621_v22  ;;  %v1154_v34 = vadd.f32 %v1153_v32, %v1100_v30 }
 0x186   : > { %1174 = vst [vmem:[#allocation2] sm:$0xff] %v1166_v28  ;;  %v1168_v35 = vadd.f32 %v1152_v29, %v622_v26 }
 0x187   : > { %1175 = vst [vmem:[#allocation2 + $0x8] sm:$0xff] %v1167_v33  ;;  %v1169_v36 = vadd.f32 %v1154_v34, %v623_v31 }
 0x188   : > { %1176 = vst [vmem:[#allocation2 + $0x10] sm:$0xff] %v1168_v35  ;;  %v1104_v37 = vpop.f32.mrb[4].mxu1 }
 0x189   : > { %1177 = vst [vmem:[#allocation2 + $0x18] sm:$0xff] %v1169_v36  ;;  %v1157_v39 = vpop.f32.mrb[4].mxu0  ;;  %v1106_v41 = vpop.f32.mrb[5].mxu1 }
 0x18a   : > { %v1158_v40 = vadd.f32 %v1157_v39, %v1104_v37  ;;  %v1159_v43 = vpop.f32.mrb[5].mxu0  ;;  %v1108_v45 = vpop.f32.mrb[6].mxu1 }
 0x18b   : > { %v1160_v44 = vadd.f32 %v1159_v43, %v1106_v41  ;;  %v1161_v47 = vpop.f32.mrb[6].mxu0  ;;  %v1110_v50 = vpop.f32.mrb[7].mxu1  ;;  %1185 = sbr.rel (%p1534_p5) target bundleno = 418 (0x1a2), region = 105 }
 0x18c   : > { %v1170_v48 = vadd.f32 %v1158_v40, %v624_v38  ;;  %v1162_v49 = vadd.f32 %v1161_v47, %v1108_v45  ;;  %v1163_v52 = vpop.f32.mrb[7].mxu0 }
 0x18d   : > { %v1171_v53 = vadd.f32 %v1160_v44, %v625_v42  ;;  %v1164_v54 = vadd.f32 %v1163_v52, %v1110_v50  ;;  %v1186_v61 = vld [vmem:[#allocation2] sm:$0xff] (!%p1534_p5) }
 0x18e   : > { %1178 = vst [vmem:[#allocation2 + $0x20] sm:$0xff] %v1170_v48  ;;  %v1172_v55 = vadd.f32 %v1162_v49, %v626_v46  ;;  %v1187_v62 = vld [vmem:[#allocation2 + $0x8] sm:$0xff] (!%p1534_p5)  ;;  %v1206_v11 = vmul.f32 (!%p1534_p5), %v1199_v4, %v1186_v61 }
 0x18f   : > { %1179 = vst [vmem:[#allocation2 + $0x28] sm:$0xff] %v1171_v53  ;;  %v1173_v56 = vadd.f32 %v1164_v54, %v627_v51  ;;  %v1188_v1 = vld [vmem:[#allocation2 + $0x10] sm:$0xff] (!%p1534_p5)  ;;  %v1207_v12 = vmul.f32 (!%p1534_p5), %v1203_v5, %v1187_v62 }
 0x190   : > { %1180 = vst [vmem:[#allocation2 + $0x30] sm:$0xff] %v1172_v55  ;;  %v1189_v2 = vld [vmem:[#allocation2 + $0x18] sm:$0xff] (!%p1534_p5)  ;;  %v1208_v13 = vmul.f32 (!%p1534_p5), %v1199_v4, %v1188_v1  ;;  %v1226_v19 = vadd.f32 (!%p1534_p5), %v1219_v6, %v1206_v11 }
 0x191   : > { %1181 = vst [vmem:[#allocation2 + $0x38] sm:$0xff] %v1173_v56  ;;  %v1209_v14 = vmul.f32 (!%p1534_p5), %v1203_v5, %v1189_v2  ;;  %v1227_v20 = vadd.f32 (!%p1534_p5), %v1223_v7, %v1207_v12 }
 0x192   : > { %v1228_v21 = vadd.f32 %v1219_v6, %v1208_v13  ;;  %v1234_v27 = vmax.f32 %v1226_v19, 0.0 }
 0x193   : > { %v1229_v22 = vadd.f32 %v1223_v7, %v1209_v14  ;;  %v1235_v28 = vmax.f32 %v1227_v20, 0.0 }
 0x194   : > { %v1236_v29 = vmax.f32 %v1228_v21, 0.0 }
 0x195   : > { %v1190_v3 = vld [vmem:[#allocation2 + $0x20] sm:$0xff]  ;;  %v1237_v30 = vmax.f32 %v1229_v22, 0.0  ;;  %v1546_v35 = vpack.c.bf16 %v1235_v28, %v1234_v27 }
 0x196   : > { %v1191_v8 = vld [vmem:[#allocation2 + $0x28] sm:$0xff]  ;;  %v1210_v15 = vmul.f32 %v1199_v4, %v1190_v3 }
 0x197   : > { %v1192_v9 = vld [vmem:[#allocation2 + $0x30] sm:$0xff]  ;;  %v1211_v16 = vmul.f32 %v1203_v5, %v1191_v8  ;;  %v1547_v36 = vpack.c.bf16 %v1237_v30, %v1236_v29  ;;  %1266 = vst [vmem:[%s2136_s15] sm:$0xff] %v1546_v35 }
 0x198   : > { %v1193_v10 = vld [vmem:[#allocation2 + $0x38] sm:$0xff]  ;;  %v1212_v17 = vmul.f32 %v1199_v4, %v1192_v9  ;;  %v1230_v23 = vadd.f32 %v1219_v6, %v1210_v15 }
 0x199   : > { %v1213_v18 = vmul.f32 %v1203_v5, %v1193_v10  ;;  %v1231_v24 = vadd.f32 %v1223_v7, %v1211_v16  ;;  %1267 = vst [vmem:[%s2136_s15 + $0x8] sm:$0xff] %v1547_v36 }
 0x19a   : > { %v1232_v25 = vadd.f32 %v1219_v6, %v1212_v17  ;;  %v1238_v31 = vmax.f32 %v1230_v23, 0.0 }
 0x19b   : > { %v1233_v26 = vadd.f32 %v1223_v7, %v1213_v18  ;;  %v1239_v32 = vmax.f32 %v1231_v24, 0.0 }
 0x19c   : > { %v1240_v33 = vmax.f32 %v1232_v25, 0.0 }
 0x19d   : > { %v1241_v34 = vmax.f32 %v1233_v26, 0.0  ;;  %v1548_v37 = vpack.c.bf16 %v1239_v32, %v1238_v31 }
 0x19f   : > { %v1549_v38 = vpack.c.bf16 %v1241_v34, %v1240_v33  ;;  %1268 = vst [vmem:[%s2136_s15 + $0x10] sm:$0xff] %v1548_v37 }
 0x1a1   : > { %1269 = vst [vmem:[%s2136_s15 + $0x18] sm:$0xff] %v1549_v38 }
 0x1a2 PF: > { %1276 = sbr.rel (!%p1964_p12) target bundleno = 426 (0x1aa), region = 109  ;;  %s1550_s1 = sshll.u32 (%p1964_p12), %s1830_s22, 3  ;;  %v1316_v39 = vld [vmem:[%s2136_s15] sm:$0xff] (%p1964_p12)  ;;  %v1318_v40 = vld [vmem:[%s2136_s15 + $0x8] sm:$0xff] (%p1964_p12) }
 0x1a3   : > { %s1282_s29 = scalar_lea.vmem (%p1964_p12), %s2273_s4, %s1550_s1 }
 0x1a4   : > { %1317 = vst [vmem:[%s1282_s29] sm:$0xff] (%p1964_p12), %v1316_v39  ;;  %1319 = vst [vmem:[%s1282_s29 + $0x10] sm:$0xff] (%p1964_p12), %v1318_v40 }
 0x1a6   : > { %v1320_v41 = vld [vmem:[%s2136_s15 + $0x10] sm:$0xff] (%p1964_p12) }
 0x1a7   : > { %1321 = vst [vmem:[%s1282_s29 + $0x20] sm:$0xff] (%p1964_p12), %v1320_v41 }
 0x1a8   : > { %v1322_v42 = vld [vmem:[%s2136_s15 + $0x18] sm:$0xff] (%p1964_p12) }
 0x1a9   : > { %1323 = vst [vmem:[%s1282_s29 + $0x30] sm:$0xff] %v1322_v42 }
 0x1aa PF: > { %s14_s25 = sadd.s32 1, %s1842_s25   ;;  %s2285_s14 = sld [smem:[#allocation6_spill]] }
 0x1ab   : > { %p11_p6 = scmp.ge.s32.totalorder %s14_s25, 10   ;;  %s2286_s27 = sld [smem:[#allocation7_spill]] }
 0x1ac   : > { %s2287_s15 = smov %s1806_s16  ;;  %s2288_s16 = smov %s1962_s13 }
 0x1ad   : > { %s2289_s17 = smov %s1814_s18  ;;  %s2290_s18 = smov %s1959_s12 }
 0x1ae   : > { %s2291_s19 = smov %s1822_s20  ;;  %s2292_s20 = smov %s1945_s7 }
 0x1af   : > { %s2293_s21 = smov %s1834_s23  ;;  %s2294_s22 = smov %s1838_s24 }
 0x1b0   : > { %s2295_s23 = smov %s2285_s14  ;;  %13 = sbr.rel (!%p11_p6) target bundleno = 9 (0x9), region = 192 }
 0x1b1   : > { %s2296_s24 = smov %s2286_s27 }

</bundles_post_ra>
